<compile_context>
chip_gen: v7x
topology: tpu7x:2x2x1
jax: 0.10.0
libtpu: 0.0.40
codegen_flags: <defaults>
</compile_context>

<pallas_src>
import functools

import jax
import jax.numpy as jnp
from jax.experimental import pallas as pl
from jax.experimental.pallas import tpu as pltpu


def lp_decoder_kernel(sd_ref, w1_ref, b1_ref, w2_ref, b2_ref, w3_ref, b3_ref,
                      o_ref, *, enc_layers, feat_dim, out_c):
    """Fused decoder for one tile of edges.

    sd_ref : [TE, 2*L*D]  gathered src|dst endpoint features (bf16).
    Computes cross-layer products, lin1+ReLU, lin2+ReLU, lin3+sigmoid.
    All intermediates stay in vregs/VMEM; only the (TE, out_c) result is stored.
    Eval mode: dropout = identity.
    """
    ld = enc_layers * feat_dim
    sd = sd_ref[...]
    src = sd[:, :ld]
    dst = sd[:, ld:]

    # cross_layer: elementwise product of every (src layer i, dst layer j) pair,
    # concatenated along the feature (lane) axis -> [TE, L*L*D].
    pieces = []
    for i in range(enc_layers):
        si = src[:, i * feat_dim:(i + 1) * feat_dim]
        for j in range(enc_layers):
            dj = dst[:, j * feat_dim:(j + 1) * feat_dim]
            pieces.append(si * dj)
    x = jnp.concatenate(pieces, axis=-1)

    # lin1 + ReLU (bf16 MXU, f32 accumulation).  F.dropout(training=False) -> id.
    x = jnp.dot(x, w1_ref[...], preferred_element_type=jnp.float32) + b1_ref[...]
    x = jnp.maximum(x, 0.0).astype(w2_ref.dtype)

    # lin2 + ReLU
    x = jnp.dot(x, w2_ref[...], preferred_element_type=jnp.float32) + b2_ref[...]
    x = jnp.maximum(x, 0.0)

    # lin3 + sigmoid
    if out_c == 1:
        # Single output column (passed as a [1, hid2] row): VPU multiply +
        # cross-lane reduction instead of a 1/128-utilized MXU pass, and a
        # narrow (TE, 1) store instead of a 128-lane padded writeback.
        logits = jnp.sum(x * w3_ref[...], axis=-1, keepdims=True) + b3_ref[...]
    else:
        logits = jnp.dot(x, w3_ref[...],
                         preferred_element_type=jnp.float32) + b3_ref[...]
    o_ref[...] = jax.nn.sigmoid(logits).astype(o_ref.dtype)


def lp_decoder_forward(h_list, edge, weights, biases, *, tile_e=1024,
                       compute_dtype=jnp.bfloat16):
    """Mirrors LPDecoder_ogb_layer3.forward (eval mode).

    weights are stored [fan_in, fan_out] (torch nn.Linear weights would need a
    transpose before being passed here).
    """
    enc_layers = len(h_list)
    feat_dim = h_list[0].shape[1]
    cross_dim = enc_layers * enc_layers * feat_dim
    hid1 = weights[0].shape[1]
    hid2 = weights[1].shape[1]
    out_c = weights[2].shape[1]
    assert weights[0].shape[0] == cross_dim

    # --- setup glue (plain JAX): cast to compute dtype, gather the endpoint
    # features, and fuse src|dst into a single lane-dense array (one DMA stream
    # per tile instead of two half-width ones). ---
    h_c = [h.astype(compute_dtype) for h in h_list]
    sd = jnp.concatenate([h_c[l][edge[0]] for l in range(enc_layers)]
                         + [h_c[l][edge[1]] for l in range(enc_layers)],
                         axis=1)                      # [E, 2*L*D]

    e = sd.shape[0]
    tile_e = max(8, (tile_e // 8) * 8)
    # Keep >= 2 grid tiles where possible so the "parallel" axis can shard
    # across both TensorCores on v7x.
    while tile_e > 256 and e <= tile_e:
        tile_e //= 2
    e_pad = pl.cdiv(e, tile_e) * tile_e
    if e_pad != e:
        sd = jnp.pad(sd, ((0, e_pad - e), (0, 0)))

    w1 = weights[0].astype(compute_dtype)
    w2 = weights[1].astype(compute_dtype)
    b1 = biases[0].reshape(1, hid1).astype(jnp.float32)
    b2 = biases[1].reshape(1, hid2).astype(jnp.float32)
    b3 = biases[2].reshape(1, out_c).astype(jnp.float32)
    if out_c == 1:
        w3 = weights[2].reshape(1, hid2).astype(jnp.float32)  # column as a row
    else:
        w3 = weights[2].astype(jnp.float32)

    kernel = functools.partial(lp_decoder_kernel, enc_layers=enc_layers,
                               feat_dim=feat_dim, out_c=out_c)

    bytes_in = int(sd.size) * sd.dtype.itemsize
    bytes_w = sum(int(a.size) * a.dtype.itemsize for a in (w1, b1, w2, b2, w3, b3))
    bytes_out = e_pad * out_c * 4
    cost = pl.CostEstimate(
        flops=2 * e_pad * (cross_dim * hid1 + hid1 * hid2 + hid2 * out_c)
              + e_pad * cross_dim,
        transcendentals=e_pad * out_c,
        bytes_accessed=bytes_in + bytes_w + bytes_out)

    out = pl.pallas_call(
        kernel,
        out_shape=jax.ShapeDtypeStruct((e_pad, out_c), jnp.float32),
        grid=(e_pad // tile_e,),
        in_specs=[
            pl.BlockSpec((tile_e, 2 * enc_layers * feat_dim), lambda i: (i, 0)),
            pl.BlockSpec(w1.shape, lambda i: (0, 0)),   # W1 (resident)
            pl.BlockSpec(b1.shape, lambda i: (0, 0)),   # b1
            pl.BlockSpec(w2.shape, lambda i: (0, 0)),   # W2
            pl.BlockSpec(b2.shape, lambda i: (0, 0)),   # b2
            pl.BlockSpec(w3.shape, lambda i: (0, 0)),   # W3 (row if out_c==1)
            pl.BlockSpec(b3.shape, lambda i: (0, 0)),   # b3
        ],
        out_specs=pl.BlockSpec((tile_e, out_c), lambda i: (i, 0)),
        compiler_params=pltpu.CompilerParams(
            dimension_semantics=("parallel",),
            vmem_limit_bytes=32 * 1024 * 1024),
        cost_estimate=cost,
    )(sd, w1, b1, w2, b2, w3, b3)

    return out[:e]


def lp_decoder_reference(h_list, edge, weights, biases, *, emulate_bf16=False):
    """Pure-JAX reference matching the torch forward (eval mode).

    With emulate_bf16=True it applies the same bf16 roundings the kernel uses,
    allowing a tight numerical comparison.
    """
    cast = (lambda a: a.astype(jnp.bfloat16).astype(jnp.float32)) if emulate_bf16 \
        else (lambda a: a)
    hs = [cast(h) for h in h_list]
    src_x = [h[edge[0]] for h in hs]
    dst_x = [h[edge[1]] for h in hs]
    pieces = [xi * xj for xi in src_x for xj in dst_x]
    x = cast(jnp.concatenate(pieces, axis=1))
    x = jnp.maximum(x @ cast(weights[0]) + biases[0], 0.0)
    x = cast(x)
    x = jnp.maximum(x @ cast(weights[1]) + biases[1], 0.0)
    return jax.nn.sigmoid(x @ weights[2] + biases[2])


def init_params(key, in_dim, hid1, hid2, out_c):
    """torch.nn.Linear-style uniform init, weights stored as [fan_in, fan_out]."""
    dims = [(in_dim, hid1), (hid1, hid2), (hid2, out_c)]
    weights, biases = [], []
    for fi, fo in dims:
        key, wk, bk = jax.random.split(key, 3)
        bound = 1.0 / (fi ** 0.5)
        weights.append(jax.random.uniform(wk, (fi, fo), jnp.float32, -bound, bound))
        biases.append(jax.random.uniform(bk, (fo,), jnp.float32, -bound, bound))
    return weights, biases


if __name__ == "__main__":
    key = jax.random.PRNGKey(0)

    # small synthetic problem
    num_nodes = 64
    in_channels = 32           # per-encoder-layer feature dim
    encoder_layer = 2          # -> n_layer = 4, cross feature dim = 128 (lane dense)
    hid1, hid2, out_channels = 128, 64, 1
    num_edges = 2500           # multiple edge tiles + a padded remainder

    key, kh, kp, ke = jax.random.split(key, 4)
    h_list = [jax.random.normal(k, (num_nodes, in_channels), jnp.float32)
              for k in jax.random.split(kh, encoder_layer)]
    edge = jax.random.randint(ke, (2, num_edges), 0, num_nodes, dtype=jnp.int32)

    weights, biases = init_params(
        kp, encoder_layer * encoder_layer * in_channels, hid1, hid2, out_channels)

    out = lp_decoder_forward(h_list, edge, weights, biases, tile_e=1024)
    jax.block_until_ready(out)
    assert out.shape == (num_edges, out_channels), out.shape

    # Tight check vs. a reference that applies the same bf16 roundings.
    ref_bf = lp_decoder_reference(h_list, edge, weights, biases, emulate_bf16=True)
    err_bf = float(jnp.max(jnp.abs(out - ref_bf)))
    assert jnp.allclose(out, ref_bf, atol=1e-2, rtol=1e-2), err_bf

    # Looser sanity check vs. the pure-f32 torch-equivalent forward.
    ref_f32 = lp_decoder_reference(h_list, edge, weights, biases)
    err_f32 = float(jnp.max(jnp.abs(out - ref_f32)))
    assert jnp.allclose(out, ref_f32, atol=5e-2, rtol=5e-2), err_f32

    print("KERNEL_OK")
</pallas_src>

<mosaic_0001>
module attributes {stable_mosaic.version = 11 : i64} {
  func.func @lp_decoder_kernel(%arg0: i32, %arg1: memref<1024x128xbf16, #tpu.memory_space<vmem>>, %arg2: memref<128x128xbf16, #tpu.memory_space<vmem>>, %arg3: memref<1x128xf32, #tpu.memory_space<vmem>>, %arg4: memref<128x64xbf16, #tpu.memory_space<vmem>>, %arg5: memref<1x64xf32, #tpu.memory_space<vmem>>, %arg6: memref<1x64xf32, #tpu.memory_space<vmem>>, %arg7: memref<1x1xf32, #tpu.memory_space<vmem>>, %arg8: memref<1024x1xf32, #tpu.memory_space<vmem>>) attributes {dimension_semantics = [#tpu.dimension_semantics<parallel>], iteration_bounds = array<i64: 3>, scalar_prefetch = 0 : i64, scratch_operands = 0 : i64, tpu.core_type = #tpu.core_type<tc>, window_params = [{transform_indices = @transform_0, window_bounds = array<i64: 1024, 128>}, {pipeline_mode = #tpu.pipeline_mode<synchronous>, transform_indices = @transform_1, window_bounds = array<i64: 128, 128>}, {pipeline_mode = #tpu.pipeline_mode<synchronous>, transform_indices = @transform_2, window_bounds = array<i64: 1, 128>}, {pipeline_mode = #tpu.pipeline_mode<synchronous>, transform_indices = @transform_3, window_bounds = array<i64: 128, 64>}, {pipeline_mode = #tpu.pipeline_mode<synchronous>, transform_indices = @transform_4, window_bounds = array<i64: 1, 64>}, {pipeline_mode = #tpu.pipeline_mode<synchronous>, transform_indices = @transform_5, window_bounds = array<i64: 1, 64>}, {pipeline_mode = #tpu.pipeline_mode<synchronous>, transform_indices = @transform_6, window_bounds = array<i64: 1, 1>}, {transform_indices = @transform_7, window_bounds = array<i64: 1024, 1>}]} {
    %c0 = arith.constant 0 : index
    %c0_0 = arith.constant 0 : index
    %0 = vector.load %arg1[%c0, %c0_0] : memref<1024x128xbf16, #tpu.memory_space<vmem>>, vector<1024x128xbf16>
    %1 = vector.extract_strided_slice %0 {offsets = [0, 0], sizes = [1024, 64], strides = [1, 1]} : vector<1024x128xbf16> to vector<1024x64xbf16>
    %2 = vector.extract_strided_slice %0 {offsets = [0, 64], sizes = [1024, 64], strides = [1, 1]} : vector<1024x128xbf16> to vector<1024x64xbf16>
    %3 = vector.extract_strided_slice %1 {offsets = [0, 0], sizes = [1024, 32], strides = [1, 1]} : vector<1024x64xbf16> to vector<1024x32xbf16>
    %4 = vector.extract_strided_slice %2 {offsets = [0, 0], sizes = [1024, 32], strides = [1, 1]} : vector<1024x64xbf16> to vector<1024x32xbf16>
    %5 = arith.mulf %3, %4 : vector<1024x32xbf16>
    %6 = vector.extract_strided_slice %2 {offsets = [0, 32], sizes = [1024, 32], strides = [1, 1]} : vector<1024x64xbf16> to vector<1024x32xbf16>
    %7 = arith.mulf %3, %6 : vector<1024x32xbf16>
    %8 = vector.extract_strided_slice %1 {offsets = [0, 32], sizes = [1024, 32], strides = [1, 1]} : vector<1024x64xbf16> to vector<1024x32xbf16>
    %9 = vector.extract_strided_slice %2 {offsets = [0, 0], sizes = [1024, 32], strides = [1, 1]} : vector<1024x64xbf16> to vector<1024x32xbf16>
    %10 = arith.mulf %8, %9 : vector<1024x32xbf16>
    %11 = vector.extract_strided_slice %2 {offsets = [0, 32], sizes = [1024, 32], strides = [1, 1]} : vector<1024x64xbf16> to vector<1024x32xbf16>
    %12 = arith.mulf %8, %11 : vector<1024x32xbf16>
    %13 = tpu.concatenate %5, %7, %10, %12 in 1 : vector<1024x32xbf16>, vector<1024x32xbf16>, vector<1024x32xbf16>, vector<1024x32xbf16> -> vector<1024x128xbf16>
    %c0_1 = arith.constant 0 : index
    %c0_2 = arith.constant 0 : index
    %14 = vector.load %arg2[%c0_1, %c0_2] : memref<128x128xbf16, #tpu.memory_space<vmem>>, vector<128x128xbf16>
    %cst = arith.constant dense<0.000000e+00> : vector<1024x128xf32>
    %15 = tpu.matmul %13, %14, %cst {dimension_numbers = #tpu.dot_dimension_numbers<[1], [0], [0], [1], [0, 0, 1, 1], [], []>} : vector<1024x128xbf16>, vector<128x128xbf16>, vector<1024x128xf32> -> vector<1024x128xf32>
    %c0_3 = arith.constant 0 : index
    %c0_4 = arith.constant 0 : index
    %16 = vector.load %arg3[%c0_3, %c0_4] : memref<1x128xf32, #tpu.memory_space<vmem>>, vector<1x128xf32>
    %17 = vector.broadcast %16 : vector<1x128xf32> to vector<1024x128xf32>
    %18 = arith.addf %15, %17 : vector<1024x128xf32>
    %cst_5 = arith.constant 0.000000e+00 : f32
    %19 = vector.broadcast %cst_5 : f32 to vector<1024x128xf32>
    %20 = arith.maximumf %18, %19 : vector<1024x128xf32>
    %21 = arith.truncf %20 : vector<1024x128xf32> to vector<1024x128xbf16>
    %c0_6 = arith.constant 0 : index
    %c0_7 = arith.constant 0 : index
    %22 = vector.load %arg4[%c0_6, %c0_7] : memref<128x64xbf16, #tpu.memory_space<vmem>>, vector<128x64xbf16>
    %cst_8 = arith.constant dense<0.000000e+00> : vector<1024x64xf32>
    %23 = tpu.matmul %21, %22, %cst_8 {dimension_numbers = #tpu.dot_dimension_numbers<[1], [0], [0], [1], [0, 0, 1, 1], [], []>} : vector<1024x128xbf16>, vector<128x64xbf16>, vector<1024x64xf32> -> vector<1024x64xf32>
    %c0_9 = arith.constant 0 : index
    %c0_10 = arith.constant 0 : index
    %24 = vector.load %arg5[%c0_9, %c0_10] : memref<1x64xf32, #tpu.memory_space<vmem>>, vector<1x64xf32>
    %25 = vector.broadcast %24 : vector<1x64xf32> to vector<1024x64xf32>
    %26 = arith.addf %23, %25 : vector<1024x64xf32>
    %cst_11 = arith.constant 0.000000e+00 : f32
    %27 = vector.broadcast %cst_11 : f32 to vector<1024x64xf32>
    %28 = arith.maximumf %26, %27 : vector<1024x64xf32>
    %c0_12 = arith.constant 0 : index
    %c0_13 = arith.constant 0 : index
    %29 = vector.load %arg6[%c0_12, %c0_13] : memref<1x64xf32, #tpu.memory_space<vmem>>, vector<1x64xf32>
    %30 = vector.broadcast %29 : vector<1x64xf32> to vector<1024x64xf32>
    %31 = arith.mulf %28, %30 : vector<1024x64xf32>
    %cst_14 = arith.constant dense<0.000000e+00> : vector<1024xf32>
    %32 = vector.multi_reduction <add>, %31, %cst_14 [1] : vector<1024x64xf32> to vector<1024xf32>
    %33 = vector.shape_cast %32 : vector<1024xf32> to vector<1024x1xf32>
    %c0_15 = arith.constant 0 : index
    %c0_16 = arith.constant 0 : index
    %34 = vector.load %arg7[%c0_15, %c0_16] : memref<1x1xf32, #tpu.memory_space<vmem>>, vector<1x1xf32>
    %35 = vector.broadcast %34 : vector<1x1xf32> to vector<1024x1xf32>
    %36 = arith.addf %33, %35 : vector<1024x1xf32>
    %37 = arith.negf %36 : vector<1024x1xf32>
    %38 = math.exp %37 : vector<1024x1xf32>
    %cst_17 = arith.constant 1.000000e+00 : f32
    %39 = vector.broadcast %cst_17 : f32 to vector<1024x1xf32>
    %40 = arith.addf %39, %38 : vector<1024x1xf32>
    %41 = arith.divf %39, %40 : vector<1024x1xf32>
    %c0_18 = arith.constant 0 : index
    %c0_19 = arith.constant 0 : index
    %42 = vector.load %arg8[%c0_18, %c0_19] : memref<1024x1xf32, #tpu.memory_space<vmem>>, vector<1024x1xf32>
    tpu.vector_store %arg8[%c0_18, %c0_19], %41 {strides = array<i32>} : memref<1024x1xf32, #tpu.memory_space<vmem>>, vector<1024x1xf32>,
    return
  }
  func.func @transform_0(%arg0: i32) -> (i32, i32) {
    %c0_i32 = arith.constant 0 : i32
    %c0_i32_0 = arith.constant 0 : i32
    return %arg0, %c0_i32 : i32, i32
  }
  func.func @transform_1(%arg0: i32) -> (i32, i32) {
    %c0_i32 = arith.constant 0 : i32
    %c0_i32_0 = arith.constant 0 : i32
    %c0_i32_1 = arith.constant 0 : i32
    return %c0_i32, %c0_i32_0 : i32, i32
  }
  func.func @transform_2(%arg0: i32) -> (i32, i32) {
    %c0_i32 = arith.constant 0 : i32
    %c0_i32_0 = arith.constant 0 : i32
    %c0_i32_1 = arith.constant 0 : i32
    return %c0_i32, %c0_i32_0 : i32, i32
  }
  func.func @transform_3(%arg0: i32) -> (i32, i32) {
    %c0_i32 = arith.constant 0 : i32
    %c0_i32_0 = arith.constant 0 : i32
    %c0_i32_1 = arith.constant 0 : i32
    return %c0_i32, %c0_i32_0 : i32, i32
  }
  func.func @transform_4(%arg0: i32) -> (i32, i32) {
    %c0_i32 = arith.constant 0 : i32
    %c0_i32_0 = arith.constant 0 : i32
    %c0_i32_1 = arith.constant 0 : i32
    return %c0_i32, %c0_i32_0 : i32, i32
  }
  func.func @transform_5(%arg0: i32) -> (i32, i32) {
    %c0_i32 = arith.constant 0 : i32
    %c0_i32_0 = arith.constant 0 : i32
    %c0_i32_1 = arith.constant 0 : i32
    return %c0_i32, %c0_i32_0 : i32, i32
  }
  func.func @transform_6(%arg0: i32) -> (i32, i32) {
    %c0_i32 = arith.constant 0 : i32
    %c0_i32_0 = arith.constant 0 : i32
    %c0_i32_1 = arith.constant 0 : i32
    return %c0_i32, %c0_i32_0 : i32, i32
  }
  func.func @transform_7(%arg0: i32) -> (i32, i32) {
    %c0_i32 = arith.constant 0 : i32
    %c0_i32_0 = arith.constant 0 : i32
    return %arg0, %c0_i32 : i32, i32
  }
}

</mosaic_0001>

<bundles_post_ra>
// kernel: tpu_custom_call.1
= control target key start
LH: loop header
LB: loop body
LE: loop exit
PB: predicated region body
PF: predicated region fallthrough
CT: control target
= control target key end

     0   :  { %s13817_s0 = inlined_call_operand.hbm [shape: bf16[3072,128], index: 0, kind: input, shape index: {}]   ;;  %s13818_s1 = inlined_call_operand.hbm [shape: bf16[128,128], index: 1, kind: input, shape index: {}]   ;;  %s13819_s2 = inlined_call_operand.hbm [shape: f32[1,128], index: 2, kind: input, shape index: {}]   ;;  %s13820_s3 = inlined_call_operand.vmem [shape: bf16[128,64], index: 3, kind: input, shape index: {}]   ;;  %s13821_s4 = inlined_call_operand.hbm [shape: f32[1,64], index: 4, kind: input, shape index: {}]   ;;  %s13822_s5 = inlined_call_operand.hbm [shape: f32[1,64], index: 5, kind: input, shape index: {}]   ;;  %s13823_s6 = inlined_call_operand.<no memory space> [shape: f32[1,1], index: 6, kind: input, shape index: {}]   ;;  %s13824_s7 = inlined_call_operand.vmem [shape: f32[3072,1], index: 7, kind: output, shape index: {}]  }
   0x1   :  { %v12_v0 = vstv %s13823_s6 }
   0x2   :  { %13 = vst [vmem:[#allocation2] sm:$0x1] %v12_v0 }
   0x3   :  { %14 = vsyncpa [#allocation4], 0 }
   0x4   :  { %16 = vsyncpa [#allocation4 + $0x1], 0 }
   0x5   :  { %17 = vsyncpa [#allocation6], 0 }
   0x6   :  { %18 = vsyncpa [#allocation9], 0  ;;  %s9001_s26 = smov 0   ;;  %s9003_s27 = smov 0  }
   0x7   :  { %s9005_s28 = smov 0   ;;  %s9007_s29 = smov 0  }
   0x8 LB: > { %s7215_s6 = sadd.s32 4294967295, %s8946_s29   ;;  %p44_p0 = scmp.ne.s32.totalorder %s8938_s27, %s8934_s26  ;;  %s8946_s29 = sphi %s9007_s29, %s14596_s29   ;;  %s8942_s28 = sphi %s9005_s28, %s14595_s28   ;;  %s8938_s27 = sphi %s9003_s27, %s14594_s27   ;;  %s8934_s26 = sphi %s9001_s26, %s14593_s26  }
   0x9   : > { %p9023_p1 = scmp.eq.s32.totalorder %s7215_s6, 0  ;;  %p7217_p2 = scmp.ge.s32.totalorder %s8946_s29, 1 }
   0xa   : > { %p207_p3 = scmp.lt.s32.totalorder %s8946_s29, 4  ;;  %s8948_s10 = smov [#allocation5]  }
   0xb   : > { %s13944_s30 = scalar_select %p9023_p1, 1, 0 }
   0xc   : > { %p9031_p4 = por %p9023_p1, %p44_p0  ;;  %p9035_p5 = pnand %p7217_p2, %p207_p3 }
   0xd   : > { %s219_s11 = sshll.u32 %s8948_s10, 4  ;;  %s8949_s13 = smov [#allocation8]   ;;  %s9039_s11 = int_to_ptr.vmem [resolvable:$true] %s219_s11 }
   0xe   : > { %s13945_s8 = scalar_select %p9031_p4, 1, 0 }
   0xf   : > { %s13946_s9 = scalar_select %p9035_p5, 1, 0 }
  0x10   : > { %p8027_p6 = pneg %p9035_p5  ;;  %s247_s14 = sshll.u32 %s8949_s13, 4  ;;  %s9049_s14 = int_to_ptr.vmem [resolvable:$true] %s247_s14 }
  0x11   : > { %s8950_s15 = smov [#allocation7]   ;;  %s8762_s19 = scalar_lea.hbm %s13818_s1, 1024 }
  0x12   : > { %p9045_p7 = pnand %p8027_p6, %p9023_p1  ;;  %s9051_s16 = sshll.u32 %s8950_s15, 4  ;;  %s234_s16 = int_to_ptr.vmem [resolvable:$true] %s9051_s16 }
  0x13   : > { %p8763_p8 = scmp.ne.s32.totalorder %s13818_s1, %s8762_s19  ;;  %p8769_p12 = scmp.lt.u32.totalorder %s8762_s19, %s13818_s1 }
  0x14   : > { %p9061_p9 = pneg %p9045_p7 }
  0x16   : > { %p8765_p10 = pnand %p9061_p9, %p8763_p8 }
  0x18   : > { %p8766_p11 = pneg %p8765_p10 }
  0x1a   : > { %p8771_p13 = pnand %p8769_p12, %p8766_p11 }
  0x1c   : > { %8774 = shalt.err (!%p8771_p13)
}
  0x1d   : > { %s8775_s25 = scalar_lea.vmem %s9039_s11, 1024  ;;  %p8783_p6 = scmp.lt.s32.totalorder %s9039_s11, %s9039_s11 }
  0x1e   : > { %p8776_p0 = scmp.ne.s32.totalorder %s9039_s11, %s8775_s25  ;;  %p8784_p1 = scmp.lt.s32.totalorder %s8775_s25, %s8775_s25 }
  0x20   : > { %p8778_p2 = pnand %p8776_p0, %p9061_p9  ;;  %p8785_p8 = por %p8784_p1, %p8783_p6 }
  0x22   : > { %p8779_p3 = pneg %p8778_p2 }
  0x24   : > { %p8786_p10 = pnand %p8785_p8, %p8779_p3 }
  0x26   : > { %8789 = shalt.err (!%p8786_p10)
}
  0x27   : > { %s8951_s26 = smov 64   ;;  %s8952_s10 = smov 4  }
  0x28   : > { %8030 = dma.hbm_to_vmem [thread:$0]  (!%p9045_p7), %s13818_s1, 1024, %s9039_s11, [#allocation6], %s8951_s26, %s8951_s26, %s8952_s10  }
  0x29   : > { %s8790_s19 = scalar_lea.hbm %s13821_s4, 16 }
  0x2a   : > { %p8791_p1 = scmp.ne.s32.totalorder %s13821_s4, %s8790_s19  ;;  %p8797_p13 = scmp.lt.u32.totalorder %s8790_s19, %s13821_s4 }
  0x2c   : > { %p8793_p11 = pnand %p8791_p1, %p9061_p9 }
  0x2e   : > { %p8794_p12 = pneg %p8793_p11 }
  0x30   : > { %p8799_p0 = pnand %p8797_p13, %p8794_p12 }
  0x32   : > { %8802 = shalt.err (!%p8799_p0)
}
  0x33   : > { %s8803_s11 = scalar_lea.vmem %s9049_s14, 16  ;;  %s8810_s25 = scalar_lea.vmem %s9049_s14, 32 }
  0x34   : > { %p8804_p2 = scmp.ne.s32.totalorder %s9049_s14, %s8803_s11  ;;  %p8811_p8 = scmp.lt.s32.totalorder %s9049_s14, %s9049_s14 }
  0x35   : > { %p8812_p10 = scmp.lt.s32.totalorder %s8810_s25, %s8803_s11 }
  0x36   : > { %p8806_p3 = pnand %p8804_p2, %p9061_p9 }
  0x37   : > { %p8813_p1 = por %p8812_p10, %p8811_p8 }
  0x38   : > { %p8807_p6 = pneg %p8806_p3 }
  0x3a   : > { %p8814_p11 = pnand %p8813_p1, %p8807_p6 }
  0x3c   : > { %8817 = shalt.err (!%p8814_p11)
}
  0x3d   : > { %8036 = dma.hbm_to_vmem [thread:$0]  (!%p9045_p7), %s13821_s4, 16, %s9049_s14, [#allocation9]  }
  0x3e   : > { %s8818_s19 = scalar_lea.hbm %s13819_s2, 16 }
  0x3f   : > { %p8819_p12 = scmp.ne.s32.totalorder %s13819_s2, %s8818_s19  ;;  %p8825_p2 = scmp.lt.u32.totalorder %s8818_s19, %s13819_s2 }
  0x41   : > { %p8821_p13 = pnand %p8819_p12, %p9061_p9 }
  0x43   : > { %p8822_p0 = pneg %p8821_p13 }
  0x45   : > { %p8827_p3 = pnand %p8825_p2, %p8822_p0 }
  0x47   : > { %8830 = shalt.err (!%p8827_p3)
}
  0x48   : > { %s8831_s11 = scalar_lea.vmem %s234_s16, 16  ;;  %s8838_s14 = scalar_lea.vmem %s234_s16, 32 }
  0x49   : > { %p8832_p6 = scmp.ne.s32.totalorder %s234_s16, %s8831_s11  ;;  %p8839_p1 = scmp.lt.s32.totalorder %s234_s16, %s234_s16 }
  0x4a   : > { %p8840_p11 = scmp.lt.s32.totalorder %s8838_s14, %s8831_s11 }
  0x4b   : > { %p8834_p8 = pnand %p8832_p6, %p9061_p9 }
  0x4c   : > { %p8841_p4 = por %p8840_p11, %p8839_p1 }
  0x4d   : > { %p8835_p10 = pneg %p8834_p8 }
  0x4f   : > { %p8842_p5 = pnand %p8841_p4, %p8835_p10 }
  0x51   : > { %8845 = shalt.err (!%p8842_p5)
}
  0x52   : > { %8033 = dma.hbm_to_vmem [thread:$0]  (!%p9045_p7), %s13819_s2, 16, %s234_s16, [#allocation6]  }
  0x53   : > { %s8953_s15 = smov [#allocation10]   ;;  %s8846_s20 = scalar_lea.hbm %s13822_s5, 16 }
  0x54   : > { %s258_s17 = sshll.u32 %s8953_s15, 4  ;;  %p8847_p12 = scmp.ne.s32.totalorder %s13822_s5, %s8846_s20  ;;  %s259_s17 = int_to_ptr.vmem [resolvable:$true] %s258_s17 }
  0x55   : > { %p8853_p13 = scmp.lt.u32.totalorder %s8846_s20, %s13822_s5 }
  0x56   : > { %p8849_p4 = pnand %p8847_p12, %p9061_p9 }
  0x58   : > { %p8850_p5 = pneg %p8849_p4 }
  0x5a   : > { %p8855_p0 = pnand %p8853_p13, %p8850_p5 }
  0x5c   : > { %8858 = shalt.err (!%p8855_p0)
}
  0x5d   : > { %s8859_s16 = scalar_lea.vmem %s259_s17, 16  ;;  %s8866_s14 = scalar_lea.vmem %s259_s17, 32 }
  0x5e   : > { %p8860_p2 = scmp.ne.s32.totalorder %s259_s17, %s8859_s16  ;;  %p8867_p8 = scmp.lt.s32.totalorder %s259_s17, %s259_s17 }
  0x5f   : > { %p8868_p10 = scmp.lt.s32.totalorder %s8866_s14, %s8859_s16 }
  0x60   : > { %p8862_p3 = pnand %p8860_p2, %p9061_p9 }
  0x61   : > { %p8869_p1 = por %p8868_p10, %p8867_p8 }
  0x62   : > { %p8863_p6 = pneg %p8862_p3 }
  0x64   : > { %p8870_p11 = pnand %p8869_p1, %p8863_p6 }
  0x66   : > { %8873 = shalt.err (!%p8870_p11)
}
  0x67   : > { %8039 = dma.hbm_to_vmem [thread:$0]  (!%p9045_p7), %s13822_s5, 16, %s259_s17, [#allocation9]  }
  0x68   : > { %s9147_s22 = sadd.s32 1, %s8946_s29   ;;  %s31_s15 = sadd.s32 1, %s8942_s28 }
  0x69   : > { %s28_s18 = ssub.s32 %s8946_s29, %s9147_s22  ;;  %p38_p9 = scmp.ne.s32.totalorder %s8942_s28, %s8938_s27 }
  0x6a   : > { %p29_p12 = scmp.eq.s32.totalorder %s28_s18, 0  ;;  %p39_p4 = scmp.eq.s32.totalorder %s8946_s29, 0 }
  0x6b   : > { %p8048_p5 = scmp.lt.s32.totalorder %s8946_s29, 3  ;;  %s272_s12 = sand.u32 1, %s8942_s28  }
  0x6c   : > { %s9158_s19 = scalar_select %p29_p12, %s8942_s28, %s31_s15  }
  0x6d   : > { %p40_p13 = por %p39_p4, %p38_p9  ;;  %s7223_s20 = sshll.u32 %s272_s12, 9 }
  0x6e   : > { %s7576_s21 = sshll.u32 %s8946_s29, 13  ;;  %s276_s17 = scalar_lea.vmem [#allocation3], %s7223_s20 }
  0x6f   : > { %s9164_s11 = scalar_lea.hbm %s13817_s0, %s7576_s21  ;;  %s283_s16 = sshll.u32 %s276_s17, 4  ;;  %s9170_s16 = int_to_ptr.vmem [resolvable:$true] %s283_s16 }
  0x70   : > { %p9166_p7 = pnand %p8048_p5, %p40_p13  ;;  %s9172_s25 = scalar_lea.sflag [#allocation4], %s272_s12 }
  0x71   : > { %s8874_s13 = scalar_lea.hbm %s9164_s11, 8192  ;;  %s8879_s20 = scalar_lea.hbm %s13817_s0, 24576 }
  0x72   : > { %p8875_p0 = scmp.ne.s32.totalorder %s9164_s11, %s8874_s13  ;;  %p8876_p2 = pneg %p9166_p7 }
  0x73   : > { %p8880_p8 = scmp.lt.u32.totalorder %s9164_s11, %s13817_s0  ;;  %p8881_p10 = scmp.lt.u32.totalorder %s8879_s20, %s8874_s13 }
  0x74   : > { %p8877_p3 = pnand %p8876_p2, %p8875_p0  ;;  %p8883_p11 = scmp.lt.u32.totalorder %s8874_s13, %s9164_s11 }
  0x75   : > { %p8882_p1 = por %p8881_p10, %p8880_p8 }
  0x76   : > { %p8878_p6 = pneg %p8877_p3 }
  0x77   : > { %p8884_p9 = por %p8883_p11, %p8882_p1 }
  0x79   : > { %p8885_p12 = pnand %p8884_p9, %p8878_p6 }
  0x7b   : > { %8888 = shalt.err (!%p8885_p12)
}
  0x7c   : > { %s8889_s12 = scalar_lea.vmem %s9170_s16, 8192  ;;  %s8954_s24 = smov [#allocation3]  }
  0x7d   : > { %p8890_p4 = scmp.ne.s32.totalorder %s9170_s16, %s8889_s12  ;;  %s8894_s17 = sshll.u32 %s8954_s24, 4  ;;  %s8895_s17 = int_to_ptr.vmem [resolvable:$false] %s8894_s17 }
  0x7e   : > { %s8896_s15 = scalar_lea.vmem %s8895_s17, 16384  ;;  %p8897_p0 = scmp.lt.s32.totalorder %s9170_s16, %s8895_s17 }
  0x7f   : > { %p8892_p5 = pnand %p8890_p4, %p8876_p2  ;;  %p8898_p3 = scmp.lt.s32.totalorder %s8896_s15, %s8889_s12 }
  0x81   : > { %p8893_p13 = pneg %p8892_p5  ;;  %p8899_p8 = por %p8898_p3, %p8897_p0 }
  0x83   : > { %p8900_p10 = pnand %p8899_p8, %p8893_p13 }
  0x85   : > { %8903 = shalt.err (!%p8900_p10)
}
  0x86   : > { %8043 = dma.hbm_to_vmem [thread:$0]  (!%p9166_p7), %s9164_s11, 8192, %s9170_s16, %s9172_s25, %s8951_s26, %s8951_s26, %s8952_s10  }
  0x87   : > { %p13950_p2 = scmp.ne.s32.totalorder %s13946_s9, 0 }
  0x89   : > { %295 = sbr.rel (%p13950_p2) target bundleno = 2123 (0x84b), region = 48 }
  0x90   : > { %s297_s13 = sand.u32 1, %s8938_s27   ;;  %p13951_p6 = scmp.ne.s32.totalorder %s13945_s8, 0 }
  0x91   : > { %s7227_s18 = sshll.u32 %s297_s13, 9  ;;  %s298_s20 = scalar_lea.sflag [#allocation4], %s297_s13 }
  0x92   : > { %s9206_s21 = scalar_lea.vmem [#allocation3], %s7227_s18 }
  0x93   : > { %8921 = dma.done.wait (%p13951_p6), %s298_s20, 8192  }
  0x94   : > { %8923 = vsyncadd (%p13951_p6), %s298_s20, 4294959104  ;;  %p13952_p1 = scmp.ne.s32.totalorder %s13944_s30, 0 }
  0x96   : > { %8925 = dma.done.wait (%p13952_p1), [#allocation6], 1040  }
  0x97   : > { %8927 = vsyncadd (%p13952_p1), [#allocation6], 4294966256 }
  0x98   : > { %8929 = dma.done.wait (%p13952_p1), [#allocation9], 32  }
  0x99   : > { %8931 = vsyncadd (%p13952_p1), [#allocation9], 4294967264  ;;  %v9221_v1 = vld [vmem:[%s9206_s21 + $0x8] sm:$0xf]  ;;  %v9224_v2 = vld [vmem:[%s9206_s21] sm:$0xf] }
  0x9a   : > { %s8955_s8 = smov 64   ;;  %v9231_v3 = vld [vmem:[%s9206_s21 + $0xc] sm:$0xf]  ;;  %v9234_v4 = vld [vmem:[%s9206_s21 + $0x4] sm:$0xf]  ;;  %s8956_s30 = smov 32  }
  0x9b   : > { %616 = vrot.lane.b32.xlu1 %v9221_v1, %s8955_s8  ;;  %612 = vrot.lane.b32.xlu0 %v9224_v2, %s8955_s8  ;;  %v9241_v5 = vld [vmem:[%s9206_s21 + $0x14] sm:$0xf]  ;;  %v9244_v6 = vld [vmem:[%s9206_s21 + $0x10] sm:$0xf]  ;;  %s8957_s9 = smov 96   ;;  %vm3492_vm0 = vcmask 261120  }
  0x9c   : > { %v9251_v7 = vld [vmem:[%s9206_s21 + $0x1c] sm:$0xf]  ;;  %v9254_v8 = vld [vmem:[%s9206_s21 + $0x18] sm:$0xf]  ;;  %v9261_v9 = vld [vmem:[%s9206_s21 + $0x24] sm:$0xf] }
  0x9d   : > { %v9264_v10 = vld [vmem:[%s9206_s21 + $0x20] sm:$0xf]  ;;  %v9271_v11 = vld [vmem:[%s9206_s21 + $0x2c] sm:$0xf]  ;;  %v9274_v12 = vld [vmem:[%s9206_s21 + $0x28] sm:$0xf] }
  0x9e   : > { %v9281_v13 = vld [vmem:[%s9206_s21 + $0x34] sm:$0xf]  ;;  %v9284_v14 = vld [vmem:[%s9206_s21 + $0x30] sm:$0xf]  ;;  %v9291_v15 = vld [vmem:[%s9206_s21 + $0x3c] sm:$0xf] }
  0x9f   : > { %618 = vrot.lane.b32.xlu1 %v9231_v3, %s8955_s8  ;;  %614 = vrot.lane.b32.xlu0 %v9234_v4, %s8955_s8  ;;  %v9294_v16 = vld [vmem:[%s9206_s21 + $0x38] sm:$0xf]  ;;  %v9297_v17 = vld [vmem:[%s9206_s21 + $0x44] sm:$0xf]  ;;  %vm3685_vm1 = vcmask 523264   ;;  %vm3814_vm2 = vcmask 785408  }
  0xa0   : > { %v9300_v18 = vld [vmem:[%s9206_s21 + $0x40] sm:$0xf]  ;;  %v9307_v19 = vld [vmem:[%s9206_s21 + $0x4c] sm:$0xf]  ;;  %v9310_v20 = vld [vmem:[%s9206_s21 + $0x48] sm:$0xf] }
  0xa1   : > { %v9317_v21 = vld [vmem:[%s9206_s21 + $0x54] sm:$0xf]  ;;  %v9320_v22 = vld [vmem:[%s9206_s21 + $0x50] sm:$0xf]  ;;  %v9331_v23 = vld [vmem:[%s9206_s21 + $0x5c] sm:$0xf] }
  0xa2   : > { %v9334_v24 = vld [vmem:[%s9206_s21 + $0x58] sm:$0xf]  ;;  %v9341_v25 = vld [vmem:[%s9206_s21 + $0x64] sm:$0xf]  ;;  %v9344_v26 = vld [vmem:[%s9206_s21 + $0x60] sm:$0xf] }
  0xa3   : > { %622 = vrot.lane.b32.xlu1 %v9241_v5, %s8955_s8  ;;  %620 = vrot.lane.b32.xlu0 %v9244_v6, %s8955_s8  ;;  %v9351_v27 = vld [vmem:[%s9206_s21 + $0x6c] sm:$0xf]  ;;  %v9354_v28 = vld [vmem:[%s9206_s21 + $0x68] sm:$0xf]  ;;  %vm6981_vm3 = vcmask 7168  }
  0xa4   : > { %v9361_v29 = vld [vmem:[%s9206_s21 + $0x74] sm:$0xf]  ;;  %v9364_v30 = vld [vmem:[%s9206_s21 + $0x70] sm:$0xf]  ;;  %v9371_v31 = vld [vmem:[%s9206_s21 + $0x7c] sm:$0xf] }
  0xa5   : > { %v9374_v32 = vld [vmem:[%s9206_s21 + $0x78] sm:$0xf]  ;;  %v9381_v33 = vld [vmem:[%s9206_s21 + $0x84] sm:$0xf]  ;;  %v9384_v34 = vld [vmem:[%s9206_s21 + $0x80] sm:$0xf] }
  0xa6   : > { %v9391_v35 = vld [vmem:[%s9206_s21 + $0x8c] sm:$0xf]  ;;  %v9394_v36 = vld [vmem:[%s9206_s21 + $0x88] sm:$0xf]  ;;  %v9401_v37 = vld [vmem:[%s9206_s21 + $0x94] sm:$0xf] }
  0xa7   : > { %626 = vrot.lane.b32.xlu1 %v9251_v7, %s8955_s8  ;;  %624 = vrot.lane.b32.xlu0 %v9254_v8, %s8955_s8  ;;  %v9404_v38 = vld [vmem:[%s9206_s21 + $0x90] sm:$0xf]  ;;  %v9411_v39 = vld [vmem:[%s9206_s21 + $0x9c] sm:$0xf] }
  0xa8   : > { %v9414_v40 = vld [vmem:[%s9206_s21 + $0x98] sm:$0xf]  ;;  %v9421_v41 = vld [vmem:[%s9206_s21 + $0xa4] sm:$0xf]  ;;  %v9424_v42 = vld [vmem:[%s9206_s21 + $0xa0] sm:$0xf] }
  0xa9   : > { %v9431_v43 = vld [vmem:[%s9206_s21 + $0xac] sm:$0xf]  ;;  %v9434_v44 = vld [vmem:[%s9206_s21 + $0xa8] sm:$0xf]  ;;  %v9441_v45 = vld [vmem:[%s9206_s21 + $0xb4] sm:$0xf] }
  0xaa   : > { %v9444_v46 = vld [vmem:[%s9206_s21 + $0xb0] sm:$0xf]  ;;  %v9451_v47 = vld [vmem:[%s9206_s21 + $0xbc] sm:$0xf]  ;;  %v9454_v48 = vld [vmem:[%s9206_s21 + $0xb8] sm:$0xf] }
  0xab   : > { %630 = vrot.lane.b32.xlu1 %v9261_v9, %s8955_s8  ;;  %628 = vrot.lane.b32.xlu0 %v9264_v10, %s8955_s8  ;;  %v9461_v49 = vld [vmem:[%s9206_s21 + $0xc4] sm:$0xf]  ;;  %v9464_v50 = vld [vmem:[%s9206_s21 + $0xc0] sm:$0xf] }
  0xac   : > { %v9471_v51 = vld [vmem:[%s9206_s21 + $0xcc] sm:$0xf]  ;;  %v9474_v52 = vld [vmem:[%s9206_s21 + $0xc8] sm:$0xf]  ;;  %v9481_v53 = vld [vmem:[%s9206_s21 + $0xd4] sm:$0xf] }
  0xad   : > { %v9484_v54 = vld [vmem:[%s9206_s21 + $0xd0] sm:$0xf]  ;;  %v9491_v55 = vld [vmem:[%s9206_s21 + $0xdc] sm:$0xf]  ;;  %v9494_v56 = vld [vmem:[%s9206_s21 + $0xd8] sm:$0xf] }
  0xae   : > { %13953 = vst [vmem:[#allocation14_spill] sm:$0xff] %v9494_v56  ;;  %v9501_v57 = vld [vmem:[%s9206_s21 + $0xe4] sm:$0xf]  ;;  %v9504_v58 = vld [vmem:[%s9206_s21 + $0xe0] sm:$0xf] }
  0xaf   : > { %634 = vrot.lane.b32.xlu1 %v9271_v11, %s8955_s8  ;;  %632 = vrot.lane.b32.xlu0 %v9274_v12, %s8955_s8  ;;  %13954 = vst [vmem:[#allocation15_spill] sm:$0xff] %v9501_v57  ;;  %13955 = vst [vmem:[#allocation16_spill] sm:$0xff] %v9504_v58  ;;  %v9511_v59 = vld [vmem:[%s9206_s21 + $0xec] sm:$0xf]  ;;  %v9514_v60 = vld [vmem:[%s9206_s21 + $0xe8] sm:$0xf] }
  0xb0   : > { %13956 = vst [vmem:[#allocation17_spill] sm:$0xff] %v9511_v59  ;;  %13957 = vst [vmem:[#allocation18_spill] sm:$0xff] %v9514_v60  ;;  %v9525_v63 = vld [vmem:[%s9206_s21 + $0xf4] sm:$0xf]  ;;  %v9528_v0 = vld [vmem:[%s9206_s21 + $0xf0] sm:$0xf] }
  0xb1   : > { %13960 = vst [vmem:[#allocation21_spill] sm:$0xff] %v9525_v63  ;;  %13961 = vst [vmem:[#allocation22_spill] sm:$0xff] %v9528_v0 }
  0xb3   : > { %638 = vrot.lane.b32.xlu1 %v9281_v13, %s8955_s8  ;;  %636 = vrot.lane.b32.xlu0 %v9284_v14, %s8955_s8 }
  0xb7   : > { %642 = vrot.lane.b32.xlu1 %v9291_v15, %s8955_s8  ;;  %640 = vrot.lane.b32.xlu0 %v9294_v16, %s8955_s8 }
  0xbb   : > { %646 = vrot.lane.b32.xlu1 %v9297_v17, %s8955_s8  ;;  %644 = vrot.lane.b32.xlu0 %v9300_v18, %s8955_s8 }
  0xbf   : > { %650 = vrot.lane.b32.xlu1 %v9307_v19, %s8955_s8  ;;  %648 = vrot.lane.b32.xlu0 %v9310_v20, %s8955_s8 }
  0xc3   : > { %654 = vrot.lane.b32.xlu1 %v9317_v21, %s8955_s8  ;;  %652 = vrot.lane.b32.xlu0 %v9320_v22, %s8955_s8 }
  0xc7   : > { %658 = vrot.lane.b32.xlu1 %v9331_v23, %s8955_s8  ;;  %656 = vrot.lane.b32.xlu0 %v9334_v24, %s8955_s8 }
  0xcb   : > { %662 = vrot.lane.b32.xlu1 %v9341_v25, %s8955_s8  ;;  %660 = vrot.lane.b32.xlu0 %v9344_v26, %s8955_s8 }
  0xcf   : > { %666 = vrot.lane.b32.xlu1 %v9351_v27, %s8955_s8  ;;  %664 = vrot.lane.b32.xlu0 %v9354_v28, %s8955_s8 }
  0xd3   : > { %670 = vrot.lane.b32.xlu1 %v9361_v29, %s8955_s8  ;;  %668 = vrot.lane.b32.xlu0 %v9364_v30, %s8955_s8 }
  0xd7   : > { %674 = vrot.lane.b32.xlu1 %v9371_v31, %s8955_s8  ;;  %672 = vrot.lane.b32.xlu0 %v9374_v32, %s8955_s8 }
  0xdb   : > { %678 = vrot.lane.b32.xlu1 %v9381_v33, %s8955_s8  ;;  %676 = vrot.lane.b32.xlu0 %v9384_v34, %s8955_s8 }
  0xdf   : > { %682 = vrot.lane.b32.xlu1 %v9391_v35, %s8955_s8  ;;  %680 = vrot.lane.b32.xlu0 %v9394_v36, %s8955_s8 }
  0xe3   : > { %686 = vrot.lane.b32.xlu1 %v9401_v37, %s8955_s8  ;;  %684 = vrot.lane.b32.xlu0 %v9404_v38, %s8955_s8 }
  0xe7   : > { %690 = vrot.lane.b32.xlu1 %v9411_v39, %s8955_s8  ;;  %688 = vrot.lane.b32.xlu0 %v9414_v40, %s8955_s8 }
  0xeb   : > { %694 = vrot.lane.b32.xlu1 %v9421_v41, %s8955_s8  ;;  %692 = vrot.lane.b32.xlu0 %v9424_v42, %s8955_s8 }
  0xef   : > { %698 = vrot.lane.b32.xlu1 %v9431_v43, %s8955_s8  ;;  %696 = vrot.lane.b32.xlu0 %v9434_v44, %s8955_s8 }
  0xf3   : > { %702 = vrot.lane.b32.xlu1 %v9441_v45, %s8955_s8  ;;  %700 = vrot.lane.b32.xlu0 %v9444_v46, %s8955_s8 }
  0xf7   : > { %706 = vrot.lane.b32.xlu1 %v9451_v47, %s8955_s8  ;;  %704 = vrot.lane.b32.xlu0 %v9454_v48, %s8955_s8 }
  0xfb   : > { %710 = vrot.lane.b32.xlu1 %v9461_v49, %s8955_s8  ;;  %708 = vrot.lane.b32.xlu0 %v9464_v50, %s8955_s8 }
  0xff   : > { %714 = vrot.lane.b32.xlu1 %v9471_v51, %s8955_s8  ;;  %712 = vrot.lane.b32.xlu0 %v9474_v52, %s8955_s8 }
 0x103   : > { %718 = vrot.lane.b32.xlu1 %v9481_v53, %s8955_s8  ;;  %716 = vrot.lane.b32.xlu0 %v9484_v54, %s8955_s8 }
 0x107   : > { %722 = vrot.lane.b32.xlu1 %v9491_v55, %s8955_s8  ;;  %720 = vrot.lane.b32.xlu0 %v9494_v56, %s8955_s8 }
 0x10b   : > { %726 = vrot.lane.b32.xlu1 %v9501_v57, %s8955_s8  ;;  %724 = vrot.lane.b32.xlu0 %v9504_v58, %s8955_s8 }
 0x10d   : > { %v9516_v61 = vpop.permute.xlu1 %616  ;;  %v9518_v62 = vpop.permute.xlu0 %612 }
 0x10e   : > { %13958 = vst [vmem:[#allocation19_spill] sm:$0xff] %v9516_v61  ;;  %13959 = vst [vmem:[#allocation20_spill] sm:$0xff] %v9518_v62  ;;  %v9539_v61 = vld [vmem:[%s9206_s21 + $0xfc] sm:$0xf]  ;;  %v9542_v62 = vld [vmem:[%s9206_s21 + $0xf8] sm:$0xf] }
 0x10f   : > { %730 = vrot.lane.b32.xlu1 %v9511_v59, %s8955_s8  ;;  %728 = vrot.lane.b32.xlu0 %v9514_v60, %s8955_s8  ;;  %13964 = vst [vmem:[#allocation25_spill] sm:$0xff] %v9539_v61  ;;  %13965 = vst [vmem:[#allocation26_spill] sm:$0xff] %v9542_v62 }
 0x111   : > { %v9530_v58 = vpop.permute.xlu1 %618  ;;  %v9532_v57 = vpop.permute.xlu0 %614 }
 0x112   : > { %13962 = vst [vmem:[#allocation23_spill] sm:$0xff] %v9530_v58  ;;  %13963 = vst [vmem:[#allocation24_spill] sm:$0xff] %v9532_v57  ;;  %v9553_v58 = vld [vmem:[%s9206_s21 + $0x104] sm:$0xf]  ;;  %v9556_v57 = vld [vmem:[%s9206_s21 + $0x100] sm:$0xf] }
 0x113   : > { %734 = vrot.lane.b32.xlu1 %v9525_v63, %s8955_s8  ;;  %732 = vrot.lane.b32.xlu0 %v9528_v0, %s8955_s8  ;;  %13968 = vst [vmem:[#allocation29_spill] sm:$0xff] %v9553_v58  ;;  %13969 = vst [vmem:[#allocation30_spill] sm:$0xff] %v9556_v57 }
 0x115   : > { %v9544_v60 = vpop.permute.xlu1 %622  ;;  %v9546_v59 = vpop.permute.xlu0 %620 }
 0x116   : > { %13966 = vst [vmem:[#allocation27_spill] sm:$0xff] %v9544_v60  ;;  %13967 = vst [vmem:[#allocation28_spill] sm:$0xff] %v9546_v59  ;;  %v9567_v59 = vld [vmem:[%s9206_s21 + $0x10c] sm:$0xf]  ;;  %v9570_v60 = vld [vmem:[%s9206_s21 + $0x108] sm:$0xf] }
 0x117   : > { %738 = vrot.lane.b32.xlu1 %v9539_v61, %s8955_s8  ;;  %736 = vrot.lane.b32.xlu0 %v9542_v62, %s8955_s8  ;;  %13972 = vst [vmem:[#allocation33_spill] sm:$0xff] %v9567_v59  ;;  %13973 = vst [vmem:[#allocation34_spill] sm:$0xff] %v9570_v60 }
 0x119   : > { %v9558_v0 = vpop.permute.xlu1 %626  ;;  %v9560_v63 = vpop.permute.xlu0 %624 }
 0x11a   : > { %13970 = vst [vmem:[#allocation31_spill] sm:$0xff] %v9558_v0  ;;  %13971 = vst [vmem:[#allocation32_spill] sm:$0xff] %v9560_v63  ;;  %v9581_v63 = vld [vmem:[%s9206_s21 + $0x114] sm:$0xf]  ;;  %v9584_v0 = vld [vmem:[%s9206_s21 + $0x110] sm:$0xf] }
 0x11b   : > { %742 = vrot.lane.b32.xlu1 %v9553_v58, %s8955_s8  ;;  %740 = vrot.lane.b32.xlu0 %v9556_v57, %s8955_s8  ;;  %13976 = vst [vmem:[#allocation37_spill] sm:$0xff] %v9581_v63  ;;  %13977 = vst [vmem:[#allocation38_spill] sm:$0xff] %v9584_v0 }
 0x11d   : > { %v9572_v62 = vpop.permute.xlu1 %630  ;;  %v9574_v61 = vpop.permute.xlu0 %628 }
 0x11e   : > { %13974 = vst [vmem:[#allocation35_spill] sm:$0xff] %v9572_v62  ;;  %13975 = vst [vmem:[#allocation36_spill] sm:$0xff] %v9574_v61  ;;  %v9595_v61 = vld [vmem:[%s9206_s21 + $0x11c] sm:$0xf]  ;;  %v9598_v62 = vld [vmem:[%s9206_s21 + $0x118] sm:$0xf] }
 0x11f   : > { %746 = vrot.lane.b32.xlu1 %v9567_v59, %s8955_s8  ;;  %744 = vrot.lane.b32.xlu0 %v9570_v60, %s8955_s8  ;;  %13980 = vst [vmem:[#allocation41_spill] sm:$0xff] %v9595_v61  ;;  %13981 = vst [vmem:[#allocation42_spill] sm:$0xff] %v9598_v62 }
 0x121   : > { %v9586_v57 = vpop.permute.xlu1 %634  ;;  %v9588_v58 = vpop.permute.xlu0 %632 }
 0x122   : > { %13978 = vst [vmem:[#allocation39_spill] sm:$0xff] %v9586_v57  ;;  %13979 = vst [vmem:[#allocation40_spill] sm:$0xff] %v9588_v58  ;;  %v9609_v58 = vld [vmem:[%s9206_s21 + $0x124] sm:$0xf]  ;;  %v9612_v57 = vld [vmem:[%s9206_s21 + $0x120] sm:$0xf] }
 0x123   : > { %750 = vrot.lane.b32.xlu1 %v9581_v63, %s8955_s8  ;;  %748 = vrot.lane.b32.xlu0 %v9584_v0, %s8955_s8  ;;  %13984 = vst [vmem:[#allocation45_spill] sm:$0xff] %v9609_v58  ;;  %13985 = vst [vmem:[#allocation46_spill] sm:$0xff] %v9612_v57 }
 0x125   : > { %v9600_v60 = vpop.permute.xlu1 %638  ;;  %v9602_v59 = vpop.permute.xlu0 %636 }
 0x126   : > { %13982 = vst [vmem:[#allocation43_spill] sm:$0xff] %v9600_v60  ;;  %13983 = vst [vmem:[#allocation44_spill] sm:$0xff] %v9602_v59  ;;  %v9623_v59 = vld [vmem:[%s9206_s21 + $0x12c] sm:$0xf]  ;;  %v9626_v60 = vld [vmem:[%s9206_s21 + $0x128] sm:$0xf] }
 0x127   : > { %754 = vrot.lane.b32.xlu1 %v9595_v61, %s8955_s8  ;;  %752 = vrot.lane.b32.xlu0 %v9598_v62, %s8955_s8  ;;  %13988 = vst [vmem:[#allocation49_spill] sm:$0xff] %v9623_v59  ;;  %13989 = vst [vmem:[#allocation50_spill] sm:$0xff] %v9626_v60 }
 0x129   : > { %v9614_v0 = vpop.permute.xlu1 %642  ;;  %v9616_v63 = vpop.permute.xlu0 %640 }
 0x12a   : > { %13986 = vst [vmem:[#allocation47_spill] sm:$0xff] %v9614_v0  ;;  %13987 = vst [vmem:[#allocation48_spill] sm:$0xff] %v9616_v63  ;;  %v9637_v63 = vld [vmem:[%s9206_s21 + $0x134] sm:$0xf]  ;;  %v9640_v0 = vld [vmem:[%s9206_s21 + $0x130] sm:$0xf] }
 0x12b   : > { %758 = vrot.lane.b32.xlu1 %v9609_v58, %s8955_s8  ;;  %756 = vrot.lane.b32.xlu0 %v9612_v57, %s8955_s8  ;;  %13992 = vst [vmem:[#allocation53_spill] sm:$0xff] %v9637_v63  ;;  %13993 = vst [vmem:[#allocation54_spill] sm:$0xff] %v9640_v0 }
 0x12d   : > { %v9628_v62 = vpop.permute.xlu1 %646  ;;  %v9630_v61 = vpop.permute.xlu0 %644 }
 0x12e   : > { %13990 = vst [vmem:[#allocation51_spill] sm:$0xff] %v9628_v62  ;;  %13991 = vst [vmem:[#allocation52_spill] sm:$0xff] %v9630_v61  ;;  %v9651_v61 = vld [vmem:[%s9206_s21 + $0x13c] sm:$0xf]  ;;  %v9654_v62 = vld [vmem:[%s9206_s21 + $0x138] sm:$0xf] }
 0x12f   : > { %762 = vrot.lane.b32.xlu1 %v9623_v59, %s8955_s8  ;;  %760 = vrot.lane.b32.xlu0 %v9626_v60, %s8955_s8  ;;  %13996 = vst [vmem:[#allocation57_spill] sm:$0xff] %v9651_v61  ;;  %13997 = vst [vmem:[#allocation58_spill] sm:$0xff] %v9654_v62 }
 0x131   : > { %v9642_v57 = vpop.permute.xlu1 %650  ;;  %v9644_v58 = vpop.permute.xlu0 %648 }
 0x132   : > { %13994 = vst [vmem:[#allocation55_spill] sm:$0xff] %v9642_v57  ;;  %13995 = vst [vmem:[#allocation56_spill] sm:$0xff] %v9644_v58  ;;  %v9665_v58 = vld [vmem:[%s9206_s21 + $0x144] sm:$0xf]  ;;  %v9668_v57 = vld [vmem:[%s9206_s21 + $0x140] sm:$0xf] }
 0x133   : > { %766 = vrot.lane.b32.xlu1 %v9637_v63, %s8955_s8  ;;  %764 = vrot.lane.b32.xlu0 %v9640_v0, %s8955_s8  ;;  %14000 = vst [vmem:[#allocation61_spill] sm:$0xff] %v9665_v58  ;;  %14001 = vst [vmem:[#allocation62_spill] sm:$0xff] %v9668_v57 }
 0x135   : > { %v9656_v60 = vpop.permute.xlu1 %654  ;;  %v9658_v59 = vpop.permute.xlu0 %652 }
 0x136   : > { %13998 = vst [vmem:[#allocation59_spill] sm:$0xff] %v9656_v60  ;;  %13999 = vst [vmem:[#allocation60_spill] sm:$0xff] %v9658_v59  ;;  %v9679_v59 = vld [vmem:[%s9206_s21 + $0x14c] sm:$0xf]  ;;  %v9682_v60 = vld [vmem:[%s9206_s21 + $0x148] sm:$0xf] }
 0x137   : > { %770 = vrot.lane.b32.xlu1 %v9651_v61, %s8955_s8  ;;  %768 = vrot.lane.b32.xlu0 %v9654_v62, %s8955_s8  ;;  %14004 = vst [vmem:[#allocation65_spill] sm:$0xff] %v9679_v59  ;;  %14005 = vst [vmem:[#allocation66_spill] sm:$0xff] %v9682_v60 }
 0x139   : > { %v9670_v0 = vpop.permute.xlu1 %658  ;;  %v9672_v63 = vpop.permute.xlu0 %656 }
 0x13a   : > { %14002 = vst [vmem:[#allocation63_spill] sm:$0xff] %v9670_v0  ;;  %14003 = vst [vmem:[#allocation64_spill] sm:$0xff] %v9672_v63  ;;  %v9693_v63 = vld [vmem:[%s9206_s21 + $0x154] sm:$0xf]  ;;  %v9696_v0 = vld [vmem:[%s9206_s21 + $0x150] sm:$0xf] }
 0x13b   : > { %774 = vrot.lane.b32.xlu1 %v9665_v58, %s8955_s8  ;;  %772 = vrot.lane.b32.xlu0 %v9668_v57, %s8955_s8  ;;  %14008 = vst [vmem:[#allocation69_spill] sm:$0xff] %v9693_v63  ;;  %14009 = vst [vmem:[#allocation70_spill] sm:$0xff] %v9696_v0 }
 0x13d   : > { %v9684_v62 = vpop.permute.xlu1 %662  ;;  %v9686_v61 = vpop.permute.xlu0 %660 }
 0x13e   : > { %14006 = vst [vmem:[#allocation67_spill] sm:$0xff] %v9684_v62  ;;  %14007 = vst [vmem:[#allocation68_spill] sm:$0xff] %v9686_v61  ;;  %v9707_v61 = vld [vmem:[%s9206_s21 + $0x15c] sm:$0xf]  ;;  %v9710_v62 = vld [vmem:[%s9206_s21 + $0x158] sm:$0xf] }
 0x13f   : > { %778 = vrot.lane.b32.xlu1 %v9679_v59, %s8955_s8  ;;  %776 = vrot.lane.b32.xlu0 %v9682_v60, %s8955_s8  ;;  %14012 = vst [vmem:[#allocation73_spill] sm:$0xff] %v9707_v61  ;;  %14013 = vst [vmem:[#allocation74_spill] sm:$0xff] %v9710_v62 }
 0x141   : > { %v9698_v57 = vpop.permute.xlu1 %666  ;;  %v9700_v58 = vpop.permute.xlu0 %664 }
 0x142   : > { %14010 = vst [vmem:[#allocation71_spill] sm:$0xff] %v9698_v57  ;;  %14011 = vst [vmem:[#allocation72_spill] sm:$0xff] %v9700_v58  ;;  %v9721_v58 = vld [vmem:[%s9206_s21 + $0x164] sm:$0xf]  ;;  %v9724_v57 = vld [vmem:[%s9206_s21 + $0x160] sm:$0xf] }
 0x143   : > { %782 = vrot.lane.b32.xlu1 %v9693_v63, %s8955_s8  ;;  %780 = vrot.lane.b32.xlu0 %v9696_v0, %s8955_s8  ;;  %14016 = vst [vmem:[#allocation77_spill] sm:$0xff] %v9721_v58  ;;  %14017 = vst [vmem:[#allocation78_spill] sm:$0xff] %v9724_v57 }
 0x145   : > { %v9712_v60 = vpop.permute.xlu1 %670  ;;  %v9714_v59 = vpop.permute.xlu0 %668 }
 0x146   : > { %14014 = vst [vmem:[#allocation75_spill] sm:$0xff] %v9712_v60  ;;  %14015 = vst [vmem:[#allocation76_spill] sm:$0xff] %v9714_v59  ;;  %v9735_v59 = vld [vmem:[%s9206_s21 + $0x16c] sm:$0xf]  ;;  %v9738_v60 = vld [vmem:[%s9206_s21 + $0x168] sm:$0xf] }
 0x147   : > { %786 = vrot.lane.b32.xlu1 %v9707_v61, %s8955_s8  ;;  %784 = vrot.lane.b32.xlu0 %v9710_v62, %s8955_s8  ;;  %14020 = vst [vmem:[#allocation81_spill] sm:$0xff] %v9735_v59  ;;  %14021 = vst [vmem:[#allocation82_spill] sm:$0xff] %v9738_v60 }
 0x149   : > { %v9726_v0 = vpop.permute.xlu1 %674  ;;  %v9728_v63 = vpop.permute.xlu0 %672 }
 0x14a   : > { %14018 = vst [vmem:[#allocation79_spill] sm:$0xff] %v9726_v0  ;;  %14019 = vst [vmem:[#allocation80_spill] sm:$0xff] %v9728_v63  ;;  %v9749_v63 = vld [vmem:[%s9206_s21 + $0x174] sm:$0xf]  ;;  %v9752_v0 = vld [vmem:[%s9206_s21 + $0x170] sm:$0xf] }
 0x14b   : > { %790 = vrot.lane.b32.xlu1 %v9721_v58, %s8955_s8  ;;  %788 = vrot.lane.b32.xlu0 %v9724_v57, %s8955_s8  ;;  %14024 = vst [vmem:[#allocation85_spill] sm:$0xff] %v9749_v63  ;;  %14025 = vst [vmem:[#allocation86_spill] sm:$0xff] %v9752_v0 }
 0x14d   : > { %v9740_v62 = vpop.permute.xlu1 %678  ;;  %v9742_v61 = vpop.permute.xlu0 %676 }
 0x14e   : > { %14022 = vst [vmem:[#allocation83_spill] sm:$0xff] %v9740_v62  ;;  %14023 = vst [vmem:[#allocation84_spill] sm:$0xff] %v9742_v61  ;;  %v9763_v61 = vld [vmem:[%s9206_s21 + $0x17c] sm:$0xf]  ;;  %v9766_v62 = vld [vmem:[%s9206_s21 + $0x178] sm:$0xf] }
 0x14f   : > { %794 = vrot.lane.b32.xlu1 %v9735_v59, %s8955_s8  ;;  %792 = vrot.lane.b32.xlu0 %v9738_v60, %s8955_s8  ;;  %14028 = vst [vmem:[#allocation89_spill] sm:$0xff] %v9763_v61  ;;  %14029 = vst [vmem:[#allocation90_spill] sm:$0xff] %v9766_v62 }
 0x151   : > { %v9754_v57 = vpop.permute.xlu1 %682  ;;  %v9756_v58 = vpop.permute.xlu0 %680 }
 0x152   : > { %14026 = vst [vmem:[#allocation87_spill] sm:$0xff] %v9754_v57  ;;  %14027 = vst [vmem:[#allocation88_spill] sm:$0xff] %v9756_v58  ;;  %v9777_v58 = vld [vmem:[%s9206_s21 + $0x184] sm:$0xf]  ;;  %v9780_v57 = vld [vmem:[%s9206_s21 + $0x180] sm:$0xf] }
 0x153   : > { %798 = vrot.lane.b32.xlu1 %v9749_v63, %s8955_s8  ;;  %796 = vrot.lane.b32.xlu0 %v9752_v0, %s8955_s8  ;;  %14032 = vst [vmem:[#allocation93_spill] sm:$0xff] %v9777_v58  ;;  %14033 = vst [vmem:[#allocation94_spill] sm:$0xff] %v9780_v57 }
 0x155   : > { %v9768_v60 = vpop.permute.xlu1 %686  ;;  %v9770_v59 = vpop.permute.xlu0 %684 }
 0x156   : > { %14030 = vst [vmem:[#allocation91_spill] sm:$0xff] %v9768_v60  ;;  %14031 = vst [vmem:[#allocation92_spill] sm:$0xff] %v9770_v59  ;;  %v9791_v59 = vld [vmem:[%s9206_s21 + $0x18c] sm:$0xf]  ;;  %v9794_v60 = vld [vmem:[%s9206_s21 + $0x188] sm:$0xf] }
 0x157   : > { %802 = vrot.lane.b32.xlu1 %v9763_v61, %s8955_s8  ;;  %800 = vrot.lane.b32.xlu0 %v9766_v62, %s8955_s8  ;;  %14036 = vst [vmem:[#allocation97_spill] sm:$0xff] %v9791_v59  ;;  %14037 = vst [vmem:[#allocation98_spill] sm:$0xff] %v9794_v60 }
 0x159   : > { %v9782_v0 = vpop.permute.xlu1 %690  ;;  %v9784_v63 = vpop.permute.xlu0 %688 }
 0x15a   : > { %14034 = vst [vmem:[#allocation95_spill] sm:$0xff] %v9782_v0  ;;  %14035 = vst [vmem:[#allocation96_spill] sm:$0xff] %v9784_v63  ;;  %v9805_v63 = vld [vmem:[%s9206_s21 + $0x194] sm:$0xf]  ;;  %v9808_v0 = vld [vmem:[%s9206_s21 + $0x190] sm:$0xf] }
 0x15b   : > { %806 = vrot.lane.b32.xlu1 %v9777_v58, %s8955_s8  ;;  %804 = vrot.lane.b32.xlu0 %v9780_v57, %s8955_s8  ;;  %14040 = vst [vmem:[#allocation101_spill] sm:$0xff] %v9805_v63  ;;  %14041 = vst [vmem:[#allocation102_spill] sm:$0xff] %v9808_v0 }
 0x15d   : > { %v9796_v62 = vpop.permute.xlu1 %694  ;;  %v9798_v61 = vpop.permute.xlu0 %692 }
 0x15e   : > { %14038 = vst [vmem:[#allocation99_spill] sm:$0xff] %v9796_v62  ;;  %14039 = vst [vmem:[#allocation100_spill] sm:$0xff] %v9798_v61  ;;  %v9819_v61 = vld [vmem:[%s9206_s21 + $0x19c] sm:$0xf]  ;;  %v9822_v62 = vld [vmem:[%s9206_s21 + $0x198] sm:$0xf] }
 0x15f   : > { %810 = vrot.lane.b32.xlu1 %v9791_v59, %s8955_s8  ;;  %808 = vrot.lane.b32.xlu0 %v9794_v60, %s8955_s8  ;;  %14044 = vst [vmem:[#allocation105_spill] sm:$0xff] %v9819_v61  ;;  %14045 = vst [vmem:[#allocation106_spill] sm:$0xff] %v9822_v62 }
 0x161   : > { %v9810_v57 = vpop.permute.xlu1 %698  ;;  %v9812_v58 = vpop.permute.xlu0 %696 }
 0x162   : > { %14042 = vst [vmem:[#allocation103_spill] sm:$0xff] %v9810_v57  ;;  %14043 = vst [vmem:[#allocation104_spill] sm:$0xff] %v9812_v58  ;;  %v9833_v58 = vld [vmem:[%s9206_s21 + $0x1a4] sm:$0xf]  ;;  %v9836_v57 = vld [vmem:[%s9206_s21 + $0x1a0] sm:$0xf] }
 0x163   : > { %814 = vrot.lane.b32.xlu1 %v9805_v63, %s8955_s8  ;;  %812 = vrot.lane.b32.xlu0 %v9808_v0, %s8955_s8  ;;  %14048 = vst [vmem:[#allocation109_spill] sm:$0xff] %v9833_v58  ;;  %14049 = vst [vmem:[#allocation110_spill] sm:$0xff] %v9836_v57 }
 0x165   : > { %v9824_v60 = vpop.permute.xlu1 %702  ;;  %v9826_v59 = vpop.permute.xlu0 %700 }
 0x166   : > { %14046 = vst [vmem:[#allocation107_spill] sm:$0xff] %v9824_v60  ;;  %14047 = vst [vmem:[#allocation108_spill] sm:$0xff] %v9826_v59  ;;  %v9847_v59 = vld [vmem:[%s9206_s21 + $0x1ac] sm:$0xf]  ;;  %v9850_v60 = vld [vmem:[%s9206_s21 + $0x1a8] sm:$0xf] }
 0x167   : > { %818 = vrot.lane.b32.xlu1 %v9819_v61, %s8955_s8  ;;  %816 = vrot.lane.b32.xlu0 %v9822_v62, %s8955_s8  ;;  %14052 = vst [vmem:[#allocation113_spill] sm:$0xff] %v9847_v59  ;;  %14053 = vst [vmem:[#allocation114_spill] sm:$0xff] %v9850_v60 }
 0x169   : > { %v9838_v0 = vpop.permute.xlu1 %706  ;;  %v9840_v63 = vpop.permute.xlu0 %704 }
 0x16a   : > { %14050 = vst [vmem:[#allocation111_spill] sm:$0xff] %v9838_v0  ;;  %14051 = vst [vmem:[#allocation112_spill] sm:$0xff] %v9840_v63  ;;  %v9861_v63 = vld [vmem:[%s9206_s21 + $0x1b4] sm:$0xf]  ;;  %v9864_v0 = vld [vmem:[%s9206_s21 + $0x1b0] sm:$0xf] }
 0x16b   : > { %822 = vrot.lane.b32.xlu1 %v9833_v58, %s8955_s8  ;;  %820 = vrot.lane.b32.xlu0 %v9836_v57, %s8955_s8  ;;  %14056 = vst [vmem:[#allocation117_spill] sm:$0xff] %v9861_v63  ;;  %14057 = vst [vmem:[#allocation118_spill] sm:$0xff] %v9864_v0 }
 0x16d   : > { %v9852_v62 = vpop.permute.xlu1 %710  ;;  %v9854_v61 = vpop.permute.xlu0 %708 }
 0x16e   : > { %14054 = vst [vmem:[#allocation115_spill] sm:$0xff] %v9852_v62  ;;  %14055 = vst [vmem:[#allocation116_spill] sm:$0xff] %v9854_v61  ;;  %v9875_v61 = vld [vmem:[%s9206_s21 + $0x1bc] sm:$0xf]  ;;  %v9878_v62 = vld [vmem:[%s9206_s21 + $0x1b8] sm:$0xf] }
 0x16f   : > { %826 = vrot.lane.b32.xlu1 %v9847_v59, %s8955_s8  ;;  %824 = vrot.lane.b32.xlu0 %v9850_v60, %s8955_s8  ;;  %14060 = vst [vmem:[#allocation121_spill] sm:$0xff] %v9875_v61  ;;  %14061 = vst [vmem:[#allocation122_spill] sm:$0xff] %v9878_v62 }
 0x171   : > { %v9866_v57 = vpop.permute.xlu1 %714  ;;  %v9868_v58 = vpop.permute.xlu0 %712 }
 0x172   : > { %14058 = vst [vmem:[#allocation119_spill] sm:$0xff] %v9866_v57  ;;  %14059 = vst [vmem:[#allocation120_spill] sm:$0xff] %v9868_v58  ;;  %v9889_v58 = vld [vmem:[%s9206_s21 + $0x1c4] sm:$0xf]  ;;  %v9892_v57 = vld [vmem:[%s9206_s21 + $0x1c0] sm:$0xf] }
 0x173   : > { %830 = vrot.lane.b32.xlu1 %v9861_v63, %s8955_s8  ;;  %828 = vrot.lane.b32.xlu0 %v9864_v0, %s8955_s8  ;;  %14064 = vst [vmem:[#allocation125_spill] sm:$0xff] %v9889_v58  ;;  %14065 = vst [vmem:[#allocation126_spill] sm:$0xff] %v9892_v57 }
 0x175   : > { %v9880_v60 = vpop.permute.xlu1 %718  ;;  %v9882_v59 = vpop.permute.xlu0 %716 }
 0x176   : > { %14062 = vst [vmem:[#allocation123_spill] sm:$0xff] %v9880_v60  ;;  %14063 = vst [vmem:[#allocation124_spill] sm:$0xff] %v9882_v59  ;;  %v9903_v59 = vld [vmem:[%s9206_s21 + $0x1cc] sm:$0xf]  ;;  %v9906_v60 = vld [vmem:[%s9206_s21 + $0x1c8] sm:$0xf] }
 0x177   : > { %834 = vrot.lane.b32.xlu1 %v9875_v61, %s8955_s8  ;;  %832 = vrot.lane.b32.xlu0 %v9878_v62, %s8955_s8  ;;  %14068 = vst [vmem:[#allocation129_spill] sm:$0xff] %v9903_v59  ;;  %14069 = vst [vmem:[#allocation130_spill] sm:$0xff] %v9906_v60 }
 0x179   : > { %v9894_v0 = vpop.permute.xlu1 %722  ;;  %v9896_v63 = vpop.permute.xlu0 %720 }
 0x17a   : > { %14066 = vst [vmem:[#allocation127_spill] sm:$0xff] %v9894_v0  ;;  %14067 = vst [vmem:[#allocation128_spill] sm:$0xff] %v9896_v63  ;;  %v9917_v63 = vld [vmem:[%s9206_s21 + $0x1d4] sm:$0xf]  ;;  %v9920_v0 = vld [vmem:[%s9206_s21 + $0x1d0] sm:$0xf] }
 0x17b   : > { %838 = vrot.lane.b32.xlu1 %v9889_v58, %s8955_s8  ;;  %836 = vrot.lane.b32.xlu0 %v9892_v57, %s8955_s8  ;;  %14072 = vst [vmem:[#allocation133_spill] sm:$0xff] %v9917_v63  ;;  %14073 = vst [vmem:[#allocation134_spill] sm:$0xff] %v9920_v0 }
 0x17d   : > { %v9908_v62 = vpop.permute.xlu1 %726  ;;  %v9910_v61 = vpop.permute.xlu0 %724 }
 0x17e   : > { %14070 = vst [vmem:[#allocation131_spill] sm:$0xff] %v9908_v62  ;;  %14071 = vst [vmem:[#allocation132_spill] sm:$0xff] %v9910_v61  ;;  %v9931_v61 = vld [vmem:[%s9206_s21 + $0x1dc] sm:$0xf]  ;;  %v9934_v62 = vld [vmem:[%s9206_s21 + $0x1d8] sm:$0xf] }
 0x17f   : > { %842 = vrot.lane.b32.xlu1 %v9903_v59, %s8955_s8  ;;  %840 = vrot.lane.b32.xlu0 %v9906_v60, %s8955_s8  ;;  %14076 = vst [vmem:[#allocation137_spill] sm:$0xff] %v9931_v61  ;;  %14077 = vst [vmem:[#allocation138_spill] sm:$0xff] %v9934_v62 }
 0x181   : > { %v9922_v57 = vpop.permute.xlu1 %730  ;;  %v9924_v58 = vpop.permute.xlu0 %728 }
 0x182   : > { %14074 = vst [vmem:[#allocation135_spill] sm:$0xff] %v9922_v57  ;;  %14075 = vst [vmem:[#allocation136_spill] sm:$0xff] %v9924_v58  ;;  %v9945_v58 = vld [vmem:[%s9206_s21 + $0x1e4] sm:$0xf]  ;;  %v9948_v57 = vld [vmem:[%s9206_s21 + $0x1e0] sm:$0xf] }
 0x183   : > { %846 = vrot.lane.b32.xlu1 %v9917_v63, %s8955_s8  ;;  %844 = vrot.lane.b32.xlu0 %v9920_v0, %s8955_s8  ;;  %14080 = vst [vmem:[#allocation141_spill] sm:$0xff] %v9945_v58  ;;  %14081 = vst [vmem:[#allocation142_spill] sm:$0xff] %v9948_v57 }
 0x185   : > { %v9936_v60 = vpop.permute.xlu1 %734  ;;  %v9938_v59 = vpop.permute.xlu0 %732 }
 0x186   : > { %14078 = vst [vmem:[#allocation139_spill] sm:$0xff] %v9936_v60  ;;  %14079 = vst [vmem:[#allocation140_spill] sm:$0xff] %v9938_v59  ;;  %v9959_v59 = vld [vmem:[%s9206_s21 + $0x1ec] sm:$0xf]  ;;  %v9962_v60 = vld [vmem:[%s9206_s21 + $0x1e8] sm:$0xf] }
 0x187   : > { %850 = vrot.lane.b32.xlu1 %v9931_v61, %s8955_s8  ;;  %848 = vrot.lane.b32.xlu0 %v9934_v62, %s8955_s8  ;;  %14084 = vst [vmem:[#allocation145_spill] sm:$0xff] %v9959_v59  ;;  %14085 = vst [vmem:[#allocation146_spill] sm:$0xff] %v9962_v60 }
 0x189   : > { %v9950_v0 = vpop.permute.xlu1 %738  ;;  %v9952_v63 = vpop.permute.xlu0 %736 }
 0x18a   : > { %14082 = vst [vmem:[#allocation143_spill] sm:$0xff] %v9950_v0  ;;  %14083 = vst [vmem:[#allocation144_spill] sm:$0xff] %v9952_v63  ;;  %v9973_v63 = vld [vmem:[%s9206_s21 + $0x1f4] sm:$0xf]  ;;  %v9976_v0 = vld [vmem:[%s9206_s21 + $0x1f0] sm:$0xf] }
 0x18b   : > { %854 = vrot.lane.b32.xlu1 %v9945_v58, %s8955_s8  ;;  %852 = vrot.lane.b32.xlu0 %v9948_v57, %s8955_s8 }
 0x18d   : > { %v9964_v62 = vpop.permute.xlu1 %742  ;;  %v9966_v61 = vpop.permute.xlu0 %740 }
 0x18e   : > { %14086 = vst [vmem:[#allocation147_spill] sm:$0xff] %v9964_v62  ;;  %14087 = vst [vmem:[#allocation148_spill] sm:$0xff] %v9966_v61  ;;  %v483_v61 = vld [vmem:[%s9206_s21 + $0x1fc] sm:$0xf]  ;;  %v482_v62 = vld [vmem:[%s9206_s21 + $0x1f8] sm:$0xf] }
 0x18f   : > { %858 = vrot.lane.b32.xlu1 %v9959_v59, %s8955_s8  ;;  %856 = vrot.lane.b32.xlu0 %v9962_v60, %s8955_s8 }
 0x191   : > { %v9978_v58 = vpop.permute.xlu1 %746  ;;  %v9980_v57 = vpop.permute.xlu0 %744 }
 0x192   : > { %14088 = vst [vmem:[#allocation149_spill] sm:$0xff] %v9978_v58  ;;  %14089 = vst [vmem:[#allocation150_spill] sm:$0xff] %v9980_v57 }
 0x193   : > { %862 = vrot.lane.b32.xlu1 %v9973_v63, %s8955_s8  ;;  %860 = vrot.lane.b32.xlu0 %v9976_v0, %s8955_s8 }
 0x195   : > { %v9988_v59 = vpop.permute.xlu1 %750  ;;  %v9990_v56 = vpop.permute.xlu0 %748 }
 0x196   : > { %14090 = vst [vmem:[#allocation151_spill] sm:$0xff] %v9988_v59  ;;  %14091 = vst [vmem:[#allocation152_spill] sm:$0xff] %v9990_v56 }
 0x197   : > { %866 = vrot.lane.b32.xlu1 %v483_v61, %s8955_s8  ;;  %864 = vrot.lane.b32.xlu0 %v482_v62, %s8955_s8 }
 0x199   : > { %v9994_v60 = vpop.permute.xlu1 %754  ;;  %v9996_v58 = vpop.permute.xlu0 %752 }
 0x19a   : > { %14092 = vst [vmem:[#allocation153_spill] sm:$0xff] %v9994_v60  ;;  %14093 = vst [vmem:[#allocation154_spill] sm:$0xff] %v9996_v58  ;;  %v14236_v60 = vld [vmem:[#allocation125_spill] sm:$0xff] }
 0x19b   : > { %1126 = vrot.lane.b32.xlu1 %v9234_v4, %s8956_s30  ;;  %1124 = vrot.lane.b32.xlu0 %v9224_v2, %s8956_s30 }
 0x19d   : > { %v10002_v57 = vpop.permute.xlu1 %758  ;;  %v10004_v59 = vpop.permute.xlu0 %756 }
 0x19e   : > { %14094 = vst [vmem:[#allocation155_spill] sm:$0xff] %v10002_v57  ;;  %14095 = vst [vmem:[#allocation156_spill] sm:$0xff] %v10004_v59  ;;  %v14232_v57 = vld [vmem:[#allocation121_spill] sm:$0xff] }
 0x19f   : > { %1130 = vrot.lane.b32.xlu1 %v9231_v3, %s8956_s30  ;;  %1128 = vrot.lane.b32.xlu0 %v9221_v1, %s8956_s30 }
 0x1a1   : > { %v10010_v61 = vpop.permute.xlu1 %762  ;;  %v10012_v62 = vpop.permute.xlu0 %760 }
 0x1a2   : > { %14096 = vst [vmem:[#allocation157_spill] sm:$0xff] %v10010_v61  ;;  %14097 = vst [vmem:[#allocation158_spill] sm:$0xff] %v10012_v62  ;;  %v14228_v61 = vld [vmem:[#allocation117_spill] sm:$0xff] }
 0x1a3   : > { %1134 = vrot.lane.b32.xlu1 %v9241_v5, %s8956_s30  ;;  %1132 = vrot.lane.b32.xlu0 %v9244_v6, %s8956_s30 }
 0x1a5   : > { %v10018_v2 = vpop.permute.xlu1 %766  ;;  %v10020_v4 = vpop.permute.xlu0 %764 }
 0x1a6   : > { %14098 = vst [vmem:[#allocation159_spill] sm:$0xff] %v10018_v2  ;;  %14099 = vst [vmem:[#allocation160_spill] sm:$0xff] %v10020_v4  ;;  %v14224_v2 = vld [vmem:[#allocation113_spill] sm:$0xff] }
 0x1a7   : > { %1138 = vrot.lane.b32.xlu1 %v9251_v7, %s8956_s30  ;;  %1136 = vrot.lane.b32.xlu0 %v9254_v8, %s8956_s30 }
 0x1a9   : > { %v10026_v1 = vpop.permute.xlu1 %770  ;;  %v10028_v3 = vpop.permute.xlu0 %768 }
 0x1aa   : > { %14100 = vst [vmem:[#allocation161_spill] sm:$0xff] %v10026_v1  ;;  %14101 = vst [vmem:[#allocation162_spill] sm:$0xff] %v10028_v3  ;;  %v14220_v1 = vld [vmem:[#allocation109_spill] sm:$0xff] }
 0x1ab   : > { %1142 = vrot.lane.b32.xlu1 %v9261_v9, %s8956_s30  ;;  %1140 = vrot.lane.b32.xlu0 %v9264_v10, %s8956_s30 }
 0x1ad   : > { %v10034_v5 = vpop.permute.xlu1 %774  ;;  %v10036_v6 = vpop.permute.xlu0 %772 }
 0x1ae   : > { %14102 = vst [vmem:[#allocation163_spill] sm:$0xff] %v10034_v5  ;;  %14103 = vst [vmem:[#allocation164_spill] sm:$0xff] %v10036_v6  ;;  %v14216_v5 = vld [vmem:[#allocation105_spill] sm:$0xff] }
 0x1af   : > { %1146 = vrot.lane.b32.xlu1 %v9271_v11, %s8956_s30  ;;  %1144 = vrot.lane.b32.xlu0 %v9274_v12, %s8956_s30 }
 0x1b1   : > { %v10042_v7 = vpop.permute.xlu1 %778  ;;  %v10044_v8 = vpop.permute.xlu0 %776 }
 0x1b2   : > { %14104 = vst [vmem:[#allocation165_spill] sm:$0xff] %v10042_v7  ;;  %14105 = vst [vmem:[#allocation166_spill] sm:$0xff] %v10044_v8  ;;  %v14212_v7 = vld [vmem:[#allocation101_spill] sm:$0xff] }
 0x1b3   : > { %1150 = vrot.lane.b32.xlu1 %v9281_v13, %s8956_s30  ;;  %1148 = vrot.lane.b32.xlu0 %v9284_v14, %s8956_s30 }
 0x1b5   : > { %v10050_v9 = vpop.permute.xlu1 %782  ;;  %v10052_v10 = vpop.permute.xlu0 %780 }
 0x1b6   : > { %14106 = vst [vmem:[#allocation167_spill] sm:$0xff] %v10050_v9  ;;  %14107 = vst [vmem:[#allocation168_spill] sm:$0xff] %v10052_v10  ;;  %v14208_v9 = vld [vmem:[#allocation97_spill] sm:$0xff] }
 0x1b7   : > { %1154 = vrot.lane.b32.xlu1 %v9291_v15, %s8956_s30  ;;  %1152 = vrot.lane.b32.xlu0 %v9294_v16, %s8956_s30 }
 0x1b9   : > { %v10058_v11 = vpop.permute.xlu1 %786  ;;  %v10060_v12 = vpop.permute.xlu0 %784 }
 0x1ba   : > { %14108 = vst [vmem:[#allocation169_spill] sm:$0xff] %v10058_v11  ;;  %14109 = vst [vmem:[#allocation170_spill] sm:$0xff] %v10060_v12  ;;  %v14204_v11 = vld [vmem:[#allocation93_spill] sm:$0xff] }
 0x1bb   : > { %1158 = vrot.lane.b32.xlu1 %v9297_v17, %s8956_s30  ;;  %1156 = vrot.lane.b32.xlu0 %v9300_v18, %s8956_s30 }
 0x1bd   : > { %v10066_v13 = vpop.permute.xlu1 %790  ;;  %v10068_v14 = vpop.permute.xlu0 %788 }
 0x1be   : > { %14110 = vst [vmem:[#allocation171_spill] sm:$0xff] %v10066_v13  ;;  %14111 = vst [vmem:[#allocation172_spill] sm:$0xff] %v10068_v14  ;;  %v14200_v13 = vld [vmem:[#allocation89_spill] sm:$0xff] }
 0x1bf   : > { %1162 = vrot.lane.b32.xlu1 %v9307_v19, %s8956_s30  ;;  %1160 = vrot.lane.b32.xlu0 %v9310_v20, %s8956_s30 }
 0x1c1   : > { %v10074_v15 = vpop.permute.xlu1 %794  ;;  %v10076_v16 = vpop.permute.xlu0 %792 }
 0x1c2   : > { %14112 = vst [vmem:[#allocation173_spill] sm:$0xff] %v10074_v15  ;;  %14113 = vst [vmem:[#allocation174_spill] sm:$0xff] %v10076_v16  ;;  %v14196_v15 = vld [vmem:[#allocation85_spill] sm:$0xff] }
 0x1c3   : > { %1166 = vrot.lane.b32.xlu1 %v9317_v21, %s8956_s30  ;;  %1164 = vrot.lane.b32.xlu0 %v9320_v22, %s8956_s30 }
 0x1c5   : > { %v10082_v17 = vpop.permute.xlu1 %798  ;;  %v10084_v18 = vpop.permute.xlu0 %796 }
 0x1c6   : > { %14114 = vst [vmem:[#allocation175_spill] sm:$0xff] %v10082_v17  ;;  %14115 = vst [vmem:[#allocation176_spill] sm:$0xff] %v10084_v18  ;;  %v14192_v17 = vld [vmem:[#allocation81_spill] sm:$0xff] }
 0x1c7   : > { %1170 = vrot.lane.b32.xlu1 %v9331_v23, %s8956_s30  ;;  %1168 = vrot.lane.b32.xlu0 %v9334_v24, %s8956_s30 }
 0x1c9   : > { %v10090_v19 = vpop.permute.xlu1 %802  ;;  %v10092_v20 = vpop.permute.xlu0 %800 }
 0x1ca   : > { %14116 = vst [vmem:[#allocation177_spill] sm:$0xff] %v10090_v19  ;;  %14117 = vst [vmem:[#allocation178_spill] sm:$0xff] %v10092_v20  ;;  %v14188_v19 = vld [vmem:[#allocation77_spill] sm:$0xff] }
 0x1cb   : > { %1174 = vrot.lane.b32.xlu1 %v9341_v25, %s8956_s30  ;;  %1172 = vrot.lane.b32.xlu0 %v9344_v26, %s8956_s30 }
 0x1cd   : > { %v10098_v21 = vpop.permute.xlu1 %806  ;;  %v10100_v22 = vpop.permute.xlu0 %804 }
 0x1ce   : > { %14118 = vst [vmem:[#allocation179_spill] sm:$0xff] %v10098_v21  ;;  %14119 = vst [vmem:[#allocation180_spill] sm:$0xff] %v10100_v22  ;;  %v14184_v21 = vld [vmem:[#allocation73_spill] sm:$0xff] }
 0x1cf   : > { %1178 = vrot.lane.b32.xlu1 %v9351_v27, %s8956_s30  ;;  %1176 = vrot.lane.b32.xlu0 %v9354_v28, %s8956_s30 }
 0x1d1   : > { %v10106_v23 = vpop.permute.xlu1 %810  ;;  %v10108_v24 = vpop.permute.xlu0 %808 }
 0x1d2   : > { %14120 = vst [vmem:[#allocation181_spill] sm:$0xff] %v10106_v23  ;;  %14121 = vst [vmem:[#allocation182_spill] sm:$0xff] %v10108_v24  ;;  %v14180_v23 = vld [vmem:[#allocation69_spill] sm:$0xff] }
 0x1d3   : > { %1182 = vrot.lane.b32.xlu1 %v9361_v29, %s8956_s30  ;;  %1180 = vrot.lane.b32.xlu0 %v9364_v30, %s8956_s30 }
 0x1d5   : > { %v10114_v25 = vpop.permute.xlu1 %814  ;;  %v10116_v26 = vpop.permute.xlu0 %812 }
 0x1d6   : > { %14122 = vst [vmem:[#allocation183_spill] sm:$0xff] %v10114_v25  ;;  %14123 = vst [vmem:[#allocation184_spill] sm:$0xff] %v10116_v26  ;;  %v14177_v25 = vld [vmem:[#allocation65_spill] sm:$0xff] }
 0x1d7   : > { %1186 = vrot.lane.b32.xlu1 %v9371_v31, %s8956_s30  ;;  %1184 = vrot.lane.b32.xlu0 %v9374_v32, %s8956_s30 }
 0x1d9   : > { %v10122_v27 = vpop.permute.xlu1 %818  ;;  %v10124_v28 = vpop.permute.xlu0 %816 }
 0x1da   : > { %14124 = vst [vmem:[#allocation185_spill] sm:$0xff] %v10122_v27  ;;  %14125 = vst [vmem:[#allocation186_spill] sm:$0xff] %v10124_v28  ;;  %v14175_v27 = vld [vmem:[#allocation61_spill] sm:$0xff] }
 0x1db   : > { %1190 = vrot.lane.b32.xlu1 %v9381_v33, %s8956_s30  ;;  %1188 = vrot.lane.b32.xlu0 %v9384_v34, %s8956_s30 }
 0x1dd   : > { %v10130_v29 = vpop.permute.xlu1 %822  ;;  %v10132_v30 = vpop.permute.xlu0 %820 }
 0x1de   : > { %14126 = vst [vmem:[#allocation187_spill] sm:$0xff] %v10130_v29  ;;  %14127 = vst [vmem:[#allocation188_spill] sm:$0xff] %v10132_v30  ;;  %v14173_v29 = vld [vmem:[#allocation57_spill] sm:$0xff] }
 0x1df   : > { %1194 = vrot.lane.b32.xlu1 %v9391_v35, %s8956_s30  ;;  %1192 = vrot.lane.b32.xlu0 %v9394_v36, %s8956_s30 }
 0x1e1   : > { %v10138_v31 = vpop.permute.xlu1 %826  ;;  %v10140_v32 = vpop.permute.xlu0 %824 }
 0x1e2   : > { %14128 = vst [vmem:[#allocation189_spill] sm:$0xff] %v10138_v31  ;;  %14129 = vst [vmem:[#allocation190_spill] sm:$0xff] %v10140_v32  ;;  %v14171_v31 = vld [vmem:[#allocation53_spill] sm:$0xff] }
 0x1e3   : > { %1198 = vrot.lane.b32.xlu1 %v9401_v37, %s8956_s30  ;;  %1196 = vrot.lane.b32.xlu0 %v9404_v38, %s8956_s30 }
 0x1e5   : > { %v10146_v33 = vpop.permute.xlu1 %830  ;;  %v10148_v34 = vpop.permute.xlu0 %828 }
 0x1e6   : > { %14130 = vst [vmem:[#allocation191_spill] sm:$0xff] %v10146_v33  ;;  %14131 = vst [vmem:[#allocation192_spill] sm:$0xff] %v10148_v34  ;;  %v14169_v33 = vld [vmem:[#allocation49_spill] sm:$0xff] }
 0x1e7   : > { %1202 = vrot.lane.b32.xlu1 %v9411_v39, %s8956_s30  ;;  %1200 = vrot.lane.b32.xlu0 %v9414_v40, %s8956_s30 }
 0x1e9   : > { %v10154_v35 = vpop.permute.xlu1 %834  ;;  %v10156_v36 = vpop.permute.xlu0 %832 }
 0x1ea   : > { %14132 = vst [vmem:[#allocation193_spill] sm:$0xff] %v10154_v35  ;;  %14133 = vst [vmem:[#allocation194_spill] sm:$0xff] %v10156_v36  ;;  %v14167_v35 = vld [vmem:[#allocation45_spill] sm:$0xff] }
 0x1eb   : > { %1206 = vrot.lane.b32.xlu1 %v9421_v41, %s8956_s30  ;;  %1204 = vrot.lane.b32.xlu0 %v9424_v42, %s8956_s30 }
 0x1ed   : > { %v10162_v37 = vpop.permute.xlu1 %838  ;;  %v10164_v38 = vpop.permute.xlu0 %836 }
 0x1ee   : > { %14134 = vst [vmem:[#allocation195_spill] sm:$0xff] %v10162_v37  ;;  %14135 = vst [vmem:[#allocation196_spill] sm:$0xff] %v10164_v38  ;;  %v14165_v37 = vld [vmem:[#allocation41_spill] sm:$0xff] }
 0x1ef   : > { %1210 = vrot.lane.b32.xlu1 %v9431_v43, %s8956_s30  ;;  %1208 = vrot.lane.b32.xlu0 %v9434_v44, %s8956_s30 }
 0x1f1   : > { %v10170_v39 = vpop.permute.xlu1 %842  ;;  %v10172_v40 = vpop.permute.xlu0 %840 }
 0x1f2   : > { %14136 = vst [vmem:[#allocation197_spill] sm:$0xff] %v10170_v39  ;;  %14137 = vst [vmem:[#allocation198_spill] sm:$0xff] %v10172_v40  ;;  %v14163_v39 = vld [vmem:[#allocation37_spill] sm:$0xff] }
 0x1f3   : > { %1214 = vrot.lane.b32.xlu1 %v9441_v45, %s8956_s30  ;;  %1212 = vrot.lane.b32.xlu0 %v9444_v46, %s8956_s30 }
 0x1f5   : > { %v10178_v41 = vpop.permute.xlu1 %846  ;;  %v10180_v42 = vpop.permute.xlu0 %844 }
 0x1f6   : > { %14138 = vst [vmem:[#allocation199_spill] sm:$0xff] %v10178_v41  ;;  %14139 = vst [vmem:[#allocation200_spill] sm:$0xff] %v10180_v42  ;;  %v14161_v41 = vld [vmem:[#allocation33_spill] sm:$0xff] }
 0x1f7   : > { %1218 = vrot.lane.b32.xlu1 %v9451_v47, %s8956_s30  ;;  %1216 = vrot.lane.b32.xlu0 %v9454_v48, %s8956_s30 }
 0x1f9   : > { %v10186_v43 = vpop.permute.xlu1 %850  ;;  %v10188_v44 = vpop.permute.xlu0 %848 }
 0x1fa   : > { %14140 = vst [vmem:[#allocation201_spill] sm:$0xff] %v10186_v43  ;;  %14141 = vst [vmem:[#allocation202_spill] sm:$0xff] %v10188_v44  ;;  %v14159_v43 = vld [vmem:[#allocation29_spill] sm:$0xff] }
 0x1fb   : > { %1222 = vrot.lane.b32.xlu1 %v9461_v49, %s8956_s30  ;;  %1220 = vrot.lane.b32.xlu0 %v9464_v50, %s8956_s30 }
 0x1fd   : > { %v10194_v45 = vpop.permute.xlu1 %854  ;;  %v10196_v46 = vpop.permute.xlu0 %852 }
 0x1fe   : > { %14142 = vst [vmem:[#allocation203_spill] sm:$0xff] %v10194_v45  ;;  %14143 = vst [vmem:[#allocation204_spill] sm:$0xff] %v10196_v46  ;;  %v14157_v45 = vld [vmem:[#allocation25_spill] sm:$0xff] }
 0x1ff   : > { %1226 = vrot.lane.b32.xlu1 %v9471_v51, %s8956_s30  ;;  %1224 = vrot.lane.b32.xlu0 %v9474_v52, %s8956_s30  ;;  %v14148_v51 = vld [vmem:[#allocation14_spill] sm:$0xff] }
 0x201   : > { %v10202_v47 = vpop.permute.xlu1 %858  ;;  %v10204_v48 = vpop.permute.xlu0 %856 }
 0x202   : > { %14144 = vst [vmem:[#allocation205_spill] sm:$0xff] %v10202_v47  ;;  %14145 = vst [vmem:[#allocation206_spill] sm:$0xff] %v10204_v48  ;;  %v14151_v48 = vld [vmem:[#allocation15_spill] sm:$0xff] }
 0x203   : > { %1230 = vrot.lane.b32.xlu1 %v9481_v53, %s8956_s30  ;;  %1228 = vrot.lane.b32.xlu0 %v9484_v54, %s8956_s30  ;;  %v14152_v53 = vld [vmem:[#allocation16_spill] sm:$0xff] }
 0x205   : > { %v10210_v49 = vpop.permute.xlu1 %862  ;;  %v10212_v50 = vpop.permute.xlu0 %860 }
 0x206   : > { %14146 = vst [vmem:[#allocation207_spill] sm:$0xff] %v10210_v49  ;;  %14147 = vst [vmem:[#allocation208_spill] sm:$0xff] %v10212_v50  ;;  %v14153_v50 = vld [vmem:[#allocation17_spill] sm:$0xff] }
 0x207   : > { %1234 = vrot.lane.b32.xlu1 %v9491_v55, %s8956_s30  ;;  %1232 = vrot.lane.b32.xlu0 %v14148_v51, %s8956_s30  ;;  %v14154_v55 = vld [vmem:[#allocation18_spill] sm:$0xff] }
 0x209   : > { %v10218_v52 = vpop.permute.xlu1 %866  ;;  %v10220_v47 = vpop.permute.xlu0 %864 }
 0x20a   : > { %14149 = vst [vmem:[#allocation14_spill] sm:$0xff] %v10218_v52  ;;  %14150 = vst [vmem:[#allocation209_spill] sm:$0xff] %v10220_v47  ;;  %v14155_v47 = vld [vmem:[#allocation21_spill] sm:$0xff] }
 0x20b   : > { %1238 = vrot.lane.b32.xlu1 %v14151_v48, %s8956_s30  ;;  %1236 = vrot.lane.b32.xlu0 %v14152_v53, %s8956_s30  ;;  %v14156_v48 = vld [vmem:[#allocation22_spill] sm:$0xff] }
 0x20d   : > { %v10226_v54 = vpop.permute.xlu1 %1126  ;;  %v10228_v49 = vpop.permute.xlu0 %1124 }
 0x20f   : > { %1242 = vrot.lane.b32.xlu1 %v14153_v50, %s8956_s30  ;;  %1240 = vrot.lane.b32.xlu0 %v14154_v55, %s8956_s30  ;;  %v14158_v50 = vld [vmem:[#allocation26_spill] sm:$0xff] }
 0x211   : > { %v10234_v51 = vpop.permute.xlu1 %1130  ;;  %v10236_v52 = vpop.permute.xlu0 %1128 }
 0x213   : > { %1246 = vrot.lane.b32.xlu1 %v14155_v47, %s8956_s30  ;;  %1244 = vrot.lane.b32.xlu0 %v14156_v48, %s8956_s30  ;;  %v14160_v47 = vld [vmem:[#allocation30_spill] sm:$0xff] }
 0x215   : > { %v10242_v53 = vpop.permute.xlu1 %1134  ;;  %v10244_v46 = vpop.permute.xlu0 %1132 }
 0x217   : > { %1250 = vrot.lane.b32.xlu1 %v14157_v45, %s8956_s30  ;;  %1248 = vrot.lane.b32.xlu0 %v14158_v50, %s8956_s30  ;;  %v14162_v45 = vld [vmem:[#allocation34_spill] sm:$0xff] }
 0x219   : > { %v10250_v55 = vpop.permute.xlu1 %1138  ;;  %v10252_v44 = vpop.permute.xlu0 %1136 }
 0x21b   : > { %1254 = vrot.lane.b32.xlu1 %v14159_v43, %s8956_s30  ;;  %1252 = vrot.lane.b32.xlu0 %v14160_v47, %s8956_s30  ;;  %v14164_v43 = vld [vmem:[#allocation38_spill] sm:$0xff] }
 0x21d   : > { %v10258_v48 = vpop.permute.xlu1 %1142  ;;  %v10260_v42 = vpop.permute.xlu0 %1140 }
 0x21f   : > { %1258 = vrot.lane.b32.xlu1 %v14161_v41, %s8956_s30  ;;  %1256 = vrot.lane.b32.xlu0 %v14162_v45, %s8956_s30  ;;  %v14166_v41 = vld [vmem:[#allocation42_spill] sm:$0xff] }
 0x221   : > { %v10266_v50 = vpop.permute.xlu1 %1146  ;;  %v10268_v40 = vpop.permute.xlu0 %1144 }
 0x223   : > { %1262 = vrot.lane.b32.xlu1 %v14163_v39, %s8956_s30  ;;  %1260 = vrot.lane.b32.xlu0 %v14164_v43, %s8956_s30  ;;  %v14168_v39 = vld [vmem:[#allocation46_spill] sm:$0xff] }
 0x225   : > { %v10274_v47 = vpop.permute.xlu1 %1150  ;;  %v10276_v38 = vpop.permute.xlu0 %1148 }
 0x227   : > { %1266 = vrot.lane.b32.xlu1 %v14165_v37, %s8956_s30  ;;  %1264 = vrot.lane.b32.xlu0 %v14166_v41, %s8956_s30  ;;  %v14170_v37 = vld [vmem:[#allocation50_spill] sm:$0xff] }
 0x229   : > { %v10282_v45 = vpop.permute.xlu1 %1154  ;;  %v10284_v36 = vpop.permute.xlu0 %1152 }
 0x22b   : > { %1270 = vrot.lane.b32.xlu1 %v14167_v35, %s8956_s30  ;;  %1268 = vrot.lane.b32.xlu0 %v14168_v39, %s8956_s30  ;;  %v14172_v35 = vld [vmem:[#allocation54_spill] sm:$0xff] }
 0x22d   : > { %v10290_v43 = vpop.permute.xlu1 %1158  ;;  %v10292_v34 = vpop.permute.xlu0 %1156 }
 0x22f   : > { %1274 = vrot.lane.b32.xlu1 %v14169_v33, %s8956_s30  ;;  %1272 = vrot.lane.b32.xlu0 %v14170_v37, %s8956_s30  ;;  %v14174_v33 = vld [vmem:[#allocation58_spill] sm:$0xff] }
 0x231   : > { %v10298_v41 = vpop.permute.xlu1 %1162  ;;  %v10300_v32 = vpop.permute.xlu0 %1160 }
 0x233   : > { %1278 = vrot.lane.b32.xlu1 %v14171_v31, %s8956_s30  ;;  %1276 = vrot.lane.b32.xlu0 %v14172_v35, %s8956_s30  ;;  %v14176_v31 = vld [vmem:[#allocation62_spill] sm:$0xff] }
 0x235   : > { %v10306_v39 = vpop.permute.xlu1 %1166  ;;  %v10308_v30 = vpop.permute.xlu0 %1164 }
 0x237   : > { %1282 = vrot.lane.b32.xlu1 %v14173_v29, %s8956_s30  ;;  %1280 = vrot.lane.b32.xlu0 %v14174_v33, %s8956_s30  ;;  %v14178_v29 = vld [vmem:[#allocation66_spill] sm:$0xff] }
 0x239   : > { %v10314_v37 = vpop.permute.xlu1 %1170  ;;  %v10316_v28 = vpop.permute.xlu0 %1168 }
 0x23b   : > { %1286 = vrot.lane.b32.xlu1 %v14175_v27, %s8956_s30  ;;  %1284 = vrot.lane.b32.xlu0 %v14176_v31, %s8956_s30  ;;  %v14181_v27 = vld [vmem:[#allocation70_spill] sm:$0xff] }
 0x23d   : > { %v10322_v35 = vpop.permute.xlu1 %1174  ;;  %v10324_v26 = vpop.permute.xlu0 %1172 }
 0x23f   : > { %1290 = vrot.lane.b32.xlu1 %v14177_v25, %s8956_s30  ;;  %1288 = vrot.lane.b32.xlu0 %v14178_v29, %s8956_s30  ;;  %v14185_v25 = vld [vmem:[#allocation74_spill] sm:$0xff] }
 0x241   : > { %v10330_v33 = vpop.permute.xlu1 %1178  ;;  %v10332_v24 = vpop.permute.xlu0 %1176 }
 0x242   : > { %14179 = vst [vmem:[#allocation15_spill] sm:$0xff] %v10332_v24 }
 0x243   : > { %1294 = vrot.lane.b32.xlu1 %v14180_v23, %s8956_s30  ;;  %1292 = vrot.lane.b32.xlu0 %v14181_v27, %s8956_s30  ;;  %v14189_v23 = vld [vmem:[#allocation78_spill] sm:$0xff] }
 0x245   : > { %v10338_v31 = vpop.permute.xlu1 %1182  ;;  %v10340_v22 = vpop.permute.xlu0 %1180 }
 0x246   : > { %14182 = vst [vmem:[#allocation16_spill] sm:$0xff] %v10338_v31  ;;  %14183 = vst [vmem:[#allocation17_spill] sm:$0xff] %v10340_v22  ;;  %v10721_v31 = vld [vmem:[%s9206_s21 + $0x7c] sm:$0xf] }
 0x247   : > { %1298 = vrot.lane.b32.xlu1 %v14184_v21, %s8956_s30  ;;  %1296 = vrot.lane.b32.xlu0 %v14185_v25, %s8956_s30  ;;  %v14193_v21 = vld [vmem:[#allocation82_spill] sm:$0xff]  ;;  %14295 = vst [vmem:[#allocation218_spill] sm:$0xff] %v10721_v31 }
 0x249   : > { %v10346_v29 = vpop.permute.xlu1 %1186  ;;  %v10348_v20 = vpop.permute.xlu0 %1184 }
 0x24a   : > { %14186 = vst [vmem:[#allocation18_spill] sm:$0xff] %v10346_v29  ;;  %14187 = vst [vmem:[#allocation21_spill] sm:$0xff] %v10348_v20  ;;  %v10699_v20 = vld [vmem:[%s9206_s21 + $0x74] sm:$0xf] }
 0x24b   : > { %1302 = vrot.lane.b32.xlu1 %v14188_v19, %s8956_s30  ;;  %1300 = vrot.lane.b32.xlu0 %v14189_v23, %s8956_s30  ;;  %v14197_v19 = vld [vmem:[#allocation86_spill] sm:$0xff]  ;;  %14291 = vst [vmem:[#allocation214_spill] sm:$0xff] %v10699_v20 }
 0x24d   : > { %v10354_v27 = vpop.permute.xlu1 %1190  ;;  %v10356_v18 = vpop.permute.xlu0 %1188 }
 0x24e   : > { %14190 = vst [vmem:[#allocation22_spill] sm:$0xff] %v10354_v27  ;;  %14191 = vst [vmem:[#allocation25_spill] sm:$0xff] %v10356_v18  ;;  %v10685_v18 = vld [vmem:[%s9206_s21 + $0x6c] sm:$0xf] }
 0x24f   : > { %1306 = vrot.lane.b32.xlu1 %v14192_v17, %s8956_s30  ;;  %1304 = vrot.lane.b32.xlu0 %v14193_v21, %s8956_s30  ;;  %v14201_v17 = vld [vmem:[#allocation90_spill] sm:$0xff] }
 0x251   : > { %v10362_v25 = vpop.permute.xlu1 %1194  ;;  %v10364_v16 = vpop.permute.xlu0 %1192 }
 0x252   : > { %14194 = vst [vmem:[#allocation26_spill] sm:$0xff] %v10362_v25  ;;  %14195 = vst [vmem:[#allocation29_spill] sm:$0xff] %v10364_v16 }
 0x253   : > { %1310 = vrot.lane.b32.xlu1 %v14196_v15, %s8956_s30  ;;  %1308 = vrot.lane.b32.xlu0 %v14197_v19, %s8956_s30  ;;  %v14205_v15 = vld [vmem:[#allocation94_spill] sm:$0xff] }
 0x255   : > { %v10370_v23 = vpop.permute.xlu1 %1198  ;;  %v10372_v14 = vpop.permute.xlu0 %1196 }
 0x256   : > { %14198 = vst [vmem:[#allocation30_spill] sm:$0xff] %v10370_v23  ;;  %14199 = vst [vmem:[#allocation33_spill] sm:$0xff] %v10372_v14 }
 0x257   : > { %1314 = vrot.lane.b32.xlu1 %v14200_v13, %s8956_s30  ;;  %1312 = vrot.lane.b32.xlu0 %v14201_v17, %s8956_s30  ;;  %v14209_v13 = vld [vmem:[#allocation98_spill] sm:$0xff] }
 0x259   : > { %v10378_v21 = vpop.permute.xlu1 %1202  ;;  %v10380_v12 = vpop.permute.xlu0 %1200 }
 0x25a   : > { %14202 = vst [vmem:[#allocation34_spill] sm:$0xff] %v10378_v21  ;;  %14203 = vst [vmem:[#allocation37_spill] sm:$0xff] %v10380_v12 }
 0x25b   : > { %1318 = vrot.lane.b32.xlu1 %v14204_v11, %s8956_s30  ;;  %1316 = vrot.lane.b32.xlu0 %v14205_v15, %s8956_s30  ;;  %v14213_v11 = vld [vmem:[#allocation102_spill] sm:$0xff] }
 0x25d   : > { %v10386_v19 = vpop.permute.xlu1 %1206  ;;  %v10388_v10 = vpop.permute.xlu0 %1204 }
 0x25e   : > { %14206 = vst [vmem:[#allocation38_spill] sm:$0xff] %v10386_v19  ;;  %14207 = vst [vmem:[#allocation41_spill] sm:$0xff] %v10388_v10 }
 0x25f   : > { %1322 = vrot.lane.b32.xlu1 %v14208_v9, %s8956_s30  ;;  %1320 = vrot.lane.b32.xlu0 %v14209_v13, %s8956_s30  ;;  %v14217_v9 = vld [vmem:[#allocation106_spill] sm:$0xff] }
 0x261   : > { %v10394_v17 = vpop.permute.xlu1 %1210  ;;  %v10396_v8 = vpop.permute.xlu0 %1208 }
 0x262   : > { %14210 = vst [vmem:[#allocation42_spill] sm:$0xff] %v10394_v17  ;;  %14211 = vst [vmem:[#allocation45_spill] sm:$0xff] %v10396_v8 }
 0x263   : > { %1326 = vrot.lane.b32.xlu1 %v14212_v7, %s8956_s30  ;;  %1324 = vrot.lane.b32.xlu0 %v14213_v11, %s8956_s30  ;;  %v14221_v7 = vld [vmem:[#allocation110_spill] sm:$0xff] }
 0x265   : > { %v10402_v15 = vpop.permute.xlu1 %1214  ;;  %v10404_v6 = vpop.permute.xlu0 %1212 }
 0x266   : > { %14214 = vst [vmem:[#allocation46_spill] sm:$0xff] %v10402_v15  ;;  %14215 = vst [vmem:[#allocation49_spill] sm:$0xff] %v10404_v6 }
 0x267   : > { %1330 = vrot.lane.b32.xlu1 %v14216_v5, %s8956_s30  ;;  %1328 = vrot.lane.b32.xlu0 %v14217_v9, %s8956_s30  ;;  %v14225_v5 = vld [vmem:[#allocation114_spill] sm:$0xff] }
 0x269   : > { %v10410_v13 = vpop.permute.xlu1 %1218  ;;  %v10412_v3 = vpop.permute.xlu0 %1216 }
 0x26a   : > { %14218 = vst [vmem:[#allocation50_spill] sm:$0xff] %v10410_v13  ;;  %14219 = vst [vmem:[#allocation53_spill] sm:$0xff] %v10412_v3 }
 0x26b   : > { %1334 = vrot.lane.b32.xlu1 %v14220_v1, %s8956_s30  ;;  %1332 = vrot.lane.b32.xlu0 %v14221_v7, %s8956_s30  ;;  %v14229_v1 = vld [vmem:[#allocation118_spill] sm:$0xff] }
 0x26d   : > { %v10418_v11 = vpop.permute.xlu1 %1222  ;;  %v10420_v4 = vpop.permute.xlu0 %1220 }
 0x26e   : > { %14222 = vst [vmem:[#allocation54_spill] sm:$0xff] %v10418_v11  ;;  %14223 = vst [vmem:[#allocation57_spill] sm:$0xff] %v10420_v4 }
 0x26f   : > { %1338 = vrot.lane.b32.xlu1 %v14224_v2, %s8956_s30  ;;  %1336 = vrot.lane.b32.xlu0 %v14225_v5, %s8956_s30  ;;  %v14233_v2 = vld [vmem:[#allocation122_spill] sm:$0xff] }
 0x271   : > { %v10426_v9 = vpop.permute.xlu1 %1226  ;;  %v10428_v62 = vpop.permute.xlu0 %1224 }
 0x272   : > { %14226 = vst [vmem:[#allocation58_spill] sm:$0xff] %v10426_v9  ;;  %14227 = vst [vmem:[#allocation61_spill] sm:$0xff] %v10428_v62 }
 0x273   : > { %1342 = vrot.lane.b32.xlu1 %v14228_v61, %s8956_s30  ;;  %1340 = vrot.lane.b32.xlu0 %v14229_v1, %s8956_s30  ;;  %v14237_v61 = vld [vmem:[#allocation126_spill] sm:$0xff] }
 0x275   : > { %v10434_v7 = vpop.permute.xlu1 %1230  ;;  %v10436_v59 = vpop.permute.xlu0 %1228 }
 0x276   : > { %14230 = vst [vmem:[#allocation62_spill] sm:$0xff] %v10434_v7  ;;  %14231 = vst [vmem:[#allocation65_spill] sm:$0xff] %v10436_v59  ;;  %v14240_v59 = vld [vmem:[#allocation129_spill] sm:$0xff] }
 0x277   : > { %1346 = vrot.lane.b32.xlu1 %v14232_v57, %s8956_s30  ;;  %1344 = vrot.lane.b32.xlu0 %v14233_v2, %s8956_s30  ;;  %v14241_v57 = vld [vmem:[#allocation130_spill] sm:$0xff] }
 0x279   : > { %v10442_v5 = vpop.permute.xlu1 %1234  ;;  %v10444_v58 = vpop.permute.xlu0 %1232 }
 0x27a   : > { %14234 = vst [vmem:[#allocation66_spill] sm:$0xff] %v10442_v5  ;;  %14235 = vst [vmem:[#allocation69_spill] sm:$0xff] %v10444_v58  ;;  %v14244_v58 = vld [vmem:[#allocation133_spill] sm:$0xff] }
 0x27b   : > { %1350 = vrot.lane.b32.xlu1 %v14236_v60, %s8956_s30  ;;  %1348 = vrot.lane.b32.xlu0 %v14237_v61, %s8956_s30  ;;  %v14245_v60 = vld [vmem:[#allocation134_spill] sm:$0xff] }
 0x27d   : > { %v10450_v1 = vpop.permute.xlu1 %1238  ;;  %v10452_v56 = vpop.permute.xlu0 %1236 }
 0x27e   : > { %14238 = vst [vmem:[#allocation70_spill] sm:$0xff] %v10450_v1  ;;  %14239 = vst [vmem:[#allocation73_spill] sm:$0xff] %v10452_v56  ;;  %v14248_v56 = vld [vmem:[#allocation137_spill] sm:$0xff] }
 0x27f   : > { %1354 = vrot.lane.b32.xlu1 %v14240_v59, %s8956_s30  ;;  %1352 = vrot.lane.b32.xlu0 %v14241_v57, %s8956_s30  ;;  %v14249_v59 = vld [vmem:[#allocation138_spill] sm:$0xff] }
 0x281   : > { %v10458_v2 = vpop.permute.xlu1 %1242  ;;  %v10460_v5 = vpop.permute.xlu0 %1240 }
 0x282   : > { %14242 = vst [vmem:[#allocation74_spill] sm:$0xff] %v10458_v2  ;;  %14243 = vst [vmem:[#allocation77_spill] sm:$0xff] %v10460_v5 }
 0x283   : > { %1358 = vrot.lane.b32.xlu1 %v14244_v58, %s8956_s30  ;;  %1356 = vrot.lane.b32.xlu0 %v14245_v60, %s8956_s30  ;;  %v14252_v58 = vld [vmem:[#allocation141_spill] sm:$0xff]  ;;  %v14253_v60 = vld [vmem:[#allocation142_spill] sm:$0xff] }
 0x285   : > { %v10466_v61 = vpop.permute.xlu1 %1246  ;;  %v10468_v1 = vpop.permute.xlu0 %1244 }
 0x286   : > { %14246 = vst [vmem:[#allocation78_spill] sm:$0xff] %v10466_v61  ;;  %14247 = vst [vmem:[#allocation81_spill] sm:$0xff] %v10468_v1 }
 0x287   : > { %1362 = vrot.lane.b32.xlu1 %v14248_v56, %s8956_s30  ;;  %1360 = vrot.lane.b32.xlu0 %v14249_v59, %s8956_s30  ;;  %v14256_v56 = vld [vmem:[#allocation145_spill] sm:$0xff]  ;;  %v14257_v59 = vld [vmem:[#allocation146_spill] sm:$0xff] }
 0x289   : > { %v10474_v57 = vpop.permute.xlu1 %1250  ;;  %v10476_v5 = vpop.permute.xlu0 %1248 }
 0x28a   : > { %14250 = vst [vmem:[#allocation82_spill] sm:$0xff] %v10474_v57  ;;  %14251 = vst [vmem:[#allocation85_spill] sm:$0xff] %v10476_v5 }
 0x28b   : > { %1366 = vrot.lane.b32.xlu1 %v14252_v58, %s8956_s30  ;;  %1364 = vrot.lane.b32.xlu0 %v14253_v60, %s8956_s30 }
 0x28d   : > { %v10482_v61 = vpop.permute.xlu1 %1254  ;;  %v10484_v1 = vpop.permute.xlu0 %1252 }
 0x28e   : > { %14254 = vst [vmem:[#allocation86_spill] sm:$0xff] %v10482_v61  ;;  %14255 = vst [vmem:[#allocation89_spill] sm:$0xff] %v10484_v1 }
 0x28f   : > { %1370 = vrot.lane.b32.xlu1 %v14256_v56, %s8956_s30  ;;  %1368 = vrot.lane.b32.xlu0 %v14257_v59, %s8956_s30  ;;  %v10503_v56 = vld [vmem:[%s9206_s21 + $0x4] sm:$0xf]  ;;  %v10508_v59 = vld [vmem:[%s9206_s21] sm:$0xf] }
 0x290   : > { %v1508_v29 = vmul.bf16 %v10508_v59, %v10228_v49 }
 0x291   : > { %v10490_v5 = vpop.permute.xlu1 %1258  ;;  %v10492_v57 = vpop.permute.xlu0 %1256 }
 0x292   : > { %14258 = vst [vmem:[#allocation90_spill] sm:$0xff] %v10490_v5  ;;  %14259 = vst [vmem:[#allocation93_spill] sm:$0xff] %v10492_v57 }
 0x293   : > { %1374 = vrot.lane.b32.xlu1 %v9973_v63, %s8956_s30  ;;  %1372 = vrot.lane.b32.xlu0 %v9976_v0, %s8956_s30 }
 0x295   : > { %v10498_v58 = vpop.permute.xlu1 %1262  ;;  %v10500_v60 = vpop.permute.xlu0 %1260 }
 0x296   : > { %14260 = vst [vmem:[#allocation94_spill] sm:$0xff] %v10498_v58  ;;  %14261 = vst [vmem:[#allocation97_spill] sm:$0xff] %v10500_v60  ;;  %v10517_v58 = vld [vmem:[%s9206_s21 + $0xc] sm:$0xf]  ;;  %v10522_v60 = vld [vmem:[%s9206_s21 + $0x8] sm:$0xf] }
 0x297   : > { %1638 = vrot.lane.b32.xlu1 %v10503_v56, %s8957_s9  ;;  %1636 = vrot.lane.b32.xlu0 %v10508_v59, %s8957_s9 }
 0x299   : > { %v10512_v63 = vpop.permute.xlu1 %1266  ;;  %v10514_v0 = vpop.permute.xlu0 %1264 }
 0x29a   : > { %14262 = vst [vmem:[#allocation98_spill] sm:$0xff] %v10512_v63  ;;  %14263 = vst [vmem:[#allocation101_spill] sm:$0xff] %v10514_v0  ;;  %v10531_v63 = vld [vmem:[%s9206_s21 + $0x14] sm:$0xf]  ;;  %v10536_v0 = vld [vmem:[%s9206_s21 + $0x10] sm:$0xf] }
 0x29b   : > { %1642 = vrot.lane.b32.xlu1 %v10517_v58, %s8957_s9  ;;  %1640 = vrot.lane.b32.xlu0 %v10522_v60, %s8957_s9 }
 0x29d   : > { %v10526_v57 = vpop.permute.xlu1 %1270  ;;  %v10528_v5 = vpop.permute.xlu0 %1268 }
 0x29e   : > { %14264 = vst [vmem:[#allocation102_spill] sm:$0xff] %v10526_v57  ;;  %14265 = vst [vmem:[#allocation105_spill] sm:$0xff] %v10528_v5  ;;  %v10545_v57 = vld [vmem:[%s9206_s21 + $0x1c] sm:$0xf]  ;;  %v10550_v5 = vld [vmem:[%s9206_s21 + $0x18] sm:$0xf] }
 0x29f   : > { %1646 = vrot.lane.b32.xlu1 %v10531_v63, %s8957_s9  ;;  %1644 = vrot.lane.b32.xlu0 %v10536_v0, %s8957_s9 }
 0x2a1   : > { %v10540_v1 = vpop.permute.xlu1 %1274  ;;  %v10542_v61 = vpop.permute.xlu0 %1272 }
 0x2a2   : > { %14266 = vst [vmem:[#allocation106_spill] sm:$0xff] %v10540_v1  ;;  %14267 = vst [vmem:[#allocation109_spill] sm:$0xff] %v10542_v61  ;;  %v10559_v1 = vld [vmem:[%s9206_s21 + $0x24] sm:$0xf]  ;;  %v10564_v61 = vld [vmem:[%s9206_s21 + $0x20] sm:$0xf] }
 0x2a3   : > { %1650 = vrot.lane.b32.xlu1 %v10545_v57, %s8957_s9  ;;  %1648 = vrot.lane.b32.xlu0 %v10550_v5, %s8957_s9 }
 0x2a5   : > { %v10554_v2 = vpop.permute.xlu1 %1278  ;;  %v10556_v7 = vpop.permute.xlu0 %1276 }
 0x2a6   : > { %14268 = vst [vmem:[#allocation110_spill] sm:$0xff] %v10554_v2  ;;  %14269 = vst [vmem:[#allocation113_spill] sm:$0xff] %v10556_v7  ;;  %v10573_v2 = vld [vmem:[%s9206_s21 + $0x2c] sm:$0xf]  ;;  %v10578_v7 = vld [vmem:[%s9206_s21 + $0x28] sm:$0xf] }
 0x2a7   : > { %1654 = vrot.lane.b32.xlu1 %v10559_v1, %s8957_s9  ;;  %1652 = vrot.lane.b32.xlu0 %v10564_v61, %s8957_s9 }
 0x2a9   : > { %v10568_v62 = vpop.permute.xlu1 %1282  ;;  %v10570_v9 = vpop.permute.xlu0 %1280 }
 0x2aa   : > { %14270 = vst [vmem:[#allocation114_spill] sm:$0xff] %v10568_v62  ;;  %14271 = vst [vmem:[#allocation117_spill] sm:$0xff] %v10570_v9  ;;  %v10587_v62 = vld [vmem:[%s9206_s21 + $0x34] sm:$0xf]  ;;  %v10592_v9 = vld [vmem:[%s9206_s21 + $0x30] sm:$0xf] }
 0x2ab   : > { %1658 = vrot.lane.b32.xlu1 %v10573_v2, %s8957_s9  ;;  %1656 = vrot.lane.b32.xlu0 %v10578_v7, %s8957_s9 }
 0x2ad   : > { %v10582_v4 = vpop.permute.xlu1 %1286  ;;  %v10584_v11 = vpop.permute.xlu0 %1284 }
 0x2ae   : > { %14272 = vst [vmem:[#allocation118_spill] sm:$0xff] %v10582_v4  ;;  %14273 = vst [vmem:[#allocation121_spill] sm:$0xff] %v10584_v11  ;;  %v10601_v4 = vld [vmem:[%s9206_s21 + $0x3c] sm:$0xf]  ;;  %v10606_v11 = vld [vmem:[%s9206_s21 + $0x38] sm:$0xf] }
 0x2af   : > { %1662 = vrot.lane.b32.xlu1 %v10587_v62, %s8957_s9  ;;  %1660 = vrot.lane.b32.xlu0 %v10592_v9, %s8957_s9 }
 0x2b1   : > { %v10596_v3 = vpop.permute.xlu1 %1290  ;;  %v10598_v13 = vpop.permute.xlu0 %1288 }
 0x2b2   : > { %14274 = vst [vmem:[#allocation122_spill] sm:$0xff] %v10596_v3  ;;  %14275 = vst [vmem:[#allocation125_spill] sm:$0xff] %v10598_v13  ;;  %v10615_v3 = vld [vmem:[%s9206_s21 + $0x44] sm:$0xf]  ;;  %v10620_v13 = vld [vmem:[%s9206_s21 + $0x40] sm:$0xf] }
 0x2b3   : > { %1666 = vrot.lane.b32.xlu1 %v10601_v4, %s8957_s9  ;;  %1664 = vrot.lane.b32.xlu0 %v10606_v11, %s8957_s9 }
 0x2b5   : > { %v10610_v6 = vpop.permute.xlu1 %1294  ;;  %v10612_v15 = vpop.permute.xlu0 %1292 }
 0x2b6   : > { %14276 = vst [vmem:[#allocation126_spill] sm:$0xff] %v10610_v6  ;;  %14277 = vst [vmem:[#allocation129_spill] sm:$0xff] %v10612_v15  ;;  %v10629_v6 = vld [vmem:[%s9206_s21 + $0x4c] sm:$0xf]  ;;  %v10634_v15 = vld [vmem:[%s9206_s21 + $0x48] sm:$0xf] }
 0x2b7   : > { %1670 = vrot.lane.b32.xlu1 %v10615_v3, %s8957_s9  ;;  %1668 = vrot.lane.b32.xlu0 %v10620_v13, %s8957_s9 }
 0x2b9   : > { %v10624_v8 = vpop.permute.xlu1 %1298  ;;  %v10626_v17 = vpop.permute.xlu0 %1296 }
 0x2ba   : > { %14278 = vst [vmem:[#allocation130_spill] sm:$0xff] %v10624_v8  ;;  %14279 = vst [vmem:[#allocation133_spill] sm:$0xff] %v10626_v17  ;;  %v10643_v8 = vld [vmem:[%s9206_s21 + $0x54] sm:$0xf]  ;;  %v10648_v17 = vld [vmem:[%s9206_s21 + $0x50] sm:$0xf] }
 0x2bb   : > { %1674 = vrot.lane.b32.xlu1 %v10629_v6, %s8957_s9  ;;  %1672 = vrot.lane.b32.xlu0 %v10634_v15, %s8957_s9 }
 0x2bd   : > { %v10638_v10 = vpop.permute.xlu1 %1302  ;;  %v10640_v19 = vpop.permute.xlu0 %1300 }
 0x2be   : > { %14280 = vst [vmem:[#allocation134_spill] sm:$0xff] %v10638_v10  ;;  %14281 = vst [vmem:[#allocation137_spill] sm:$0xff] %v10640_v19  ;;  %v10657_v10 = vld [vmem:[%s9206_s21 + $0x5c] sm:$0xf]  ;;  %v10662_v19 = vld [vmem:[%s9206_s21 + $0x58] sm:$0xf] }
 0x2bf   : > { %1678 = vrot.lane.b32.xlu1 %v10643_v8, %s8957_s9  ;;  %1676 = vrot.lane.b32.xlu0 %v10648_v17, %s8957_s9 }
 0x2c1   : > { %v10652_v12 = vpop.permute.xlu1 %1306  ;;  %v10654_v21 = vpop.permute.xlu0 %1304 }
 0x2c2   : > { %14282 = vst [vmem:[#allocation138_spill] sm:$0xff] %v10652_v12  ;;  %14283 = vst [vmem:[#allocation141_spill] sm:$0xff] %v10654_v21  ;;  %v10671_v12 = vld [vmem:[%s9206_s21 + $0x64] sm:$0xf]  ;;  %v10676_v21 = vld [vmem:[%s9206_s21 + $0x60] sm:$0xf] }
 0x2c3   : > { %1682 = vrot.lane.b32.xlu1 %v10657_v10, %s8957_s9  ;;  %1680 = vrot.lane.b32.xlu0 %v10662_v19, %s8957_s9 }
 0x2c5   : > { %v10666_v14 = vpop.permute.xlu1 %1310  ;;  %v10668_v23 = vpop.permute.xlu0 %1308 }
 0x2c6   : > { %14284 = vst [vmem:[#allocation142_spill] sm:$0xff] %v10666_v14  ;;  %14285 = vst [vmem:[#allocation145_spill] sm:$0xff] %v10668_v23  ;;  %v10690_v23 = vld [vmem:[%s9206_s21 + $0x68] sm:$0xf] }
 0x2c7   : > { %1686 = vrot.lane.b32.xlu1 %v10671_v12, %s8957_s9  ;;  %1684 = vrot.lane.b32.xlu0 %v10676_v21, %s8957_s9  ;;  %14288 = vst [vmem:[#allocation211_spill] sm:$0xff] %v10690_v23 }
 0x2c9   : > { %v10680_v16 = vpop.permute.xlu1 %1314  ;;  %v10682_v25 = vpop.permute.xlu0 %1312 }
 0x2ca   : > { %14286 = vst [vmem:[#allocation146_spill] sm:$0xff] %v10680_v16  ;;  %14287 = vst [vmem:[#allocation210_spill] sm:$0xff] %v10682_v25  ;;  %v10704_v25 = vld [vmem:[%s9206_s21 + $0x70] sm:$0xf]  ;;  %v1509_v16 = vmul.bf16 %v10503_v56, %v10226_v54 }
 0x2cb   : > { %1690 = vrot.lane.b32.xlu1 %v10685_v18, %s8957_s9  ;;  %1688 = vrot.lane.b32.xlu0 %v10690_v23, %s8957_s9  ;;  %14292 = vst [vmem:[#allocation215_spill] sm:$0xff] %v10704_v25 }
 0x2cc   : > { %v7298_v49 = vcombine.low %v1508_v29, %v1509_v16 }
 0x2cd   : > { %v10694_v14 = vpop.permute.xlu1 %1318  ;;  %v10696_v27 = vpop.permute.xlu0 %1316 }
 0x2ce   : > { %14289 = vst [vmem:[#allocation212_spill] sm:$0xff] %v10694_v14  ;;  %14290 = vst [vmem:[#allocation213_spill] sm:$0xff] %v10696_v27  ;;  %v1511_v14 = vmul.bf16 %v10517_v58, %v10234_v51  ;;  %v1510_v27 = vmul.bf16 %v10522_v60, %v10236_v52 }
 0x2cf   : > { %1694 = vrot.lane.b32.xlu1 %v10699_v20, %s8957_s9  ;;  %1692 = vrot.lane.b32.xlu0 %v10704_v25, %s8957_s9  ;;  %v10726_v25 = vld [vmem:[%s9206_s21 + $0x78] sm:$0xf] }
 0x2d0   : > { %14296 = vst [vmem:[#allocation219_spill] sm:$0xff] %v10726_v25  ;;  %v7299_v54 = vcombine.low %v1510_v27, %v1511_v14 }
 0x2d1   : > { %v10716_v22 = vpop.permute.xlu1 %1322  ;;  %v10718_v20 = vpop.permute.xlu0 %1320 }
 0x2d2   : > { %14293 = vst [vmem:[#allocation216_spill] sm:$0xff] %v10716_v22  ;;  %14294 = vst [vmem:[#allocation217_spill] sm:$0xff] %v10718_v20 }
 0x2d3   : > { %1698 = vrot.lane.b32.xlu1 %v10721_v31, %s8957_s9  ;;  %1696 = vrot.lane.b32.xlu0 %v10726_v25, %s8957_s9 }
 0x2d5   : > { %v10730_v51 = vpop.permute.xlu1 %1326  ;;  %v10732_v23 = vpop.permute.xlu0 %1324 }
 0x2d6   : > { %14297 = vst [vmem:[#allocation220_spill] sm:$0xff] %v10730_v51  ;;  %14298 = vst [vmem:[#allocation221_spill] sm:$0xff] %v10732_v23 }
 0x2d7   : > { %2790 = vrot.lane.b32.xlu1 %v7299_v54, %s8956_s30  ;;  %2788 = vrot.lane.b32.xlu0 %v7298_v49, %s8956_s30  ;;  %v8094_v49 = vld [vmem:[#allocation5] sm:$0xff]  }
 0x2d8   : > { %7721 = vmatprep.subr.bf16.mxu0 %v8094_v49 }
 0x2d9   : > { %v10736_v52 = vpop.permute.xlu1 %1330  ;;  %v10738_v20 = vpop.permute.xlu0 %1328  ;;  %7722 = vmatpush3.bf16.msra.mxu0 %v8094_v49  ;;  %v8098_v49 = vld [vmem:[#allocation5 + $0x20] sm:$0xff]  }
 0x2da   : > { %14299 = vst [vmem:[#allocation222_spill] sm:$0xff] %v10736_v52  ;;  %14300 = vst [vmem:[#allocation223_spill] sm:$0xff] %v10738_v20 }
 0x2dd   : > { %v10740_v22 = vpop.permute.xlu1 %1334  ;;  %v10742_v31 = vpop.permute.xlu0 %1332 }
 0x2de   : > { %14301 = vst [vmem:[#allocation224_spill] sm:$0xff] %v10740_v22  ;;  %14302 = vst [vmem:[#allocation225_spill] sm:$0xff] %v10742_v31  ;;  %v8095_v31 = vld [vmem:[#allocation5 + $0x8] sm:$0xff]  }
 0x2df   : > { %7723 = vmatprep.subr.bf16.mxu0 %v8095_v31 }
 0x2e0   : > { %7724 = vmatpush3.bf16.msra.mxu0 %v8095_v31  ;;  %v8099_v31 = vld [vmem:[#allocation5 + $0x28] sm:$0xff]  }
 0x2e1   : > { %v10744_v24 = vpop.permute.xlu1 %1338  ;;  %v10746_v16 = vpop.permute.xlu0 %1336 }
 0x2e2   : > { %14303 = vst [vmem:[#allocation226_spill] sm:$0xff] %v10744_v24  ;;  %14304 = vst [vmem:[#allocation227_spill] sm:$0xff] %v10746_v16 }
 0x2e5   : > { %v10748_v14 = vpop.permute.xlu1 %1342  ;;  %v10750_v29 = vpop.permute.xlu0 %1340 }
 0x2e6   : > { %14305 = vst [vmem:[#allocation228_spill] sm:$0xff] %v10748_v14  ;;  %14306 = vst [vmem:[#allocation229_spill] sm:$0xff] %v10750_v29  ;;  %v8096_v14 = vld [vmem:[#allocation5 + $0x10] sm:$0xff]  }
 0x2e7   : > { %7725 = vmatprep.subr.bf16.mxu0 %v8096_v14 }
 0x2e8   : > { %7726 = vmatpush3.bf16.msra.mxu0 %v8096_v14  ;;  %v8100_v14 = vld [vmem:[#allocation5 + $0x30] sm:$0xff]  }
 0x2e9   : > { %v10752_v27 = vpop.permute.xlu1 %1346  ;;  %v10754_v54 = vpop.permute.xlu0 %1344 }
 0x2ea   : > { %14307 = vst [vmem:[#allocation230_spill] sm:$0xff] %v10752_v27  ;;  %14308 = vst [vmem:[#allocation231_spill] sm:$0xff] %v10754_v54  ;;  %v8097_v54 = vld [vmem:[#allocation5 + $0x18] sm:$0xff]  }
 0x2eb   : > { %7727 = vmatprep.subr.bf16.mxu0 %v8097_v54 }
 0x2ec   : > { %7728 = vmatpush3.bf16.msra.mxu0 %v8097_v54 }
 0x2ed   : > { %v10756_v52 = vpop.permute.xlu1 %1350  ;;  %v10758_v20 = vpop.permute.xlu0 %1348  ;;  %7729 = vmatprep.subr.bf16.mxu0 %v8098_v49 }
 0x2ee   : > { %14309 = vst [vmem:[#allocation232_spill] sm:$0xff] %v10756_v52  ;;  %14310 = vst [vmem:[#allocation233_spill] sm:$0xff] %v10758_v20 }
 0x2f0   : > { %7730 = vmatpush3.bf16.msra.mxu0 %v8098_v49 }
 0x2f1   : > { %v10760_v24 = vpop.permute.xlu1 %1354  ;;  %v10762_v16 = vpop.permute.xlu0 %1352  ;;  %7731 = vmatprep.subr.bf16.mxu0 %v8099_v31 }
 0x2f2   : > { %14311 = vst [vmem:[#allocation234_spill] sm:$0xff] %v10760_v24  ;;  %14312 = vst [vmem:[#allocation235_spill] sm:$0xff] %v10762_v16 }
 0x2f4   : > { %7732 = vmatpush3.bf16.msra.mxu0 %v8099_v31 }
 0x2f5   : > { %v10764_v29 = vpop.permute.xlu1 %1358  ;;  %v10766_v27 = vpop.permute.xlu0 %1356  ;;  %7733 = vmatprep.subr.bf16.mxu0 %v8100_v14 }
 0x2f6   : > { %14313 = vst [vmem:[#allocation236_spill] sm:$0xff] %v10764_v29  ;;  %14314 = vst [vmem:[#allocation237_spill] sm:$0xff] %v10766_v27 }
 0x2f8   : > { %7734 = vmatpush3.bf16.msra.mxu0 %v8100_v14 }
 0x2f9   : > { %v10768_v52 = vpop.permute.xlu1 %1362  ;;  %v10770_v20 = vpop.permute.xlu0 %1360 }
 0x2fa   : > { %14315 = vst [vmem:[#allocation238_spill] sm:$0xff] %v10768_v52  ;;  %14316 = vst [vmem:[#allocation239_spill] sm:$0xff] %v10770_v20 }
 0x2fd   : > { %v10772_v24 = vpop.permute.xlu1 %1366  ;;  %v10774_v16 = vpop.permute.xlu0 %1364 }
 0x2fe   : > { %14317 = vst [vmem:[#allocation240_spill] sm:$0xff] %v10772_v24  ;;  %14318 = vst [vmem:[#allocation241_spill] sm:$0xff] %v10774_v16  ;;  %v8101_v24 = vld [vmem:[#allocation5 + $0x38] sm:$0xff]  }
 0x2ff   : > { %7735 = vmatprep.subr.bf16.mxu0 %v8101_v24 }
 0x300   : > { %7736 = vmatpush3.bf16.msra.mxu0 %v8101_v24 }
 0x301   : > { %v10776_v22 = vpop.permute.xlu1 %1370  ;;  %v10778_v29 = vpop.permute.xlu0 %1368 }
 0x302   : > { %14319 = vst [vmem:[#allocation242_spill] sm:$0xff] %v10776_v22  ;;  %14320 = vst [vmem:[#allocation243_spill] sm:$0xff] %v10778_v29  ;;  %v14323_v22 = vld [vmem:[#allocation24_spill] sm:$0xff] }
 0x303   : > { %v997_v29 = vmul.bf16 %v10503_v56, %v14323_v22  ;;  %v14325_v22 = vld [vmem:[#allocation23_spill] sm:$0xff] }
 0x304   : > { %v999_v24 = vmul.bf16 %v10517_v58, %v14325_v22 }
 0x305   : > { %v10780_v27 = vpop.permute.xlu1 %1374  ;;  %v10782_v52 = vpop.permute.xlu0 %1372 }
 0x306   : > { %14321 = vst [vmem:[#allocation244_spill] sm:$0xff] %v10780_v27  ;;  %14322 = vst [vmem:[#allocation245_spill] sm:$0xff] %v10782_v52  ;;  %v14324_v52 = vld [vmem:[#allocation20_spill] sm:$0xff] }
 0x307   : > { %v996_v14 = vmul.bf16 %v10508_v59, %v14324_v52  ;;  %v10803_v52 = vld [vmem:[%s9206_s21 + $0x84] sm:$0xf] }
 0x309   : > { %v1639_v54 = vpop.permute.xlu1 %1638  ;;  %v1637_v20 = vpop.permute.xlu0 %1636 }
 0x30a   : > { %v2021_v16 = vmul.bf16 %v10503_v56, %v1639_v54  ;;  %v2020_v49 = vmul.bf16 %v10508_v59, %v1637_v20  ;;  %v10793_v20 = vcombine.low %v996_v14, %v997_v29  ;;  %v14326_v56 = vld [vmem:[#allocation19_spill] sm:$0xff]  ;;  %v1514_v14 = vmul.bf16 %v10550_v5, %v10252_v44  ;;  %v14328_v44 = vld [vmem:[#allocation28_spill] sm:$0xff] }
 0x30b   : > { %v998_v59 = vmul.bf16 %v10522_v60, %v14326_v56 }
 0x30c   : > { %v7362_v31 = vcombine.low %v2020_v49, %v2021_v16  ;;  %v10821_v49 = vld [vmem:[%s9206_s21 + $0x88] sm:$0xf] }
 0x30d   : > { %v1643_v27 = vpop.permute.xlu1 %1642  ;;  %v1641_v23 = vpop.permute.xlu0 %1640  ;;  %v10812_v16 = vcombine.low %v998_v59, %v999_v24  ;;  %v10835_v59 = vld [vmem:[%s9206_s21 + $0x8c] sm:$0xf] }
 0x30e   : > { %v2023_v51 = vmul.bf16 %v10517_v58, %v1643_v27  ;;  %v2022_v25 = vmul.bf16 %v10522_v60, %v1641_v23  ;;  %3236 = vrot.lane.b32.xlu0 %v7362_v31, %s8956_s30  ;;  %v10808_v23 = vld [vmem:[%s9206_s21 + $0x80] sm:$0xf]  ;;  %v1513_v58 = vmul.bf16 %v10531_v63, %v10242_v53  ;;  %v1512_v60 = vmul.bf16 %v10536_v0, %v10244_v46 }
 0x30f   : > { %v1515_v53 = vmul.bf16 %v10545_v57, %v10250_v55  ;;  %v14327_v55 = vld [vmem:[#allocation27_spill] sm:$0xff] }
 0x310   : > { %v7363_v54 = vcombine.low %v2022_v25, %v2023_v51  ;;  %v7300_v31 = vcombine.low %v1512_v60, %v1513_v58 }
 0x311   : > { %v1647_v25 = vpop.permute.xlu1 %1646  ;;  %v1645_v51 = vpop.permute.xlu0 %1644  ;;  %v7301_v58 = vcombine.low %v1514_v14, %v1515_v53  ;;  %v10855_v53 = vld [vmem:[%s9206_s21 + $0x94] sm:$0xf]  ;;  %v10860_v14 = vld [vmem:[%s9206_s21 + $0x90] sm:$0xf] }
 0x312   : > { %3364 = vrot.lane.b32.xlu0 %v10793_v20, %s8955_s8  ;;  %3238 = vrot.lane.b32.xlu1 %v7363_v54, %s8956_s30  ;;  %v2025_v29 = vmul.bf16 %v10531_v63, %v1647_v25  ;;  %v2024_v27 = vmul.bf16 %v10536_v0, %v1645_v51  ;;  %v1001_v25 = vmul.bf16 %v10531_v63, %v14327_v55  ;;  %v10873_v55 = vld [vmem:[%s9206_s21 + $0x98] sm:$0xf] }
 0x313   : > { %v1000_v51 = vmul.bf16 %v10536_v0, %v14328_v44  ;;  %v1518_v44 = vmul.bf16 %v10578_v7, %v10268_v40  ;;  %v14332_v40 = vld [vmem:[#allocation36_spill] sm:$0xff] }
 0x314   : > { %v7364_v22 = vcombine.low %v2024_v27, %v2025_v29  ;;  %v14329_v27 = vld [vmem:[#allocation31_spill] sm:$0xff] }
 0x315   : > { %v1651_v46 = vpop.permute.xlu1 %1650  ;;  %v1649_v54 = vpop.permute.xlu0 %1648  ;;  %v10845_v29 = vcombine.low %v1000_v51, %v1001_v25  ;;  %v1003_v63 = vmul.bf16 %v10545_v57, %v14329_v27 }
 0x316   : > { %1702 = vrot.lane.b32.xlu0 %v10803_v52, %s8957_s9  ;;  %1700 = vrot.lane.b32.xlu1 %v10808_v23, %s8957_s9  ;;  %v2027_v24 = vmul.bf16 %v10545_v57, %v1651_v46  ;;  %v2026_v56 = vmul.bf16 %v10550_v5, %v1649_v54  ;;  %v1517_v57 = vmul.bf16 %v10559_v1, %v10258_v48 }
 0x317   : > { %v1519_v48 = vmul.bf16 %v10573_v2, %v10266_v50  ;;  %v14331_v50 = vld [vmem:[#allocation35_spill] sm:$0xff] }
 0x318   : > { %v7365_v60 = vcombine.low %v2026_v56, %v2027_v24 }
 0x319   : > { %v1655_v46 = vpop.permute.xlu1 %1654  ;;  %v1653_v54 = vpop.permute.xlu0 %1652 }
 0x31a   : > { %1704 = vrot.lane.b32.xlu0 %v10821_v49, %s8957_s9  ;;  %3366 = vrot.lane.b32.xlu1 %v10812_v16, %s8955_s8  ;;  %v2029_v24 = vmul.bf16 %v10559_v1, %v1655_v46  ;;  %v2028_v56 = vmul.bf16 %v10564_v61, %v1653_v54  ;;  %v7303_v46 = vcombine.low %v1518_v44, %v1519_v48 }
 0x31d   : > { %v1657_v51 = vpop.permute.xlu0 %1656 }
 0x31e   : > { %2792 = vrot.lane.b32.xlu0 %v7300_v31, %s8956_s30  ;;  %1706 = vrot.lane.b32.xlu1 %v10835_v59, %s8957_s9  ;;  %v14330_v31 = vld [vmem:[#allocation32_spill] sm:$0xff]  ;;  %v2030_v27 = vmul.bf16 %v10578_v7, %v1657_v51 }
 0x31f   : > { %v1002_v0 = vmul.bf16 %v10550_v5, %v14330_v31  ;;  %v1516_v5 = vmul.bf16 %v10564_v61, %v10260_v42  ;;  %v1659_v42 = vpop.permute.xlu1 %1658  ;;  %v1005_v31 = vmul.bf16 %v10559_v1, %v14331_v50  ;;  %v1522_v50 = vmul.bf16 %v10606_v11, %v10284_v36 }
 0x321   : > { %v7302_v25 = vcombine.low %v1516_v5, %v1517_v57  ;;  %v14333_v5 = vld [vmem:[#allocation39_spill] sm:$0xff]  ;;  %v1661_v44 = vpop.permute.xlu0 %1660 }
 0x322   : > { %2794 = vrot.lane.b32.xlu1 %v7301_v58, %s8956_s30  ;;  %3240 = vrot.lane.b32.xlu0 %v7364_v22, %s8956_s30  ;;  %v10864_v22 = vcombine.low %v1002_v0, %v1003_v63  ;;  %v7366_v58 = vcombine.low %v2028_v56, %v2029_v24  ;;  %v10887_v63 = vld [vmem:[%s9206_s21 + $0x9c] sm:$0xf]  ;;  %v1004_v0 = vmul.bf16 %v10564_v61, %v14332_v40  ;;  %v10907_v56 = vld [vmem:[%s9206_s21 + $0xa4] sm:$0xf] }
 0x323   : > { %v1007_v1 = vmul.bf16 %v10573_v2, %v14333_v5  ;;  %v14334_v24 = vld [vmem:[#allocation40_spill] sm:$0xff]  ;;  %v1663_v48 = vpop.permute.xlu1 %1662  ;;  %v14335_v5 = vld [vmem:[#allocation43_spill] sm:$0xff] }
 0x324   : > { %v10897_v57 = vcombine.low %v1004_v0, %v1005_v31  ;;  %v1006_v61 = vmul.bf16 %v10578_v7, %v14334_v24  ;;  %v1520_v7 = vmul.bf16 %v10592_v9, %v10276_v38  ;;  %v2033_v51 = vmul.bf16 %v10587_v62, %v1663_v48 }
 0x325   : > { %v1665_v31 = vpop.permute.xlu0 %1664 }
 0x326   : > { %3368 = vrot.lane.b32.xlu0 %v10845_v29, %s8955_s8  ;;  %3242 = vrot.lane.b32.xlu1 %v7365_v60, %s8956_s30  ;;  %v2031_v60 = vmul.bf16 %v10573_v2, %v1659_v42  ;;  %v10916_v42 = vcombine.low %v1006_v61, %v1007_v1  ;;  %v1521_v2 = vmul.bf16 %v10587_v62, %v10274_v47  ;;  %v14336_v1 = vld [vmem:[#allocation44_spill] sm:$0xff] }
 0x327   : > { %v1523_v47 = vmul.bf16 %v10601_v4, %v10282_v45  ;;  %v1667_v38 = vpop.permute.xlu1 %1666  ;;  %v1009_v45 = vmul.bf16 %v10587_v62, %v14335_v5  ;;  %v1008_v36 = vmul.bf16 %v10592_v9, %v14336_v1  ;;  %v14337_v62 = vld [vmem:[#allocation47_spill] sm:$0xff] }
 0x328   : > { %v7367_v54 = vcombine.low %v2030_v27, %v2031_v60  ;;  %v10925_v60 = vld [vmem:[%s9206_s21 + $0xa8] sm:$0xf]  ;;  %v7304_v27 = vcombine.low %v1520_v7, %v1521_v2  ;;  %v2035_v0 = vmul.bf16 %v10601_v4, %v1667_v38  ;;  %v1011_v2 = vmul.bf16 %v10601_v4, %v14337_v62  ;;  %v14338_v7 = vld [vmem:[#allocation48_spill] sm:$0xff] }
 0x329   : > { %v7305_v24 = vcombine.low %v1522_v50, %v1523_v47  ;;  %v10949_v48 = vcombine.low %v1008_v36, %v1009_v45  ;;  %v10964_v47 = vld [vmem:[%s9206_s21 + $0xb0] sm:$0xf]  ;;  %v1525_v4 = vmul.bf16 %v10615_v3, %v10290_v43  ;;  %v1527_v43 = vmul.bf16 %v10629_v6, %v10298_v41 }
 0x32a   : > { %1710 = vrot.lane.b32.xlu0 %v10855_v53, %s8957_s9  ;;  %1708 = vrot.lane.b32.xlu1 %v10860_v14, %s8957_s9 }
 0x32e   : > { %1712 = vrot.lane.b32.xlu0 %v10873_v55, %s8957_s9  ;;  %3370 = vrot.lane.b32.xlu1 %v10864_v22, %s8955_s8 }
 0x332   : > { %2796 = vrot.lane.b32.xlu0 %v7302_v25, %s8956_s30  ;;  %1714 = vrot.lane.b32.xlu1 %v10887_v63, %s8957_s9  ;;  %v10912_v25 = vld [vmem:[%s9206_s21 + $0xa0] sm:$0xf] }
 0x336   : > { %2798 = vrot.lane.b32.xlu1 %v7303_v46, %s8956_s30  ;;  %3244 = vrot.lane.b32.xlu0 %v7366_v58, %s8956_s30  ;;  %v2032_v58 = vmul.bf16 %v10592_v9, %v1661_v44  ;;  %v2034_v46 = vmul.bf16 %v10606_v11, %v1665_v31  ;;  %v1669_v44 = vpop.permute.xlu0 %1668  ;;  %v1010_v9 = vmul.bf16 %v10606_v11, %v14338_v7 }
 0x337   : > { %v1524_v11 = vmul.bf16 %v10620_v13, %v10292_v34  ;;  %v2036_v31 = vmul.bf16 %v10620_v13, %v1669_v44  ;;  %v1526_v34 = vmul.bf16 %v10634_v15, %v10300_v32  ;;  %v14340_v44 = vld [vmem:[#allocation52_spill] sm:$0xff] }
 0x338   : > { %v7368_v40 = vcombine.low %v2032_v58, %v2033_v51  ;;  %v7369_v61 = vcombine.low %v2034_v46, %v2035_v0  ;;  %v1671_v51 = vpop.permute.xlu1 %1670  ;;  %v10968_v50 = vcombine.low %v1010_v9, %v1011_v2  ;;  %v10977_v0 = vld [vmem:[%s9206_s21 + $0xb8] sm:$0xf]  ;;  %v1012_v32 = vmul.bf16 %v10620_v13, %v14340_v44  ;;  %v11045_v44 = vld [vmem:[%s9206_s21 + $0xcc] sm:$0xf] }
 0x339   : > { %v2037_v38 = vmul.bf16 %v10615_v3, %v1671_v51  ;;  %v7306_v46 = vcombine.low %v1524_v11, %v1525_v4  ;;  %v7307_v62 = vcombine.low %v1526_v34, %v1527_v43  ;;  %v14342_v4 = vld [vmem:[#allocation56_spill] sm:$0xff] }
 0x33a   : > { %3372 = vrot.lane.b32.xlu0 %v10897_v57, %s8955_s8  ;;  %3246 = vrot.lane.b32.xlu1 %v7367_v54, %s8956_s30  ;;  %v10939_v54 = vld [vmem:[%s9206_s21 + $0xac] sm:$0xf]  ;;  %v1673_v58 = vpop.permute.xlu0 %1672  ;;  %v1014_v11 = vmul.bf16 %v10634_v15, %v14342_v4 }
 0x33b   : > { %v7370_v45 = vcombine.low %v2036_v31, %v2037_v38  ;;  %v2038_v36 = vmul.bf16 %v10634_v15, %v1673_v58  ;;  %v11013_v31 = vld [vmem:[%s9206_s21 + $0xc4] sm:$0xf] }
 0x33e   : > { %1718 = vrot.lane.b32.xlu0 %v10907_v56, %s8957_s9  ;;  %1716 = vrot.lane.b32.xlu1 %v10912_v25, %s8957_s9  ;;  %v1677_v5 = vpop.permute.xlu0 %1676 }
 0x342   : > { %1720 = vrot.lane.b32.xlu0 %v10925_v60, %s8957_s9  ;;  %3374 = vrot.lane.b32.xlu1 %v10916_v42, %s8955_s8  ;;  %v1681_v9 = vpop.permute.xlu0 %1680 }
 0x346   : > { %2800 = vrot.lane.b32.xlu0 %v7304_v27, %s8956_s30  ;;  %1722 = vrot.lane.b32.xlu1 %v10939_v54, %s8957_s9  ;;  %v10959_v27 = vld [vmem:[%s9206_s21 + $0xb4] sm:$0xf]  ;;  %v11010_v38 = vpop.permute.xlu0 %1684 }
 0x34a   : > { %2802 = vrot.lane.b32.xlu1 %v7305_v24, %s8956_s30  ;;  %3248 = vrot.lane.b32.xlu0 %v7368_v40, %s8956_s30  ;;  %v1675_v40 = vpop.permute.xlu1 %1674  ;;  %v10991_v24 = vld [vmem:[%s9206_s21 + $0xbc] sm:$0xf]  ;;  %v11028_v34 = vpop.permute.xlu0 %1688 }
 0x34b   : > { %v2039_v1 = vmul.bf16 %v10629_v6, %v1675_v40  ;;  %v11018_v40 = vld [vmem:[%s9206_s21 + $0xc0] sm:$0xf] }
 0x34d   : > { %v7371_v7 = vcombine.low %v2038_v36, %v2039_v1 }
 0x34e   : > { %3376 = vrot.lane.b32.xlu0 %v10949_v48, %s8955_s8  ;;  %3250 = vrot.lane.b32.xlu1 %v7369_v61, %s8956_s30  ;;  %v14339_v61 = vld [vmem:[#allocation51_spill] sm:$0xff]  ;;  %v1679_v2 = vpop.permute.xlu1 %1678 }
 0x34f   : > { %v1013_v41 = vmul.bf16 %v10615_v3, %v14339_v61  ;;  %v14341_v3 = vld [vmem:[#allocation55_spill] sm:$0xff]  ;;  %v2041_v36 = vmul.bf16 %v10643_v8, %v1679_v2  ;;  %v2040_v61 = vmul.bf16 %v10648_v17, %v1677_v5  ;;  %v2042_v5 = vmul.bf16 %v10662_v19, %v1681_v9 }
 0x350   : > { %v1015_v13 = vmul.bf16 %v10629_v6, %v14341_v3  ;;  %v1528_v6 = vmul.bf16 %v10648_v17, %v10308_v30  ;;  %v1530_v30 = vmul.bf16 %v10662_v19, %v10316_v28  ;;  %v14345_v9 = vld [vmem:[#allocation63_spill] sm:$0xff] }
 0x351   : > { %v11001_v51 = vcombine.low %v1012_v32, %v1013_v41  ;;  %v14343_v32 = vld [vmem:[#allocation59_spill] sm:$0xff]  ;;  %v7372_v28 = vcombine.low %v2040_v61, %v2041_v36 }
 0x352   : > { %1726 = vrot.lane.b32.xlu0 %v10959_v27, %s8957_s9  ;;  %1724 = vrot.lane.b32.xlu1 %v10964_v47, %s8957_s9  ;;  %v1683_v58 = vpop.permute.xlu1 %1682  ;;  %v11026_v15 = vcombine.low %v1014_v11, %v1015_v13  ;;  %v11055_v13 = vpop.permute.xlu0 %1692 }
 0x353   : > { %v2043_v2 = vmul.bf16 %v10657_v10, %v1683_v58  ;;  %v1019_v58 = vmul.bf16 %v10657_v10, %v14345_v9 }
 0x356   : > { %1728 = vrot.lane.b32.xlu0 %v10977_v0, %s8957_s9  ;;  %3378 = vrot.lane.b32.xlu1 %v10968_v50, %s8955_s8  ;;  %v1687_v43 = vpop.permute.xlu1 %1686 }
 0x35a   : > { %2804 = vrot.lane.b32.xlu0 %v7306_v46, %s8956_s30  ;;  %1730 = vrot.lane.b32.xlu1 %v10991_v24, %s8957_s9  ;;  %v1529_v46 = vmul.bf16 %v10643_v8, %v10306_v39  ;;  %v1531_v39 = vmul.bf16 %v10657_v10, %v10314_v37  ;;  %v1691_v41 = vpop.permute.xlu1 %1690  ;;  %v1533_v10 = vmul.bf16 %v10671_v12, %v10322_v35 }
 0x35c   : > { %v7308_v1 = vcombine.low %v1528_v6, %v1529_v46  ;;  %v7309_v3 = vcombine.low %v1530_v30, %v1531_v39  ;;  %v14346_v46 = vld [vmem:[#allocation64_spill] sm:$0xff]  ;;  %v11080_v30 = vld [vmem:[%s9206_s21 + $0xd0] sm:$0xf] }
 0x35d   : > { %v1018_v6 = vmul.bf16 %v10662_v19, %v14346_v46  ;;  %v11075_v39 = vld [vmem:[%s9206_s21 + $0xd4] sm:$0xf]  ;;  %v1532_v19 = vmul.bf16 %v10676_v21, %v10324_v26  ;;  %v2044_v26 = vmul.bf16 %v10676_v21, %v11010_v38 }
 0x35e   : > { %2806 = vrot.lane.b32.xlu1 %v7307_v62, %s8956_s30  ;;  %3252 = vrot.lane.b32.xlu0 %v7370_v45, %s8956_s30  ;;  %v11031_v45 = vld [vmem:[%s9206_s21 + $0xc8] sm:$0xf]  ;;  %v1017_v62 = vmul.bf16 %v10643_v8, %v14343_v32  ;;  %v7373_v8 = vcombine.low %v2042_v5, %v2043_v2  ;;  %v11061_v11 = vpop.permute.xlu1 %1694  ;;  %v11091_v32 = vld [vmem:[%s9206_s21 + $0xd8] sm:$0xf] }
 0x35f   : > { %v11084_v36 = vcombine.low %v1018_v6, %v1019_v58  ;;  %14347 = vst [vmem:[#allocation24_spill] sm:$0xff] %v11091_v32  ;;  %v7310_v35 = vcombine.low %v1532_v19, %v1533_v10  ;;  %v14352_v58 = vld [vmem:[#allocation68_spill] sm:$0xff]  ;;  %v2047_v10 = vmul.bf16 %v10685_v18, %v1691_v41 }
 0x362   : > { %3380 = vrot.lane.b32.xlu0 %v11001_v51, %s8955_s8  ;;  %3254 = vrot.lane.b32.xlu1 %v7371_v7, %s8956_s30  ;;  %v14344_v7 = vld [vmem:[#allocation60_spill] sm:$0xff] }
 0x363   : > { %v1016_v37 = vmul.bf16 %v10648_v17, %v14344_v7  ;;  %v11063_v17 = vpop.permute.xlu0 %1696  ;;  %v14348_v7 = vld [vmem:[#allocation15_spill] sm:$0xff] }
 0x365   : > { %v11059_v4 = vcombine.low %v1016_v37, %v1017_v62  ;;  %v1535_v62 = vmul.bf16 %v10685_v18, %v10330_v33  ;;  %v14349_v37 = vld [vmem:[#allocation211_spill] sm:$0xff] }
 0x366   : > { %1734 = vrot.lane.b32.xlu0 %v11013_v31, %s8957_s9  ;;  %1732 = vrot.lane.b32.xlu1 %v11018_v40, %s8957_s9  ;;  %v14351_v33 = vld [vmem:[#allocation67_spill] sm:$0xff]  ;;  %v2046_v19 = vmul.bf16 %v14349_v37, %v11028_v34 }
 0x367   : > { %v2789_v61 = vpop.permute.xlu0 %2788  ;;  %v1021_v9 = vmul.bf16 %v10671_v12, %v14351_v33  ;;  %v11143_v33 = vld [vmem:[%s9206_s21 + $0xe4] sm:$0xf] }
 0x368   : > { %v3495_v38 = vsel %vm3492_vm0, %v10793_v20, %v2789_v61  ;;  %v14353_v61 = vld [vmem:[#allocation71_spill] sm:$0xff] }
 0x36a   : > { %1736 = vrot.lane.b32.xlu0 %v11031_v45, %s8957_s9  ;;  %3382 = vrot.lane.b32.xlu1 %v11026_v15, %s8955_s8 }
 0x36e   : > { %2808 = vrot.lane.b32.xlu0 %v7308_v1, %s8956_s30  ;;  %1738 = vrot.lane.b32.xlu1 %v11045_v44, %s8957_s9  ;;  %v11072_v1 = vpop.permute.xlu1 %1698 }
 0x372   : > { %2810 = vrot.lane.b32.xlu1 %v7309_v3, %s8956_s30  ;;  %3256 = vrot.lane.b32.xlu0 %v7372_v28, %s8956_s30  ;;  %v1534_v3 = vmul.bf16 %v14349_v37, %v14348_v7  ;;  %v2045_v28 = vmul.bf16 %v10671_v12, %v1687_v43  ;;  %v2791_v2 = vpop.permute.xlu1 %2790  ;;  %v1020_v43 = vmul.bf16 %v10676_v21, %v14352_v58  ;;  %v14358_v58 = vld [vmem:[#allocation17_spill] sm:$0xff] }
 0x373   : > { %v7375_v21 = vcombine.low %v2046_v19, %v2047_v10  ;;  %v3498_v34 = vsel %vm3492_vm0, %v10812_v16, %v2791_v2  ;;  %v11148_v16 = vld [vmem:[%s9206_s21 + $0xe0] sm:$0xf]  ;;  %v14357_v2 = vld [vmem:[#allocation214_spill] sm:$0xff] }
 0x374   : > { %v7311_v46 = vcombine.low %v1534_v3, %v1535_v62  ;;  %v7374_v6 = vcombine.low %v2044_v26, %v2045_v28  ;;  %v11123_v12 = vcombine.low %v1020_v43, %v1021_v9  ;;  %v14354_v62 = vld [vmem:[#allocation72_spill] sm:$0xff]  ;;  %14355 = vst [vmem:[#allocation23_spill] sm:$0xff] %v11148_v16  ;;  %v14359_v43 = vld [vmem:[#allocation215_spill] sm:$0xff]  ;;  %v11161_v10 = vld [vmem:[%s9206_s21 + $0xe8] sm:$0xf] }
 0x375   : > { %v1022_v3 = vmul.bf16 %v14349_v37, %v14354_v62  ;;  %v14356_v37 = vld [vmem:[#allocation16_spill] sm:$0xff]  ;;  %14360 = vst [vmem:[#allocation19_spill] sm:$0xff] %v11161_v10  ;;  %v14361_v19 = vld [vmem:[#allocation18_spill] sm:$0xff]  ;;  %v2049_v62 = vmul.bf16 %v14357_v2, %v11061_v11 }
 0x376   : > { %3384 = vrot.lane.b32.xlu0 %v11059_v4, %s8955_s8  ;;  %3258 = vrot.lane.b32.xlu1 %v7373_v8, %s8956_s30  ;;  %v11106_v8 = vld [vmem:[%s9206_s21 + $0xdc] sm:$0xf]  ;;  %v1537_v9 = vmul.bf16 %v14357_v2, %v14356_v37  ;;  %v14366_v37 = vld [vmem:[#allocation75_spill] sm:$0xff] }
 0x377   : > { %14350 = vst [vmem:[#allocation20_spill] sm:$0xff] %v11106_v8 }
 0x37a   : > { %1742 = vrot.lane.b32.xlu0 %v11075_v39, %s8957_s9  ;;  %1740 = vrot.lane.b32.xlu1 %v11080_v30, %s8957_s9 }
 0x37e   : > { %1744 = vrot.lane.b32.xlu0 %v11091_v32, %s8957_s9  ;;  %3386 = vrot.lane.b32.xlu1 %v11084_v36, %s8955_s8 }
 0x380   : > { %v3237_v5 = vpop.permute.xlu0 %3236 }
 0x381   : > { %v3687_v7 = vsel %vm3685_vm1, %v3495_v38, %v3237_v5 }
 0x382   : > { %2812 = vrot.lane.b32.xlu0 %v7310_v35, %s8956_s30  ;;  %1746 = vrot.lane.b32.xlu1 %v11106_v8, %s8957_s9 }
 0x384   : > { %v3239_v35 = vpop.permute.xlu1 %3238  ;;  %v3365_v32 = vpop.permute.xlu0 %3364 }
 0x385   : > { %v3816_v8 = vsel %vm3814_vm2, %v3687_v7, %v3365_v32  ;;  %v1023_v32 = vmul.bf16 %v10685_v18, %v14353_v61  ;;  %v3689_v28 = vsel %vm3685_vm1, %v3498_v34, %v3239_v35  ;;  %v14362_v7 = vld [vmem:[#allocation218_spill] sm:$0xff]  ;;  %v14364_v34 = vld [vmem:[#allocation219_spill] sm:$0xff] }
 0x386   : > { %2814 = vrot.lane.b32.xlu1 %v7311_v46, %s8956_s30  ;;  %3260 = vrot.lane.b32.xlu0 %v7374_v6, %s8956_s30  ;;  %v1536_v46 = vmul.bf16 %v14359_v43, %v14358_v58  ;;  %v1539_v35 = vmul.bf16 %v14362_v7, %v14361_v19  ;;  %v1025_v58 = vmul.bf16 %v14357_v2, %v14366_v37  ;;  %v14367_v19 = vld [vmem:[#allocation76_spill] sm:$0xff] }
 0x387   : > { %7737 = vmatprep.mubr.bf16.mxu0 %v3816_v8  ;;  %v11152_v18 = vcombine.low %v1022_v3, %v1023_v32  ;;  %v2048_v3 = vmul.bf16 %v14359_v43, %v11055_v13 }
 0x388   : > { %v11125_v20 = vpop.permute.xlu1 %1700  ;;  %v11127_v41 = vpop.permute.xlu0 %1702  ;;  %v7312_v32 = vcombine.low %v1536_v46, %v1537_v9  ;;  %v1024_v9 = vmul.bf16 %v14359_v43, %v14367_v19 }
 0x389   : > { %v7376_v13 = vcombine.low %v2048_v3, %v2049_v62 }
 0x38a   : > { %3388 = vrot.lane.b32.xlu0 %v11123_v12, %s8955_s8  ;;  %3262 = vrot.lane.b32.xlu1 %v7375_v21, %s8956_s30  ;;  %v14363_v21 = vld [vmem:[#allocation21_spill] sm:$0xff] }
 0x38b   : > { %v1538_v61 = vmul.bf16 %v14364_v34, %v14363_v21  ;;  %v2051_v21 = vmul.bf16 %v14362_v7, %v11072_v1 }
 0x38c   : > { %v3367_v26 = vpop.permute.xlu1 %3366  ;;  %v11139_v5 = vpop.permute.xlu0 %1704 }
 0x38d   : > { %v3819_v8 = vsel %vm3814_vm2, %v3689_v28, %v3367_v26  ;;  %v7313_v46 = vcombine.low %v1538_v61, %v1539_v35  ;;  %v14369_v35 = vld [vmem:[#allocation80_spill] sm:$0xff] }
 0x38e   : > { %1750 = vrot.lane.b32.xlu0 %v11143_v33, %s8957_s9  ;;  %1748 = vrot.lane.b32.xlu1 %v11148_v16, %s8957_s9  ;;  %v1026_v61 = vmul.bf16 %v14364_v34, %v14369_v35 }
 0x38f   : > { %7738 = vmatmul.mubr.bf16.vlgmr.msra.gmra.mrb[0].mxu0 %v3819_v8  ;;  %v11177_v8 = vld [vmem:[%s9206_s21 + $0xec] sm:$0xf] }
 0x390   : > { %v11158_v38 = vpop.permute.xlu1 %1706  ;;  %v2793_v6 = vpop.permute.xlu0 %2792  ;;  %14365 = vst [vmem:[#allocation27_spill] sm:$0xff] %v11177_v8 }
 0x391   : > { %v3501_v11 = vsel %vm3492_vm0, %v10845_v29, %v2793_v6  ;;  %v11195_v29 = vcombine.low %v1024_v9, %v1025_v58  ;;  %v11215_v58 = vld [vmem:[%s9206_s21 + $0xf4] sm:$0xf] }
 0x392   : > { %1752 = vrot.lane.b32.xlu0 %v11161_v10, %s8957_s9  ;;  %3390 = vrot.lane.b32.xlu1 %v11152_v18, %s8955_s8 }
 0x394   : > { %v2795_v28 = vpop.permute.xlu1 %2794  ;;  %v3241_v26 = vpop.permute.xlu0 %3240 }
 0x395   : > { %v3691_v10 = vsel %vm3685_vm1, %v3501_v11, %v3241_v26  ;;  %v11233_v11 = vld [vmem:[%s9206_s21 + $0xf8] sm:$0xf] }
 0x396   : > { %2816 = vrot.lane.b32.xlu0 %v7312_v32, %s8956_s30  ;;  %1754 = vrot.lane.b32.xlu1 %v11177_v8, %s8957_s9  ;;  %v2050_v32 = vmul.bf16 %v14364_v34, %v11063_v17  ;;  %v3504_v17 = vsel %vm3492_vm0, %v10864_v22, %v2795_v28  ;;  %v11220_v22 = vld [vmem:[%s9206_s21 + $0xf0] sm:$0xf]  ;;  %v14370_v34 = vld [vmem:[#allocation22_spill] sm:$0xff] }
 0x397   : > { %v1541_v28 = vmul.bf16 %v10803_v52, %v14370_v34 }
 0x398   : > { %v3243_v8 = vpop.permute.xlu1 %3242  ;;  %v3369_v16 = vpop.permute.xlu0 %3368  ;;  %v7377_v43 = vcombine.low %v2050_v32, %v2051_v21  ;;  %v14373_v32 = vld [vmem:[#allocation29_spill] sm:$0xff] }
 0x399   : > { %v3822_v2 = vsel %vm3814_vm2, %v3691_v10, %v3369_v16  ;;  %v14368_v16 = vld [vmem:[#allocation79_spill] sm:$0xff]  ;;  %v3693_v62 = vsel %vm3685_vm1, %v3504_v17, %v3243_v8  ;;  %v14371_v8 = vld [vmem:[#allocation25_spill] sm:$0xff]  ;;  %v2052_v17 = vmul.bf16 %v10808_v23, %v11125_v20 }
 0x39a   : > { %2818 = vrot.lane.b32.xlu1 %v7313_v46, %s8956_s30  ;;  %3264 = vrot.lane.b32.xlu0 %v7376_v13, %s8956_s30  ;;  %v1027_v10 = vmul.bf16 %v14362_v7, %v14368_v16  ;;  %v1540_v19 = vmul.bf16 %v10808_v23, %v14371_v8  ;;  %v14372_v13 = vld [vmem:[#allocation26_spill] sm:$0xff]  ;;  %v2053_v16 = vmul.bf16 %v10803_v52, %v11127_v41 }
 0x39b   : > { %7741 = vmatprep.mubr.bf16.mxu0 %v3822_v2  ;;  %v1543_v21 = vmul.bf16 %v10835_v59, %v14372_v13  ;;  %v1542_v2 = vmul.bf16 %v10821_v49, %v14373_v32  ;;  %v2054_v8 = vmul.bf16 %v10821_v49, %v11139_v5 }
 0x39c   : > { %v11197_v1 = vpop.permute.xlu1 %1708  ;;  %v11199_v6 = vpop.permute.xlu0 %1710  ;;  %v11224_v7 = vcombine.low %v1026_v61, %v1027_v10  ;;  %v11249_v61 = vld [vmem:[%s9206_s21 + $0xfc] sm:$0xf]  ;;  %v7378_v41 = vcombine.low %v2052_v17, %v2053_v16 }
 0x39d   : > { %v14377_v17 = vld [vmem:[#allocation88_spill] sm:$0xff] }
 0x39e   : > { %3392 = vrot.lane.b32.xlu0 %v11195_v29, %s8955_s8  ;;  %3266 = vrot.lane.b32.xlu1 %v7377_v43, %s8956_s30  ;;  %v7314_v43 = vcombine.low %v1540_v19, %v1541_v28  ;;  %v7315_v28 = vcombine.low %v1542_v2, %v1543_v21  ;;  %v2055_v19 = vmul.bf16 %v10835_v59, %v11158_v38  ;;  %v14376_v21 = vld [vmem:[#allocation87_spill] sm:$0xff] }
 0x39f   : > { %v1031_v2 = vmul.bf16 %v10835_v59, %v14376_v21  ;;  %v1030_v16 = vmul.bf16 %v10821_v49, %v14377_v17  ;;  %v14378_v49 = vld [vmem:[#allocation30_spill] sm:$0xff]  ;;  %v2057_v21 = vmul.bf16 %v10855_v53, %v11199_v6 }
 0x3a0   : > { %v3371_v3 = vpop.permute.xlu1 %3370  ;;  %v11211_v26 = vpop.permute.xlu0 %1712 }
 0x3a1   : > { %v3825_v37 = vsel %vm3814_vm2, %v3693_v62, %v3371_v3  ;;  %v14374_v62 = vld [vmem:[#allocation83_spill] sm:$0xff]  ;;  %v11296_v59 = vcombine.low %v1030_v16, %v1031_v2 }
 0x3a2   : > { %1758 = vrot.lane.b32.xlu0 %v11215_v58, %s8957_s9  ;;  %1756 = vrot.lane.b32.xlu1 %v11220_v22, %s8957_s9  ;;  %v1029_v3 = vmul.bf16 %v10803_v52, %v14374_v62  ;;  %v11321_v16 = vld [vmem:[%s9206_s21 + $0x10c] sm:$0xf] }
 0x3a3   : > { %7742 = vmatmul.mubr.bf16.gmra.mrb[4].mxu0 %v3825_v37  ;;  %v14375_v37 = vld [vmem:[#allocation84_spill] sm:$0xff] }
 0x3a4   : > { %v11230_v9 = vpop.permute.xlu1 %1714  ;;  %v2797_v46 = vpop.permute.xlu0 %2796  ;;  %v1028_v34 = vmul.bf16 %v10808_v23, %v14375_v37 }
 0x3a5   : > { %v3507_v20 = vsel %vm3492_vm0, %v10897_v57, %v2797_v46  ;;  %v7379_v57 = vcombine.low %v2054_v8, %v2055_v19  ;;  %v11305_v19 = vld [vmem:[%s9206_s21 + $0x108] sm:$0xf] }
 0x3a6   : > { %1760 = vrot.lane.b32.xlu0 %v11233_v11, %s8957_s9  ;;  %3394 = vrot.lane.b32.xlu1 %v11224_v7, %s8955_s8  ;;  %v11267_v23 = vcombine.low %v1028_v34, %v1029_v3  ;;  %v11287_v34 = vld [vmem:[%s9206_s21 + $0x104] sm:$0xf] }
 0x3a8   : > { %v2799_v10 = vpop.permute.xlu1 %2798  ;;  %v3245_v35 = vpop.permute.xlu0 %3244 }
 0x3a9   : > { %v3695_v13 = vsel %vm3685_vm1, %v3507_v20, %v3245_v35  ;;  %v3510_v38 = vsel %vm3492_vm0, %v10916_v42, %v2799_v10  ;;  %v11292_v42 = vld [vmem:[%s9206_s21 + $0x100] sm:$0xf]  ;;  %v1545_v10 = vmul.bf16 %v10855_v53, %v14378_v49 }
 0x3aa   : > { %2820 = vrot.lane.b32.xlu0 %v7314_v43, %s8956_s30  ;;  %1762 = vrot.lane.b32.xlu1 %v11249_v61, %s8957_s9 }
 0x3ac   : > { %v3247_v32 = vpop.permute.xlu1 %3246  ;;  %v3373_v43 = vpop.permute.xlu0 %3372 }
 0x3ad   : > { %v3828_v52 = vsel %vm3814_vm2, %v3695_v13, %v3373_v43  ;;  %v3697_v35 = vsel %vm3685_vm1, %v3510_v38, %v3247_v32  ;;  %v14380_v13 = vld [vmem:[#allocation34_spill] sm:$0xff]  ;;  %v14381_v43 = vld [vmem:[#allocation37_spill] sm:$0xff]  ;;  %v2056_v38 = vmul.bf16 %v10860_v14, %v11197_v1 }
 0x3ae   : > { %2822 = vrot.lane.b32.xlu1 %v7315_v28, %s8956_s30  ;;  %3268 = vrot.lane.b32.xlu0 %v7378_v41, %s8956_s30  ;;  %v14379_v28 = vld [vmem:[#allocation33_spill] sm:$0xff]  ;;  %v1547_v32 = vmul.bf16 %v10887_v63, %v14380_v13 }
 0x3af   : > { %7745 = vmatprep.mubr.bf16.mxu0 %v3828_v52  ;;  %v1544_v20 = vmul.bf16 %v10860_v14, %v14379_v28  ;;  %v1546_v52 = vmul.bf16 %v10873_v55, %v14381_v43  ;;  %v7380_v6 = vcombine.low %v2056_v38, %v2057_v21  ;;  %v2058_v28 = vmul.bf16 %v10873_v55, %v11211_v26  ;;  %v14385_v38 = vld [vmem:[#allocation96_spill] sm:$0xff] }
 0x3b0   : > { %v11269_v5 = vpop.permute.xlu1 %1716  ;;  %v11271_v46 = vpop.permute.xlu0 %1718  ;;  %v1034_v21 = vmul.bf16 %v10873_v55, %v14385_v38  ;;  %v8102_v55 = vld [vmem:[%s13820_s3] sm:$0xff]  }
 0x3b1   : > { %7865 = vmatprep.subr.bf16.mxu1 %v8102_v55  ;;  %v2061_v38 = vmul.bf16 %v10907_v56, %v11271_v46 }
 0x3b2   : > { %3396 = vrot.lane.b32.xlu0 %v11267_v23, %s8955_s8  ;;  %3270 = vrot.lane.b32.xlu1 %v7379_v57, %s8956_s30  ;;  %v7316_v57 = vcombine.low %v1544_v20, %v1545_v10  ;;  %v7317_v10 = vcombine.low %v1546_v52, %v1547_v32  ;;  %v2059_v20 = vmul.bf16 %v10887_v63, %v11230_v9  ;;  %v14384_v32 = vld [vmem:[#allocation95_spill] sm:$0xff] }
 0x3b3   : > { %v1035_v52 = vmul.bf16 %v10887_v63, %v14384_v32  ;;  %7866 = vmatpush3.bf16.msra.mxu1 %v8102_v55 }
 0x3b4   : > { %v3375_v62 = vpop.permute.xlu1 %3374  ;;  %v11283_v3 = vpop.permute.xlu0 %1720 }
 0x3b5   : > { %v3831_v37 = vsel %vm3814_vm2, %v3697_v35, %v3375_v62  ;;  %v14382_v35 = vld [vmem:[#allocation91_spill] sm:$0xff]  ;;  %v11371_v63 = vcombine.low %v1034_v21, %v1035_v52  ;;  %v2060_v52 = vmul.bf16 %v10912_v25, %v11269_v5 }
 0x3b6   : > { %1766 = vrot.lane.b32.xlu0 %v11287_v34, %s8957_s9  ;;  %1764 = vrot.lane.b32.xlu1 %v11292_v42, %s8957_s9  ;;  %v1033_v62 = vmul.bf16 %v10855_v53, %v14382_v35 }
 0x3b7   : > { %7746 = vmatmul.mubr.bf16.gmra.mrb[8].mxu0 %v3831_v37  ;;  %v14383_v37 = vld [vmem:[#allocation92_spill] sm:$0xff] }
 0x3b8   : > { %v11302_v41 = vpop.permute.xlu1 %1722  ;;  %v2801_v8 = vpop.permute.xlu0 %2800  ;;  %v1032_v49 = vmul.bf16 %v10860_v14, %v14383_v37 }
 0x3b9   : > { %v3513_v1 = vsel %vm3492_vm0, %v10949_v48, %v2801_v8  ;;  %v7381_v48 = vcombine.low %v2058_v28, %v2059_v20 }
 0x3ba   : > { %1768 = vrot.lane.b32.xlu0 %v11305_v19, %s8957_s9  ;;  %3398 = vrot.lane.b32.xlu1 %v11296_v59, %s8955_s8  ;;  %v11339_v14 = vcombine.low %v1032_v49, %v1033_v62  ;;  %v11359_v49 = vld [vmem:[%s9206_s21 + $0x114] sm:$0xf] }
 0x3bc   : > { %v2803_v2 = vpop.permute.xlu1 %2802  ;;  %v3249_v17 = vpop.permute.xlu0 %3248 }
 0x3bd   : > { %v3699_v13 = vsel %vm3685_vm1, %v3513_v1, %v3249_v17  ;;  %v3516_v9 = vsel %vm3492_vm0, %v10968_v50, %v2803_v2  ;;  %v11364_v50 = vld [vmem:[%s9206_s21 + $0x110] sm:$0xf]  ;;  %v14386_v2 = vld [vmem:[#allocation38_spill] sm:$0xff]  ;;  %v14387_v1 = vld [vmem:[#allocation41_spill] sm:$0xff] }
 0x3be   : > { %2824 = vrot.lane.b32.xlu0 %v7316_v57, %s8956_s30  ;;  %1770 = vrot.lane.b32.xlu1 %v11321_v16, %s8957_s9 }
 0x3c0   : > { %v3251_v43 = vpop.permute.xlu1 %3250  ;;  %v3377_v57 = vpop.permute.xlu0 %3376 }
 0x3c1   : > { %v3834_v53 = vsel %vm3814_vm2, %v3699_v13, %v3377_v57  ;;  %v3701_v17 = vsel %vm3685_vm1, %v3516_v9, %v3251_v43  ;;  %v11380_v13 = vld [vmem:[%s9206_s21 + $0x118] sm:$0xf]  ;;  %v14388_v43 = vld [vmem:[#allocation42_spill] sm:$0xff] }
 0x3c2   : > { %2826 = vrot.lane.b32.xlu1 %v7317_v10, %s8956_s30  ;;  %3272 = vrot.lane.b32.xlu0 %v7380_v6, %s8956_s30  ;;  %v1549_v10 = vmul.bf16 %v10907_v56, %v14386_v2  ;;  %v1548_v6 = vmul.bf16 %v10912_v25, %v14387_v1  ;;  %v1551_v57 = vmul.bf16 %v10939_v54, %v14388_v43  ;;  %v8103_v9 = vld [vmem:[%s13820_s3 + $0x8] sm:$0xff]   ;;  %v14391_v2 = vld [vmem:[#allocation100_spill] sm:$0xff] }
 0x3c3   : > { %7749 = vmatprep.mubr.bf16.mxu0 %v3834_v53  ;;  %v14389_v53 = vld [vmem:[#allocation45_spill] sm:$0xff]  ;;  %7867 = vmatprep.subr.bf16.mxu1 %v8103_v9  ;;  %v8104_v1 = vld [vmem:[%s13820_s3 + $0x10] sm:$0xff]   ;;  %v2062_v43 = vmul.bf16 %v10925_v60, %v11283_v3 }
 0x3c4   : > { %v11341_v26 = vpop.permute.xlu1 %1724  ;;  %v11343_v8 = vpop.permute.xlu0 %1726  ;;  %v7318_v32 = vcombine.low %v1548_v6, %v1549_v10  ;;  %v1036_v10 = vmul.bf16 %v10912_v25, %v14391_v2  ;;  %7868 = vmatpush3.bf16.msra.mxu1 %v8103_v9  ;;  %v7382_v6 = vcombine.low %v2060_v52, %v2061_v38  ;;  %v8106_v52 = vld [vmem:[%s13820_s3 + $0x20] sm:$0xff]   ;;  %v14392_v38 = vld [vmem:[#allocation103_spill] sm:$0xff] }
 0x3c5   : > { %7869 = vmatprep.subr.bf16.mxu1 %v8104_v1 }
 0x3c6   : > { %3400 = vrot.lane.b32.xlu0 %v11339_v14, %s8955_s8  ;;  %3274 = vrot.lane.b32.xlu1 %v7381_v48, %s8956_s30  ;;  %v1550_v48 = vmul.bf16 %v10925_v60, %v14389_v53  ;;  %v2063_v53 = vmul.bf16 %v10939_v54, %v11302_v41 }
 0x3c8   : > { %v3379_v35 = vpop.permute.xlu1 %3378  ;;  %v11355_v62 = vpop.permute.xlu0 %1728  ;;  %v7319_v5 = vcombine.low %v1550_v48, %v1551_v57  ;;  %7870 = vmatpush3.bf16.msra.mxu1 %v8104_v1  ;;  %v7383_v41 = vcombine.low %v2062_v43, %v2063_v53  ;;  %v14394_v1 = vld [vmem:[#allocation46_spill] sm:$0xff]  ;;  %v14395_v43 = vld [vmem:[#allocation49_spill] sm:$0xff] }
 0x3c9   : > { %v3837_v37 = vsel %vm3814_vm2, %v3701_v17, %v3379_v35  ;;  %v11399_v35 = vld [vmem:[%s9206_s21 + $0x11c] sm:$0xf]  ;;  %v1552_v53 = vmul.bf16 %v10964_v47, %v14395_v43 }
 0x3ca   : > { %1774 = vrot.lane.b32.xlu0 %v11359_v49, %s8957_s9  ;;  %1772 = vrot.lane.b32.xlu1 %v11364_v50, %s8957_s9  ;;  %v8109_v43 = vld [vmem:[%s13820_s3 + $0x38] sm:$0xff]  }
 0x3cb   : > { %7750 = vmatmul.mubr.bf16.gmra.mrb[12].mxu0 %v3837_v37  ;;  %v14390_v37 = vld [vmem:[#allocation99_spill] sm:$0xff] }
 0x3cc   : > { %v11377_v28 = vpop.permute.xlu1 %1730  ;;  %v2805_v20 = vpop.permute.xlu0 %2804  ;;  %v1037_v55 = vmul.bf16 %v10907_v56, %v14390_v37  ;;  %v14393_v37 = vld [vmem:[#allocation104_spill] sm:$0xff] }
 0x3cd   : > { %v3519_v46 = vsel %vm3492_vm0, %v11001_v51, %v2805_v20  ;;  %v8105_v51 = vld [vmem:[%s13820_s3 + $0x18] sm:$0xff]  }
 0x3ce   : > { %1776 = vrot.lane.b32.xlu0 %v11380_v13, %s8957_s9  ;;  %3402 = vrot.lane.b32.xlu1 %v11371_v63, %s8955_s8  ;;  %v11423_v3 = vcombine.low %v1036_v10, %v1037_v55  ;;  %v1038_v55 = vmul.bf16 %v10925_v60, %v14393_v37  ;;  %v8107_v60 = vld [vmem:[%s13820_s3 + $0x28] sm:$0xff]   ;;  %v2065_v37 = vmul.bf16 %v10959_v27, %v11343_v8 }
 0x3cf   : > { %7871 = vmatprep.subr.bf16.mxu1 %v8105_v51 }
 0x3d0   : > { %v2807_v21 = vpop.permute.xlu1 %2806  ;;  %v3253_v17 = vpop.permute.xlu0 %3252  ;;  %7872 = vmatpush3.bf16.msra.mxu1 %v8105_v51 }
 0x3d1   : > { %v3703_v56 = vsel %vm3685_vm1, %v3519_v46, %v3253_v17  ;;  %v3522_v9 = vsel %vm3492_vm0, %v11026_v15, %v2807_v21  ;;  %v1039_v17 = vmul.bf16 %v10939_v54, %v14392_v38  ;;  %7873 = vmatprep.subr.bf16.mxu1 %v8106_v52  ;;  %v11446_v15 = vld [vmem:[%s9206_s21 + $0x124] sm:$0xf]  ;;  %v11451_v21 = vld [vmem:[%s9206_s21 + $0x120] sm:$0xf] }
 0x3d2   : > { %2828 = vrot.lane.b32.xlu0 %v7318_v32, %s8956_s30  ;;  %1778 = vrot.lane.b32.xlu1 %v11399_v35, %s8957_s9 }
 0x3d3   : > { %v11458_v54 = vcombine.low %v1038_v55, %v1039_v17  ;;  %v2064_v17 = vmul.bf16 %v10964_v47, %v11341_v26 }
 0x3d4   : > { %v3255_v32 = vpop.permute.xlu1 %3254  ;;  %v3381_v25 = vpop.permute.xlu0 %3380  ;;  %7874 = vmatpush3.bf16.msra.mxu1 %v8106_v52  ;;  %v8108_v52 = vld [vmem:[%s13820_s3 + $0x30] sm:$0xff]  }
 0x3d5   : > { %v3840_v57 = vsel %vm3814_vm2, %v3703_v56, %v3381_v25  ;;  %v3705_v2 = vsel %vm3685_vm1, %v3522_v9, %v3255_v32  ;;  %7875 = vmatprep.subr.bf16.mxu1 %v8107_v60  ;;  %v11467_v25 = vld [vmem:[%s9206_s21 + $0x128] sm:$0xf] }
 0x3d6   : > { %2830 = vrot.lane.b32.xlu1 %v7319_v5, %s8956_s30  ;;  %3276 = vrot.lane.b32.xlu0 %v7382_v6, %s8956_s30  ;;  %v1553_v6 = vmul.bf16 %v10959_v27, %v14394_v1  ;;  %v14399_v1 = vld [vmem:[#allocation108_spill] sm:$0xff] }
 0x3d7   : > { %7753 = vmatprep.mubr.bf16.mxu0 %v3840_v57  ;;  %v14396_v57 = vld [vmem:[#allocation50_spill] sm:$0xff] }
 0x3d8   : > { %v11425_v20 = vpop.permute.xlu1 %1732  ;;  %v11427_v48 = vpop.permute.xlu0 %1734  ;;  %v1555_v51 = vmul.bf16 %v10991_v24, %v14396_v57  ;;  %7876 = vmatpush3.bf16.msra.mxu1 %v8107_v60  ;;  %v7320_v38 = vcombine.low %v1552_v53, %v1553_v6  ;;  %v1040_v6 = vmul.bf16 %v10964_v47, %v14399_v1  ;;  %v7384_v53 = vcombine.low %v2064_v17, %v2065_v37  ;;  %v14401_v37 = vld [vmem:[#allocation112_spill] sm:$0xff] }
 0x3d9   : > { %7877 = vmatprep.subr.bf16.mxu1 %v8108_v52  ;;  %v2066_v57 = vmul.bf16 %v10977_v0, %v11355_v62 }
 0x3da   : > { %3404 = vrot.lane.b32.xlu0 %v11423_v3, %s8955_s8  ;;  %3278 = vrot.lane.b32.xlu1 %v7383_v41, %s8956_s30  ;;  %v14397_v41 = vld [vmem:[#allocation53_spill] sm:$0xff] }
 0x3db   : > { %v1554_v9 = vmul.bf16 %v10977_v0, %v14397_v41  ;;  %v2067_v41 = vmul.bf16 %v10991_v24, %v11377_v28 }
 0x3dc   : > { %v3383_v10 = vpop.permute.xlu1 %3382  ;;  %v11442_v5 = vpop.permute.xlu0 %1736  ;;  %7878 = vmatpush3.bf16.msra.mxu1 %v8108_v52  ;;  %v14400_v52 = vld [vmem:[#allocation111_spill] sm:$0xff] }
 0x3dd   : > { %v3843_v46 = vsel %vm3814_vm2, %v3705_v2, %v3383_v10  ;;  %v11486_v10 = vld [vmem:[%s9206_s21 + $0x12c] sm:$0xf]  ;;  %v7321_v26 = vcombine.low %v1554_v9, %v1555_v51  ;;  %7879 = vmatprep.subr.bf16.mxu1 %v8109_v43  ;;  %v7385_v62 = vcombine.low %v2066_v57, %v2067_v41  ;;  %v1043_v17 = vmul.bf16 %v10991_v24, %v14400_v52  ;;  %v11545_v41 = vld [vmem:[%s9206_s21 + $0x138] sm:$0xf] }
 0x3de   : > { %1782 = vrot.lane.b32.xlu0 %v11446_v15, %s8957_s9  ;;  %1780 = vrot.lane.b32.xlu1 %v11451_v21, %s8957_s9  ;;  %v2069_v52 = vmul.bf16 %v11013_v31, %v11427_v48 }
 0x3df   : > { %7754 = vmatmul.mubr.bf16.gmra.mrb[16].mxu0 %v3843_v46  ;;  %v14398_v46 = vld [vmem:[#allocation107_spill] sm:$0xff] }
 0x3e0   : > { %v11464_v56 = vpop.permute.xlu1 %1738  ;;  %v2809_v32 = vpop.permute.xlu0 %2808  ;;  %v1041_v60 = vmul.bf16 %v10959_v27, %v14398_v46  ;;  %7880 = vmatpush3.bf16.msra.mxu1 %v8109_v43 }
 0x3e1   : > { %v3525_v8 = vsel %vm3492_vm0, %v11059_v4, %v2809_v32 }
 0x3e2   : > { %1784 = vrot.lane.b32.xlu0 %v11467_v25, %s8957_s9  ;;  %3406 = vrot.lane.b32.xlu1 %v11458_v54, %s8955_s8  ;;  %v11507_v4 = vcombine.low %v1040_v6, %v1041_v60 }
 0x3e4   : > { %v2811_v55 = vpop.permute.xlu1 %2810  ;;  %v3257_v2 = vpop.permute.xlu0 %3256 }
 0x3e5   : > { %v3707_v27 = vsel %vm3685_vm1, %v3525_v8, %v3257_v2  ;;  %v3528_v9 = vsel %vm3492_vm0, %v11084_v36, %v2811_v55  ;;  %v1042_v2 = vmul.bf16 %v10977_v0, %v14401_v37  ;;  %v11532_v36 = vld [vmem:[%s9206_s21 + $0x130] sm:$0xf]  ;;  %v14402_v0 = vld [vmem:[#allocation54_spill] sm:$0xff]  ;;  %v14403_v8 = vld [vmem:[#allocation57_spill] sm:$0xff] }
 0x3e6   : > { %2832 = vrot.lane.b32.xlu0 %v7320_v38, %s8956_s30  ;;  %1786 = vrot.lane.b32.xlu1 %v11486_v10, %s8957_s9  ;;  %v1557_v55 = vmul.bf16 %v11013_v31, %v14402_v0  ;;  %v1556_v43 = vmul.bf16 %v11018_v40, %v14403_v8  ;;  %v2070_v8 = vmul.bf16 %v11031_v45, %v11442_v5 }
 0x3e7   : > { %v11536_v24 = vcombine.low %v1042_v2, %v1043_v17  ;;  %v11561_v2 = vld [vmem:[%s9206_s21 + $0x13c] sm:$0xf] }
 0x3e8   : > { %v3259_v38 = vpop.permute.xlu1 %3258  ;;  %v3385_v47 = vpop.permute.xlu0 %3384 }
 0x3e9   : > { %v3846_v51 = vsel %vm3814_vm2, %v3707_v27, %v3385_v47  ;;  %v3709_v46 = vsel %vm3685_vm1, %v3528_v9, %v3259_v38  ;;  %v14404_v27 = vld [vmem:[#allocation58_spill] sm:$0xff]  ;;  %v14405_v47 = vld [vmem:[#allocation61_spill] sm:$0xff]  ;;  %v2068_v9 = vmul.bf16 %v11018_v40, %v11425_v20 }
 0x3ea   : > { %2834 = vrot.lane.b32.xlu1 %v7321_v26, %s8956_s30  ;;  %3280 = vrot.lane.b32.xlu0 %v7384_v53, %s8956_s30  ;;  %v11527_v26 = vld [vmem:[%s9206_s21 + $0x134] sm:$0xf]  ;;  %v1559_v38 = vmul.bf16 %v11045_v44, %v14404_v27 }
 0x3eb   : > { %7757 = vmatprep.mubr.bf16.mxu0 %v3846_v51  ;;  %v1558_v51 = vmul.bf16 %v11031_v45, %v14405_v47  ;;  %v7386_v48 = vcombine.low %v2068_v9, %v2069_v52  ;;  %v14409_v9 = vld [vmem:[#allocation120_spill] sm:$0xff] }
 0x3ec   : > { %v11509_v32 = vpop.permute.xlu1 %1740  ;;  %v11511_v28 = vpop.permute.xlu0 %1742  ;;  %v1046_v52 = vmul.bf16 %v11031_v45, %v14409_v9  ;;  %v14410_v45 = vld [vmem:[#allocation62_spill] sm:$0xff] }
 0x3ed   : > { %v2073_v9 = vmul.bf16 %v11075_v39, %v11511_v28 }
 0x3ee   : > { %3408 = vrot.lane.b32.xlu0 %v11507_v4, %s8955_s8  ;;  %3282 = vrot.lane.b32.xlu1 %v7385_v62, %s8956_s30  ;;  %v7322_v62 = vcombine.low %v1556_v43, %v1557_v55  ;;  %v7323_v55 = vcombine.low %v1558_v51, %v1559_v38  ;;  %v2071_v43 = vmul.bf16 %v11045_v44, %v11464_v56  ;;  %v14408_v38 = vld [vmem:[#allocation119_spill] sm:$0xff] }
 0x3ef   : > { %v1047_v51 = vmul.bf16 %v11045_v44, %v14408_v38 }
 0x3f0   : > { %v3387_v60 = vpop.permute.xlu1 %3386  ;;  %v11523_v1 = vpop.permute.xlu0 %1744 }
 0x3f1   : > { %v3849_v6 = vsel %vm3814_vm2, %v3709_v46, %v3387_v60  ;;  %v14406_v46 = vld [vmem:[#allocation115_spill] sm:$0xff]  ;;  %v11608_v44 = vcombine.low %v1046_v52, %v1047_v51  ;;  %v2072_v51 = vmul.bf16 %v11080_v30, %v11509_v32 }
 0x3f2   : > { %1790 = vrot.lane.b32.xlu0 %v11527_v26, %s8957_s9  ;;  %1788 = vrot.lane.b32.xlu1 %v11532_v36, %s8957_s9  ;;  %v1045_v60 = vmul.bf16 %v11013_v31, %v14406_v46 }
 0x3f3   : > { %7758 = vmatmul.mubr.bf16.gmra.mrb[20].mxu0 %v3849_v6  ;;  %v14407_v6 = vld [vmem:[#allocation116_spill] sm:$0xff]  ;;  %v7388_v28 = vcombine.low %v2072_v51, %v2073_v9 }
 0x3f4   : > { %v11542_v53 = vpop.permute.xlu1 %1746  ;;  %v2813_v57 = vpop.permute.xlu0 %2812  ;;  %v1044_v0 = vmul.bf16 %v11018_v40, %v14407_v6  ;;  %v14421_v51 = vld [vmem:[#allocation128_spill] sm:$0xff] }
 0x3f5   : > { %v3531_v20 = vsel %vm3492_vm0, %v11123_v12, %v2813_v57  ;;  %v7387_v12 = vcombine.low %v2070_v8, %v2071_v43  ;;  %v11617_v43 = vld [vmem:[%s9206_s21 + $0x148] sm:$0xf] }
 0x3f6   : > { %1792 = vrot.lane.b32.xlu0 %v11545_v41, %s8957_s9  ;;  %3410 = vrot.lane.b32.xlu1 %v11536_v24, %s8955_s8  ;;  %v11579_v40 = vcombine.low %v1044_v0, %v1045_v60  ;;  %v11599_v0 = vld [vmem:[%s9206_s21 + $0x144] sm:$0xf]  ;;  %14412 = vst [vmem:[#allocation28_spill] sm:$0xff] %v11617_v43 }
 0x3f8   : > { %v2815_v17 = vpop.permute.xlu1 %2814  ;;  %v3261_v37 = vpop.permute.xlu0 %3260 }
 0x3f9   : > { %v3711_v27 = vsel %vm3685_vm1, %v3531_v20, %v3261_v37  ;;  %v3534_v56 = vsel %vm3492_vm0, %v11152_v18, %v2815_v17  ;;  %v11604_v18 = vld [vmem:[%s9206_s21 + $0x140] sm:$0xf]  ;;  %v1561_v17 = vmul.bf16 %v11075_v39, %v14410_v45 }
 0x3fa   : > { %2836 = vrot.lane.b32.xlu0 %v7322_v62, %s8956_s30  ;;  %1794 = vrot.lane.b32.xlu1 %v11561_v2, %s8957_s9 }
 0x3fc   : > { %v3263_v47 = vpop.permute.xlu1 %3262  ;;  %v3389_v62 = vpop.permute.xlu0 %3388 }
 0x3fd   : > { %v3852_v31 = vsel %vm3814_vm2, %v3711_v27, %v3389_v62  ;;  %v3713_v37 = vsel %vm3685_vm1, %v3534_v56, %v3263_v47  ;;  %v14413_v27 = vld [vmem:[#allocation66_spill] sm:$0xff]  ;;  %v14414_v47 = vld [vmem:[#allocation20_spill] sm:$0xff] }
 0x3fe   : > { %2838 = vrot.lane.b32.xlu1 %v7323_v55, %s8956_s30  ;;  %3284 = vrot.lane.b32.xlu0 %v7386_v48, %s8956_s30  ;;  %v14411_v55 = vld [vmem:[#allocation65_spill] sm:$0xff]  ;;  %v1563_v62 = vmul.bf16 %v14414_v47, %v14413_v27 }
 0x3ff   : > { %7761 = vmatprep.mubr.bf16.mxu0 %v3852_v31  ;;  %v1560_v20 = vmul.bf16 %v11080_v30, %v14411_v55  ;;  %v14415_v31 = vld [vmem:[#allocation69_spill] sm:$0xff]  ;;  %v14419_v55 = vld [vmem:[#allocation124_spill] sm:$0xff] }
 0x400   : > { %v11581_v5 = vpop.permute.xlu1 %1748  ;;  %v11583_v57 = vpop.permute.xlu0 %1750 }
 0x401   : > { %v7324_v38 = vcombine.low %v1560_v20, %v1561_v17  ;;  %v1048_v17 = vmul.bf16 %v11080_v30, %v14419_v55  ;;  %v11671_v55 = vld [vmem:[%s9206_s21 + $0x154] sm:$0xf] }
 0x402   : > { %3412 = vrot.lane.b32.xlu0 %v11579_v40, %s8955_s8  ;;  %3286 = vrot.lane.b32.xlu1 %v7387_v12, %s8956_s30  ;;  %v14416_v12 = vld [vmem:[#allocation24_spill] sm:$0xff] }
 0x403   : > { %v1562_v56 = vmul.bf16 %v14416_v12, %v14415_v31  ;;  %v2074_v27 = vmul.bf16 %v14416_v12, %v11523_v1  ;;  %v2075_v31 = vmul.bf16 %v14414_v47, %v11542_v53  ;;  %v1050_v9 = vmul.bf16 %v14416_v12, %v14421_v51  ;;  %v14423_v12 = vld [vmem:[#allocation70_spill] sm:$0xff] }
 0x404   : > { %v3391_v46 = vpop.permute.xlu1 %3390  ;;  %v11595_v60 = vpop.permute.xlu0 %1752 }
 0x405   : > { %v3855_v6 = vsel %vm3814_vm2, %v3713_v37, %v3391_v46  ;;  %v11633_v46 = vld [vmem:[%s9206_s21 + $0x14c] sm:$0xf]  ;;  %v7325_v20 = vcombine.low %v1562_v56, %v1563_v62 }
 0x406   : > { %1798 = vrot.lane.b32.xlu0 %v11599_v0, %s8957_s9  ;;  %1796 = vrot.lane.b32.xlu1 %v11604_v18, %s8957_s9  ;;  %14417 = vst [vmem:[#allocation31_spill] sm:$0xff] %v11633_v46  ;;  %v14420_v62 = vld [vmem:[#allocation127_spill] sm:$0xff] }
 0x407   : > { %7762 = vmatmul.mubr.bf16.gmra.mrb[24].mxu0 %v3855_v6  ;;  %v14418_v6 = vld [vmem:[#allocation123_spill] sm:$0xff]  ;;  %v1051_v56 = vmul.bf16 %v14414_v47, %v14420_v62 }
 0x408   : > { %v11614_v48 = vpop.permute.xlu1 %1754  ;;  %v2817_v8 = vpop.permute.xlu0 %2816  ;;  %v1049_v45 = vmul.bf16 %v11075_v39, %v14418_v6 }
 0x409   : > { %v3537_v32 = vsel %vm3492_vm0, %v11195_v29, %v2817_v8  ;;  %v7389_v29 = vcombine.low %v2074_v27, %v2075_v31  ;;  %v11680_v47 = vcombine.low %v1050_v9, %v1051_v56  ;;  %v11689_v27 = vld [vmem:[%s9206_s21 + $0x158] sm:$0xf]  ;;  %v14427_v31 = vld [vmem:[#allocation74_spill] sm:$0xff]  ;;  %v2077_v9 = vmul.bf16 %v11143_v33, %v11583_v57 }
 0x40a   : > { %1800 = vrot.lane.b32.xlu0 %v11617_v43, %s8957_s9  ;;  %3414 = vrot.lane.b32.xlu1 %v11608_v44, %s8955_s8  ;;  %v11651_v30 = vcombine.low %v1048_v17, %v1049_v45  ;;  %v14425_v17 = vld [vmem:[#allocation23_spill] sm:$0xff]  ;;  %14426 = vst [vmem:[#allocation35_spill] sm:$0xff] %v11689_v27 }
 0x40b   : > { %v2076_v51 = vmul.bf16 %v14425_v17, %v11581_v5 }
 0x40c   : > { %v2819_v52 = vpop.permute.xlu1 %2818  ;;  %v3265_v37 = vpop.permute.xlu0 %3264 }
 0x40d   : > { %v3540_v53 = vsel %vm3492_vm0, %v11224_v7, %v2819_v52  ;;  %v11676_v7 = vld [vmem:[%s9206_s21 + $0x150] sm:$0xf]  ;;  %v14424_v52 = vld [vmem:[#allocation73_spill] sm:$0xff]  ;;  %v7390_v57 = vcombine.low %v2076_v51, %v2077_v9 }
 0x40e   : > { %2840 = vrot.lane.b32.xlu0 %v7324_v38, %s8956_s30  ;;  %1802 = vrot.lane.b32.xlu1 %v11633_v46, %s8957_s9  ;;  %v3715_v38 = vsel %vm3685_vm1, %v3537_v32, %v3265_v37  ;;  %14422 = vst [vmem:[#allocation32_spill] sm:$0xff] %v11676_v7 }
 0x410   : > { %v3267_v43 = vpop.permute.xlu1 %3266  ;;  %v3393_v46 = vpop.permute.xlu0 %3392 }
 0x411   : > { %v3858_v39 = vsel %vm3814_vm2, %v3715_v38, %v3393_v46  ;;  %v3717_v37 = vsel %vm3685_vm1, %v3540_v53, %v3267_v43  ;;  %v1565_v43 = vmul.bf16 %v11143_v33, %v14423_v12  ;;  %v14428_v38 = vld [vmem:[#allocation27_spill] sm:$0xff] }
 0x412   : > { %2842 = vrot.lane.b32.xlu1 %v7325_v20, %s8956_s30  ;;  %3288 = vrot.lane.b32.xlu0 %v7388_v28, %s8956_s30  ;;  %v1564_v20 = vmul.bf16 %v14425_v17, %v14424_v52  ;;  %v14430_v53 = vld [vmem:[#allocation19_spill] sm:$0xff] }
 0x413   : > { %7765 = vmatprep.mubr.bf16.mxu0 %v3858_v39  ;;  %v1567_v39 = vmul.bf16 %v14428_v38, %v14427_v31  ;;  %v14432_v12 = vld [vmem:[#allocation131_spill] sm:$0xff]  ;;  %v14433_v31 = vld [vmem:[#allocation132_spill] sm:$0xff] }
 0x414   : > { %v11653_v1 = vpop.permute.xlu1 %1756  ;;  %v11655_v8 = vpop.permute.xlu0 %1758  ;;  %v7326_v56 = vcombine.low %v1564_v20, %v1565_v43  ;;  %v1053_v52 = vmul.bf16 %v11143_v33, %v14432_v12  ;;  %v1052_v43 = vmul.bf16 %v14425_v17, %v14433_v31 }
 0x416   : > { %3416 = vrot.lane.b32.xlu0 %v11651_v30, %s8955_s8  ;;  %3290 = vrot.lane.b32.xlu1 %v7389_v29, %s8956_s30  ;;  %v14429_v29 = vld [vmem:[#allocation77_spill] sm:$0xff] }
 0x417   : > { %v1566_v62 = vmul.bf16 %v14430_v53, %v14429_v29  ;;  %v2078_v29 = vmul.bf16 %v14430_v53, %v11595_v60 }
 0x418   : > { %v3395_v46 = vpop.permute.xlu1 %3394  ;;  %v11667_v6 = vpop.permute.xlu0 %1760 }
 0x419   : > { %v3861_v45 = vsel %vm3814_vm2, %v3717_v37, %v3395_v46  ;;  %v7327_v20 = vcombine.low %v1566_v62, %v1567_v39  ;;  %v14435_v39 = vld [vmem:[#allocation136_spill] sm:$0xff] }
 0x41a   : > { %1806 = vrot.lane.b32.xlu0 %v11671_v55, %s8957_s9  ;;  %1804 = vrot.lane.b32.xlu1 %v11676_v7, %s8957_s9  ;;  %v1054_v62 = vmul.bf16 %v14430_v53, %v14435_v39  ;;  %v14436_v53 = vld [vmem:[#allocation78_spill] sm:$0xff] }
 0x41b   : > { %7766 = vmatmul.mubr.bf16.gmra.mrb[28].mxu0 %v3861_v45  ;;  %v11705_v45 = vld [vmem:[%s9206_s21 + $0x15c] sm:$0xf] }
 0x41c   : > { %v11686_v32 = vpop.permute.xlu1 %1762  ;;  %v2821_v28 = vpop.permute.xlu0 %2820  ;;  %14431 = vst [vmem:[#allocation36_spill] sm:$0xff] %v11705_v45 }
 0x41d   : > { %v3543_v5 = vsel %vm3492_vm0, %v11267_v23, %v2821_v28  ;;  %v11723_v23 = vcombine.low %v1052_v43, %v1053_v52  ;;  %v11743_v52 = vld [vmem:[%s9206_s21 + $0x164] sm:$0xf] }
 0x41e   : > { %1808 = vrot.lane.b32.xlu0 %v11689_v27, %s8957_s9  ;;  %3418 = vrot.lane.b32.xlu1 %v11680_v47, %s8955_s8 }
 0x420   : > { %v2823_v37 = vpop.permute.xlu1 %2822  ;;  %v3269_v46 = vpop.permute.xlu0 %3268 }
 0x421   : > { %v3719_v27 = vsel %vm3685_vm1, %v3543_v5, %v3269_v46  ;;  %v11761_v5 = vld [vmem:[%s9206_s21 + $0x168] sm:$0xf] }
 0x422   : > { %2844 = vrot.lane.b32.xlu0 %v7326_v56, %s8956_s30  ;;  %1810 = vrot.lane.b32.xlu1 %v11705_v45, %s8957_s9  ;;  %v2079_v56 = vmul.bf16 %v14428_v38, %v11614_v48  ;;  %v3546_v48 = vsel %vm3492_vm0, %v11296_v59, %v2823_v37  ;;  %v11748_v59 = vld [vmem:[%s9206_s21 + $0x160] sm:$0xf]  ;;  %v1569_v37 = vmul.bf16 %v11215_v58, %v14436_v53 }
 0x424   : > { %v3271_v45 = vpop.permute.xlu1 %3270  ;;  %v3397_v7 = vpop.permute.xlu0 %3396  ;;  %v7391_v17 = vcombine.low %v2078_v29, %v2079_v56  ;;  %v14439_v56 = vld [vmem:[#allocation85_spill] sm:$0xff] }
 0x425   : > { %v3864_v33 = vsel %vm3814_vm2, %v3719_v27, %v3397_v7  ;;  %v14434_v7 = vld [vmem:[#allocation135_spill] sm:$0xff]  ;;  %v3721_v51 = vsel %vm3685_vm1, %v3546_v48, %v3271_v45  ;;  %v14437_v45 = vld [vmem:[#allocation81_spill] sm:$0xff]  ;;  %v2080_v48 = vmul.bf16 %v11220_v22, %v11653_v1 }
 0x426   : > { %2846 = vrot.lane.b32.xlu1 %v7327_v20, %s8956_s30  ;;  %3292 = vrot.lane.b32.xlu0 %v7390_v57, %s8956_s30  ;;  %v1055_v27 = vmul.bf16 %v14428_v38, %v14434_v7  ;;  %v1568_v31 = vmul.bf16 %v11220_v22, %v14437_v45  ;;  %v14438_v57 = vld [vmem:[#allocation82_spill] sm:$0xff]  ;;  %v2081_v7 = vmul.bf16 %v11215_v58, %v11655_v8 }
 0x427   : > { %7769 = vmatprep.mubr.bf16.mxu0 %v3864_v33  ;;  %v1571_v29 = vmul.bf16 %v11249_v61, %v14438_v57  ;;  %v1570_v33 = vmul.bf16 %v11233_v11, %v14439_v56  ;;  %v2082_v45 = vmul.bf16 %v11233_v11, %v11667_v6 }
 0x428   : > { %v11725_v60 = vpop.permute.xlu1 %1764  ;;  %v11727_v28 = vpop.permute.xlu0 %1766  ;;  %v11752_v38 = vcombine.low %v1054_v62, %v1055_v27  ;;  %v11777_v62 = vld [vmem:[%s9206_s21 + $0x16c] sm:$0xf]  ;;  %v7392_v8 = vcombine.low %v2080_v48, %v2081_v7  ;;  %v14443_v48 = vld [vmem:[#allocation144_spill] sm:$0xff] }
 0x429   : > { %v1058_v7 = vmul.bf16 %v11233_v11, %v14443_v48  ;;  %v14444_v11 = vld [vmem:[#allocation86_spill] sm:$0xff] }
 0x42a   : > { %3420 = vrot.lane.b32.xlu0 %v11723_v23, %s8955_s8  ;;  %3294 = vrot.lane.b32.xlu1 %v7391_v17, %s8956_s30  ;;  %v7328_v17 = vcombine.low %v1568_v31, %v1569_v37  ;;  %v7329_v37 = vcombine.low %v1570_v33, %v1571_v29  ;;  %v2083_v31 = vmul.bf16 %v11249_v61, %v11686_v32  ;;  %v14442_v29 = vld [vmem:[#allocation143_spill] sm:$0xff] }
 0x42b   : > { %v1059_v33 = vmul.bf16 %v11249_v61, %v14442_v29  ;;  %v2085_v29 = vmul.bf16 %v11287_v34, %v11727_v28 }
 0x42c   : > { %v3399_v9 = vpop.permute.xlu1 %3398  ;;  %v11739_v46 = vpop.permute.xlu0 %1768 }
 0x42d   : > { %v3867_v12 = vsel %vm3814_vm2, %v3721_v51, %v3399_v9  ;;  %v14440_v51 = vld [vmem:[#allocation139_spill] sm:$0xff]  ;;  %v11824_v61 = vcombine.low %v1058_v7, %v1059_v33  ;;  %v11849_v7 = vld [vmem:[%s9206_s21 + $0x17c] sm:$0xf] }
 0x42e   : > { %1814 = vrot.lane.b32.xlu0 %v11743_v52, %s8957_s9  ;;  %1812 = vrot.lane.b32.xlu1 %v11748_v59, %s8957_s9  ;;  %v1057_v9 = vmul.bf16 %v11215_v58, %v14440_v51 }
 0x42f   : > { %7770 = vmatmul.mubr.bf16.gmra.mrb[32].mxu0 %v3867_v12  ;;  %v14441_v12 = vld [vmem:[#allocation140_spill] sm:$0xff] }
 0x430   : > { %v11758_v43 = vpop.permute.xlu1 %1770  ;;  %v2825_v20 = vpop.permute.xlu0 %2824  ;;  %v1056_v53 = vmul.bf16 %v11220_v22, %v14441_v12 }
 0x431   : > { %v3549_v1 = vsel %vm3492_vm0, %v11339_v14, %v2825_v20  ;;  %v7393_v14 = vcombine.low %v2082_v45, %v2083_v31  ;;  %v11833_v31 = vld [vmem:[%s9206_s21 + $0x178] sm:$0xf] }
 0x432   : > { %1816 = vrot.lane.b32.xlu0 %v11761_v5, %s8957_s9  ;;  %3422 = vrot.lane.b32.xlu1 %v11752_v38, %s8955_s8  ;;  %v11795_v22 = vcombine.low %v1056_v53, %v1057_v9  ;;  %v11815_v53 = vld [vmem:[%s9206_s21 + $0x174] sm:$0xf] }
 0x434   : > { %v2827_v27 = vpop.permute.xlu1 %2826  ;;  %v3273_v39 = vpop.permute.xlu0 %3272 }
 0x435   : > { %v3723_v57 = vsel %vm3685_vm1, %v3549_v1, %v3273_v39  ;;  %v3552_v32 = vsel %vm3492_vm0, %v11371_v63, %v2827_v27  ;;  %v11820_v63 = vld [vmem:[%s9206_s21 + $0x170] sm:$0xf]  ;;  %v1573_v27 = vmul.bf16 %v11287_v34, %v14444_v11 }
 0x436   : > { %2848 = vrot.lane.b32.xlu0 %v7328_v17, %s8956_s30  ;;  %1818 = vrot.lane.b32.xlu1 %v11777_v62, %s8957_s9 }
 0x438   : > { %v3275_v56 = vpop.permute.xlu1 %3274  ;;  %v3401_v17 = vpop.permute.xlu0 %3400 }
 0x439   : > { %v3870_v58 = vsel %vm3814_vm2, %v3723_v57, %v3401_v17  ;;  %v3725_v39 = vsel %vm3685_vm1, %v3552_v32, %v3275_v56  ;;  %v14446_v57 = vld [vmem:[#allocation90_spill] sm:$0xff]  ;;  %v14447_v17 = vld [vmem:[#allocation93_spill] sm:$0xff]  ;;  %v2084_v32 = vmul.bf16 %v11292_v42, %v11725_v60 }
 0x43a   : > { %2850 = vrot.lane.b32.xlu1 %v7329_v37, %s8956_s30  ;;  %3296 = vrot.lane.b32.xlu0 %v7392_v8, %s8956_s30  ;;  %v14445_v37 = vld [vmem:[#allocation89_spill] sm:$0xff]  ;;  %v1575_v56 = vmul.bf16 %v11321_v16, %v14446_v57 }
 0x43b   : > { %7773 = vmatprep.mubr.bf16.mxu0 %v3870_v58  ;;  %v1572_v1 = vmul.bf16 %v11292_v42, %v14445_v37  ;;  %v1574_v58 = vmul.bf16 %v11305_v19, %v14447_v17  ;;  %v7394_v28 = vcombine.low %v2084_v32, %v2085_v29  ;;  %v2086_v37 = vmul.bf16 %v11305_v19, %v11739_v46  ;;  %v14451_v32 = vld [vmem:[#allocation150_spill] sm:$0xff] }
 0x43c   : > { %v11797_v6 = vpop.permute.xlu1 %1772  ;;  %v11799_v20 = vpop.permute.xlu0 %1774  ;;  %v1062_v29 = vmul.bf16 %v11305_v19, %v14451_v32  ;;  %v14452_v19 = vld [vmem:[#allocation94_spill] sm:$0xff] }
 0x43e   : > { %3424 = vrot.lane.b32.xlu0 %v11795_v22, %s8955_s8  ;;  %3298 = vrot.lane.b32.xlu1 %v7393_v14, %s8956_s30  ;;  %v7330_v14 = vcombine.low %v1572_v1, %v1573_v27  ;;  %v7331_v27 = vcombine.low %v1574_v58, %v1575_v56  ;;  %v2087_v1 = vmul.bf16 %v11321_v16, %v11758_v43  ;;  %v14450_v56 = vld [vmem:[#allocation149_spill] sm:$0xff] }
 0x43f   : > { %v1063_v58 = vmul.bf16 %v11321_v16, %v14450_v56  ;;  %v2089_v56 = vmul.bf16 %v11359_v49, %v11799_v20 }
 0x440   : > { %v3403_v51 = vpop.permute.xlu1 %3402  ;;  %v11811_v9 = vpop.permute.xlu0 %1776 }
 0x441   : > { %v3873_v12 = vsel %vm3814_vm2, %v3725_v39, %v3403_v51  ;;  %v14448_v39 = vld [vmem:[#allocation147_spill] sm:$0xff]  ;;  %v11896_v16 = vcombine.low %v1062_v29, %v1063_v58 }
 0x442   : > { %1822 = vrot.lane.b32.xlu0 %v11815_v53, %s8957_s9  ;;  %1820 = vrot.lane.b32.xlu1 %v11820_v63, %s8957_s9  ;;  %v1061_v51 = vmul.bf16 %v11287_v34, %v14448_v39  ;;  %v11921_v29 = vld [vmem:[%s9206_s21 + $0x18c] sm:$0xf] }
 0x443   : > { %7774 = vmatmul.mubr.bf16.gmra.mrb[36].mxu0 %v3873_v12  ;;  %v14449_v12 = vld [vmem:[#allocation148_spill] sm:$0xff] }
 0x444   : > { %v11830_v8 = vpop.permute.xlu1 %1778  ;;  %v2829_v45 = vpop.permute.xlu0 %2828  ;;  %v1060_v11 = vmul.bf16 %v11292_v42, %v14449_v12 }
 0x445   : > { %v3555_v60 = vsel %vm3492_vm0, %v11423_v3, %v2829_v45  ;;  %v7395_v3 = vcombine.low %v2086_v37, %v2087_v1  ;;  %v11905_v1 = vld [vmem:[%s9206_s21 + $0x188] sm:$0xf] }
 0x446   : > { %1824 = vrot.lane.b32.xlu0 %v11833_v31, %s8957_s9  ;;  %3426 = vrot.lane.b32.xlu1 %v11824_v61, %s8955_s8  ;;  %v11867_v42 = vcombine.low %v1060_v11, %v1061_v51  ;;  %v11887_v11 = vld [vmem:[%s9206_s21 + $0x184] sm:$0xf]  ;;  %14454 = vst [vmem:[#allocation39_spill] sm:$0xff] %v11905_v1 }
 0x448   : > { %v2831_v33 = vpop.permute.xlu1 %2830  ;;  %v3277_v48 = vpop.permute.xlu0 %3276 }
 0x449   : > { %v3727_v57 = vsel %vm3685_vm1, %v3555_v60, %v3277_v48  ;;  %v3558_v43 = vsel %vm3492_vm0, %v11458_v54, %v2831_v33  ;;  %v11892_v54 = vld [vmem:[%s9206_s21 + $0x180] sm:$0xf]  ;;  %v1577_v33 = vmul.bf16 %v11359_v49, %v14452_v19 }
 0x44a   : > { %2852 = vrot.lane.b32.xlu0 %v7330_v14, %s8956_s30  ;;  %1826 = vrot.lane.b32.xlu1 %v11849_v7, %s8957_s9 }
 0x44c   : > { %v3279_v17 = vpop.permute.xlu1 %3278  ;;  %v3405_v14 = vpop.permute.xlu0 %3404 }
 0x44d   : > { %v3876_v34 = vsel %vm3814_vm2, %v3727_v57, %v3405_v14  ;;  %v3729_v48 = vsel %vm3685_vm1, %v3558_v43, %v3279_v17  ;;  %v14455_v57 = vld [vmem:[#allocation98_spill] sm:$0xff]  ;;  %v14456_v14 = vld [vmem:[#allocation101_spill] sm:$0xff]  ;;  %v2088_v43 = vmul.bf16 %v11364_v50, %v11797_v6 }
 0x44e   : > { %2854 = vrot.lane.b32.xlu1 %v7331_v27, %s8956_s30  ;;  %3300 = vrot.lane.b32.xlu0 %v7394_v28, %s8956_s30  ;;  %v14453_v27 = vld [vmem:[#allocation97_spill] sm:$0xff]  ;;  %v1579_v17 = vmul.bf16 %v11399_v35, %v14455_v57 }
 0x44f   : > { %7777 = vmatprep.mubr.bf16.mxu0 %v3876_v34  ;;  %v1576_v60 = vmul.bf16 %v11364_v50, %v14453_v27  ;;  %v1578_v34 = vmul.bf16 %v11380_v13, %v14456_v14  ;;  %v7396_v20 = vcombine.low %v2088_v43, %v2089_v56  ;;  %v2090_v27 = vmul.bf16 %v11380_v13, %v11811_v9 }
 0x450   : > { %v11869_v46 = vpop.permute.xlu1 %1780  ;;  %v11871_v45 = vpop.permute.xlu0 %1782 }
 0x452   : > { %3428 = vrot.lane.b32.xlu0 %v11867_v42, %s8955_s8  ;;  %3302 = vrot.lane.b32.xlu1 %v7395_v3, %s8956_s30  ;;  %v7332_v3 = vcombine.low %v1576_v60, %v1577_v33  ;;  %v7333_v33 = vcombine.low %v1578_v34, %v1579_v17  ;;  %v2091_v60 = vmul.bf16 %v11399_v35, %v11830_v8 }
 0x454   : > { %v3407_v39 = vpop.permute.xlu1 %3406  ;;  %v11883_v51 = vpop.permute.xlu0 %1784  ;;  %v7397_v8 = vcombine.low %v2090_v27, %v2091_v60  ;;  %v14460_v27 = vld [vmem:[#allocation154_spill] sm:$0xff] }
 0x455   : > { %v3879_v12 = vsel %vm3814_vm2, %v3729_v48, %v3407_v39  ;;  %v14457_v48 = vld [vmem:[#allocation151_spill] sm:$0xff]  ;;  %v1066_v60 = vmul.bf16 %v11380_v13, %v14460_v27 }
 0x456   : > { %1830 = vrot.lane.b32.xlu0 %v11887_v11, %s8957_s9  ;;  %1828 = vrot.lane.b32.xlu1 %v11892_v54, %s8957_s9  ;;  %v1065_v39 = vmul.bf16 %v11359_v49, %v14457_v48 }
 0x457   : > { %7778 = vmatmul.mubr.bf16.gmra.mrb[40].mxu0 %v3879_v12  ;;  %v14458_v12 = vld [vmem:[#allocation152_spill] sm:$0xff] }
 0x458   : > { %v11902_v28 = vpop.permute.xlu1 %1786  ;;  %v2833_v37 = vpop.permute.xlu0 %2832  ;;  %v1064_v19 = vmul.bf16 %v11364_v50, %v14458_v12 }
 0x459   : > { %v3561_v6 = vsel %vm3492_vm0, %v11507_v4, %v2833_v37 }
 0x45a   : > { %1832 = vrot.lane.b32.xlu0 %v11905_v1, %s8957_s9  ;;  %3430 = vrot.lane.b32.xlu1 %v11896_v16, %s8955_s8  ;;  %v11936_v1 = vld [vmem:[#allocation7] ss:$0 sm:$0xff]  ;;  %v11942_v9 = vcombine.low %v1064_v19, %v1065_v39 }
 0x45b   : > { %v14459_v39 = vld [vmem:[#allocation153_spill] sm:$0xff] }
 0x45c   : > { %v2835_v58 = vpop.permute.xlu1 %2834  ;;  %v3281_v32 = vpop.permute.xlu0 %3280  ;;  %v1067_v19 = vmul.bf16 %v11399_v35, %v14459_v39  ;;  %v11965_v35 = vld [vmem:[%s9206_s21 + $0x194] sm:$0xf]  ;;  %v11983_v39 = vld [vmem:[%s9206_s21 + $0x198] sm:$0xf] }
 0x45d   : > { %v3731_v57 = vsel %vm3685_vm1, %v3561_v6, %v3281_v32  ;;  %14463 = vst [vmem:[#allocation40_spill] sm:$0xff] %v11983_v39 }
 0x45e   : > { %2856 = vrot.lane.b32.xlu0 %v7332_v3, %s8956_s30  ;;  %1834 = vrot.lane.b32.xlu1 %v11921_v29, %s8957_s9 }
 0x460   : > { %v3283_v14 = vpop.permute.xlu1 %3282  ;;  %v3409_v3 = vpop.permute.xlu0 %3408 }
 0x461   : > { %v3882_v49 = vsel %vm3814_vm2, %v3731_v57, %v3409_v3 }
 0x462   : > { %v7739_v50 = vpop.f32.mrb[0].mxu0  ;;  %2858 = vrot.lane.b32.xlu1 %v7333_v33, %s8956_s30  ;;  %3304 = vrot.lane.b32.xlu0 %v7396_v20, %s8956_s30  ;;  %v3564_v33 = vsel %vm3492_vm0, %v11536_v24, %v2835_v58  ;;  %v11970_v24 = vld [vmem:[%s9206_s21 + $0x190] sm:$0xf]  ;;  %v11974_v58 = vcombine.low %v1066_v60, %v1067_v19  ;;  %v14464_v19 = vld [vmem:[#allocation106_spill] sm:$0xff]  ;;  %v2092_v60 = vmul.bf16 %v11451_v21, %v11869_v46 }
 0x463   : > { %v4121_v4 = vadd.f32 %v7739_v50, %v11936_v1  ;;  %v4112_v37 = vpop.f32.mrb[1].mxu0  ;;  %7781 = vmatprep.mubr.bf16.mxu0 %v3882_v49  ;;  %v3733_v57 = vsel %vm3685_vm1, %v3564_v33, %v3283_v14  ;;  %v14461_v14 = vld [vmem:[#allocation102_spill] sm:$0xff]  ;;  %v1583_v33 = vmul.bf16 %v11486_v10, %v14464_v19 }
 0x464   : > { %v4113_v17 = vadd.f32 %v11936_v1, %v4112_v37  ;;  %v7740_v34 = vpop.f32.mrb[2].mxu0  ;;  %v11945_v43 = vpop.permute.xlu1 %1788 }
 0x465   : > { %v4124_v56 = vadd.f32 %v7740_v34, %v11936_v1  ;;  %v4115_v32 = vpop.f32.mrb[3].mxu0  ;;  %v11948_v48 = vpop.permute.xlu0 %1790  ;;  %v4625_v6 = vmax.f32 %v4121_v4, 0.0  ;;  %v1581_v4 = vmul.bf16 %v11446_v15, %v14461_v14 }
 0x466   : > { %v4116_v12 = vadd.f32 %v11936_v1, %v4115_v32  ;;  %3432 = vrot.lane.b32.xlu0 %v11942_v9, %s8955_s8  ;;  %3306 = vrot.lane.b32.xlu1 %v7397_v8, %s8956_s30  ;;  %v4623_v3 = vmax.f32 %v4113_v17, 0.0  ;;  %v14462_v17 = vld [vmem:[#allocation105_spill] sm:$0xff] }
 0x467   : > { %v4626_v20 = vmax.f32 %v4124_v56, 0.0  ;;  %v1580_v56 = vmul.bf16 %v11451_v21, %v14462_v17  ;;  %v2095_v17 = vmul.bf16 %v11486_v10, %v11902_v28 }
 0x468   : > { %v4624_v49 = vmax.f32 %v4116_v12, 0.0  ;;  %v3411_v50 = vpop.permute.xlu1 %3410 }
 0x469   : > { %v4752_v37 = vpack.c.bf16 %v4626_v20, %v4625_v6  ;;  %v11961_v34 = vpop.permute.xlu0 %1792  ;;  %v3885_v8 = vsel %vm3814_vm2, %v3733_v57, %v3411_v50  ;;  %v14465_v6 = vld [vmem:[#allocation109_spill] sm:$0xff]  ;;  %v7334_v27 = vcombine.low %v1580_v56, %v1581_v4  ;;  %v2093_v57 = vmul.bf16 %v11446_v15, %v11871_v45 }
 0x46a   : > { %1838 = vrot.lane.b32.xlu0 %v11965_v35, %s8957_s9  ;;  %1836 = vrot.lane.b32.xlu1 %v11970_v24, %s8957_s9  ;;  %v4751_v13 = vpack.c.bf16 %v4624_v49, %v4623_v3  ;;  %v1582_v20 = vmul.bf16 %v11467_v25, %v14465_v6  ;;  %v11999_v50 = vld [vmem:[%s9206_s21 + $0x19c] sm:$0xf]  ;;  %v2094_v45 = vmul.bf16 %v11467_v25, %v11883_v51 }
 0x46b   : > { %7782 = vmatmul.mubr.bf16.gmra.mrb[44].mxu0 %v3885_v8  ;;  %v7398_v46 = vcombine.low %v2092_v60, %v2093_v57 }
 0x46c   : > { %7881 = vmatprep.mubr.bf16.mxu1 %v4751_v13  ;;  %v11980_v32 = vpop.permute.xlu1 %1794  ;;  %v14467_v13 = vld [vmem:[#allocation156_spill] sm:$0xff]  ;;  %v7335_v4 = vcombine.low %v1582_v20, %v1583_v33  ;;  %v7399_v28 = vcombine.low %v2094_v45, %v2095_v17 }
 0x46d   : > { %7882 = vmatmul.mubr.bf16.vlgmr.msra.gmra.mrb[0].mxu1 %v4752_v37  ;;  %v2837_v12 = vpop.permute.xlu0 %2836  ;;  %v14466_v37 = vld [vmem:[#allocation155_spill] sm:$0xff]  ;;  %v1068_v14 = vmul.bf16 %v11451_v21, %v14467_v13 }
 0x46e   : > { %1840 = vrot.lane.b32.xlu0 %v11983_v39, %s8957_s9  ;;  %3434 = vrot.lane.b32.xlu1 %v11974_v58, %s8955_s8  ;;  %v1069_v8 = vmul.bf16 %v11446_v15, %v14466_v37  ;;  %v3567_v56 = vsel %vm3492_vm0, %v11579_v40, %v2837_v12 }
 0x470   : > { %v2839_v3 = vpop.permute.xlu1 %2838  ;;  %v12018_v33 = vcombine.low %v1068_v14, %v1069_v8 }
 0x471   : > { %v3285_v49 = vpop.permute.xlu0 %3284  ;;  %v3570_v13 = vsel %vm3492_vm0, %v11608_v44, %v2839_v3  ;;  %v12046_v44 = vld [vmem:[%s9206_s21 + $0x1a0] sm:$0xf]  ;;  %v14470_v3 = vld [vmem:[#allocation110_spill] sm:$0xff] }
 0x472   : > { %2860 = vrot.lane.b32.xlu0 %v7334_v27, %s8956_s30  ;;  %1842 = vrot.lane.b32.xlu1 %v11999_v50, %s8957_s9  ;;  %v3735_v6 = vsel %vm3685_vm1, %v3567_v56, %v3285_v49 }
 0x474   : > { %v3287_v19 = vpop.permute.xlu1 %3286 }
 0x475   : > { %v3413_v27 = vpop.permute.xlu0 %3412  ;;  %v3737_v17 = vsel %vm3685_vm1, %v3570_v13, %v3287_v19  ;;  %v1585_v19 = vmul.bf16 %v11527_v26, %v14470_v3  ;;  %v14473_v13 = vld [vmem:[#allocation117_spill] sm:$0xff] }
 0x476   : > { %v7743_v39 = vpop.f32.mrb[4].mxu0  ;;  %2862 = vrot.lane.b32.xlu1 %v7335_v4, %s8956_s30  ;;  %3308 = vrot.lane.b32.xlu0 %v7398_v46, %s8956_s30  ;;  %v3888_v15 = vsel %vm3814_vm2, %v3735_v6, %v3413_v27  ;;  %v14469_v46 = vld [vmem:[#allocation158_spill] sm:$0xff] }
 0x477   : > { %v4137_v21 = vadd.f32 %v7743_v39, %v11936_v1  ;;  %v4128_v51 = vpop.f32.mrb[5].mxu0  ;;  %7785 = vmatprep.mubr.bf16.mxu0 %v3888_v15  ;;  %v14468_v39 = vld [vmem:[#allocation157_spill] sm:$0xff]  ;;  %v1070_v45 = vmul.bf16 %v11467_v25, %v14469_v46  ;;  %v2096_v46 = vmul.bf16 %v11532_v36, %v11945_v43 }
 0x478   : > { %v4129_v40 = vadd.f32 %v11936_v1, %v4128_v51  ;;  %v7744_v12 = vpop.f32.mrb[6].mxu0  ;;  %v12021_v20 = vpop.permute.xlu1 %1796  ;;  %v1071_v8 = vmul.bf16 %v11486_v10, %v14468_v39  ;;  %v14472_v39 = vld [vmem:[#allocation114_spill] sm:$0xff] }
 0x479   : > { %v4140_v60 = vadd.f32 %v7744_v12, %v11936_v1  ;;  %v4131_v57 = vpop.f32.mrb[7].mxu0  ;;  %v12024_v49 = vpop.permute.xlu0 %1798  ;;  %v4629_v14 = vmax.f32 %v4137_v21, 0.0  ;;  %v12041_v12 = vld [vmem:[%s9206_s21 + $0x1a4] sm:$0xf] }
 0x47a   : > { %v4132_v37 = vadd.f32 %v11936_v1, %v4131_v57  ;;  %3436 = vrot.lane.b32.xlu0 %v12018_v33, %s8955_s8  ;;  %3310 = vrot.lane.b32.xlu1 %v7399_v28, %s8956_s30  ;;  %v4627_v56 = vmax.f32 %v4129_v40, 0.0  ;;  %v12050_v25 = vcombine.low %v1070_v45, %v1071_v8  ;;  %v14471_v21 = vld [vmem:[#allocation113_spill] sm:$0xff]  ;;  %v1587_v8 = vmul.bf16 %v11561_v2, %v14472_v39 }
 0x47b   : > { %v4630_v4 = vmax.f32 %v4140_v60, 0.0  ;;  %v1584_v40 = vmul.bf16 %v11532_v36, %v14471_v21  ;;  %v2097_v45 = vmul.bf16 %v11527_v26, %v11948_v48  ;;  %v2098_v48 = vmul.bf16 %v11545_v41, %v11961_v34 }
 0x47c   : > { %v4628_v6 = vmax.f32 %v4132_v37, 0.0  ;;  %v3415_v27 = vpop.permute.xlu1 %3414  ;;  %v12059_v37 = vld [vmem:[%s9206_s21 + $0x1a8] sm:$0xf] }
 0x47d   : > { %v4754_v15 = vpack.c.bf16 %v4630_v4, %v4629_v14  ;;  %v12037_v51 = vpop.permute.xlu0 %1800  ;;  %v3891_v28 = vsel %vm3814_vm2, %v3737_v17, %v3415_v27  ;;  %v1586_v14 = vmul.bf16 %v11545_v41, %v14473_v13  ;;  %v7336_v4 = vcombine.low %v1584_v40, %v1585_v19  ;;  %v14474_v27 = vld [vmem:[#allocation159_spill] sm:$0xff] }
 0x47e   : > { %v4753_v10 = vpack.c.bf16 %v4628_v6, %v4627_v56  ;;  %1846 = vrot.lane.b32.xlu0 %v12041_v12, %s8957_s9  ;;  %1844 = vrot.lane.b32.xlu1 %v12046_v44, %s8957_s9  ;;  %v12075_v6 = vld [vmem:[%s9206_s21 + $0x1ac] sm:$0xf]  ;;  %v7400_v43 = vcombine.low %v2096_v46, %v2097_v45  ;;  %v2099_v19 = vmul.bf16 %v11561_v2, %v11980_v32 }
 0x47f   : > { %7786 = vmatmul.mubr.bf16.gmra.mrb[48].mxu0 %v3891_v28  ;;  %v14475_v28 = vld [vmem:[#allocation160_spill] sm:$0xff]  ;;  %v7337_v3 = vcombine.low %v1586_v14, %v1587_v8 }
 0x480   : > { %7885 = vmatprep.mubr.bf16.mxu1 %v4753_v10  ;;  %v12056_v60 = vpop.permute.xlu1 %1802  ;;  %v1072_v10 = vmul.bf16 %v11532_v36, %v14475_v28  ;;  %v7401_v32 = vcombine.low %v2098_v48, %v2099_v19  ;;  %v14477_v48 = vld [vmem:[#allocation162_spill] sm:$0xff] }
 0x481   : > { %7886 = vmatmul.mubr.bf16.gmra.mrb[4].mxu1 %v4754_v15  ;;  %v2841_v57 = vpop.permute.xlu0 %2840  ;;  %v1073_v15 = vmul.bf16 %v11527_v26, %v14474_v27  ;;  %v1074_v19 = vmul.bf16 %v11545_v41, %v14477_v48 }
 0x482   : > { %1848 = vrot.lane.b32.xlu0 %v12059_v37, %s8957_s9  ;;  %3438 = vrot.lane.b32.xlu1 %v12050_v25, %s8955_s8  ;;  %v3573_v21 = vsel %vm3492_vm0, %v11651_v30, %v2841_v57 }
 0x483   : > { %v12094_v8 = vcombine.low %v1072_v10, %v1073_v15  ;;  %v14476_v15 = vld [vmem:[#allocation161_spill] sm:$0xff] }
 0x484   : > { %v2843_v17 = vpop.permute.xlu1 %2842  ;;  %v1075_v28 = vmul.bf16 %v11561_v2, %v14476_v15  ;;  %v14481_v15 = vld [vmem:[#allocation122_spill] sm:$0xff] }
 0x485   : > { %v3289_v56 = vpop.permute.xlu0 %3288  ;;  %v3576_v10 = vsel %vm3492_vm0, %v11680_v47, %v2843_v17  ;;  %v12122_v47 = vld [vmem:[%s9206_s21 + $0x1b0] sm:$0xf]  ;;  %v14478_v17 = vld [vmem:[#allocation118_spill] sm:$0xff] }
 0x486   : > { %2864 = vrot.lane.b32.xlu0 %v7336_v4, %s8956_s30  ;;  %1850 = vrot.lane.b32.xlu1 %v12075_v6, %s8957_s9  ;;  %v3739_v39 = vsel %vm3685_vm1, %v3573_v21, %v3289_v56  ;;  %v12126_v41 = vcombine.low %v1074_v19, %v1075_v28  ;;  %v14482_v28 = vld [vmem:[#allocation31_spill] sm:$0xff] }
 0x488   : > { %v3291_v40 = vpop.permute.xlu1 %3290 }
 0x489   : > { %v3417_v13 = vpop.permute.xlu0 %3416  ;;  %v3741_v21 = vsel %vm3685_vm1, %v3576_v10, %v3291_v40  ;;  %v1589_v40 = vmul.bf16 %v11599_v0, %v14478_v17  ;;  %v1591_v10 = vmul.bf16 %v14482_v28, %v14481_v15  ;;  %v14487_v17 = vld [vmem:[#allocation164_spill] sm:$0xff] }
 0x48a   : > { %v7747_v4 = vpop.f32.mrb[8].mxu0  ;;  %2866 = vrot.lane.b32.xlu1 %v7337_v3, %s8956_s30  ;;  %3312 = vrot.lane.b32.xlu0 %v7400_v43, %s8956_s30  ;;  %v3894_v26 = vsel %vm3814_vm2, %v3739_v39, %v3417_v13 }
 0x48b   : > { %v4153_v36 = vadd.f32 %v7747_v4, %v11936_v1  ;;  %v4144_v34 = vpop.f32.mrb[9].mxu0  ;;  %7789 = vmatprep.mubr.bf16.mxu0 %v3894_v26 }
 0x48c   : > { %v4145_v30 = vadd.f32 %v11936_v1, %v4144_v34  ;;  %v7748_v57 = vpop.f32.mrb[10].mxu0  ;;  %v12097_v14 = vpop.permute.xlu1 %1804 }
 0x48d   : > { %v4156_v46 = vadd.f32 %v7748_v57, %v11936_v1  ;;  %v4147_v45 = vpop.f32.mrb[11].mxu0  ;;  %v12100_v56 = vpop.permute.xlu0 %1806  ;;  %v4633_v3 = vmax.f32 %v4153_v36, 0.0  ;;  %v12117_v57 = vld [vmem:[%s9206_s21 + $0x1b4] sm:$0xf]  ;;  %v14479_v36 = vld [vmem:[#allocation121_spill] sm:$0xff] }
 0x48e   : > { %v4148_v27 = vadd.f32 %v11936_v1, %v4147_v45  ;;  %3440 = vrot.lane.b32.xlu0 %v12094_v8, %s8955_s8  ;;  %3314 = vrot.lane.b32.xlu1 %v7401_v32, %s8956_s30  ;;  %v4631_v39 = vmax.f32 %v4145_v30, 0.0  ;;  %v1588_v30 = vmul.bf16 %v11604_v18, %v14479_v36 }
 0x48f   : > { %v4634_v43 = vmax.f32 %v4156_v46, 0.0 }
 0x490   : > { %v4632_v13 = vmax.f32 %v4148_v27, 0.0  ;;  %v3419_v4 = vpop.permute.xlu1 %3418  ;;  %v12135_v27 = vld [vmem:[%s9206_s21 + $0x1b8] sm:$0xf]  ;;  %v7338_v19 = vcombine.low %v1588_v30, %v1589_v40  ;;  %v1076_v40 = vmul.bf16 %v11604_v18, %v14487_v17  ;;  %v2103_v30 = vmul.bf16 %v14482_v28, %v12056_v60 }
 0x491   : > { %v4756_v26 = vpack.c.bf16 %v4634_v43, %v4633_v3  ;;  %v12113_v34 = vpop.permute.xlu0 %1808  ;;  %v3897_v32 = vsel %vm3814_vm2, %v3741_v21, %v3419_v4  ;;  %14480 = vst [vmem:[#allocation43_spill] sm:$0xff] %v12135_v27  ;;  %v14483_v3 = vld [vmem:[#allocation125_spill] sm:$0xff]  ;;  %v14484_v43 = vld [vmem:[#allocation28_spill] sm:$0xff]  ;;  %v2100_v21 = vmul.bf16 %v11604_v18, %v12021_v20 }
 0x492   : > { %v4755_v2 = vpack.c.bf16 %v4632_v13, %v4631_v39  ;;  %1854 = vrot.lane.b32.xlu0 %v12117_v57, %s8957_s9  ;;  %1852 = vrot.lane.b32.xlu1 %v12122_v47, %s8957_s9  ;;  %v1590_v48 = vmul.bf16 %v14484_v43, %v14483_v3  ;;  %v2101_v39 = vmul.bf16 %v11599_v0, %v12024_v49 }
 0x493   : > { %7790 = vmatmul.mubr.bf16.gmra.mrb[52].mxu0 %v3897_v32  ;;  %v14486_v32 = vld [vmem:[#allocation163_spill] sm:$0xff]  ;;  %v2102_v49 = vmul.bf16 %v14484_v43, %v12037_v51 }
 0x494   : > { %7889 = vmatprep.mubr.bf16.mxu1 %v4755_v2  ;;  %v12132_v46 = vpop.permute.xlu1 %1810  ;;  %v1077_v2 = vmul.bf16 %v11599_v0, %v14486_v32  ;;  %v7339_v36 = vcombine.low %v1590_v48, %v1591_v10  ;;  %v7402_v20 = vcombine.low %v2100_v21, %v2101_v39 }
 0x495   : > { %7890 = vmatmul.mubr.bf16.gmra.mrb[8].mxu1 %v4756_v26  ;;  %v2845_v45 = vpop.permute.xlu0 %2844  ;;  %v12151_v26 = vld [vmem:[%s9206_s21 + $0x1bc] sm:$0xf]  ;;  %v7403_v60 = vcombine.low %v2102_v49, %v2103_v30 }
 0x496   : > { %1856 = vrot.lane.b32.xlu0 %v12135_v27, %s8957_s9  ;;  %3442 = vrot.lane.b32.xlu1 %v12126_v41, %s8955_s8  ;;  %14485 = vst [vmem:[#allocation44_spill] sm:$0xff] %v12151_v26  ;;  %v3579_v15 = vsel %vm3492_vm0, %v11723_v23, %v2845_v45  ;;  %v12170_v10 = vcombine.low %v1076_v40, %v1077_v2 }
 0x498   : > { %v2847_v13 = vpop.permute.xlu1 %2846 }
 0x499   : > { %v3293_v4 = vpop.permute.xlu0 %3292  ;;  %v3582_v2 = vsel %vm3492_vm0, %v11752_v38, %v2847_v13  ;;  %v12198_v38 = vld [vmem:[%s9206_s21 + $0x1c0] sm:$0xf]  ;;  %v14491_v13 = vld [vmem:[#allocation126_spill] sm:$0xff] }
 0x49a   : > { %2868 = vrot.lane.b32.xlu0 %v7338_v19, %s8956_s30  ;;  %1858 = vrot.lane.b32.xlu1 %v12151_v26, %s8957_s9  ;;  %v3743_v19 = vsel %vm3685_vm1, %v3579_v15, %v3293_v4 }
 0x49c   : > { %v3295_v3 = vpop.permute.xlu1 %3294 }
 0x49d   : > { %v3421_v27 = vpop.permute.xlu0 %3420  ;;  %v3745_v49 = vsel %vm3685_vm1, %v3582_v2, %v3295_v3  ;;  %v1593_v3 = vmul.bf16 %v11671_v55, %v14491_v13  ;;  %v14496_v2 = vld [vmem:[#allocation36_spill] sm:$0xff] }
 0x49e   : > { %v7751_v26 = vpop.f32.mrb[12].mxu0  ;;  %2870 = vrot.lane.b32.xlu1 %v7339_v36, %s8956_s30  ;;  %3316 = vrot.lane.b32.xlu0 %v7402_v20, %s8956_s30  ;;  %v3900_v0 = vsel %vm3814_vm2, %v3743_v19, %v3421_v27  ;;  %v14488_v27 = vld [vmem:[#allocation165_spill] sm:$0xff]  ;;  %v14489_v36 = vld [vmem:[#allocation166_spill] sm:$0xff] }
 0x49f   : > { %v4169_v18 = vadd.f32 %v7751_v26, %v11936_v1  ;;  %v4160_v51 = vpop.f32.mrb[13].mxu0  ;;  %7793 = vmatprep.mubr.bf16.mxu0 %v3900_v0  ;;  %v1079_v26 = vmul.bf16 %v14482_v28, %v14488_v27  ;;  %v1078_v20 = vmul.bf16 %v14484_v43, %v14489_v36  ;;  %v12211_v27 = vld [vmem:[%s9206_s21 + $0x1c8] sm:$0xf]  ;;  %v14498_v36 = vld [vmem:[#allocation35_spill] sm:$0xff] }
 0x4a0   : > { %v4161_v23 = vadd.f32 %v11936_v1, %v4160_v51  ;;  %v7752_v45 = vpop.f32.mrb[14].mxu0  ;;  %v12173_v48 = vpop.permute.xlu1 %1812  ;;  %14494 = vst [vmem:[#allocation48_spill] sm:$0xff] %v12211_v27 }
 0x4a1   : > { %v4172_v21 = vadd.f32 %v7752_v45, %v11936_v1  ;;  %v4163_v39 = vpop.f32.mrb[15].mxu0  ;;  %v12176_v4 = vpop.permute.xlu0 %1814  ;;  %v4637_v17 = vmax.f32 %v4169_v18, 0.0  ;;  %v12193_v45 = vld [vmem:[%s9206_s21 + $0x1c4] sm:$0xf]  ;;  %v12202_v43 = vcombine.low %v1078_v20, %v1079_v26 }
 0x4a2   : > { %v4164_v32 = vadd.f32 %v11936_v1, %v4163_v39  ;;  %3444 = vrot.lane.b32.xlu0 %v12170_v10, %s8955_s8  ;;  %3318 = vrot.lane.b32.xlu1 %v7403_v60, %s8956_s30  ;;  %v4635_v30 = vmax.f32 %v4161_v23, 0.0  ;;  %v14492_v18 = vld [vmem:[#allocation129_spill] sm:$0xff]  ;;  %v14493_v23 = vld [vmem:[#allocation32_spill] sm:$0xff]  ;;  %v14495_v26 = vld [vmem:[#allocation130_spill] sm:$0xff] }
 0x4a3   : > { %v4638_v40 = vmax.f32 %v4172_v21, 0.0  ;;  %14490 = vst [vmem:[#allocation47_spill] sm:$0xff] %v12202_v43  ;;  %v1592_v21 = vmul.bf16 %v14493_v23, %v14492_v18  ;;  %v14501_v18 = vld [vmem:[#allocation168_spill] sm:$0xff] }
 0x4a4   : > { %v4636_v15 = vmax.f32 %v4164_v32, 0.0  ;;  %v3423_v19 = vpop.permute.xlu1 %3422 }
 0x4a5   : > { %v4758_v0 = vpack.c.bf16 %v4638_v40, %v4637_v17  ;;  %v12189_v51 = vpop.permute.xlu0 %1816  ;;  %v3903_v60 = vsel %vm3814_vm2, %v3745_v49, %v3423_v19  ;;  %v1595_v17 = vmul.bf16 %v14496_v2, %v14495_v26  ;;  %v14497_v40 = vld [vmem:[#allocation133_spill] sm:$0xff]  ;;  %v7340_v49 = vcombine.low %v1592_v21, %v1593_v3 }
 0x4a6   : > { %v4757_v28 = vpack.c.bf16 %v4636_v15, %v4635_v30  ;;  %1862 = vrot.lane.b32.xlu0 %v12193_v45, %s8957_s9  ;;  %1860 = vrot.lane.b32.xlu1 %v12198_v38, %s8957_s9  ;;  %v1594_v20 = vmul.bf16 %v14498_v36, %v14497_v40  ;;  %v2104_v30 = vmul.bf16 %v14493_v23, %v12097_v14 }
 0x4a7   : > { %7794 = vmatmul.mubr.bf16.gmra.mrb[56].mxu0 %v3903_v60  ;;  %v2105_v15 = vmul.bf16 %v11671_v55, %v12100_v56  ;;  %v12227_v60 = vld [vmem:[%s9206_s21 + $0x1cc] sm:$0xf]  ;;  %v1080_v3 = vmul.bf16 %v14493_v23, %v14501_v18  ;;  %v2106_v56 = vmul.bf16 %v14498_v36, %v12113_v34  ;;  %v2107_v26 = vmul.bf16 %v14496_v2, %v12132_v46 }
 0x4a8   : > { %7893 = vmatprep.mubr.bf16.mxu1 %v4757_v28  ;;  %v12208_v39 = vpop.permute.xlu1 %1818  ;;  %14499 = vst [vmem:[#allocation51_spill] sm:$0xff] %v12227_v60  ;;  %v14500_v28 = vld [vmem:[#allocation167_spill] sm:$0xff]  ;;  %v7341_v21 = vcombine.low %v1594_v20, %v1595_v17 }
 0x4a9   : > { %7894 = vmatmul.mubr.bf16.gmra.mrb[12].mxu1 %v4758_v0  ;;  %v2849_v32 = vpop.permute.xlu0 %2848  ;;  %v1081_v13 = vmul.bf16 %v11671_v55, %v14500_v28  ;;  %v7404_v14 = vcombine.low %v2104_v30, %v2105_v15  ;;  %v7405_v46 = vcombine.low %v2106_v56, %v2107_v26 }
 0x4aa   : > { %1864 = vrot.lane.b32.xlu0 %v12211_v27, %s8957_s9  ;;  %3446 = vrot.lane.b32.xlu1 %v12202_v43, %s8955_s8  ;;  %v3585_v40 = vsel %vm3492_vm0, %v11795_v22, %v2849_v32 }
 0x4ab   : > { %v12246_v17 = vcombine.low %v1080_v3, %v1081_v13  ;;  %v14503_v3 = vld [vmem:[#allocation170_spill] sm:$0xff] }
 0x4ac   : > { %v2851_v19 = vpop.permute.xlu1 %2850 }
 0x4ad   : > { %v3297_v0 = vpop.permute.xlu0 %3296 }
 0x4ae   : > { %2872 = vrot.lane.b32.xlu0 %v7340_v49, %s8956_s30  ;;  %1866 = vrot.lane.b32.xlu1 %v12227_v60, %s8957_s9  ;;  %v3747_v27 = vsel %vm3685_vm1, %v3585_v40, %v3297_v0 }
 0x4b0   : > { %v3299_v49 = vpop.permute.xlu1 %3298 }
 0x4b1   : > { %v3425_v43 = vpop.permute.xlu0 %3424 }
 0x4b2   : > { %v7755_v60 = vpop.f32.mrb[16].mxu0  ;;  %2874 = vrot.lane.b32.xlu1 %v7341_v21, %s8956_s30  ;;  %3320 = vrot.lane.b32.xlu0 %v7404_v14, %s8956_s30  ;;  %v3906_v55 = vsel %vm3814_vm2, %v3747_v27, %v3425_v43  ;;  %v14502_v43 = vld [vmem:[#allocation169_spill] sm:$0xff]  ;;  %v1082_v21 = vmul.bf16 %v14498_v36, %v14503_v3  ;;  %v2108_v3 = vmul.bf16 %v11748_v59, %v12173_v48 }
 0x4b3   : > { %v4185_v23 = vadd.f32 %v7755_v60, %v11936_v1  ;;  %v4176_v34 = vpop.f32.mrb[17].mxu0  ;;  %7797 = vmatprep.mubr.bf16.mxu0 %v3906_v55  ;;  %v1083_v27 = vmul.bf16 %v14496_v2, %v14502_v43  ;;  %v3588_v60 = vsel %vm3492_vm0, %v11824_v61, %v2851_v19  ;;  %v12274_v61 = vld [vmem:[%s9206_s21 + $0x1d0] sm:$0xf]  ;;  %v14504_v19 = vld [vmem:[#allocation134_spill] sm:$0xff] }
 0x4b4   : > { %v4177_v22 = vadd.f32 %v11936_v1, %v4176_v34  ;;  %v7756_v32 = vpop.f32.mrb[18].mxu0  ;;  %v12249_v20 = vpop.permute.xlu1 %1820  ;;  %v3749_v14 = vsel %vm3685_vm1, %v3588_v60, %v3299_v49  ;;  %v1597_v49 = vmul.bf16 %v11743_v52, %v14504_v19  ;;  %v14506_v43 = vld [vmem:[#allocation138_spill] sm:$0xff]  ;;  %v14507_v60 = vld [vmem:[#allocation141_spill] sm:$0xff] }
 0x4b5   : > { %v4188_v30 = vadd.f32 %v7756_v32, %v11936_v1  ;;  %v4179_v15 = vpop.f32.mrb[19].mxu0  ;;  %v12252_v0 = vpop.permute.xlu0 %1822  ;;  %v4641_v13 = vmax.f32 %v4185_v23, 0.0  ;;  %v12269_v32 = vld [vmem:[%s9206_s21 + $0x1d4] sm:$0xf]  ;;  %v12278_v36 = vcombine.low %v1082_v21, %v1083_v27  ;;  %v14505_v23 = vld [vmem:[#allocation137_spill] sm:$0xff]  ;;  %v1599_v27 = vmul.bf16 %v11777_v62, %v14506_v43 }
 0x4b6   : > { %v4180_v28 = vadd.f32 %v11936_v1, %v4179_v15  ;;  %3448 = vrot.lane.b32.xlu0 %v12246_v17, %s8955_s8  ;;  %3322 = vrot.lane.b32.xlu1 %v7405_v46, %s8956_s30  ;;  %v4639_v56 = vmax.f32 %v4177_v22, 0.0  ;;  %v1596_v22 = vmul.bf16 %v11748_v59, %v14505_v23  ;;  %v2109_v21 = vmul.bf16 %v11743_v52, %v12176_v4 }
 0x4b7   : > { %v4642_v18 = vmax.f32 %v4188_v30, 0.0  ;;  %v2110_v4 = vmul.bf16 %v11761_v5, %v12189_v51 }
 0x4b8   : > { %v4640_v26 = vmax.f32 %v4180_v28, 0.0  ;;  %v3427_v40 = vpop.permute.xlu1 %3426  ;;  %v12287_v28 = vld [vmem:[%s9206_s21 + $0x1d8] sm:$0xf]  ;;  %v7406_v48 = vcombine.low %v2108_v3, %v2109_v21 }
 0x4b9   : > { %v4760_v55 = vpack.c.bf16 %v4642_v18, %v4641_v13  ;;  %v12265_v34 = vpop.permute.xlu0 %1824  ;;  %v3909_v46 = vsel %vm3814_vm2, %v3749_v14, %v3427_v40  ;;  %v1598_v13 = vmul.bf16 %v11761_v5, %v14507_v60  ;;  %v7342_v18 = vcombine.low %v1596_v22, %v1597_v49  ;;  %v14508_v40 = vld [vmem:[#allocation171_spill] sm:$0xff] }
 0x4ba   : > { %v4759_v2 = vpack.c.bf16 %v4640_v26, %v4639_v56  ;;  %1870 = vrot.lane.b32.xlu0 %v12269_v32, %s8957_s9  ;;  %1868 = vrot.lane.b32.xlu1 %v12274_v61, %s8957_s9  ;;  %v12303_v26 = vld [vmem:[%s9206_s21 + $0x1dc] sm:$0xf]  ;;  %v2111_v49 = vmul.bf16 %v11777_v62, %v12208_v39 }
 0x4bb   : > { %7798 = vmatmul.mubr.bf16.gmra.mrb[60].mxu0 %v3909_v46  ;;  %v14509_v46 = vld [vmem:[#allocation172_spill] sm:$0xff]  ;;  %v7343_v19 = vcombine.low %v1598_v13, %v1599_v27 }
 0x4bc   : > { %7897 = vmatprep.mubr.bf16.mxu1 %v4759_v2  ;;  %v12284_v30 = vpop.permute.xlu1 %1826  ;;  %v1084_v2 = vmul.bf16 %v11748_v59, %v14509_v46  ;;  %v7407_v39 = vcombine.low %v2110_v4, %v2111_v49  ;;  %v14511_v4 = vld [vmem:[#allocation174_spill] sm:$0xff] }
 0x4bd   : > { %7898 = vmatmul.mubr.bf16.gmra.mrb[16].mxu1 %v4760_v55  ;;  %v2853_v15 = vpop.permute.xlu0 %2852  ;;  %v1085_v55 = vmul.bf16 %v11743_v52, %v14508_v40  ;;  %v1086_v49 = vmul.bf16 %v11761_v5, %v14511_v4  ;;  %v2112_v4 = vmul.bf16 %v11820_v63, %v12249_v20 }
 0x4be   : > { %1872 = vrot.lane.b32.xlu0 %v12287_v28, %s8957_s9  ;;  %3450 = vrot.lane.b32.xlu1 %v12278_v36, %s8955_s8  ;;  %v3591_v23 = vsel %vm3492_vm0, %v11867_v42, %v2853_v15 }
 0x4bf   : > { %v12322_v27 = vcombine.low %v1084_v2, %v1085_v55  ;;  %v14510_v55 = vld [vmem:[#allocation173_spill] sm:$0xff] }
 0x4c0   : > { %v2855_v14 = vpop.permute.xlu1 %2854  ;;  %v1087_v46 = vmul.bf16 %v11777_v62, %v14510_v55  ;;  %v14514_v55 = vld [vmem:[#allocation146_spill] sm:$0xff] }
 0x4c1   : > { %v3301_v56 = vpop.permute.xlu0 %3300  ;;  %v3594_v2 = vsel %vm3492_vm0, %v11896_v16, %v2855_v14  ;;  %v12350_v16 = vld [vmem:[%s9206_s21 + $0x1e0] sm:$0xf]  ;;  %v14512_v14 = vld [vmem:[#allocation142_spill] sm:$0xff] }
 0x4c2   : > { %2876 = vrot.lane.b32.xlu0 %v7342_v18, %s8956_s30  ;;  %1874 = vrot.lane.b32.xlu1 %v12303_v26, %s8957_s9  ;;  %v3751_v43 = vsel %vm3685_vm1, %v3591_v23, %v3301_v56  ;;  %v12354_v5 = vcombine.low %v1086_v49, %v1087_v46  ;;  %v1603_v46 = vmul.bf16 %v11849_v7, %v14514_v55 }
 0x4c3   : > { %v2113_v49 = vmul.bf16 %v11815_v53, %v12252_v0  ;;  %v2114_v0 = vmul.bf16 %v11833_v31, %v12265_v34 }
 0x4c4   : > { %v3303_v22 = vpop.permute.xlu1 %3302 }
 0x4c5   : > { %v3429_v60 = vpop.permute.xlu0 %3428  ;;  %v3753_v23 = vsel %vm3685_vm1, %v3594_v2, %v3303_v22  ;;  %v1601_v22 = vmul.bf16 %v11815_v53, %v14512_v14  ;;  %v14515_v2 = vld [vmem:[#allocation210_spill] sm:$0xff]  ;;  %v7408_v20 = vcombine.low %v2112_v4, %v2113_v49 }
 0x4c6   : > { %v7759_v18 = vpop.f32.mrb[20].mxu0  ;;  %2878 = vrot.lane.b32.xlu1 %v7343_v19, %s8956_s30  ;;  %3324 = vrot.lane.b32.xlu0 %v7406_v48, %s8956_s30  ;;  %v3912_v52 = vsel %vm3814_vm2, %v3751_v43, %v3429_v60 }
 0x4c7   : > { %v4201_v59 = vadd.f32 %v7759_v18, %v11936_v1  ;;  %v4192_v51 = vpop.f32.mrb[21].mxu0  ;;  %7801 = vmatprep.mubr.bf16.mxu0 %v3912_v52 }
 0x4c8   : > { %v4193_v42 = vadd.f32 %v11936_v1, %v4192_v51  ;;  %v7760_v15 = vpop.f32.mrb[22].mxu0  ;;  %v12325_v13 = vpop.permute.xlu1 %1828 }
 0x4c9   : > { %v4204_v3 = vadd.f32 %v7760_v15, %v11936_v1  ;;  %v4195_v21 = vpop.f32.mrb[23].mxu0  ;;  %v12328_v56 = vpop.permute.xlu0 %1830  ;;  %v4645_v19 = vmax.f32 %v4201_v59, 0.0  ;;  %v12345_v15 = vld [vmem:[%s9206_s21 + $0x1e4] sm:$0xf] }
 0x4ca   : > { %v4196_v40 = vadd.f32 %v11936_v1, %v4195_v21  ;;  %3452 = vrot.lane.b32.xlu0 %v12322_v27, %s8955_s8  ;;  %3326 = vrot.lane.b32.xlu1 %v7407_v39, %s8956_s30  ;;  %v4643_v43 = vmax.f32 %v4193_v42, 0.0  ;;  %v14513_v59 = vld [vmem:[#allocation145_spill] sm:$0xff] }
 0x4cb   : > { %v4646_v48 = vmax.f32 %v4204_v3, 0.0  ;;  %v1600_v42 = vmul.bf16 %v11820_v63, %v14513_v59 }
 0x4cc   : > { %v4644_v60 = vmax.f32 %v4196_v40, 0.0  ;;  %v3431_v18 = vpop.permute.xlu1 %3430  ;;  %v12363_v40 = vld [vmem:[%s9206_s21 + $0x1e8] sm:$0xf] }
 0x4cd   : > { %v4762_v52 = vpack.c.bf16 %v4646_v48, %v4645_v19  ;;  %v12341_v51 = vpop.permute.xlu0 %1832  ;;  %v3915_v39 = vsel %vm3814_vm2, %v3753_v23, %v3431_v18  ;;  %v1602_v19 = vmul.bf16 %v11833_v31, %v14515_v2  ;;  %v7344_v48 = vcombine.low %v1600_v42, %v1601_v22  ;;  %v14516_v18 = vld [vmem:[#allocation175_spill] sm:$0xff] }
 0x4ce   : > { %v4761_v62 = vpack.c.bf16 %v4644_v60, %v4643_v43  ;;  %1878 = vrot.lane.b32.xlu0 %v12345_v15, %s8957_s9  ;;  %1876 = vrot.lane.b32.xlu1 %v12350_v16, %s8957_s9  ;;  %v12379_v60 = vld [vmem:[%s9206_s21 + $0x1ec] sm:$0xf]  ;;  %v2115_v22 = vmul.bf16 %v11849_v7, %v12284_v30 }
 0x4cf   : > { %7802 = vmatmul.mubr.bf16.gmra.mrb[64].mxu0 %v3915_v39  ;;  %v14517_v39 = vld [vmem:[#allocation176_spill] sm:$0xff]  ;;  %v7345_v14 = vcombine.low %v1602_v19, %v1603_v46 }
 0x4d0   : > { %7901 = vmatprep.mubr.bf16.mxu1 %v4761_v62  ;;  %v12360_v3 = vpop.permute.xlu1 %1834  ;;  %v1088_v62 = vmul.bf16 %v11820_v63, %v14517_v39  ;;  %v7409_v30 = vcombine.low %v2114_v0, %v2115_v22 }
 0x4d1   : > { %7902 = vmatmul.mubr.bf16.gmra.mrb[20].mxu1 %v4762_v52  ;;  %v2857_v21 = vpop.permute.xlu0 %2856  ;;  %v1089_v52 = vmul.bf16 %v11815_v53, %v14516_v18 }
 0x4d2   : > { %1880 = vrot.lane.b32.xlu0 %v12363_v40, %s8957_s9  ;;  %3454 = vrot.lane.b32.xlu1 %v12354_v5, %s8955_s8  ;;  %v3597_v59 = vsel %vm3492_vm0, %v11942_v9, %v2857_v21 }
 0x4d3   : > { %v12398_v46 = vcombine.low %v1088_v62, %v1089_v52 }
 0x4d4   : > { %v2859_v23 = vpop.permute.xlu1 %2858 }
 0x4d5   : > { %v3305_v43 = vpop.permute.xlu0 %3304  ;;  %v3600_v52 = vsel %vm3492_vm0, %v11974_v58, %v2859_v23  ;;  %v12422_v58 = vld [vmem:[%s9206_s21 + $0x1f8] sm:$0xf]  ;;  %v14519_v23 = vld [vmem:[#allocation177_spill] sm:$0xff] }
 0x4d6   : > { %2880 = vrot.lane.b32.xlu0 %v7344_v48, %s8956_s30  ;;  %1882 = vrot.lane.b32.xlu1 %v12379_v60, %s8957_s9  ;;  %v3755_v55 = vsel %vm3685_vm1, %v3597_v59, %v3305_v43 }
 0x4d8   : > { %v3307_v42 = vpop.permute.xlu1 %3306 }
 0x4d9   : > { %v3433_v2 = vpop.permute.xlu0 %3432 }
 0x4da   : > { %v7763_v48 = vpop.f32.mrb[24].mxu0  ;;  %2882 = vrot.lane.b32.xlu1 %v7345_v14, %s8956_s30  ;;  %3328 = vrot.lane.b32.xlu0 %v7408_v20, %s8956_s30  ;;  %v3918_v53 = vsel %vm3814_vm2, %v3755_v55, %v3433_v2  ;;  %v3757_v14 = vsel %vm3685_vm1, %v3600_v52, %v3307_v42  ;;  %v1091_v42 = vmul.bf16 %v11849_v7, %v14519_v23  ;;  %v14522_v7 = vld [vmem:[#allocation212_spill] sm:$0xff] }
 0x4db   : > { %v4217_v63 = vadd.f32 %v7763_v48, %v11936_v1  ;;  %v4208_v34 = vpop.f32.mrb[25].mxu0  ;;  %7805 = vmatprep.mubr.bf16.mxu0 %v3918_v53  ;;  %v12417_v53 = vld [vmem:[%s9206_s21 + $0x1fc] sm:$0xf]  ;;  %v2117_v23 = vmul.bf16 %v11887_v11, %v12328_v56 }
 0x4dc   : > { %v4209_v9 = vadd.f32 %v11936_v1, %v4208_v34  ;;  %v7764_v21 = vpop.f32.mrb[26].mxu0  ;;  %v12401_v19 = vpop.permute.xlu1 %1836  ;;  %14518 = vst [vmem:[#allocation52_spill] sm:$0xff] %v12417_v53 }
 0x4dd   : > { %v4220_v4 = vadd.f32 %v7764_v21, %v11936_v1  ;;  %v4211_v49 = vpop.f32.mrb[27].mxu0  ;;  %v12404_v43 = vpop.permute.xlu0 %1838  ;;  %v4649_v39 = vmax.f32 %v4217_v63, 0.0  ;;  %v14520_v63 = vld [vmem:[#allocation178_spill] sm:$0xff]  ;;  %v12433_v21 = vld [vmem:[%s9206_s21 + $0x1f4] sm:$0xf] }
 0x4de   : > { %v4212_v18 = vadd.f32 %v11936_v1, %v4211_v49  ;;  %3456 = vrot.lane.b32.xlu0 %v12398_v46, %s8955_s8  ;;  %3330 = vrot.lane.b32.xlu1 %v7409_v30, %s8956_s30  ;;  %v4647_v20 = vmax.f32 %v4209_v9, 0.0  ;;  %v1090_v34 = vmul.bf16 %v11833_v31, %v14520_v63  ;;  %v1605_v31 = vmul.bf16 %v11887_v11, %v14522_v7 }
 0x4df   : > { %v4650_v62 = vmax.f32 %v4220_v4, 0.0  ;;  %v12438_v4 = vld [vmem:[%s9206_s21 + $0x1f0] sm:$0xf]  ;;  %s13094_s21 = sshll.u32 %s7215_s6, 7 }
 0x4e0   : > { %v4648_v0 = vmax.f32 %v4212_v18, 0.0  ;;  %v3435_v22 = vpop.permute.xlu1 %3434  ;;  %v12442_v49 = vcombine.low %v1090_v34, %v1091_v42  ;;  %v14523_v18 = vld [vmem:[#allocation213_spill] sm:$0xff]  ;;  %v14527_v34 = vld [vmem:[#allocation179_spill] sm:$0xff]  ;;  %p350_p7 = scmp.lt.s32.totalorder %s13094_s21, 383 }
 0x4e1   : > { %v4764_v59 = vpack.c.bf16 %v4650_v62, %v4649_v39  ;;  %v12413_v55 = vpop.permute.xlu0 %1840  ;;  %v3921_v2 = vsel %vm3814_vm2, %v3757_v14, %v3435_v22  ;;  %v1604_v52 = vmul.bf16 %v11892_v54, %v14523_v18  ;;  %v14524_v14 = vld [vmem:[#allocation216_spill] sm:$0xff]  ;;  %v14526_v22 = vld [vmem:[#allocation39_spill] sm:$0xff]  ;;  %v1093_v7 = vmul.bf16 %v11887_v11, %v14527_v34 }
 0x4e2   : > { %v4763_v48 = vpack.c.bf16 %v4648_v0, %v4647_v20  ;;  %1378 = vrot.lane.b32.xlu0 %v12417_v53, %s8956_s30  ;;  %1376 = vrot.lane.b32.xlu1 %v12422_v58, %s8956_s30  ;;  %14521 = vst [vmem:[#allocation55_spill] sm:$0xff] %v12442_v49  ;;  %v1607_v20 = vmul.bf16 %v11921_v29, %v14524_v14  ;;  %v14525_v0 = vld [vmem:[#allocation217_spill] sm:$0xff]  ;;  %v14528_v18 = vld [vmem:[#allocation180_spill] sm:$0xff]  ;;  %s14598_s21 = smov (!%p350_p7, %s13094_s21), 383 }
 0x4e3   : > { %7806 = vmatmul.mubr.bf16.gmra.mrb[68].mxu0 %v3921_v2  ;;  %v7346_v2 = vcombine.low %v1604_v52, %v1605_v31  ;;  %v1092_v14 = vmul.bf16 %v11892_v54, %v14528_v18  ;;  %v2119_v52 = vmul.bf16 %v11921_v29, %v12360_v3  ;;  %s7233_s29 = sshll.u32 %s14598_s21, 3 }
 0x4e4   : > { %7905 = vmatprep.mubr.bf16.mxu1 %v4763_v48  ;;  %v12430_v30 = vpop.permute.xlu1 %1842  ;;  %v2116_v48 = vmul.bf16 %v11892_v54, %v12325_v13  ;;  %v2118_v54 = vmul.bf16 %v14526_v22, %v12341_v51 }
 0x4e5   : > { %7906 = vmatmul.mubr.bf16.gmra.mrb[24].mxu1 %v4764_v59  ;;  %v2861_v9 = vpop.permute.xlu0 %2860  ;;  %v1606_v59 = vmul.bf16 %v14526_v22, %v14525_v0  ;;  %v12479_v34 = vcombine.low %v1092_v14, %v1093_v7  ;;  %v14532_v7 = vld [vmem:[#allocation221_spill] sm:$0xff] }
 0x4e6   : > { %1886 = vrot.lane.b32.xlu0 %v12433_v21, %s8957_s9  ;;  %1884 = vrot.lane.b32.xlu1 %v12438_v4, %s8957_s9  ;;  %v3603_v42 = vsel %vm3492_vm0, %v12018_v33, %v2861_v9  ;;  %v7410_v11 = vcombine.low %v2116_v48, %v2117_v23  ;;  %v14530_v23 = vld [vmem:[#allocation182_spill] sm:$0xff] }
 0x4e7   : > { %v7347_v56 = vcombine.low %v1606_v59, %v1607_v20  ;;  %v1094_v51 = vmul.bf16 %v14526_v22, %v14530_v23 }
 0x4e8   : > { %v2863_v39 = vpop.permute.xlu1 %2862 }
 0x4e9   : > { %v3309_v62 = vpop.permute.xlu0 %3308  ;;  %v3606_v14 = vsel %vm3492_vm0, %v12050_v25, %v2863_v39 }
 0x4ea   : > { %1888 = vrot.lane.b32.xlu0 %v12422_v58, %s8957_s9  ;;  %3458 = vrot.lane.b32.xlu1 %v12442_v49, %s8955_s8  ;;  %v3759_v49 = vsel %vm3685_vm1, %v3603_v42, %v3309_v62 }
 0x4ec   : > { %v3311_v63 = vpop.permute.xlu1 %3310 }
 0x4ed   : > { %v3437_v0 = vpop.permute.xlu0 %3436  ;;  %v3761_v22 = vsel %vm3685_vm1, %v3606_v14, %v3311_v63 }
 0x4ee   : > { %v7767_v31 = vpop.f32.mrb[28].mxu0  ;;  %2884 = vrot.lane.b32.xlu0 %v7346_v2, %s8956_s30  ;;  %1890 = vrot.lane.b32.xlu1 %v12417_v53, %s8957_s9  ;;  %v3924_v13 = vsel %vm3814_vm2, %v3759_v49, %v3437_v0  ;;  %v14529_v49 = vld [vmem:[#allocation181_spill] sm:$0xff]  ;;  %v14531_v0 = vld [vmem:[#allocation220_spill] sm:$0xff] }
 0x4ef   : > { %v4233_v33 = vadd.f32 %v7767_v31, %v11936_v1  ;;  %v4224_v9 = vpop.f32.mrb[29].mxu0  ;;  %7809 = vmatprep.mubr.bf16.mxu0 %v3924_v13  ;;  %v1095_v20 = vmul.bf16 %v11921_v29, %v14529_v49  ;;  %v1609_v3 = vmul.bf16 %v11965_v35, %v14531_v0  ;;  %v1608_v29 = vmul.bf16 %v11970_v24, %v14532_v7 }
 0x4f0   : > { %v4225_v62 = vadd.f32 %v11936_v1, %v4224_v9  ;;  %v7768_v2 = vpop.f32.mrb[30].mxu0  ;;  %v12477_v42 = vpop.permute.xlu1 %1844 }
 0x4f1   : > { %v4236_v59 = vadd.f32 %v7768_v2, %v11936_v1  ;;  %v4227_v18 = vpop.f32.mrb[31].mxu0  ;;  %v12484_v48 = vpop.permute.xlu0 %1846  ;;  %v4653_v13 = vmax.f32 %v4233_v33, 0.0  ;;  %v7411_v2 = vcombine.low %v2118_v54, %v2119_v52  ;;  %v12504_v25 = vcombine.low %v1094_v51, %v1095_v20  ;;  %v14533_v33 = vld [vmem:[#allocation222_spill] sm:$0xff]  ;;  %v14534_v54 = vld [vmem:[#allocation223_spill] sm:$0xff]  ;;  %v14535_v52 = vld [vmem:[#allocation40_spill] sm:$0xff] }
 0x4f2   : > { %v4228_v31 = vadd.f32 %v11936_v1, %v4227_v18  ;;  %2886 = vrot.lane.b32.xlu1 %v7347_v56, %s8956_s30  ;;  %3332 = vrot.lane.b32.xlu0 %v7410_v11, %s8956_s30  ;;  %v4651_v49 = vmax.f32 %v4225_v62, 0.0  ;;  %v7348_v39 = vcombine.low %v1608_v29, %v1609_v3  ;;  %v1611_v63 = vmul.bf16 %v11999_v50, %v14533_v33  ;;  %v14536_v51 = vld [vmem:[#allocation183_spill] sm:$0xff]  ;;  %v14537_v29 = vld [vmem:[#allocation184_spill] sm:$0xff] }
 0x4f3   : > { %v4654_v9 = vmax.f32 %v4236_v59, 0.0  ;;  %v1610_v62 = vmul.bf16 %v14535_v52, %v14534_v54  ;;  %v2120_v59 = vmul.bf16 %v11970_v24, %v12401_v19  ;;  %v1097_v3 = vmul.bf16 %v11965_v35, %v14536_v51 }
 0x4f4   : > { %v4652_v23 = vmax.f32 %v4228_v31, 0.0  ;;  %v3439_v0 = vpop.permute.xlu1 %3438  ;;  %v2121_v31 = vmul.bf16 %v11965_v35, %v12404_v43  ;;  %v1096_v14 = vmul.bf16 %v11970_v24, %v14537_v29  ;;  %v2122_v43 = vmul.bf16 %v14535_v52, %v12413_v55  ;;  %v14538_v35 = vld [vmem:[#allocation185_spill] sm:$0xff]  ;;  %v14539_v24 = vld [vmem:[#allocation186_spill] sm:$0xff] }
 0x4f5   : > { %v4766_v53 = vpack.c.bf16 %v4654_v9, %v4653_v13  ;;  %v12498_v18 = vpop.permute.xlu0 %1848  ;;  %v3927_v56 = vsel %vm3814_vm2, %v3761_v22, %v3439_v0  ;;  %v7349_v19 = vcombine.low %v1610_v62, %v1611_v63  ;;  %v14540_v0 = vld [vmem:[#allocation224_spill] sm:$0xff]  ;;  %v14542_v63 = vld [vmem:[#allocation226_spill] sm:$0xff]  ;;  %v14543_v62 = vld [vmem:[#allocation227_spill] sm:$0xff]  ;;  %v2125_v51 = vmul.bf16 %v12041_v12, %v12484_v48 }
 0x4f6   : > { %v4765_v11 = vpack.c.bf16 %v4652_v23, %v4651_v49  ;;  %3460 = vrot.lane.b32.xlu0 %v12479_v34, %s8955_s8  ;;  %3334 = vrot.lane.b32.xlu1 %v7411_v2, %s8956_s30  ;;  %v7412_v13 = vcombine.low %v2120_v59, %v2121_v31  ;;  %v12529_v22 = vcombine.low %v1096_v14, %v1097_v3 }
 0x4f7   : > { %7810 = vmatmul.mubr.bf16.gmra.mrb[72].mxu0 %v3927_v56  ;;  %v1099_v49 = vmul.bf16 %v11999_v50, %v14538_v35  ;;  %v1098_v23 = vmul.bf16 %v14535_v52, %v14539_v24  ;;  %v1613_v55 = vmul.bf16 %v12041_v12, %v14540_v0  ;;  %v14541_v56 = vld [vmem:[#allocation225_spill] sm:$0xff]  ;;  %v1615_v54 = vmul.bf16 %v12075_v6, %v14542_v63  ;;  %v14545_v35 = vld [vmem:[#allocation188_spill] sm:$0xff] }
 0x4f8   : > { %7909 = vmatprep.mubr.bf16.mxu1 %v4765_v11  ;;  %v12514_v7 = vpop.permute.xlu1 %1850  ;;  %v2124_v31 = vmul.bf16 %v12046_v44, %v12477_v42  ;;  %v1100_v24 = vmul.bf16 %v12046_v44, %v14545_v35  ;;  %v14553_v35 = vld [vmem:[#allocation43_spill] sm:$0xff] }
 0x4f9   : > { %7910 = vmatmul.mubr.bf16.gmra.mrb[28].mxu1 %v4766_v53  ;;  %v2865_v20 = vpop.permute.xlu0 %2864  ;;  %v2123_v53 = vmul.bf16 %v11999_v50, %v12430_v30  ;;  %v1612_v30 = vmul.bf16 %v12046_v44, %v14541_v56  ;;  %v1614_v50 = vmul.bf16 %v12059_v37, %v14543_v62  ;;  %v12555_v14 = vcombine.low %v1098_v23, %v1099_v49 }
 0x4fa   : > { %2888 = vrot.lane.b32.xlu0 %v7348_v39, %s8956_s30  ;;  %3462 = vrot.lane.b32.xlu1 %v12504_v25, %s8955_s8  ;;  %v3609_v39 = vsel %vm3492_vm0, %v12094_v8, %v2865_v20  ;;  %v7414_v49 = vcombine.low %v2124_v31, %v2125_v51 }
 0x4fb   : > { %v7413_v11 = vcombine.low %v2122_v43, %v2123_v53  ;;  %v14544_v53 = vld [vmem:[#allocation187_spill] sm:$0xff] }
 0x4fc   : > { %v2867_v9 = vpop.permute.xlu1 %2866 }
 0x4fd   : > { %v3313_v2 = vpop.permute.xlu0 %3312 }
 0x4fe   : > { %2890 = vrot.lane.b32.xlu1 %v7349_v19, %s8956_s30  ;;  %3336 = vrot.lane.b32.xlu0 %v7412_v13, %s8956_s30  ;;  %v3763_v59 = vsel %vm3685_vm1, %v3609_v39, %v3313_v2  ;;  %v7350_v19 = vcombine.low %v1612_v30, %v1613_v55  ;;  %v12557_v13 = vld [vmem:[#allocation7] ss:$0 sm:$0xff]  ;;  %v1101_v2 = vmul.bf16 %v12041_v12, %v14544_v53  ;;  %v14551_v53 = vld [vmem:[#allocation44_spill] sm:$0xff] }
 0x4ff   : > { %v2126_v55 = vmul.bf16 %v12059_v37, %v12498_v18  ;;  %v3612_v12 = vsel %vm3492_vm0, %v12126_v41, %v2867_v9  ;;  %v2127_v39 = vmul.bf16 %v12075_v6, %v12514_v7  ;;  %v14546_v18 = vld [vmem:[#allocation189_spill] sm:$0xff]  ;;  %v14547_v7 = vld [vmem:[#allocation190_spill] sm:$0xff] }
 0x500   : > { %v3315_v33 = vpop.permute.xlu1 %3314  ;;  %v12579_v41 = vcombine.low %v1100_v24, %v1101_v2  ;;  %v1103_v9 = vmul.bf16 %v12075_v6, %v14546_v18  ;;  %v14550_v6 = vld [vmem:[#allocation230_spill] sm:$0xff] }
 0x501   : > { %v3441_v52 = vpop.permute.xlu0 %3440  ;;  %v3765_v63 = vsel %vm3685_vm1, %v3612_v12, %v3315_v33  ;;  %v1102_v33 = vmul.bf16 %v12059_v37, %v14547_v7  ;;  %v1619_v2 = vmul.bf16 %v14551_v53, %v14550_v6  ;;  %v14552_v37 = vld [vmem:[#allocation231_spill] sm:$0xff] }
 0x502   : > { %v7771_v3 = vpop.f32.mrb[32].mxu0  ;;  %3464 = vrot.lane.b32.xlu0 %v12529_v22, %s8955_s8  ;;  %3338 = vrot.lane.b32.xlu1 %v7413_v11, %s8956_s30  ;;  %v3930_v8 = vsel %vm3814_vm2, %v3763_v59, %v3441_v52  ;;  %v7351_v11 = vcombine.low %v1614_v50, %v1615_v54  ;;  %v1618_v24 = vmul.bf16 %v14553_v35, %v14552_v37  ;;  %v14554_v12 = vld [vmem:[#allocation191_spill] sm:$0xff] }
 0x503   : > { %v4249_v20 = vadd.f32 %v7771_v3, %v11936_v1  ;;  %v4240_v29 = vpop.f32.mrb[33].mxu0  ;;  %7813 = vmatprep.mubr.bf16.mxu0 %v3930_v8  ;;  %v14548_v3 = vld [vmem:[#allocation228_spill] sm:$0xff] }
 0x504   : > { %v4241_v42 = vadd.f32 %v12557_v13, %v4240_v29  ;;  %v7772_v48 = vpop.f32.mrb[34].mxu0  ;;  %v1853_v43 = vpop.permute.xlu1 %1852  ;;  %v1617_v8 = vmul.bf16 %v12117_v57, %v14548_v3 }
 0x505   : > { %v4252_v0 = vadd.f32 %v12557_v13, %v7772_v48  ;;  %v4243_v1 = vpop.f32.mrb[35].mxu0  ;;  %v1855_v56 = vpop.permute.xlu0 %1854  ;;  %v4657_v44 = vmax.f32 %v4249_v20, 0.0  ;;  %v14549_v20 = vld [vmem:[#allocation229_spill] sm:$0xff] }
 0x506   : > { %v4244_v23 = vadd.f32 %v12557_v13, %v4243_v1  ;;  %2892 = vrot.lane.b32.xlu0 %v7350_v19, %s8956_s30  ;;  %3466 = vrot.lane.b32.xlu1 %v12555_v14, %s8955_s8  ;;  %v4655_v54 = vmax.f32 %v4241_v42, 0.0  ;;  %v1616_v29 = vmul.bf16 %v12122_v47, %v14549_v20  ;;  %v7415_v19 = vcombine.low %v2126_v55, %v2127_v39 }
 0x507   : > { %v4658_v30 = vmax.f32 %v4252_v0, 0.0  ;;  %v12596_v0 = vcombine.low %v1102_v33, %v1103_v9 }
 0x508   : > { %v4656_v62 = vmax.f32 %v4244_v23, 0.0  ;;  %v3443_v50 = vpop.permute.xlu1 %3442  ;;  %v7352_v1 = vcombine.low %v1616_v29, %v1617_v8 }
 0x509   : > { %v4768_v59 = vpack.c.bf16 %v4658_v30, %v4657_v44  ;;  %v1857_v52 = vpop.permute.xlu0 %1856  ;;  %v3933_v31 = vsel %vm3814_vm2, %v3765_v63, %v3443_v50  ;;  %v1105_v44 = vmul.bf16 %v12117_v57, %v14554_v12  ;;  %v14555_v30 = vld [vmem:[#allocation192_spill] sm:$0xff]  ;;  %v14556_v63 = vld [vmem:[#allocation193_spill] sm:$0xff] }
 0x50a   : > { %v4767_v51 = vpack.c.bf16 %v4656_v62, %v4655_v54  ;;  %2894 = vrot.lane.b32.xlu1 %v7351_v11, %s8956_s30  ;;  %3340 = vrot.lane.b32.xlu0 %v7414_v49, %s8956_s30  ;;  %v2128_v11 = vmul.bf16 %v12122_v47, %v1853_v43  ;;  %v2129_v49 = vmul.bf16 %v12117_v57, %v1855_v56  ;;  %v14558_v57 = vld [vmem:[#allocation232_spill] sm:$0xff] }
 0x50b   : > { %7814 = vmatmul.mubr.bf16.gmra.mrb[76].mxu0 %v3933_v31  ;;  %v1104_v39 = vmul.bf16 %v12122_v47, %v14555_v30  ;;  %v1107_v54 = vmul.bf16 %v14551_v53, %v14556_v63  ;;  %v7353_v62 = vcombine.low %v1618_v24, %v1619_v2  ;;  %v2130_v56 = vmul.bf16 %v14553_v35, %v1857_v52  ;;  %v14559_v47 = vld [vmem:[#allocation233_spill] sm:$0xff]  ;;  %v14563_v30 = vld [vmem:[#allocation235_spill] sm:$0xff] }
 0x50c   : > { %7913 = vmatprep.mubr.bf16.mxu1 %v4767_v51  ;;  %v1859_v42 = vpop.permute.xlu1 %1858  ;;  %v7416_v43 = vcombine.low %v2128_v11, %v2129_v49  ;;  %v14557_v51 = vld [vmem:[#allocation194_spill] sm:$0xff]  ;;  %v1621_v9 = vmul.bf16 %v12193_v45, %v14558_v57  ;;  %v1620_v7 = vmul.bf16 %v12198_v38, %v14559_v47  ;;  %v14561_v11 = vld [vmem:[#allocation51_spill] sm:$0xff] }
 0x50d   : > { %7914 = vmatmul.mubr.bf16.gmra.mrb[32].mxu1 %v4768_v59  ;;  %v2869_v48 = vpop.permute.xlu0 %2868  ;;  %v2131_v50 = vmul.bf16 %v14551_v53, %v1859_v42  ;;  %v1106_v18 = vmul.bf16 %v14553_v35, %v14557_v51  ;;  %v12624_v29 = vcombine.low %v1104_v39, %v1105_v44  ;;  %v14564_v39 = vld [vmem:[#allocation48_spill] sm:$0xff] }
 0x50e   : > { %3468 = vrot.lane.b32.xlu0 %v12579_v41, %s8955_s8  ;;  %3342 = vrot.lane.b32.xlu1 %v7415_v19, %s8956_s30  ;;  %v3615_v59 = vsel %vm3492_vm0, %v12170_v10, %v2869_v48  ;;  %v7354_v2 = vcombine.low %v1620_v7, %v1621_v9  ;;  %v1622_v63 = vmul.bf16 %v14564_v39, %v14563_v30  ;;  %v14565_v7 = vld [vmem:[#allocation195_spill] sm:$0xff]  ;;  %v14571_v30 = vld [vmem:[#allocation238_spill] sm:$0xff] }
 0x50f   : > { %v7417_v19 = vcombine.low %v2130_v56, %v2131_v50  ;;  %v12627_v53 = vcombine.low %v1106_v18, %v1107_v54 }
 0x510   : > { %v2871_v23 = vpop.permute.xlu1 %2870 }
 0x511   : > { %v3317_v55 = vpop.permute.xlu0 %3316 }
 0x512   : > { %2896 = vrot.lane.b32.xlu0 %v7352_v1, %s8956_s30  ;;  %3470 = vrot.lane.b32.xlu1 %v12596_v0, %s8955_s8  ;;  %v3767_v33 = vsel %vm3685_vm1, %v3615_v59, %v3317_v55  ;;  %v14560_v1 = vld [vmem:[#allocation234_spill] sm:$0xff]  ;;  %v14562_v55 = vld [vmem:[#allocation47_spill] sm:$0xff] }
 0x513   : > { %v1623_v49 = vmul.bf16 %v14561_v11, %v14560_v1  ;;  %v3618_v12 = vsel %vm3492_vm0, %v14562_v55, %v2871_v23  ;;  %v14570_v1 = vld [vmem:[#allocation237_spill] sm:$0xff] }
 0x514   : > { %v3319_v31 = vpop.permute.xlu1 %3318 }
 0x515   : > { %v3445_v3 = vpop.permute.xlu0 %3444  ;;  %v3769_v54 = vsel %vm3685_vm1, %v3618_v12, %v3319_v31 }
 0x516   : > { %v7775_v8 = vpop.f32.mrb[36].mxu0  ;;  %2898 = vrot.lane.b32.xlu1 %v7353_v62, %s8956_s30  ;;  %3344 = vrot.lane.b32.xlu0 %v7416_v43, %s8956_s30  ;;  %v3936_v10 = vsel %vm3814_vm2, %v3767_v33, %v3445_v3  ;;  %v1109_v33 = vmul.bf16 %v12193_v45, %v14565_v7  ;;  %v14566_v3 = vld [vmem:[#allocation196_spill] sm:$0xff] }
 0x517   : > { %v4265_v52 = vadd.f32 %v12557_v13, %v7775_v8  ;;  %v4256_v20 = vpop.f32.mrb[37].mxu0  ;;  %7817 = vmatprep.mubr.bf16.mxu0 %v3936_v10  ;;  %v1108_v8 = vmul.bf16 %v12198_v38, %v14566_v3  ;;  %v7355_v10 = vcombine.low %v1622_v63, %v1623_v49  ;;  %v1624_v49 = vmul.bf16 %v12274_v61, %v14570_v1  ;;  %v14572_v63 = vld [vmem:[#allocation239_spill] sm:$0xff] }
 0x518   : > { %v4257_v42 = vadd.f32 %v12557_v13, %v4256_v20  ;;  %v7776_v48 = vpop.f32.mrb[38].mxu0  ;;  %v1861_v6 = vpop.permute.xlu1 %1860 }
 0x519   : > { %v4268_v37 = vadd.f32 %v12557_v13, %v7776_v48  ;;  %v4259_v35 = vpop.f32.mrb[39].mxu0  ;;  %v1863_v24 = vpop.permute.xlu0 %1862  ;;  %v4661_v62 = vmax.f32 %v4265_v52, 0.0  ;;  %v2132_v59 = vmul.bf16 %v12198_v38, %v1861_v6  ;;  %v14567_v48 = vld [vmem:[#allocation197_spill] sm:$0xff]  ;;  %v12659_v38 = vcombine.low %v1108_v8, %v1109_v33  ;;  %v14573_v8 = vld [vmem:[#allocation199_spill] sm:$0xff] }
 0x51a   : > { %v4260_v44 = vadd.f32 %v12557_v13, %v4259_v35  ;;  %3472 = vrot.lane.b32.xlu0 %v12624_v29, %s8955_s8  ;;  %3346 = vrot.lane.b32.xlu1 %v7417_v19, %s8956_s30  ;;  %v4659_v56 = vmax.f32 %v4257_v42, 0.0  ;;  %v2133_v23 = vmul.bf16 %v12193_v45, %v1863_v24  ;;  %v1111_v6 = vmul.bf16 %v14561_v11, %v14567_v48  ;;  %v14569_v35 = vld [vmem:[#allocation236_spill] sm:$0xff] }
 0x51b   : > { %v4662_v43 = vmax.f32 %v4268_v37, 0.0  ;;  %v1625_v24 = vmul.bf16 %v12269_v32, %v14569_v35 }
 0x51c   : > { %v4660_v50 = vmax.f32 %v4260_v44, 0.0  ;;  %v3447_v51 = vpop.permute.xlu1 %3446  ;;  %v7418_v52 = vcombine.low %v2132_v59, %v2133_v23 }
 0x51d   : > { %v4770_v18 = vpack.c.bf16 %v4662_v43, %v4661_v62  ;;  %v1865_v57 = vpop.permute.xlu0 %1864  ;;  %v3939_v9 = vsel %vm3814_vm2, %v3769_v54, %v3447_v51  ;;  %v7356_v44 = vcombine.low %v1624_v49, %v1625_v24  ;;  %v1626_v54 = vmul.bf16 %v12287_v28, %v14572_v63 }
 0x51e   : > { %v4769_v47 = vpack.c.bf16 %v4660_v50, %v4659_v56  ;;  %2900 = vrot.lane.b32.xlu0 %v7354_v2, %s8956_s30  ;;  %3474 = vrot.lane.b32.xlu1 %v12627_v53, %s8955_s8  ;;  %v2134_v31 = vmul.bf16 %v14564_v39, %v1865_v57  ;;  %v14568_v2 = vld [vmem:[#allocation198_spill] sm:$0xff] }
 0x51f   : > { %7818 = vmatmul.mubr.bf16.gmra.mrb[80].mxu0 %v3939_v9  ;;  %v1110_v45 = vmul.bf16 %v14564_v39, %v14568_v2  ;;  %v1627_v39 = vmul.bf16 %v12303_v26, %v14571_v30 }
 0x520   : > { %7917 = vmatprep.mubr.bf16.mxu1 %v4769_v47  ;;  %v1867_v20 = vpop.permute.xlu1 %1866 }
 0x521   : > { %7918 = vmatmul.mubr.bf16.gmra.mrb[36].mxu1 %v4770_v18  ;;  %v2135_v19 = vmul.bf16 %v14561_v11, %v1867_v20  ;;  %v2873_v42 = vpop.permute.xlu0 %2872  ;;  %v12668_v11 = vcombine.low %v1110_v45, %v1111_v6  ;;  %v7357_v57 = vcombine.low %v1626_v54, %v1627_v39  ;;  %v14576_v39 = vld [vmem:[#allocation241_spill] sm:$0xff] }
 0x522   : > { %2902 = vrot.lane.b32.xlu1 %v7355_v10, %s8956_s30  ;;  %3348 = vrot.lane.b32.xlu0 %v7418_v52, %s8956_s30  ;;  %v3621_v62 = vsel %vm3492_vm0, %v12246_v17, %v2873_v42  ;;  %v1113_v10 = vmul.bf16 %v12269_v32, %v14573_v8  ;;  %v1628_v63 = vmul.bf16 %v12350_v16, %v14576_v39 }
 0x523   : > { %v7419_v37 = vcombine.low %v2134_v31, %v2135_v19  ;;  %v14574_v19 = vld [vmem:[#allocation200_spill] sm:$0xff] }
 0x524   : > { %v2875_v55 = vpop.permute.xlu1 %2874  ;;  %v1112_v42 = vmul.bf16 %v12274_v61, %v14574_v19 }
 0x525   : > { %v3321_v12 = vpop.permute.xlu0 %3320  ;;  %v3624_v48 = vsel %vm3492_vm0, %v12278_v36, %v2875_v55  ;;  %v14575_v36 = vld [vmem:[#allocation240_spill] sm:$0xff] }
 0x526   : > { %3476 = vrot.lane.b32.xlu0 %v12659_v38, %s8955_s8  ;;  %3350 = vrot.lane.b32.xlu1 %v7419_v37, %s8956_s30  ;;  %v3771_v56 = vsel %vm3685_vm1, %v3621_v62, %v3321_v12  ;;  %v12698_v30 = vcombine.low %v1112_v42, %v1113_v10  ;;  %v1629_v55 = vmul.bf16 %v12345_v15, %v14575_v36  ;;  %v14581_v36 = vld [vmem:[#allocation203_spill] sm:$0xff] }
 0x528   : > { %v3323_v43 = vpop.permute.xlu1 %3322 }
 0x529   : > { %v3449_v50 = vpop.permute.xlu0 %3448  ;;  %v3773_v45 = vsel %vm3685_vm1, %v3624_v48, %v3323_v43 }
 0x52a   : > { %v7779_v59 = vpop.f32.mrb[40].mxu0  ;;  %2904 = vrot.lane.b32.xlu0 %v7356_v44, %s8956_s30  ;;  %3478 = vrot.lane.b32.xlu1 %v12668_v11, %s8955_s8  ;;  %v3942_v23 = vsel %vm3814_vm2, %v3771_v56, %v3449_v50  ;;  %v14577_v56 = vld [vmem:[#allocation201_spill] sm:$0xff] }
 0x52b   : > { %v4281_v51 = vadd.f32 %v12557_v13, %v7779_v59  ;;  %v4272_v18 = vpop.f32.mrb[41].mxu0  ;;  %7821 = vmatprep.mubr.bf16.mxu0 %v3942_v23  ;;  %v1115_v50 = vmul.bf16 %v12303_v26, %v14577_v56  ;;  %v14578_v59 = vld [vmem:[#allocation202_spill] sm:$0xff] }
 0x52c   : > { %v4273_v9 = vadd.f32 %v12557_v13, %v4272_v18  ;;  %v7780_v17 = vpop.f32.mrb[42].mxu0  ;;  %v1869_v47 = vpop.permute.xlu1 %1868  ;;  %v1114_v23 = vmul.bf16 %v12287_v28, %v14578_v59  ;;  %v7358_v18 = vcombine.low %v1628_v63, %v1629_v55  ;;  %v1117_v55 = vmul.bf16 %v12345_v15, %v14581_v36 }
 0x52d   : > { %v4284_v31 = vadd.f32 %v12557_v13, %v7780_v17  ;;  %v4275_v7 = vpop.f32.mrb[43].mxu0  ;;  %v2136_v33 = vmul.bf16 %v12274_v61, %v1869_v47  ;;  %v1871_v3 = vpop.permute.xlu0 %1870  ;;  %v4665_v6 = vmax.f32 %v4281_v51, 0.0  ;;  %v14579_v47 = vld [vmem:[#allocation242_spill] sm:$0xff] }
 0x52e   : > { %v4276_v52 = vadd.f32 %v12557_v13, %v4275_v7  ;;  %v2137_v20 = vmul.bf16 %v12269_v32, %v1871_v3  ;;  %2906 = vrot.lane.b32.xlu1 %v7357_v57, %s8956_s30  ;;  %v4663_v37 = vmax.f32 %v4273_v9, 0.0  ;;  %v12713_v17 = vcombine.low %v1114_v23, %v1115_v50  ;;  %v14580_v7 = vld [vmem:[#allocation243_spill] sm:$0xff] }
 0x52f   : > { %v4666_v2 = vmax.f32 %v4284_v31, 0.0  ;;  %v1631_v31 = vmul.bf16 %v12379_v60, %v14579_v47 }
 0x530   : > { %v4664_v35 = vmax.f32 %v4276_v52, 0.0  ;;  %v7420_v24 = vcombine.low %v2136_v33, %v2137_v20  ;;  %v3451_v1 = vpop.permute.xlu1 %3450  ;;  %v1630_v33 = vmul.bf16 %v12363_v40, %v14580_v7  ;;  %v14584_v7 = vld [vmem:[#allocation245_spill] sm:$0xff] }
 0x531   : > { %v4772_v49 = vpack.c.bf16 %v4666_v2, %v4665_v6  ;;  %v1873_v12 = vpop.permute.xlu0 %1872  ;;  %v3945_v32 = vsel %vm3814_vm2, %v3773_v45, %v3451_v1 }
 0x532   : > { %v4771_v44 = vpack.c.bf16 %v4664_v35, %v4663_v37  ;;  %3352 = vrot.lane.b32.xlu0 %v7420_v24, %s8956_s30  ;;  %7822 = vmatmul.mubr.bf16.gmra.mrb[84].mxu0 %v3945_v32  ;;  %v2138_v61 = vmul.bf16 %v12287_v28, %v1873_v12  ;;  %v7359_v20 = vcombine.low %v1630_v33, %v1631_v31  ;;  %v14583_v31 = vld [vmem:[#allocation244_spill] sm:$0xff] }
 0x534   : > { %7921 = vmatprep.mubr.bf16.mxu1 %v4771_v44  ;;  %v1875_v54 = vpop.permute.xlu1 %1874 }
 0x535   : > { %7922 = vmatmul.mubr.bf16.gmra.mrb[40].mxu1 %v4772_v49  ;;  %v2139_v62 = vmul.bf16 %v12303_v26, %v1875_v54  ;;  %v2877_v43 = vpop.permute.xlu0 %2876 }
 0x536   : > { %3480 = vrot.lane.b32.xlu0 %v12698_v30, %s8955_s8  ;;  %v3627_v26 = vsel %vm3492_vm0, %v12322_v27, %v2877_v43 }
 0x537   : > { %v7421_v51 = vcombine.low %v2138_v61, %v2139_v62  ;;  %v14582_v62 = vld [vmem:[#allocation204_spill] sm:$0xff] }
 0x538   : > { %v2879_v57 = vpop.permute.xlu1 %2878  ;;  %v1116_v43 = vmul.bf16 %v12350_v16, %v14582_v62 }
 0x539   : > { %v3325_v9 = vpop.permute.xlu0 %3324  ;;  %3354 = vrot.lane.b32.xlu1 %v7421_v51, %s8956_s30  ;;  %v3630_v56 = vsel %vm3492_vm0, %v12354_v5, %v2879_v57  ;;  %v1632_v5 = vmul.bf16 %v12438_v4, %v14584_v7 }
 0x53a   : > { %2908 = vrot.lane.b32.xlu0 %v7358_v18, %s8956_s30  ;;  %v3775_v3 = vsel %vm3685_vm1, %v3627_v26, %v3325_v9  ;;  %v12749_v47 = vcombine.low %v1116_v43, %v1117_v55 }
 0x53c   : > { %v3327_v28 = vpop.permute.xlu1 %3326 }
 0x53d   : > { %v3453_v8 = vpop.permute.xlu0 %3452  ;;  %3482 = vrot.lane.b32.xlu1 %v12713_v17, %s8955_s8  ;;  %v3777_v23 = vsel %vm3685_vm1, %v3630_v56, %v3327_v28 }
 0x53e   : > { %v7783_v10 = vpop.f32.mrb[44].mxu0  ;;  %v3948_v52 = vsel %vm3814_vm2, %v3775_v3, %v3453_v8  ;;  %v14585_v3 = vld [vmem:[#allocation205_spill] sm:$0xff] }
 0x53f   : > { %v4297_v19 = vadd.f32 %v12557_v13, %v7783_v10  ;;  %v4288_v42 = vpop.f32.mrb[45].mxu0  ;;  %7825 = vmatprep.mubr.bf16.mxu0 %v3948_v52  ;;  %v1119_v8 = vmul.bf16 %v12379_v60, %v14585_v3  ;;  %v14586_v10 = vld [vmem:[#allocation206_spill] sm:$0xff] }
 0x540   : > { %v4289_v48 = vadd.f32 %v12557_v13, %v4288_v42  ;;  %v7784_v6 = vpop.f32.mrb[46].mxu0  ;;  %v12727_v2 = vpop.f32.mrb[0].mxu1  ;;  %v1118_v52 = vmul.bf16 %v12363_v40, %v14586_v10 }
 0x541   : > { %v4300_v27 = vadd.f32 %v12557_v13, %v7784_v6  ;;  %v4291_v45 = vpop.f32.mrb[47].mxu0  ;;  %v12730_v37 = vpop.f32.mrb[1].mxu1  ;;  %2910 = vrot.lane.b32.xlu1 %v7359_v20, %s8956_s30  ;;  %v4669_v49 = vmax.f32 %v4297_v19, 0.0 }
 0x542   : > { %v4292_v35 = vadd.f32 %v12557_v13, %v4291_v45  ;;  %v1877_v24 = vpop.permute.xlu1 %1876  ;;  %v1879_v1 = vpop.permute.xlu0 %1878  ;;  %v4667_v39 = vmax.f32 %v4289_v48, 0.0  ;;  %v12765_v6 = vcombine.low %v1118_v52, %v1119_v8  ;;  %v14589_v8 = vld [vmem:[#allocation207_spill] sm:$0xff]  ;;  %v14590_v52 = vld [vmem:[#allocation208_spill] sm:$0xff] }
 0x543   : > { %v4670_v12 = vmax.f32 %v4300_v27, 0.0  ;;  %v2140_v32 = vmul.bf16 %v12350_v16, %v1877_v24  ;;  %v2141_v44 = vmul.bf16 %v12345_v15, %v1879_v1  ;;  %v12736_v61 = vpop.f32.mrb[2].mxu1  ;;  %v1633_v16 = vmul.bf16 %v12433_v21, %v14583_v31 }
 0x544   : > { %v4668_v63 = vmax.f32 %v4292_v35, 0.0  ;;  %v12740_v54 = vpop.f32.mrb[3].mxu1  ;;  %v1121_v10 = vmul.bf16 %v12433_v21, %v14589_v8 }
 0x545   : > { %v4774_v50 = vpack.c.bf16 %v4670_v12, %v4669_v49  ;;  %v7422_v59 = vcombine.low %v2140_v32, %v2141_v44  ;;  %v7360_v20 = vcombine.low %v1632_v5, %v1633_v16 }
 0x546   : > { %v4773_v51 = vpack.c.bf16 %v4668_v63, %v4667_v39  ;;  %v3455_v18 = vpop.permute.xlu1 %3454  ;;  %v1881_v9 = vpop.permute.xlu0 %1880 }
 0x547   : > { %3356 = vrot.lane.b32.xlu0 %v7422_v59, %s8956_s30  ;;  %v3951_v15 = vsel %vm3814_vm2, %v3777_v23, %v3455_v18  ;;  %v2142_v57 = vmul.bf16 %v12363_v40, %v1881_v9  ;;  %v14587_v23 = vld [vmem:[#allocation52_spill] sm:$0xff] }
 0x548   : > { %7826 = vmatmul.mubr.bf16.gmra.mrb[88].mxu0 %v3951_v15  ;;  %7925 = vmatprep.mubr.bf16.mxu1 %v4773_v51 }
 0x549   : > { %7926 = vmatmul.mubr.bf16.gmra.mrb[44].mxu1 %v4774_v50 }
 0x54a   : > { %v1883_v33 = vpop.permute.xlu1 %1882  ;;  %v2881_v26 = vpop.permute.xlu0 %2880 }
 0x54b   : > { %v2143_v28 = vmul.bf16 %v12379_v60, %v1883_v33  ;;  %3484 = vrot.lane.b32.xlu0 %v12749_v47, %s8955_s8  ;;  %v3633_v27 = vsel %vm3492_vm0, %v12398_v46, %v2881_v26 }
 0x54d   : > { %v7423_v19 = vcombine.low %v2142_v57, %v2143_v28  ;;  %v14588_v28 = vld [vmem:[#allocation55_spill] sm:$0xff] }
 0x54e   : > { %v2883_v42 = vpop.permute.xlu1 %2882  ;;  %v3329_v48 = vpop.permute.xlu0 %3328 }
 0x54f   : > { %2912 = vrot.lane.b32.xlu0 %v7360_v20, %s8956_s30  ;;  %3358 = vrot.lane.b32.xlu1 %v7423_v19, %s8956_s30  ;;  %v3779_v45 = vsel %vm3685_vm1, %v3633_v27, %v3329_v48  ;;  %v3636_v3 = vsel %vm3492_vm0, %v14588_v28, %v2883_v42  ;;  %v1120_v20 = vmul.bf16 %v12438_v4, %v14590_v52 }
 0x552   : > { %v3331_v35 = vpop.permute.xlu1 %3330  ;;  %v3457_v60 = vpop.permute.xlu0 %3456 }
 0x553   : > { %v7787_v24 = vpop.f32.mrb[48].mxu0  ;;  %3486 = vrot.lane.b32.xlu1 %v12765_v6, %s8955_s8  ;;  %v3954_v40 = vsel %vm3814_vm2, %v3779_v45, %v3457_v60  ;;  %v3781_v19 = vsel %vm3685_vm1, %v3636_v3, %v3331_v35 }
 0x554   : > { %v4313_v1 = vadd.f32 %v12557_v13, %v7787_v24  ;;  %v4304_v49 = vpop.f32.mrb[49].mxu0  ;;  %7829 = vmatprep.mubr.bf16.mxu0 %v3954_v40  ;;  %v12774_v12 = vpop.f32.mrb[4].mxu1  ;;  %v12800_v24 = vcombine.low %v1120_v20, %v1121_v10 }
 0x555   : > { %v4305_v32 = vadd.f32 %v12557_v13, %v4304_v49  ;;  %v7788_v44 = vpop.f32.mrb[50].mxu0  ;;  %v12777_v46 = vpop.f32.mrb[5].mxu1  ;;  %v14592_v49 = vld [vmem:[#allocation209_spill] sm:$0xff] }
 0x556   : > { %v4316_v36 = vadd.f32 %v12557_v13, %v7788_v44  ;;  %v4307_v55 = vpop.f32.mrb[51].mxu0  ;;  %v1377_v39 = vpop.permute.xlu1 %1376  ;;  %v4673_v50 = vmax.f32 %v4313_v1, 0.0 }
 0x557   : > { %v4308_v63 = vadd.f32 %v12557_v13, %v4307_v55  ;;  %v1634_v62 = vmul.bf16 %v12422_v58, %v1377_v39  ;;  %v1379_v43 = vpop.permute.xlu0 %1378  ;;  %v12782_v56 = vpop.f32.mrb[6].mxu1  ;;  %v4671_v9 = vmax.f32 %v4305_v32, 0.0  ;;  %v1122_v32 = vmul.bf16 %v12422_v58, %v14592_v49 }
 0x558   : > { %v4674_v59 = vmax.f32 %v4316_v36, 0.0  ;;  %v1635_v51 = vmul.bf16 %v14587_v23, %v1379_v43  ;;  %v12785_v18 = vpop.f32.mrb[7].mxu1 }
 0x559   : > { %v4672_v15 = vmax.f32 %v4308_v63, 0.0 }
 0x55a   : > { %v4776_v31 = vpack.c.bf16 %v4674_v59, %v4673_v50  ;;  %v7361_v16 = vcombine.low %v1634_v62, %v1635_v51  ;;  %v1885_v7 = vpop.permute.xlu1 %1884 }
 0x55b   : > { %v4775_v5 = vpack.c.bf16 %v4672_v15, %v4671_v9  ;;  %v2144_v57 = vmul.bf16 %v12438_v4, %v1885_v7  ;;  %v1887_v33 = vpop.permute.xlu0 %1886  ;;  %v14591_v4 = vld [vmem:[#allocation14_spill] sm:$0xff] }
 0x55c   : > { %v2145_v26 = vmul.bf16 %v12433_v21, %v1887_v33  ;;  %2914 = vrot.lane.b32.xlu1 %v7361_v16, %s8956_s30  ;;  %v1123_v35 = vmul.bf16 %v14587_v23, %v14591_v4 }
 0x55d   : > { %7929 = vmatprep.mubr.bf16.mxu1 %v4775_v5 }
 0x55e   : > { %v7424_v48 = vcombine.low %v2144_v57, %v2145_v26  ;;  %7930 = vmatmul.mubr.bf16.gmra.mrb[48].mxu1 %v4776_v31  ;;  %v3459_v27 = vpop.permute.xlu1 %3458  ;;  %v12814_v51 = vcombine.low %v1122_v32, %v1123_v35 }
 0x55f   : > { %v1889_v45 = vpop.permute.xlu0 %1888  ;;  %v3957_v60 = vsel %vm3814_vm2, %v3781_v19, %v3459_v27 }
 0x560   : > { %3360 = vrot.lane.b32.xlu0 %v7424_v48, %s8956_s30  ;;  %7830 = vmatmul.mubr.bf16.gmra.mrb[92].mxu0 %v3957_v60  ;;  %v2146_v42 = vmul.bf16 %v12422_v58, %v1889_v45 }
 0x562   : > { %v1891_v40 = vpop.permute.xlu1 %1890 }
 0x563   : > { %v2147_v21 = vmul.bf16 %v14587_v23, %v1891_v40  ;;  %v2885_v1 = vpop.permute.xlu0 %2884 }
 0x564   : > { %3488 = vrot.lane.b32.xlu0 %v12800_v24, %s8955_s8  ;;  %v3639_v15 = vsel %vm3492_vm0, %v12479_v34, %v2885_v1 }
 0x565   : > { %v7425_v44 = vcombine.low %v2146_v42, %v2147_v21  ;;  %v12834_v42 = vld [vmem:[#allocation8] ss:$0 sm:$0xff] }
 0x566   : > { %v2887_v36 = vpop.permute.xlu1 %2886  ;;  %v7791_v55 = vpop.f32.mrb[52].mxu0  ;;  %v4921_v21 = vadd.f32 %v12834_v42, %v12730_v37  ;;  %v4929_v32 = vadd.f32 %v12727_v2, %v12834_v42 }
 0x567   : > { %v3333_v39 = vpop.permute.xlu0 %3332  ;;  %v4329_v63 = vadd.f32 %v12557_v13, %v7791_v55  ;;  %3362 = vrot.lane.b32.xlu1 %v7425_v44, %s8956_s30  ;;  %v4320_v62 = vpop.f32.mrb[53].mxu0  ;;  %v3642_v34 = vsel %vm3492_vm0, %v12504_v25, %v2887_v36  ;;  %s13130_s30 = scalar_lea.vmem %s13824_s7, %s7233_s29 }
 0x568   : > { %v4321_v43 = vadd.f32 %v12557_v13, %v4320_v62  ;;  %v7792_v50 = vpop.f32.mrb[54].mxu0  ;;  %v12812_v59 = vpop.f32.mrb[8].mxu1  ;;  %v3783_v5 = vsel %vm3685_vm1, %v3639_v15, %v3333_v39  ;;  %v5431_v36 = vmax.f32 %v4921_v21, 0.0  ;;  %v4932_v15 = vadd.f32 %v12736_v61, %v12834_v42 }
 0x569   : > { %v4332_v23 = vadd.f32 %v12557_v13, %v7792_v50  ;;  %v4323_v9 = vpop.f32.mrb[55].mxu0  ;;  %v12817_v58 = vpop.f32.mrb[9].mxu1  ;;  %v4677_v57 = vmax.f32 %v4329_v63, 0.0  ;;  %v12847_v63 = vld [vmem:[#allocation10] ss:$0 sm:$0xff] }
 0x56a   : > { %v4324_v31 = vadd.f32 %v12557_v13, %v4323_v9  ;;  %v3335_v16 = vpop.permute.xlu1 %3334  ;;  %v12822_v7 = vpop.f32.mrb[10].mxu1  ;;  %v4675_v3 = vmax.f32 %v4321_v43, 0.0 }
 0x56b   : > { %v4678_v33 = vmax.f32 %v4332_v23, 0.0  ;;  %v3461_v26 = vpop.permute.xlu0 %3460  ;;  %3490 = vrot.lane.b32.xlu1 %v12814_v51, %s8955_s8  ;;  %v12827_v28 = vpop.f32.mrb[11].mxu1  ;;  %v3785_v19 = vsel %vm3685_vm1, %v3642_v34, %v3335_v16 }
 0x56c   : > { %v4676_v8 = vmax.f32 %v4324_v31, 0.0  ;;  %v3960_v10 = vsel %vm3814_vm2, %v3783_v5, %v3461_v26 }
 0x56d   : > { %v4778_v52 = vpack.c.bf16 %v4678_v33, %v4677_v57  ;;  %7833 = vmatprep.mubr.bf16.mxu0 %v3960_v10  ;;  %v5566_v57 = vmul.f32 %v12847_v63, %v5431_v36 }
 0x56e   : > { %v4777_v20 = vpack.c.bf16 %v4676_v8, %v4675_v3  ;;  %v3463_v48 = vpop.permute.xlu1 %3462 }
 0x56f   : > { %v2889_v27 = vpop.permute.xlu0 %2888  ;;  %v3963_v45 = vsel %vm3814_vm2, %v3785_v19, %v3463_v48  ;;  %v5434_v48 = vmax.f32 %v4932_v15, 0.0 }
 0x570   : > { %7834 = vmatmul.mubr.bf16.gmra.mrb[96].mxu0 %v3963_v45  ;;  %7933 = vmatprep.mubr.bf16.mxu1 %v4777_v20  ;;  %v3645_v25 = vsel %vm3492_vm0, %v12529_v22, %v2889_v27  ;;  %v4924_v27 = vadd.f32 %v12834_v42, %v12740_v54  ;;  %v4948_v54 = vadd.f32 %v12782_v56, %v12834_v42 }
 0x571   : > { %7934 = vmatmul.mubr.bf16.gmra.mrb[52].mxu1 %v4778_v52  ;;  %v4945_v56 = vadd.f32 %v12774_v12, %v12834_v42 }
 0x572   : > { %v2891_v60 = vpop.permute.xlu1 %2890 }
 0x573   : > { %v3337_v40 = vpop.permute.xlu0 %3336  ;;  %v3648_v44 = vsel %vm3492_vm0, %v12555_v14, %v2891_v60  ;;  %v5433_v14 = vmax.f32 %v4929_v32, 0.0  ;;  %v4940_v60 = vadd.f32 %v12834_v42, %v12785_v18  ;;  %v5432_v18 = vmax.f32 %v4924_v27, 0.0 }
 0x574   : > { %v3787_v4 = vsel %vm3685_vm1, %v3645_v25, %v3337_v40  ;;  %v5437_v15 = vmax.f32 %v4945_v56, 0.0 }
 0x575   : > { %v5568_v61 = vmul.f32 %v12847_v63, %v5433_v14  ;;  %v5436_v36 = vmax.f32 %v4940_v60, 0.0 }
 0x576   : > { %v3339_v1 = vpop.permute.xlu1 %3338 }
 0x577   : > { %v3465_v35 = vpop.permute.xlu0 %3464  ;;  %v3789_v55 = vsel %vm3685_vm1, %v3648_v44, %v3339_v1  ;;  %v5694_v1 = vsel %vm3685_vm1, %v5566_v57, 0.0  ;;  %v5569_v44 = vmul.f32 %v12847_v63, %v5434_v48  ;;  %v4953_v57 = vadd.f32 %v12834_v42, %v12817_v58 }
 0x578   : > { %v3966_v49 = vsel %vm3814_vm2, %v3787_v4, %v3465_v35  ;;  %v4937_v4 = vadd.f32 %v12834_v42, %v12777_v46 }
 0x579   : > { %7837 = vmatprep.mubr.bf16.mxu0 %v3966_v49  ;;  %v5703_v14 = vsel %vm3685_vm1, %v5569_v44, 0.0 }
 0x57a   : > { %v3467_v37 = vpop.permute.xlu1 %3466  ;;  %v7795_v39 = vpop.f32.mrb[56].mxu0 }
 0x57b   : > { %v2893_v22 = vpop.permute.xlu0 %2892  ;;  %v4345_v62 = vadd.f32 %v12557_v13, %v7795_v39  ;;  %v4336_v43 = vpop.f32.mrb[57].mxu0  ;;  %v3969_v50 = vsel %vm3814_vm2, %v3789_v55, %v3467_v37  ;;  %v5700_v37 = vsel %vm3685_vm1, %v5568_v61, 0.0  ;;  %v5435_v39 = vmax.f32 %v4937_v4, 0.0 }
 0x57c   : > { %v4337_v23 = vadd.f32 %v12557_v13, %v4336_v43  ;;  %7838 = vmatmul.mubr.bf16.gmra.mrb[100].mxu0 %v3969_v50  ;;  %v7796_v2 = vpop.f32.mrb[58].mxu0  ;;  %v12852_v9 = vpop.f32.mrb[12].mxu1  ;;  %v3651_v40 = vsel %vm3492_vm0, %v12579_v41, %v2893_v22  ;;  %v5438_v43 = vmax.f32 %v4948_v54, 0.0  ;;  %v5571_v50 = vmul.f32 %v12847_v63, %v5436_v36 }
 0x57d   : > { %v4348_v31 = vadd.f32 %v12557_v13, %v7796_v2  ;;  %v4339_v16 = vpop.f32.mrb[59].mxu0  ;;  %v12857_v5 = vpop.f32.mrb[13].mxu1  ;;  %v4681_v8 = vmax.f32 %v4345_v62, 0.0  ;;  %v5570_v12 = vmul.f32 %v12847_v63, %v5435_v39 }
 0x57e   : > { %v4340_v33 = vadd.f32 %v12557_v13, %v4339_v16  ;;  %v2895_v26 = vpop.permute.xlu1 %2894  ;;  %v12861_v3 = vpop.f32.mrb[14].mxu1  ;;  %v4679_v20 = vmax.f32 %v4337_v23, 0.0  ;;  %v4956_v23 = vadd.f32 %v12834_v42, %v12827_v28  ;;  %v5573_v16 = vmul.f32 %v12847_v63, %v5438_v43 }
 0x57f   : > { %v4682_v10 = vmax.f32 %v4348_v31, 0.0  ;;  %v3341_v34 = vpop.permute.xlu0 %3340  ;;  %v12863_v52 = vpop.f32.mrb[15].mxu1  ;;  %v3654_v41 = vsel %vm3492_vm0, %v12596_v0, %v2895_v26  ;;  %v5567_v0 = vmul.f32 %v12847_v63, %v5432_v18  ;;  %v5706_v27 = vsel %vm3685_vm1, %v5570_v12, 0.0 }
 0x580   : > { %v4680_v19 = vmax.f32 %v4340_v33, 0.0  ;;  %v3791_v35 = vsel %vm3685_vm1, %v3651_v40, %v3341_v34  ;;  %v4964_v33 = vadd.f32 %v12822_v7, %v12834_v42  ;;  %v5440_v26 = vmax.f32 %v4956_v23, 0.0 }
 0x581   : > { %v4780_v45 = vpack.c.bf16 %v4682_v10, %v4681_v8  ;;  %v5709_v10 = vsel %vm3685_vm1, %v5571_v50, 0.0  ;;  %v4972_v18 = vadd.f32 %v12834_v42, %v12863_v52  ;;  %v4980_v50 = vadd.f32 %v12861_v3, %v12834_v42 }
 0x582   : > { %v4779_v21 = vpack.c.bf16 %v4680_v19, %v4679_v20  ;;  %v3343_v25 = vpop.permute.xlu1 %3342  ;;  %v5697_v20 = vsel %vm3685_vm1, %v5567_v0, 0.0  ;;  %v5572_v19 = vmul.f32 %v12847_v63, %v5437_v15  ;;  %v5442_v4 = vmax.f32 %v4964_v33, 0.0 }
 0x583   : > { %5695 = vadd.xlane.f32.xlu0 %v5694_v1  ;;  %v3469_v49 = vpop.permute.xlu0 %3468  ;;  %v3793_v46 = vsel %vm3685_vm1, %v3654_v41, %v3343_v25  ;;  %v5715_v25 = vsel %vm3685_vm1, %v5573_v16, 0.0  ;;  %v5439_v1 = vmax.f32 %v4953_v57, 0.0  ;;  %v4977_v33 = vadd.f32 %v12852_v9, %v12834_v42 }
 0x584   : > { %v3972_v32 = vsel %vm3814_vm2, %v3791_v35, %v3469_v49  ;;  %7937 = vmatprep.mubr.bf16.mxu1 %v4779_v21  ;;  %v5712_v52 = vsel %vm3685_vm1, %v5572_v19, 0.0 }
 0x585   : > { %7841 = vmatprep.mubr.bf16.mxu0 %v3972_v32  ;;  %7938 = vmatmul.mubr.bf16.gmra.mrb[56].mxu1 %v4780_v45  ;;  %v5574_v0 = vmul.f32 %v12847_v63, %v5439_v1 }
 0x586   : > { %v3471_v55 = vpop.permute.xlu1 %3470 }
 0x587   : > { %5701 = vadd.xlane.f32.xlu0 %v5700_v37  ;;  %v2897_v22 = vpop.permute.xlu0 %2896  ;;  %v3975_v62 = vsel %vm3814_vm2, %v3793_v46, %v3471_v55  ;;  %v5718_v3 = vsel %vm3685_vm1, %v5574_v0, 0.0 }
 0x588   : > { %7842 = vmatmul.mubr.bf16.gmra.mrb[104].mxu0 %v3975_v62  ;;  %v3657_v28 = vsel %vm3492_vm0, %v12624_v29, %v2897_v22  ;;  %v4961_v29 = vadd.f32 %v12812_v59, %v12834_v42  ;;  %v5575_v59 = vmul.f32 %v12847_v63, %v5440_v26  ;;  %v5446_v26 = vmax.f32 %v4980_v50, 0.0 }
 0x58a   : > { %v2899_v2 = vpop.permute.xlu1 %2898  ;;  %v5441_v22 = vmax.f32 %v4961_v29, 0.0 }
 0x58b   : > { %5704 = vadd.xlane.f32.xlu0 %v5703_v14  ;;  %v3345_v31 = vpop.permute.xlu0 %3344  ;;  %v3660_v35 = vsel %vm3492_vm0, %v12627_v53, %v2899_v2  ;;  %v5577_v2 = vmul.f32 %v12847_v63, %v5442_v4  ;;  %v5444_v14 = vmax.f32 %v4972_v18, 0.0 }
 0x58c   : > { %v3795_v61 = vsel %vm3685_vm1, %v3657_v28, %v3345_v31  ;;  %v5721_v31 = vsel %vm3685_vm1, %v5575_v59, 0.0  ;;  %v5576_v57 = vmul.f32 %v12847_v63, %v5441_v22 }
 0x58d   : > { %v5579_v28 = vmul.f32 %v12847_v63, %v5444_v14 }
 0x58e   : > { %v3347_v8 = vpop.permute.xlu1 %3346  ;;  %v7799_v34 = vpop.f32.mrb[60].mxu0 }
 0x58f   : > { %5710 = vadd.xlane.f32.xlu0 %v5709_v10  ;;  %v3473_v48 = vpop.permute.xlu0 %3472  ;;  %v4361_v58 = vadd.f32 %v12557_v13, %v7799_v34  ;;  %5698 = vadd.xlane.f32.xlu1 %v5697_v20  ;;  %v4352_v7 = vpop.f32.mrb[61].mxu0  ;;  %v3797_v41 = vsel %vm3685_vm1, %v3660_v35, %v3347_v8  ;;  %v5727_v20 = vsel %vm3685_vm1, %v5577_v2, 0.0  ;;  %v5733_v4 = vsel %vm3685_vm1, %v5579_v28, 0.0 }
 0x590   : > { %v4353_v45 = vadd.f32 %v12557_v13, %v4352_v7  ;;  %v3978_v60 = vsel %vm3814_vm2, %v3795_v61, %v3473_v48  ;;  %v7800_v40 = vpop.f32.mrb[62].mxu0  ;;  %v12910_v21 = vpop.f32.mrb[16].mxu1  ;;  %v5445_v48 = vmax.f32 %v4977_v33, 0.0  ;;  %v5724_v7 = vsel %vm3685_vm1, %v5576_v57, 0.0 }
 0x591   : > { %7845 = vmatprep.mubr.bf16.mxu0 %v3978_v60  ;;  %v4364_v49 = vadd.f32 %v12557_v13, %v7800_v40  ;;  %v4355_v54 = vpop.f32.mrb[63].mxu0  ;;  %v4984_v32 = vpop.f32.mrb[17].mxu1  ;;  %v4685_v55 = vmax.f32 %v4361_v58, 0.0  ;;  %v4993_v60 = vadd.f32 %v12910_v21, %v12834_v42 }
 0x592   : > { %v4356_v44 = vadd.f32 %v12557_v13, %v4355_v54  ;;  %v3475_v36 = vpop.permute.xlu1 %3474  ;;  %v7900_v46 = vpop.f32.mrb[18].mxu1  ;;  %v4683_v62 = vmax.f32 %v4353_v45, 0.0  ;;  %v4969_v13 = vadd.f32 %v12834_v42, %v12857_v5  ;;  %v4985_v19 = vadd.f32 %v12834_v42, %v4984_v32 }
 0x593   : > { %v4686_v37 = vmax.f32 %v4364_v49, 0.0  ;;  %5716 = vadd.xlane.f32.xlu0 %v5715_v25  ;;  %v2901_v53 = vpop.permute.xlu0 %2900  ;;  %5707 = vadd.xlane.f32.xlu1 %v5706_v27  ;;  %v3981_v56 = vsel %vm3814_vm2, %v3797_v41, %v3475_v36  ;;  %v4987_v39 = vpop.f32.mrb[19].mxu1  ;;  %v4996_v29 = vadd.f32 %v7900_v46, %v12834_v42  ;;  %v5580_v54 = vmul.f32 %v12847_v63, %v5445_v48  ;;  %v12958_v46 = vld [vmem:[#allocation7] ss:$0 sm:$0xff] }
 0x594   : > { %v4684_v43 = vmax.f32 %v4356_v44, 0.0  ;;  %7846 = vmatmul.mubr.bf16.gmra.mrb[108].mxu0 %v3981_v56  ;;  %v5443_v5 = vmax.f32 %v4969_v13, 0.0  ;;  %v3663_v8 = vsel %vm3492_vm0, %v12659_v38, %v2901_v53  ;;  %v4988_v10 = vadd.f32 %v12834_v42, %v4987_v39 }
 0x595   : > { %v4782_v23 = vpack.c.bf16 %v4686_v37, %v4685_v55  ;;  %v5581_v38 = vmul.f32 %v12847_v63, %v5446_v26  ;;  %v5447_v35 = vmax.f32 %v4985_v19, 0.0  ;;  %v5450_v32 = vmax.f32 %v4996_v29, 0.0 }
 0x596   : > { %v4781_v15 = vpack.c.bf16 %v4684_v43, %v4683_v62  ;;  %v2903_v12 = vpop.permute.xlu1 %2902  ;;  %v5578_v27 = vmul.f32 %v12847_v63, %v5443_v5  ;;  %v5448_v40 = vmax.f32 %v4988_v10, 0.0  ;;  %v5449_v59 = vmax.f32 %v4993_v60, 0.0 }
 0x597   : > { %5722 = vadd.xlane.f32.xlu0 %v5721_v31  ;;  %v3349_v16 = vpop.permute.xlu0 %3348  ;;  %5713 = vadd.xlane.f32.xlu1 %v5712_v52  ;;  %v3666_v45 = vsel %vm3492_vm0, %v12668_v11, %v2903_v12  ;;  %v5739_v21 = vsel %vm3685_vm1, %v5581_v38, 0.0  ;;  %v5582_v36 = vmul.f32 %v12847_v63, %v5447_v35  ;;  %v5585_v22 = vmul.f32 %v12847_v63, %v5450_v32 }
 0x598   : > { %7941 = vmatprep.mubr.bf16.mxu1 %v4781_v15  ;;  %v3799_v9 = vsel %vm3685_vm1, %v3663_v8, %v3349_v16  ;;  %v5583_v18 = vmul.f32 %v12847_v63, %v5448_v40  ;;  %v5730_v44 = vsel %vm3685_vm1, %v5578_v27, 0.0  ;;  %v5584_v0 = vmul.f32 %v12847_v63, %v5449_v59 }
 0x599   : > { %7942 = vmatmul.mubr.bf16.gmra.mrb[60].mxu1 %v4782_v23  ;;  %v5736_v2 = vsel %vm3685_vm1, %v5580_v54, 0.0  ;;  %v5742_v57 = vsel %vm3685_vm1, %v5582_v36, 0.0  ;;  %v5751_v19 = vsel %vm3685_vm1, %v5585_v22, 0.0 }
 0x59a   : > { %v3351_v34 = vpop.permute.xlu1 %3350  ;;  %v5745_v23 = vsel %vm3685_vm1, %v5583_v18, 0.0  ;;  %v5748_v40 = vsel %vm3685_vm1, %v5584_v0, 0.0 }
 0x59b   : > { %5728 = vadd.xlane.f32.xlu0 %v5727_v20  ;;  %v3477_v61 = vpop.permute.xlu0 %3476  ;;  %5719 = vadd.xlane.f32.xlu1 %v5718_v3  ;;  %v3801_v25 = vsel %vm3685_vm1, %v3666_v45, %v3351_v34 }
 0x59c   : > { %v3984_v58 = vsel %vm3814_vm2, %v3799_v9, %v3477_v61 }
 0x59d   : > { %7849 = vmatprep.mubr.bf16.mxu0 %v3984_v58 }
 0x59e   : > { %v3479_v1 = vpop.permute.xlu1 %3478 }
 0x59f   : > { %5734 = vadd.xlane.f32.xlu0 %v5733_v4  ;;  %5725 = vadd.xlane.f32.xlu1 %v5724_v7  ;;  %v3987_v49 = vsel %vm3814_vm2, %v3801_v25, %v3479_v1  ;;  %v2905_v11 = vpop.permute.xlu0 %2904 }
 0x5a0   : > { %7850 = vmatmul.mubr.bf16.gmra.mrb[112].mxu0 %v3987_v49  ;;  %v3669_v33 = vsel %vm3492_vm0, %v12698_v30, %v2905_v11 }
 0x5a2   : > { %v7803_v41 = vpop.f32.mrb[64].mxu0  ;;  %v2907_v14 = vpop.permute.xlu1 %2906 }
 0x5a3   : > { %5740 = vadd.xlane.f32.xlu0 %v5739_v21  ;;  %v4377_v55 = vadd.f32 %v12958_v46, %v7803_v41  ;;  %5731 = vadd.xlane.f32.xlu1 %v5730_v44  ;;  %v4368_v37 = vpop.f32.mrb[65].mxu0  ;;  %v3672_v29 = vsel %vm3492_vm0, %v12713_v17, %v2907_v14 }
 0x5a4   : > { %v4369_v53 = vadd.f32 %v12958_v46, %v4368_v37  ;;  %v7804_v56 = vpop.f32.mrb[66].mxu0  ;;  %v7903_v39 = vpop.f32.mrb[20].mxu1 }
 0x5a5   : > { %v4380_v62 = vadd.f32 %v12958_v46, %v7804_v56  ;;  %v3353_v43 = vpop.permute.xlu0 %3352  ;;  %v4371_v52 = vpop.f32.mrb[67].mxu0  ;;  %v4689_v15 = vmax.f32 %v4377_v55, 0.0  ;;  %v5009_v9 = vadd.f32 %v7903_v39, %v12834_v42 }
 0x5a6   : > { %v4372_v13 = vadd.f32 %v12958_v46, %v4371_v52  ;;  %v5000_v50 = vpop.f32.mrb[21].mxu1  ;;  %v4687_v5 = vmax.f32 %v4369_v53, 0.0  ;;  %v3803_v10 = vsel %vm3685_vm1, %v3669_v33, %v3353_v43 }
 0x5a7   : > { %v4690_v12 = vmax.f32 %v4380_v62, 0.0  ;;  %v5001_v31 = vadd.f32 %v12834_v42, %v5000_v50  ;;  %5746 = vadd.xlane.f32.xlu0 %v5745_v23  ;;  %v7904_v16 = vpop.f32.mrb[22].mxu1  ;;  %5737 = vadd.xlane.f32.xlu1 %v5736_v2  ;;  %v5453_v45 = vmax.f32 %v5009_v9, 0.0 }
 0x5a8   : > { %v4688_v26 = vmax.f32 %v4372_v13, 0.0  ;;  %v5012_v3 = vadd.f32 %v7904_v16, %v12834_v42  ;;  %v5003_v28 = vpop.f32.mrb[23].mxu1 }
 0x5a9   : > { %v4784_v8 = vpack.c.bf16 %v4690_v12, %v4689_v15  ;;  %v5004_v34 = vadd.f32 %v12834_v42, %v5003_v28  ;;  %v3481_v20 = vpop.permute.xlu0 %3480  ;;  %v5451_v48 = vmax.f32 %v5001_v31, 0.0  ;;  %v5588_v54 = vmul.f32 %v12847_v63, %v5453_v45 }
 0x5aa   : > { %v4783_v61 = vpack.c.bf16 %v4688_v26, %v4687_v5  ;;  %v3990_v58 = vsel %vm3814_vm2, %v3803_v10, %v3481_v20  ;;  %v5454_v30 = vmax.f32 %v5012_v3, 0.0 }
 0x5ab   : > { %v5452_v7 = vmax.f32 %v5004_v34, 0.0  ;;  %5752 = vadd.xlane.f32.xlu0 %v5751_v19  ;;  %5743 = vadd.xlane.f32.xlu1 %v5742_v57  ;;  %v3355_v27 = vpop.permute.xlu1 %3354  ;;  %v5586_v60 = vmul.f32 %v12847_v63, %v5451_v48  ;;  %v5760_v18 = vsel %vm3685_vm1, %v5588_v54, 0.0 }
 0x5ac   : > { %7853 = vmatprep.mubr.bf16.mxu0 %v3990_v58  ;;  %7945 = vmatprep.mubr.bf16.mxu1 %v4783_v61  ;;  %v5589_v25 = vmul.f32 %v12847_v63, %v5454_v30  ;;  %v3805_v1 = vsel %vm3685_vm1, %v3672_v29, %v3355_v27 }
 0x5ad   : > { %v5587_v38 = vmul.f32 %v12847_v63, %v5452_v7  ;;  %7946 = vmatmul.mubr.bf16.gmra.mrb[64].mxu1 %v4784_v8  ;;  %v5754_v17 = vsel %vm3685_vm1, %v5586_v60, 0.0  ;;  %v2909_v11 = vpop.permute.xlu0 %2908 }
 0x5ae   : > { %v5763_v32 = vsel %vm3685_vm1, %v5589_v25, 0.0  ;;  %v3675_v43 = vsel %vm3492_vm0, %v12749_v47, %v2909_v11 }
 0x5af   : > { %5749 = vadd.xlane.f32.xlu1 %v5748_v40  ;;  %v5757_v4 = vsel %vm3685_vm1, %v5587_v38, 0.0  ;;  %v3483_v35 = vpop.permute.xlu1 %3482 }
 0x5b0   : > { %5758 = vadd.xlane.f32.xlu0 %v5757_v4  ;;  %v3993_v49 = vsel %vm3814_vm2, %v3805_v1, %v3483_v35 }
 0x5b1   : > { %7854 = vmatmul.mubr.bf16.gmra.mrb[116].mxu0 %v3993_v49 }
 0x5b3   : > { %5755 = vadd.xlane.f32.xlu1 %v5754_v17  ;;  %v2911_v31 = vpop.permute.xlu1 %2910 }
 0x5b4   : > { %5764 = vadd.xlane.f32.xlu0 %v5763_v32  ;;  %v3678_v58 = vsel %vm3492_vm0, %v12765_v6, %v2911_v31 }
 0x5b6   : > { %v7807_v59 = vpop.f32.mrb[68].mxu0 }
 0x5b7   : > { %v4393_v21 = vadd.f32 %v12958_v46, %v7807_v59  ;;  %5761 = vadd.xlane.f32.xlu1 %v5760_v18  ;;  %v4384_v41 = vpop.f32.mrb[69].mxu0 }
 0x5b8   : > { %v4385_v44 = vadd.f32 %v12958_v46, %v4384_v41  ;;  %v7808_v36 = vpop.f32.mrb[70].mxu0  ;;  %v7907_v55 = vpop.f32.mrb[24].mxu1 }
 0x5b9   : > { %v4396_v37 = vadd.f32 %v12958_v46, %v7808_v36  ;;  %v5025_v53 = vadd.f32 %v7907_v55, %v12834_v42  ;;  %v3357_v56 = vpop.permute.xlu0 %3356  ;;  %v4387_v39 = vpop.f32.mrb[71].mxu0  ;;  %v4693_v52 = vmax.f32 %v4393_v21, 0.0 }
 0x5ba   : > { %v4388_v22 = vadd.f32 %v12958_v46, %v4387_v39  ;;  %v5016_v62 = vpop.f32.mrb[25].mxu1  ;;  %v4691_v23 = vmax.f32 %v4385_v44, 0.0  ;;  %v3807_v2 = vsel %vm3685_vm1, %v3675_v43, %v3357_v56 }
 0x5bb   : > { %v4694_v0 = vmax.f32 %v4396_v37, 0.0  ;;  %v5017_v13 = vadd.f32 %v12834_v42, %v5016_v62  ;;  %v7908_v50 = vpop.f32.mrb[26].mxu1  ;;  %v5457_v57 = vmax.f32 %v5025_v53, 0.0 }
 0x5bc   : > { %v4692_v14 = vmax.f32 %v4388_v22, 0.0  ;;  %v5028_v15 = vadd.f32 %v7908_v50, %v12834_v42  ;;  %v5019_v12 = vpop.f32.mrb[27].mxu1 }
 0x5bd   : > { %v4786_v16 = vpack.c.bf16 %v4694_v0, %v4693_v52  ;;  %v5455_v33 = vmax.f32 %v5017_v13, 0.0  ;;  %v5020_v5 = vadd.f32 %v12834_v42, %v5019_v12  ;;  %v3485_v26 = vpop.permute.xlu0 %3484  ;;  %v5592_v34 = vmul.f32 %v12847_v63, %v5457_v57 }
 0x5be   : > { %v4785_v47 = vpack.c.bf16 %v4692_v14, %v4691_v23  ;;  %v3996_v3 = vsel %vm3814_vm2, %v3807_v2, %v3485_v26  ;;  %v5458_v8 = vmax.f32 %v5028_v15, 0.0 }
 0x5bf   : > { %v5590_v28 = vmul.f32 %v12847_v63, %v5455_v33  ;;  %v5456_v10 = vmax.f32 %v5020_v5, 0.0  ;;  %7857 = vmatprep.mubr.bf16.mxu0 %v3996_v3  ;;  %v5772_v27 = vsel %vm3685_vm1, %v5592_v34, 0.0 }
 0x5c0   : > { %7949 = vmatprep.mubr.bf16.mxu1 %v4785_v47  ;;  %v5593_v61 = vmul.f32 %v12847_v63, %v5458_v8 }
 0x5c1   : > { %v5591_v20 = vmul.f32 %v12847_v63, %v5456_v10  ;;  %v3359_v19 = vpop.permute.xlu1 %3358  ;;  %7950 = vmatmul.mubr.bf16.gmra.mrb[68].mxu1 %v4786_v16  ;;  %v5766_v9 = vsel %vm3685_vm1, %v5590_v28, 0.0  ;;  %v2913_v17 = vpop.permute.xlu0 %2912 }
 0x5c2   : > { %5767 = vadd.xlane.f32.xlu1 %v5766_v9  ;;  %v3809_v30 = vsel %vm3685_vm1, %v3678_v58, %v3359_v19  ;;  %v5775_v29 = vsel %vm3685_vm1, %v5593_v61, 0.0  ;;  %v3681_v2 = vsel %vm3492_vm0, %v12800_v24, %v2913_v17 }
 0x5c3   : > { %v5769_v48 = vsel %vm3685_vm1, %v5591_v20, 0.0 }
 0x5c4   : > { %5770 = vadd.xlane.f32.xlu0 %v5769_v48 }
 0x5c5   : > { %v3487_v7 = vpop.permute.xlu1 %3486 }
 0x5c6   : > { %5773 = vadd.xlane.f32.xlu1 %v5772_v27  ;;  %v3999_v38 = vsel %vm3814_vm2, %v3809_v30, %v3487_v7 }
 0x5c7   : > { %7858 = vmatmul.mubr.bf16.gmra.mrb[120].mxu0 %v3999_v38 }
 0x5c8   : > { %5776 = vadd.xlane.f32.xlu0 %v5775_v29 }
 0x5ca   : > { %v7811_v45 = vpop.f32.mrb[72].mxu0 }
 0x5cb   : > { %v4409_v60 = vadd.f32 %v12958_v46, %v7811_v45  ;;  %v4400_v40 = vpop.f32.mrb[73].mxu0 }
 0x5cc   : > { %v4401_v25 = vadd.f32 %v12958_v46, %v4400_v40  ;;  %v7812_v6 = vpop.f32.mrb[74].mxu0  ;;  %v7911_v1 = vpop.f32.mrb[28].mxu1 }
 0x5cd   : > { %v4412_v4 = vadd.f32 %v12958_v46, %v7812_v6  ;;  %v5041_v35 = vadd.f32 %v7911_v1, %v12834_v42  ;;  %v4403_v49 = vpop.f32.mrb[75].mxu0  ;;  %v5032_v54 = vpop.f32.mrb[29].mxu1  ;;  %v4697_v18 = vmax.f32 %v4409_v60, 0.0 }
 0x5ce   : > { %v4404_v32 = vadd.f32 %v12958_v46, %v4403_v49  ;;  %v5033_v11 = vadd.f32 %v12834_v42, %v5032_v54  ;;  %v7912_v59 = vpop.f32.mrb[30].mxu1  ;;  %v4695_v21 = vmax.f32 %v4401_v25, 0.0  ;;  %v2915_v14 = vpop.permute.xlu1 %2914 }
 0x5cf   : > { %v4698_v41 = vmax.f32 %v4412_v4, 0.0  ;;  %v5044_v44 = vadd.f32 %v7912_v59, %v12834_v42  ;;  %v5035_v36 = vpop.f32.mrb[31].mxu1  ;;  %v5461_v55 = vmax.f32 %v5041_v35, 0.0  ;;  %v3684_v26 = vsel %vm3492_vm0, %v12814_v51, %v2915_v14 }
 0x5d0   : > { %v4696_v37 = vmax.f32 %v4404_v32, 0.0  ;;  %v5459_v53 = vmax.f32 %v5033_v11, 0.0  ;;  %v5036_v56 = vadd.f32 %v12834_v42, %v5035_v36 }
 0x5d1   : > { %v4788_v39 = vpack.c.bf16 %v4698_v41, %v4697_v18  ;;  %v5462_v43 = vmax.f32 %v5044_v44, 0.0  ;;  %v5596_v13 = vmul.f32 %v12847_v63, %v5461_v55 }
 0x5d2   : > { %v4787_v22 = vpack.c.bf16 %v4696_v37, %v4695_v21  ;;  %v5594_v62 = vmul.f32 %v12847_v63, %v5459_v53  ;;  %v5460_v52 = vmax.f32 %v5036_v56, 0.0  ;;  %v3361_v0 = vpop.permute.xlu0 %3360 }
 0x5d3   : > { %v5597_v15 = vmul.f32 %v12847_v63, %v5462_v43  ;;  %v3811_v12 = vsel %vm3685_vm1, %v3681_v2, %v3361_v0  ;;  %v5784_v33 = vsel %vm3685_vm1, %v5596_v13, 0.0 }
 0x5d4   : > { %v5595_v50 = vmul.f32 %v12847_v63, %v5460_v52  ;;  %7953 = vmatprep.mubr.bf16.mxu1 %v4787_v22  ;;  %v5778_v23 = vsel %vm3685_vm1, %v5594_v62, 0.0 }
 0x5d5   : > { %7954 = vmatmul.mubr.bf16.gmra.mrb[72].mxu1 %v4788_v39  ;;  %5779 = vadd.xlane.f32.xlu1 %v5778_v23  ;;  %v5787_v24 = vsel %vm3685_vm1, %v5597_v15, 0.0 }
 0x5d6   : > { %v3489_v31 = vpop.permute.xlu0 %3488  ;;  %v5781_v16 = vsel %vm3685_vm1, %v5595_v50, 0.0 }
 0x5d7   : > { %v4002_v57 = vsel %vm3814_vm2, %v3811_v12, %v3489_v31  ;;  %5782 = vadd.xlane.f32.xlu0 %v5781_v16 }
 0x5d8   : > { %7861 = vmatprep.mubr.bf16.mxu0 %v4002_v57 }
 0x5d9   : > { %v3363_v5 = vpop.permute.xlu1 %3362  ;;  %5785 = vadd.xlane.f32.xlu1 %v5784_v33 }
 0x5da   : > { %v3813_v47 = vsel %vm3685_vm1, %v3684_v26, %v3363_v5 }
 0x5db   : > { %5788 = vadd.xlane.f32.xlu0 %v5787_v24 }
 0x5dd   : > { %v3491_v3 = vpop.permute.xlu1 %3490 }
 0x5de   : > { %v7815_v28 = vpop.f32.mrb[76].mxu0  ;;  %v4005_v8 = vsel %vm3814_vm2, %v3813_v47, %v3491_v3 }
 0x5df   : > { %v4425_v10 = vadd.f32 %v12958_v46, %v7815_v28  ;;  %7862 = vmatmul.mubr.bf16.gmra.mrb[124].mxu0 %v4005_v8  ;;  %v4416_v34 = vpop.f32.mrb[77].mxu0 }
 0x5e0   : > { %v4417_v20 = vadd.f32 %v12958_v46, %v4416_v34  ;;  %v7816_v19 = vpop.f32.mrb[78].mxu0  ;;  %v7915_v9 = vpop.f32.mrb[32].mxu1 }
 0x5e1   : > { %v4428_v61 = vadd.f32 %v12958_v46, %v7816_v19  ;;  %v5057_v48 = vadd.f32 %v7915_v9, %v12834_v42  ;;  %v4419_v58 = vpop.f32.mrb[79].mxu0  ;;  %v5048_v51 = vpop.f32.mrb[33].mxu1  ;;  %v4701_v38 = vmax.f32 %v4425_v10, 0.0 }
 0x5e2   : > { %v4420_v30 = vadd.f32 %v12958_v46, %v4419_v58  ;;  %v5049_v7 = vadd.f32 %v12834_v42, %v5048_v51  ;;  %v7916_v27 = vpop.f32.mrb[34].mxu1  ;;  %v4699_v29 = vmax.f32 %v4417_v20, 0.0 }
 0x5e3   : > { %v4702_v45 = vmax.f32 %v4428_v61, 0.0  ;;  %v5060_v60 = vadd.f32 %v7916_v27, %v12834_v42  ;;  %v5051_v40 = vpop.f32.mrb[35].mxu1  ;;  %v5465_v25 = vmax.f32 %v5057_v48, 0.0 }
 0x5e4   : > { %v4700_v6 = vmax.f32 %v4420_v30, 0.0  ;;  %v5463_v1 = vmax.f32 %v5049_v7, 0.0  ;;  %v5052_v4 = vadd.f32 %v12834_v42, %v5051_v40 }
 0x5e5   : > { %v4790_v35 = vpack.c.bf16 %v4702_v45, %v4701_v38  ;;  %v5466_v17 = vmax.f32 %v5060_v60, 0.0  ;;  %v5600_v11 = vmul.f32 %v12847_v63, %v5465_v25 }
 0x5e6   : > { %v4789_v49 = vpack.c.bf16 %v4700_v6, %v4699_v29  ;;  %v5598_v54 = vmul.f32 %v12847_v63, %v5463_v1  ;;  %v5464_v32 = vmax.f32 %v5052_v4, 0.0 }
 0x5e7   : > { %v5601_v21 = vmul.f32 %v12847_v63, %v5466_v17  ;;  %v5796_v44 = vsel %vm3685_vm1, %v5600_v11, 0.0 }
 0x5e8   : > { %v5599_v59 = vmul.f32 %v12847_v63, %v5464_v32  ;;  %7957 = vmatprep.mubr.bf16.mxu1 %v4789_v49  ;;  %v5790_v18 = vsel %vm3685_vm1, %v5598_v54, 0.0 }
 0x5e9   : > { %7958 = vmatmul.mubr.bf16.gmra.mrb[76].mxu1 %v4790_v35  ;;  %5791 = vadd.xlane.f32.xlu1 %v5790_v18  ;;  %v5799_v36 = vsel %vm3685_vm1, %v5601_v21, 0.0 }
 0x5ea   : > { %v5793_v41 = vsel %vm3685_vm1, %v5599_v59, 0.0 }
 0x5eb   : > { %5794 = vadd.xlane.f32.xlu0 %v5793_v41 }
 0x5ed   : > { %5797 = vadd.xlane.f32.xlu1 %v5796_v44 }
 0x5ef   : > { %5800 = vadd.xlane.f32.xlu0 %v5799_v36 }
 0x5f2   : > { %v7819_v55 = vpop.f32.mrb[80].mxu0 }
 0x5f3   : > { %v4441_v37 = vadd.f32 %v12958_v46, %v7819_v55  ;;  %v4432_v53 = vpop.f32.mrb[81].mxu0  ;;  %v13080_v55 = vld [vmem:[#allocation2] ss:$0 sm:$0xff] }
 0x5f4   : > { %v4433_v56 = vadd.f32 %v12958_v46, %v4432_v53  ;;  %v7820_v39 = vpop.f32.mrb[82].mxu0  ;;  %v7919_v22 = vpop.f32.mrb[36].mxu1 }
 0x5f5   : > { %v4444_v62 = vadd.f32 %v12958_v46, %v7820_v39  ;;  %v5073_v43 = vadd.f32 %v7919_v22, %v12834_v42  ;;  %v4435_v52 = vpop.f32.mrb[83].mxu0  ;;  %v5064_v0 = vpop.f32.mrb[37].mxu1  ;;  %v4705_v2 = vmax.f32 %v4441_v37, 0.0 }
 0x5f6   : > { %v4436_v13 = vadd.f32 %v12958_v46, %v4435_v52  ;;  %v5065_v50 = vadd.f32 %v12834_v42, %v5064_v0  ;;  %v7920_v23 = vpop.f32.mrb[38].mxu1  ;;  %v4703_v14 = vmax.f32 %v4433_v56, 0.0 }
 0x5f7   : > { %v4706_v15 = vmax.f32 %v4444_v62, 0.0  ;;  %v5076_v12 = vadd.f32 %v7920_v23, %v12834_v42  ;;  %v5067_v31 = vpop.f32.mrb[39].mxu1  ;;  %v5469_v16 = vmax.f32 %v5073_v43, 0.0 }
 0x5f8   : > { %v4704_v57 = vmax.f32 %v4436_v13, 0.0  ;;  %v5467_v33 = vmax.f32 %v5065_v50, 0.0  ;;  %v5068_v5 = vadd.f32 %v12834_v42, %v5067_v31 }
 0x5f9   : > { %v4792_v24 = vpack.c.bf16 %v4706_v15, %v4705_v2  ;;  %v5470_v3 = vmax.f32 %v5076_v12, 0.0  ;;  %v5604_v8 = vmul.f32 %v12847_v63, %v5469_v16 }
 0x5fa   : > { %v4791_v26 = vpack.c.bf16 %v4704_v57, %v4703_v14  ;;  %v5602_v47 = vmul.f32 %v12847_v63, %v5467_v33  ;;  %v5468_v28 = vmax.f32 %v5068_v5, 0.0 }
 0x5fb   : > { %v5605_v20 = vmul.f32 %v12847_v63, %v5470_v3  ;;  %v5808_v9 = vsel %vm3685_vm1, %v5604_v8, 0.0 }
 0x5fc   : > { %v5603_v10 = vmul.f32 %v12847_v63, %v5468_v28  ;;  %7961 = vmatprep.mubr.bf16.mxu1 %v4791_v26  ;;  %v5802_v34 = vsel %vm3685_vm1, %v5602_v47, 0.0 }
 0x5fd   : > { %7962 = vmatmul.mubr.bf16.gmra.mrb[80].mxu1 %v4792_v24  ;;  %5803 = vadd.xlane.f32.xlu1 %v5802_v34  ;;  %v5811_v61 = vsel %vm3685_vm1, %v5605_v20, 0.0 }
 0x5fe   : > { %v5805_v19 = vsel %vm3685_vm1, %v5603_v10, 0.0 }
 0x5ff   : > { %5806 = vadd.xlane.f32.xlu0 %v5805_v19 }
 0x601   : > { %5809 = vadd.xlane.f32.xlu1 %v5808_v9 }
 0x603   : > { %5812 = vadd.xlane.f32.xlu0 %v5811_v61 }
 0x605   : > { %v7823_v48 = vpop.f32.mrb[84].mxu0 }
 0x606   : > { %v4457_v58 = vadd.f32 %v12958_v46, %v7823_v48  ;;  %v4448_v51 = vpop.f32.mrb[85].mxu0 }
 0x607   : > { %v4449_v30 = vadd.f32 %v12958_v46, %v4448_v51  ;;  %v7824_v7 = vpop.f32.mrb[86].mxu0 }
 0x608   : > { %v4460_v27 = vadd.f32 %v12958_v46, %v7824_v7  ;;  %v7923_v38 = vpop.f32.mrb[40].mxu1  ;;  %v4451_v29 = vpop.f32.mrb[87].mxu0  ;;  %v4709_v25 = vmax.f32 %v4457_v58, 0.0  ;;  %v13104_v7 = vld [vmem:[#allocation8] ss:$0 sm:$0xff] }
 0x609   : > { %v5089_v45 = vadd.f32 %v7923_v38, %v12834_v42  ;;  %v4452_v60 = vadd.f32 %v12958_v46, %v4451_v29  ;;  %v5080_v40 = vpop.f32.mrb[41].mxu1  ;;  %v4707_v35 = vmax.f32 %v4449_v30, 0.0 }
 0x60a   : > { %v4710_v6 = vmax.f32 %v4460_v27, 0.0  ;;  %v5081_v1 = vadd.f32 %v12834_v42, %v5080_v40  ;;  %v7924_v4 = vpop.f32.mrb[42].mxu1 }
 0x60b   : > { %v4708_v49 = vmax.f32 %v4452_v60, 0.0  ;;  %v5092_v54 = vadd.f32 %v7924_v4, %v12834_v42  ;;  %v5083_v17 = vpop.f32.mrb[43].mxu1  ;;  %v5473_v11 = vmax.f32 %v5089_v45, 0.0 }
 0x60c   : > { %v4794_v32 = vpack.c.bf16 %v4710_v6, %v4709_v25  ;;  %v5471_v59 = vmax.f32 %v5081_v1, 0.0  ;;  %v5084_v18 = vadd.f32 %v12834_v42, %v5083_v17  ;;  %v13114_v17 = vld [vmem:[#allocation10] ss:$0 sm:$0xff] }
 0x60d   : > { %v4793_v21 = vpack.c.bf16 %v4708_v49, %v4707_v35  ;;  %v5474_v44 = vmax.f32 %v5092_v54, 0.0  ;;  %v5608_v37 = vmul.f32 %v12847_v63, %v5473_v11 }
 0x60e   : > { %v5606_v41 = vmul.f32 %v12847_v63, %v5471_v59  ;;  %v5472_v36 = vmax.f32 %v5084_v18, 0.0 }
 0x60f   : > { %7965 = vmatprep.mubr.bf16.mxu1 %v4793_v21  ;;  %v5609_v62 = vmul.f32 %v12847_v63, %v5474_v44  ;;  %v5820_v13 = vsel %vm3685_vm1, %v5608_v37, 0.0 }
 0x610   : > { %v5607_v53 = vmul.f32 %v12847_v63, %v5472_v36  ;;  %v5696_v56 = vpop.xlane.xlu0 %5695  ;;  %7966 = vmatmul.mubr.bf16.gmra.mrb[84].mxu1 %v4794_v32  ;;  %v5814_v39 = vsel %vm3685_vm1, %v5606_v41, 0.0 }
 0x611   : > { %v6085_v22 = vadd.f32 %v13080_v55, %v5696_v56  ;;  %5815 = vadd.xlane.f32.xlu1 %v5814_v39  ;;  %v5823_v23 = vsel %vm3685_vm1, %v5609_v62, 0.0 }
 0x612   : > { %v5817_v43 = vsel %vm3685_vm1, %v5607_v53, 0.0 }
 0x613   : > { %v7446_v52 = vmul.f32 -1.442695, %v6085_v22  ;;  %5818 = vadd.xlane.f32.xlu0 %v5817_v43 }
 0x614   : > { %v5702_v0 = vpop.xlane.xlu0 %5701 }
 0x615   : > { %8110 = vpow2.f32 %v7446_v52  ;;  %v6087_v50 = vadd.f32 %v13080_v55, %v5702_v0  ;;  %5821 = vadd.xlane.f32.xlu1 %v5820_v13 }
 0x617   : > { %v7448_v2 = vmul.f32 -1.442695, %v6087_v50  ;;  %5824 = vadd.xlane.f32.xlu0 %v5823_v23 }
 0x618   : > { %v5705_v14 = vpop.xlane.xlu0 %5704 }
 0x619   : > { %8112 = vpow2.f32 %v7448_v2  ;;  %v6088_v63 = vadd.f32 %v13080_v55, %v5705_v14 }
 0x61b   : > { %v7449_v15 = vmul.f32 -1.442695, %v6088_v63  ;;  %v7827_v12 = vpop.f32.mrb[88].mxu0 }
 0x61c   : > { %v4473_v31 = vadd.f32 %v12958_v46, %v7827_v12  ;;  %v5711_v16 = vpop.xlane.xlu0 %5710  ;;  %v4464_v57 = vpop.f32.mrb[89].mxu0 }
 0x61d   : > { %8114 = vpow2.f32 %v7449_v15  ;;  %v6090_v33 = vadd.f32 %v13080_v55, %v5711_v16  ;;  %v4465_v5 = vadd.f32 %v12958_v46, %v4464_v57  ;;  %v5699_v24 = vpop.xlane.xlu1 %5698  ;;  %v7828_v26 = vpop.f32.mrb[90].mxu0 }
 0x61e   : > { %v4713_v47 = vmax.f32 %v4473_v31, 0.0  ;;  %v6086_v3 = vadd.f32 %v13080_v55, %v5699_v24  ;;  %v4476_v28 = vadd.f32 %v12958_v46, %v7828_v26  ;;  %v7927_v8 = vpop.f32.mrb[44].mxu1  ;;  %v4467_v10 = vpop.f32.mrb[91].mxu0 }
 0x61f   : > { %v8111_v34 = vpop.eup %8110  ;;  %v7451_v20 = vmul.f32 -1.442695, %v6090_v33  ;;  %v4711_v19 = vmax.f32 %v4465_v5, 0.0  ;;  %v5105_v9 = vadd.f32 %v7927_v8, %v12834_v42  ;;  %v4468_v61 = vadd.f32 %v12958_v46, %v4467_v10  ;;  %v5096_v48 = vpop.f32.mrb[45].mxu1 }
 0x620   : > { %v6597_v58 = vadd.f32 1.0, %v8111_v34  ;;  %v7447_v51 = vmul.f32 -1.442695, %v6086_v3  ;;  %v4714_v30 = vmax.f32 %v4476_v28, 0.0  ;;  %v5097_v27 = vadd.f32 %v13104_v7, %v5096_v48  ;;  %v7928_v38 = vpop.f32.mrb[46].mxu1  ;;  %v5717_v29 = vpop.xlane.xlu0 %5716 }
 0x621   : > { %8116 = vpow2.f32 %v7451_v20  ;;  %v5477_v45 = vmax.f32 %v5105_v9, 0.0  ;;  %v4712_v60 = vmax.f32 %v4468_v61, 0.0  ;;  %v5108_v40 = vadd.f32 %v13104_v7, %v7928_v38  ;;  %v5099_v42 = vpop.f32.mrb[47].mxu1  ;;  %v5708_v25 = vpop.xlane.xlu1 %5707 }
 0x622   : > { %8118 = vrcp.f32 %v6597_v58  ;;  %v4796_v6 = vpack.c.bf16 %v4714_v30, %v4713_v47  ;;  %v5475_v1 = vmax.f32 %v5097_v27, 0.0  ;;  %v6092_v4 = vadd.f32 %v13080_v55, %v5717_v29 }
 0x623   : > { %v8113_v35 = vpop.eup %8112  ;;  %8120 = vpow2.f32 %v7447_v51  ;;  %v4795_v49 = vpack.c.bf16 %v4712_v60, %v4711_v19  ;;  %v5100_v59 = vadd.f32 %v13104_v7, %v5099_v42  ;;  %v5612_v21 = vmul.f32 %v13114_v17, %v5477_v45 }
 0x624   : > { %v6599_v54 = vadd.f32 1.0, %v8113_v35  ;;  %v5610_v32 = vmul.f32 %v13114_v17, %v5475_v1  ;;  %v7453_v11 = vmul.f32 -1.442695, %v6092_v4  ;;  %v5723_v18 = vpop.xlane.xlu0 %5722  ;;  %v5478_v41 = vmax.f32 %v5108_v40, 0.0 }
 0x625   : > { %v6089_v44 = vadd.f32 %v13080_v55, %v5708_v25  ;;  %v6094_v36 = vadd.f32 %v13080_v55, %v5723_v18  ;;  %v5714_v37 = vpop.xlane.xlu1 %5713  ;;  %7969 = vmatprep.mubr.bf16.mxu1 %v4795_v49  ;;  %v5476_v53 = vmax.f32 %v5100_v59, 0.0  ;;  %v5832_v12 = vsel %vm3685_vm1, %v5612_v21, 0.0 }
 0x626   : > { %8122 = vrcp.f32 %v6599_v54  ;;  %v6091_v56 = vadd.f32 %v13080_v55, %v5714_v37  ;;  %7970 = vmatmul.mubr.bf16.gmra.mrb[88].mxu1 %v4796_v6  ;;  %v5826_v39 = vsel %vm3685_vm1, %v5610_v32, 0.0  ;;  %v5613_v23 = vmul.f32 %v13114_v17, %v5478_v41 }
 0x627   : > { %v8115_v22 = vpop.eup %8114  ;;  %8124 = vpow2.f32 %v7453_v11  ;;  %v7450_v62 = vmul.f32 -1.442695, %v6089_v44  ;;  %v7455_v43 = vmul.f32 -1.442695, %v6094_v36  ;;  %5827 = vadd.xlane.f32.xlu1 %v5826_v39  ;;  %v5611_v0 = vmul.f32 %v13114_v17, %v5476_v53 }
 0x628   : > { %v6600_v52 = vadd.f32 1.0, %v8115_v22  ;;  %v7452_v13 = vmul.f32 -1.442695, %v6091_v56  ;;  %v5729_v50 = vpop.xlane.xlu0 %5728  ;;  %v5835_v10 = vsel %vm3685_vm1, %v5613_v23, 0.0 }
 0x629   : > { %8126 = vpow2.f32 %v7450_v62  ;;  %v6096_v2 = vadd.f32 %v13080_v55, %v5729_v50  ;;  %v5720_v14 = vpop.xlane.xlu1 %5719  ;;  %v5829_v63 = vsel %vm3685_vm1, %v5611_v0, 0.0 }
 0x62a   : > { %8128 = vrcp.f32 %v6600_v52  ;;  %v6093_v15 = vadd.f32 %v13080_v55, %v5720_v14  ;;  %5830 = vadd.xlane.f32.xlu0 %v5829_v63 }
 0x62b   : > { %v8117_v31 = vpop.eup %8116  ;;  %8130 = vpow2.f32 %v7455_v43  ;;  %v7457_v16 = vmul.f32 -1.442695, %v6096_v2  ;;  %5833 = vadd.xlane.f32.xlu1 %v5832_v12 }
 0x62c   : > { %v8119_v57 = vpop.eup %8118  ;;  %v6602_v33 = vadd.f32 1.0, %v8117_v31  ;;  %8132 = vpow2.f32 %v7452_v13  ;;  %v7454_v5 = vmul.f32 -1.442695, %v6093_v15  ;;  %v5735_v24 = vpop.xlane.xlu0 %5734 }
 0x62d   : > { %v8121_v26 = vpop.eup %8120  ;;  %6982 = vst.msk [vmem:[%s13130_s30] sm:$0xff] %vm6981_vm3, %v8119_v57  ;;  %8134 = vpow2.f32 %v7457_v16  ;;  %v6098_v47 = vadd.f32 %v13080_v55, %v5735_v24  ;;  %v5726_v3 = vpop.xlane.xlu1 %5725 }
 0x62e   : > { %8136 = vrcp.f32 %v6602_v33  ;;  %v6598_v28 = vadd.f32 1.0, %v8121_v26  ;;  %v6095_v8 = vadd.f32 %v13080_v55, %v5726_v3  ;;  %5836 = vadd.xlane.f32.xlu0 %v5835_v10 }
 0x62f   : > { %8138 = vpow2.f32 %v7454_v5  ;;  %v7459_v34 = vmul.f32 -1.442695, %v6098_v47 }
 0x630   : > { %v8123_v20 = vpop.eup %8122  ;;  %8140 = vrcp.f32 %v6598_v28  ;;  %v7456_v19 = vmul.f32 -1.442695, %v6095_v8  ;;  %v5741_v9 = vpop.xlane.xlu0 %5740 }
 0x631   : > { %v8125_v61 = vpop.eup %8124  ;;  %6984 = vst.msk [vmem:[%s13130_s30 + $0x10] sm:$0xff] %vm6981_vm3, %v8123_v20  ;;  %8142 = vpow2.f32 %v7459_v34  ;;  %v6100_v48 = vadd.f32 %v13080_v55, %v5741_v9  ;;  %v5732_v58 = vpop.xlane.xlu1 %5731 }
 0x632   : > { %v7931_v51 = vpop.f32.mrb[48].mxu1  ;;  %v6604_v30 = vadd.f32 1.0, %v8125_v61  ;;  %8144 = vpow2.f32 %v7456_v19  ;;  %v6097_v27 = vadd.f32 %v13080_v55, %v5732_v58 }
 0x633   : > { %v5121_v38 = vadd.f32 %v13104_v7, %v7931_v51  ;;  %v5112_v29 = vpop.f32.mrb[49].mxu1  ;;  %v8127_v45 = vpop.eup %8126  ;;  %v7461_v60 = vmul.f32 -1.442695, %v6100_v48 }
 0x634   : > { %v5113_v40 = vadd.f32 %v13104_v7, %v5112_v29  ;;  %v7831_v42 = vpop.f32.mrb[92].mxu0  ;;  %v7932_v25 = vpop.f32.mrb[50].mxu1  ;;  %8146 = vrcp.f32 %v6604_v30  ;;  %v6601_v1 = vadd.f32 1.0, %v8127_v45  ;;  %v7458_v4 = vmul.f32 -1.442695, %v6097_v27 }
 0x635   : > { %v8129_v6 = vpop.eup %8128  ;;  %v5481_v35 = vmax.f32 %v5121_v38, 0.0  ;;  %v5747_v49 = vpop.xlane.xlu0 %5746  ;;  %8148 = vpow2.f32 %v7461_v60  ;;  %v4489_v59 = vadd.f32 %v12958_v46, %v7831_v42  ;;  %v5124_v18 = vadd.f32 %v13104_v7, %v7932_v25 }
 0x636   : > { %v4480_v54 = vpop.f32.mrb[93].mxu0  ;;  %v8131_v32 = vpop.eup %8130  ;;  %6985 = vst.msk [vmem:[%s13130_s30 + $0x18] sm:$0xff] %vm6981_vm3, %v8129_v6  ;;  %v5479_v11 = vmax.f32 %v5113_v40, 0.0  ;;  %8150 = vrcp.f32 %v6601_v1  ;;  %v6102_v53 = vadd.f32 %v13080_v55, %v5747_v49 }
 0x637   : > { %v5115_v21 = vpop.f32.mrb[51].mxu1  ;;  %v5738_v41 = vpop.xlane.xlu1 %5737  ;;  %v6606_v36 = vadd.f32 1.0, %v8131_v32  ;;  %v13151_v37 = vmul.f32 %v13114_v17, %v5481_v35  ;;  %8152 = vpow2.f32 %v7458_v4  ;;  %v4717_v43 = vmax.f32 %v4489_v59, 0.0 }
 0x638   : > { %v8133_v44 = vpop.eup %8132  ;;  %v7832_v56 = vpop.f32.mrb[94].mxu0  ;;  %v5614_v62 = vmul.f32 %v13114_v17, %v5479_v11  ;;  %v5482_v50 = vmax.f32 %v5124_v18, 0.0  ;;  %v7463_v23 = vmul.f32 -1.442695, %v6102_v53  ;;  %v4481_v14 = vadd.f32 %v12958_v46, %v4480_v54 }
 0x639   : > { %v8135_v39 = vpop.eup %8134  ;;  %v6603_v22 = vadd.f32 1.0, %v8133_v44  ;;  %v4483_v52 = vpop.f32.mrb[95].mxu0  ;;  %8154 = vrcp.f32 %v6606_v36  ;;  %v5116_v63 = vadd.f32 %v13104_v7, %v5115_v21  ;;  %v6099_v15 = vadd.f32 %v13080_v55, %v5738_v41 }
 0x63a   : > { %v8137_v0 = vpop.eup %8136  ;;  %v6608_v13 = vadd.f32 1.0, %v8135_v39  ;;  %v5753_v12 = vpop.xlane.xlu0 %5752  ;;  %v5617_v33 = vmul.f32 %v13114_v17, %v5482_v50  ;;  %v4492_v5 = vadd.f32 %v12958_v46, %v7832_v56  ;;  %v4715_v26 = vmax.f32 %v4481_v14, 0.0 }
 0x63b   : > { %v8139_v2 = vpop.eup %8138  ;;  %6987 = vst.msk [vmem:[%s13130_s30 + $0x28] sm:$0xff] %vm6981_vm3, %v8137_v0  ;;  %8156 = vrcp.f32 %v6603_v22  ;;  %v5744_v31 = vpop.xlane.xlu1 %5743  ;;  %v5480_v47 = vmax.f32 %v5116_v63, 0.0  ;;  %v7460_v3 = vmul.f32 -1.442695, %v6099_v15  ;;  %v4484_v34 = vadd.f32 %v12958_v46, %v4483_v52  ;;  %v13185_v22 = vld [vmem:[#allocation7] ss:$0 sm:$0xff] }
 0x63c   : > { %v8141_v16 = vpop.eup %8140  ;;  %8158 = vrcp.f32 %v6608_v13  ;;  %v6605_v57 = vadd.f32 1.0, %v8139_v2  ;;  %v4718_v10 = vmax.f32 %v4492_v5, 0.0  ;;  %v6104_v9 = vadd.f32 %v13080_v55, %v5753_v12 }
 0x63d   : > { %v8143_v24 = vpop.eup %8142  ;;  %6983 = vst.msk [vmem:[%s13130_s30 + $0x8] sm:$0xff] %vm6981_vm3, %v8141_v16  ;;  %8160 = vpow2.f32 %v7463_v23  ;;  %v5615_v19 = vmul.f32 %v13114_v17, %v5480_v47  ;;  %v4716_v30 = vmax.f32 %v4484_v34, 0.0  ;;  %v6101_v27 = vadd.f32 %v13080_v55, %v5744_v31 }
 0x63e   : > { %v8145_v28 = vpop.eup %8144  ;;  %8162 = vrcp.f32 %v6605_v57  ;;  %v6610_v8 = vadd.f32 1.0, %v8143_v24  ;;  %v5759_v48 = vpop.xlane.xlu0 %5758  ;;  %v4798_v51 = vpack.c.bf16 %v4718_v10, %v4717_v43  ;;  %v7465_v46 = vmul.f32 -1.442695, %v6104_v9 }
 0x63f   : > { %v6607_v20 = vadd.f32 1.0, %v8145_v28  ;;  %8164 = vpow2.f32 %v7460_v3  ;;  %v5750_v61 = vpop.xlane.xlu1 %5749  ;;  %v8147_v58 = vpop.eup %8146  ;;  %v5838_v29 = vsel %vm3685_vm1, %v5614_v62, 0.0  ;;  %v4797_v42 = vpack.c.bf16 %v4716_v30, %v4715_v26 }
 0x640   : > { %8166 = vrcp.f32 %v6610_v8  ;;  %v8149_v38 = vpop.eup %8148  ;;  %6989 = vst.msk [vmem:[%s13130_s30 + $0x38] sm:$0xff] %vm6981_vm3, %v8147_v58  ;;  %v6103_v45 = vadd.f32 %v13080_v55, %v5750_v61  ;;  %v7462_v25 = vmul.f32 -1.442695, %v6101_v27  ;;  %5839 = vadd.xlane.f32.xlu1 %v5838_v29  ;;  %v5841_v6 = vsel %vm3685_vm1, %v5615_v19, 0.0 }
 0x641   : > { %8168 = vrcp.f32 %v6607_v20  ;;  %v8151_v60 = vpop.eup %8150  ;;  %v6612_v40 = vadd.f32 1.0, %v8149_v38  ;;  %5842 = vadd.xlane.f32.xlu0 %v5841_v6  ;;  %v6106_v35 = vadd.f32 %v13080_v55, %v5759_v48  ;;  %7973 = vmatprep.mubr.bf16.mxu1 %v4797_v42  ;;  %v5844_v41 = vsel %vm3685_vm1, %v13151_v37, 0.0 }
 0x642   : > { %v8153_v1 = vpop.eup %8152  ;;  %6986 = vst.msk [vmem:[%s13130_s30 + $0x20] sm:$0xff] %vm6981_vm3, %v8151_v60  ;;  %8170 = vpow2.f32 %v7465_v46  ;;  %v7464_v4 = vmul.f32 -1.442695, %v6103_v45  ;;  %v5765_v54 = vpop.xlane.xlu0 %5764  ;;  %7974 = vmatmul.mubr.bf16.gmra.mrb[92].mxu1 %v4798_v51  ;;  %v5847_v39 = vsel %vm3685_vm1, %v5617_v33, 0.0 }
 0x643   : > { %v5756_v49 = vpop.xlane.xlu1 %5755  ;;  %v8155_v32 = vpop.eup %8154  ;;  %8172 = vrcp.f32 %v6612_v40  ;;  %v6609_v11 = vadd.f32 1.0, %v8153_v1  ;;  %v7467_v21 = vmul.f32 -1.442695, %v6106_v35  ;;  %v6108_v44 = vadd.f32 %v13080_v55, %v5765_v54 }
 0x644   : > { %v6105_v59 = vadd.f32 %v13080_v55, %v5756_v49  ;;  %6991 = vst.msk [vmem:[%s13130_s30 + $0x48] sm:$0xff] %vm6981_vm3, %v8155_v32  ;;  %8174 = vpow2.f32 %v7462_v25  ;;  %v7835_v36 = vpop.f32.mrb[96].mxu0  ;;  %5845 = vadd.xlane.f32.xlu1 %v5844_v41  ;;  %v7935_v52 = vpop.f32.mrb[52].mxu1 }
 0x645   : > { %v8157_v18 = vpop.eup %8156  ;;  %8176 = vrcp.f32 %v6609_v11  ;;  %v4505_v62 = vadd.f32 %v13185_v22, %v7835_v36  ;;  %v4496_v43 = vpop.f32.mrb[97].mxu0  ;;  %5848 = vadd.xlane.f32.xlu0 %v5847_v39  ;;  %v7469_v37 = vmul.f32 -1.442695, %v6108_v44  ;;  %v5137_v2 = vadd.f32 %v13104_v7, %v7935_v52 }
 0x646   : > { %v8159_v53 = vpop.eup %8158  ;;  %6988 = vst.msk [vmem:[%s13130_s30 + $0x30] sm:$0xff] %vm6981_vm3, %v8157_v18  ;;  %v7466_v56 = vmul.f32 -1.442695, %v6105_v59  ;;  %8178 = vpow2.f32 %v7464_v4  ;;  %v4497_v50 = vadd.f32 %v13185_v22, %v4496_v43  ;;  %v7836_v23 = vpop.f32.mrb[98].mxu0 }
 0x647   : > { %v8161_v0 = vpop.eup %8160  ;;  %6993 = vst.msk [vmem:[%s13130_s30 + $0x58] sm:$0xff] %vm6981_vm3, %v8159_v53  ;;  %v5762_v13 = vpop.xlane.xlu1 %5761  ;;  %8180 = vpow2.f32 %v7467_v21  ;;  %v4721_v57 = vmax.f32 %v4505_v62, 0.0  ;;  %v4508_v5 = vadd.f32 %v13185_v22, %v7836_v23  ;;  %v5485_v20 = vmax.f32 %v5137_v2, 0.0 }
 0x648   : > { %v8163_v14 = vpop.eup %8162  ;;  %v6614_v63 = vadd.f32 1.0, %v8161_v0  ;;  %v6107_v15 = vadd.f32 %v13080_v55, %v5762_v13  ;;  %v4499_v12 = vpop.f32.mrb[99].mxu0  ;;  %8182 = vpow2.f32 %v7466_v56  ;;  %v4719_v33 = vmax.f32 %v4497_v50, 0.0 }
 0x649   : > { %v5128_v31 = vpop.f32.mrb[53].mxu1  ;;  %v8165_v16 = vpop.eup %8164  ;;  %6990 = vst.msk [vmem:[%s13130_s30 + $0x40] sm:$0xff] %vm6981_vm3, %v8163_v14  ;;  %v4500_v28 = vadd.f32 %v13185_v22, %v4499_v12  ;;  %v4722_v34 = vmax.f32 %v4508_v5, 0.0  ;;  %v5620_v40 = vmul.f32 %v13114_v17, %v5485_v20 }
 0x64a   : > { %v7936_v24 = vpop.f32.mrb[54].mxu1  ;;  %v8167_v26 = vpop.eup %8166  ;;  %8184 = vrcp.f32 %v6614_v63  ;;  %v6611_v47 = vadd.f32 1.0, %v8165_v16  ;;  %v7468_v3 = vmul.f32 -1.442695, %v6107_v15  ;;  %v5129_v19 = vadd.f32 %v13104_v7, %v5128_v31 }
 0x64b   : > { %v5131_v8 = vpop.f32.mrb[55].mxu1  ;;  %v8169_v10 = vpop.eup %8168  ;;  %6995 = vst.msk [vmem:[%s13130_s30 + $0x68] sm:$0xff] %vm6981_vm3, %v8167_v26  ;;  %8186 = vpow2.f32 %v7469_v37  ;;  %v4720_v9 = vmax.f32 %v4500_v28, 0.0  ;;  %v5140_v61 = vadd.f32 %v13104_v7, %v7936_v24  ;;  %v4800_v51 = vpack.c.bf16 %v4722_v34, %v4721_v57 }
 0x64c   : > { %6992 = vst.msk [vmem:[%s13130_s30 + $0x50] sm:$0xff] %vm6981_vm3, %v8169_v10  ;;  %8188 = vrcp.f32 %v6611_v47  ;;  %v5132_v48 = vadd.f32 %v13104_v7, %v5131_v8  ;;  %v8171_v58 = vpop.eup %8170  ;;  %v5483_v30 = vmax.f32 %v5129_v19, 0.0  ;;  %v5856_v43 = vsel %vm3685_vm1, %v5620_v40, 0.0 }
 0x64d   : > { %8190 = vpow2.f32 %v7468_v3  ;;  %v8173_v27 = vpop.eup %8172  ;;  %v6616_v38 = vadd.f32 1.0, %v8171_v58  ;;  %v4799_v46 = vpack.c.bf16 %v4720_v9, %v4719_v33  ;;  %v5486_v29 = vmax.f32 %v5140_v61, 0.0 }
 0x64e   : > { %v5484_v45 = vmax.f32 %v5132_v48, 0.0  ;;  %v8175_v60 = vpop.eup %8174  ;;  %6997 = vst.msk [vmem:[%s13130_s30 + $0x78] sm:$0xff] %vm6981_vm3, %v8173_v27  ;;  %v5618_v42 = vmul.f32 %v13114_v17, %v5483_v30 }
 0x64f   : > { %v8177_v25 = vpop.eup %8176  ;;  %8192 = vrcp.f32 %v6616_v38  ;;  %v6613_v6 = vadd.f32 1.0, %v8175_v60  ;;  %v5621_v1 = vmul.f32 %v13114_v17, %v5486_v29  ;;  %7977 = vmatprep.mubr.bf16.mxu1 %v4799_v46  ;;  %v5768_v54 = vpop.xlane.xlu1 %5767 }
 0x650   : > { %v5619_v4 = vmul.f32 %v13114_v17, %v5484_v45  ;;  %v8179_v35 = vpop.eup %8178  ;;  %6994 = vst.msk [vmem:[%s13130_s30 + $0x60] sm:$0xff] %vm6981_vm3, %v8177_v25  ;;  %v5850_v49 = vsel %vm3685_vm1, %v5618_v42, 0.0  ;;  %7978 = vmatmul.mubr.bf16.gmra.mrb[96].mxu1 %v4800_v51  ;;  %v7839_v32 = vpop.f32.mrb[100].mxu0  ;;  %v6109_v18 = vadd.f32 %v13080_v55, %v5768_v54 }
 0x651   : > { %v8181_v11 = vpop.eup %8180  ;;  %8194 = vrcp.f32 %v6613_v6  ;;  %v6615_v59 = vadd.f32 1.0, %v8179_v35  ;;  %5851 = vadd.xlane.f32.xlu1 %v5850_v49  ;;  %v4521_v21 = vadd.f32 %v13185_v22, %v7839_v32  ;;  %v4512_v41 = vpop.f32.mrb[101].mxu0  ;;  %v5859_v50 = vsel %vm3685_vm1, %v5621_v1, 0.0 }
 0x652   : > { %v8183_v44 = vpop.eup %8182  ;;  %v6618_v36 = vadd.f32 1.0, %v8181_v11  ;;  %v5853_v53 = vsel %vm3685_vm1, %v5619_v4, 0.0  ;;  %v4513_v56 = vadd.f32 %v13185_v22, %v4512_v41  ;;  %v7840_v39 = vpop.f32.mrb[102].mxu0  ;;  %v7470_v37 = vmul.f32 -1.442695, %v6109_v18 }
 0x653   : > { %v5771_v62 = vpop.xlane.xlu0 %5770  ;;  %8196 = vrcp.f32 %v6615_v59  ;;  %v6617_v0 = vadd.f32 1.0, %v8183_v44  ;;  %5854 = vadd.xlane.f32.xlu0 %v5853_v53  ;;  %v4515_v13 = vpop.f32.mrb[103].mxu0  ;;  %v4725_v2 = vmax.f32 %v4521_v21, 0.0  ;;  %v4524_v14 = vadd.f32 %v13185_v22, %v7840_v39 }
 0x654   : > { %v8185_v52 = vpop.eup %8184  ;;  %8198 = vrcp.f32 %v6618_v36  ;;  %v6110_v63 = vadd.f32 %v13080_v55, %v5771_v62  ;;  %v5774_v15 = vpop.xlane.xlu1 %5773  ;;  %v4516_v16 = vadd.f32 %v13185_v22, %v4515_v13  ;;  %v4723_v5 = vmax.f32 %v4513_v56, 0.0 }
 0x655   : > { %v8187_v23 = vpop.eup %8186  ;;  %6999 = vst.msk [vmem:[%s13130_s30 + $0x88] sm:$0xff] %vm6981_vm3, %v8185_v52  ;;  %8200 = vrcp.f32 %v6617_v0  ;;  %5857 = vadd.xlane.f32.xlu1 %v5856_v43  ;;  %v6111_v57 = vadd.f32 %v13080_v55, %v5774_v15  ;;  %v4726_v24 = vmax.f32 %v4524_v14, 0.0 }
 0x656   : > { %v8189_v12 = vpop.eup %8188  ;;  %v6620_v31 = vadd.f32 1.0, %v8187_v23  ;;  %8202 = vpow2.f32 %v7470_v37  ;;  %v7471_v26 = vmul.f32 -1.442695, %v6110_v63  ;;  %v4724_v28 = vmax.f32 %v4516_v16, 0.0 }
 0x657   : > { %v8191_v33 = vpop.eup %8190  ;;  %6996 = vst.msk [vmem:[%s13130_s30 + $0x70] sm:$0xff] %vm6981_vm3, %v8189_v12  ;;  %v5777_v47 = vpop.xlane.xlu0 %5776  ;;  %v7472_v8 = vmul.f32 -1.442695, %v6111_v57  ;;  %5860 = vadd.xlane.f32.xlu0 %v5859_v50  ;;  %v4802_v10 = vpack.c.bf16 %v4726_v24, %v4725_v2 }
 0x658   : > { %8204 = vrcp.f32 %v6620_v31  ;;  %v6619_v3 = vadd.f32 1.0, %v8191_v33  ;;  %v6112_v34 = vadd.f32 %v13080_v55, %v5777_v47  ;;  %v4801_v19 = vpack.c.bf16 %v4724_v28, %v4723_v5  ;;  %v7939_v9 = vpop.f32.mrb[56].mxu1 }
 0x659   : > { %8206 = vpow2.f32 %v7471_v26  ;;  %v8193_v20 = vpop.eup %8192  ;;  %v5153_v48 = vadd.f32 %v13104_v7, %v7939_v9  ;;  %v5144_v58 = vpop.f32.mrb[57].mxu1 }
 0x65a   : > { %8208 = vrcp.f32 %v6619_v3  ;;  %7001 = vst.msk [vmem:[%s13130_s30 + $0x98] sm:$0xff] %vm6981_vm3, %v8193_v20  ;;  %v7473_v61 = vmul.f32 -1.442695, %v6112_v34  ;;  %7981 = vmatprep.mubr.bf16.mxu1 %v4801_v19  ;;  %v5145_v30 = vadd.f32 %v13104_v7, %v5144_v58  ;;  %v7940_v27 = vpop.f32.mrb[58].mxu1 }
 0x65b   : > { %8210 = vpow2.f32 %v7472_v8  ;;  %v8195_v51 = vpop.eup %8194  ;;  %v5489_v38 = vmax.f32 %v5153_v48, 0.0  ;;  %7982 = vmatmul.mubr.bf16.gmra.mrb[100].mxu1 %v4802_v10  ;;  %v7843_v46 = vpop.f32.mrb[104].mxu0  ;;  %v5156_v29 = vadd.f32 %v13104_v7, %v7940_v27 }
 0x65c   : > { %6998 = vst.msk [vmem:[%s13130_s30 + $0x80] sm:$0xff] %vm6981_vm3, %v8195_v51  ;;  %8212 = vpow2.f32 %v7473_v61  ;;  %v5147_v45 = vpop.f32.mrb[59].mxu1  ;;  %v5487_v40 = vmax.f32 %v5145_v30, 0.0  ;;  %v4537_v42 = vadd.f32 %v13185_v22, %v7843_v46  ;;  %v4528_v25 = vpop.f32.mrb[105].mxu0 }
 0x65d   : > { %v8197_v60 = vpop.eup %8196  ;;  %v5148_v6 = vadd.f32 %v13104_v7, %v5147_v45  ;;  %v5490_v4 = vmax.f32 %v5156_v29, 0.0  ;;  %v4529_v35 = vadd.f32 %v13185_v22, %v4528_v25  ;;  %v7844_v49 = vpop.f32.mrb[106].mxu0  ;;  %v5624_v41 = vmul.f32 %v13114_v17, %v5489_v38 }
 0x65e   : > { %v8199_v1 = vpop.eup %8198  ;;  %7000 = vst.msk [vmem:[%s13130_s30 + $0x90] sm:$0xff] %vm6981_vm3, %v8197_v60  ;;  %v5622_v32 = vmul.f32 %v13114_v17, %v5487_v40  ;;  %v4540_v59 = vadd.f32 %v13185_v22, %v7844_v49  ;;  %v4531_v18 = vpop.f32.mrb[107].mxu0  ;;  %v4729_v44 = vmax.f32 %v4537_v42, 0.0 }
 0x65f   : > { %v8201_v54 = vpop.eup %8200  ;;  %7003 = vst.msk [vmem:[%s13130_s30 + $0xa8] sm:$0xff] %vm6981_vm3, %v8199_v1  ;;  %v5488_v11 = vmax.f32 %v5148_v6, 0.0  ;;  %v4532_v36 = vadd.f32 %v13185_v22, %v4531_v18  ;;  %v5625_v0 = vmul.f32 %v13114_v17, %v5490_v4  ;;  %v4727_v37 = vmax.f32 %v4529_v35, 0.0 }
 0x660   : > { %v8203_v21 = vpop.eup %8202  ;;  %7002 = vst.msk [vmem:[%s13130_s30 + $0xa0] sm:$0xff] %vm6981_vm3, %v8201_v54  ;;  %v4730_v62 = vmax.f32 %v4540_v59, 0.0  ;;  %v5862_v43 = vsel %vm3685_vm1, %v5622_v32, 0.0  ;;  %v5868_v33 = vsel %vm3685_vm1, %v5624_v41, 0.0 }
 0x661   : > { %v6621_v56 = vadd.f32 1.0, %v8203_v21  ;;  %v5623_v39 = vmul.f32 %v13114_v17, %v5488_v11  ;;  %v4728_v13 = vmax.f32 %v4532_v36, 0.0  ;;  %5863 = vadd.xlane.f32.xlu1 %v5862_v43  ;;  %v5871_v28 = vsel %vm3685_vm1, %v5625_v0, 0.0 }
 0x662   : > { %v8205_v53 = vpop.eup %8204  ;;  %v4804_v2 = vpack.c.bf16 %v4730_v62, %v4729_v44  ;;  %v5780_v14 = vpop.xlane.xlu1 %5779 }
 0x663   : > { %v8207_v52 = vpop.eup %8206  ;;  %7005 = vst.msk [vmem:[%s13130_s30 + $0xb8] sm:$0xff] %vm6981_vm3, %v8205_v53  ;;  %8214 = vrcp.f32 %v6621_v56  ;;  %v5865_v63 = vsel %vm3685_vm1, %v5623_v39, 0.0  ;;  %v4803_v12 = vpack.c.bf16 %v4728_v13, %v4727_v37  ;;  %v6113_v31 = vadd.f32 %v13080_v55, %v5780_v14 }
 0x664   : > { %v8209_v50 = vpop.eup %8208  ;;  %v6622_v23 = vadd.f32 1.0, %v8207_v52  ;;  %5866 = vadd.xlane.f32.xlu0 %v5865_v63  ;;  %v5783_v57 = vpop.xlane.xlu0 %5782 }
 0x665   : > { %v8211_v15 = vpop.eup %8210  ;;  %7004 = vst.msk [vmem:[%s13130_s30 + $0xb0] sm:$0xff] %vm6981_vm3, %v8209_v50  ;;  %v7474_v24 = vmul.f32 -1.442695, %v6113_v31  ;;  %7985 = vmatprep.mubr.bf16.mxu1 %v4803_v12  ;;  %v6114_v26 = vadd.f32 %v13080_v55, %v5783_v57  ;;  %5869 = vadd.xlane.f32.xlu1 %v5868_v33 }
 0x666   : > { %8216 = vrcp.f32 %v6622_v23  ;;  %v6623_v16 = vadd.f32 1.0, %v8211_v15  ;;  %v8213_v5 = vpop.eup %8212  ;;  %7986 = vmatmul.mubr.bf16.gmra.mrb[104].mxu1 %v4804_v2  ;;  %v5786_v3 = vpop.xlane.xlu1 %5785 }
 0x667   : > { %v6624_v47 = vadd.f32 1.0, %v8213_v5  ;;  %v7475_v8 = vmul.f32 -1.442695, %v6114_v26  ;;  %v6115_v10 = vadd.f32 %v13080_v55, %v5786_v3  ;;  %v7847_v34 = vpop.f32.mrb[108].mxu0  ;;  %v13287_v26 = vld [vmem:[#allocation2] ss:$0 sm:$0xff] }
 0x668   : > { %8218 = vrcp.f32 %v6623_v16  ;;  %5872 = vadd.xlane.f32.xlu0 %v5871_v28  ;;  %v4553_v20 = vadd.f32 %v13185_v22, %v7847_v34  ;;  %v4544_v19 = vpop.f32.mrb[109].mxu0  ;;  %v5789_v9 = vpop.xlane.xlu0 %5788 }
 0x669   : > { %8220 = vpow2.f32 %v7474_v24  ;;  %v7476_v61 = vmul.f32 -1.442695, %v6115_v10  ;;  %v4545_v48 = vadd.f32 %v13185_v22, %v4544_v19  ;;  %v7848_v58 = vpop.f32.mrb[110].mxu0  ;;  %v6116_v51 = vadd.f32 %v13080_v55, %v5789_v9 }
 0x66a   : > { %8222 = vrcp.f32 %v6624_v47  ;;  %v4556_v30 = vadd.f32 %v13185_v22, %v7848_v58  ;;  %v4547_v27 = vpop.f32.mrb[111].mxu0  ;;  %v4733_v45 = vmax.f32 %v4553_v20, 0.0 }
 0x66b   : > { %8224 = vpow2.f32 %v7475_v8  ;;  %v7477_v38 = vmul.f32 -1.442695, %v6116_v51  ;;  %v4548_v46 = vadd.f32 %v13185_v22, %v4547_v27  ;;  %v4731_v42 = vmax.f32 %v4545_v48, 0.0 }
 0x66c   : > { %8226 = vpow2.f32 %v7476_v61  ;;  %v4734_v60 = vmax.f32 %v4556_v30, 0.0  ;;  %v7943_v40 = vpop.f32.mrb[60].mxu1 }
 0x66d   : > { %v8215_v29 = vpop.eup %8214  ;;  %8228 = vpow2.f32 %v7477_v38  ;;  %v4732_v25 = vmax.f32 %v4548_v46, 0.0  ;;  %v5169_v55 = vadd.f32 %v13104_v7, %v7943_v40  ;;  %v5160_v6 = vpop.f32.mrb[61].mxu1 }
 0x66e   : > { %7006 = vst.msk [vmem:[%s13130_s30 + $0xc0] sm:$0xff] %vm6981_vm3, %v8215_v29  ;;  %v4806_v4 = vpack.c.bf16 %v4734_v60, %v4733_v45  ;;  %v5161_v35 = vadd.f32 %v13104_v7, %v5160_v6  ;;  %v7944_v49 = vpop.f32.mrb[62].mxu1 }
 0x66f   : > { %v4805_v54 = vpack.c.bf16 %v4732_v25, %v4731_v42  ;;  %v5493_v32 = vmax.f32 %v5169_v55, 0.0  ;;  %v5172_v11 = vadd.f32 %v13104_v7, %v7944_v49  ;;  %v5163_v59 = vpop.f32.mrb[63].mxu1 }
 0x670   : > { %v8217_v1 = vpop.eup %8216  ;;  %v5491_v21 = vmax.f32 %v5161_v35, 0.0  ;;  %v5164_v41 = vadd.f32 %v13104_v7, %v5163_v59 }
 0x671   : > { %7007 = vst.msk [vmem:[%s13130_s30 + $0xc8] sm:$0xff] %vm6981_vm3, %v8217_v1  ;;  %7989 = vmatprep.mubr.bf16.mxu1 %v4805_v54  ;;  %v5494_v39 = vmax.f32 %v5172_v11, 0.0  ;;  %v5628_v52 = vmul.f32 %v13114_v17, %v5493_v32 }
 0x672   : > { %v8219_v18 = vpop.eup %8218  ;;  %v5626_v56 = vmul.f32 %v13114_v17, %v5491_v21  ;;  %v5492_v62 = vmax.f32 %v5164_v41, 0.0  ;;  %7990 = vmatmul.mubr.bf16.gmra.mrb[108].mxu1 %v4806_v4  ;;  %v13305_v21 = vld [vmem:[#allocation8] ss:$0 sm:$0xff] }
 0x673   : > { %v8221_v44 = vpop.eup %8220  ;;  %7008 = vst.msk [vmem:[%s13130_s30 + $0xd0] sm:$0xff] %vm6981_vm3, %v8219_v18  ;;  %v7851_v0 = vpop.f32.mrb[112].mxu0  ;;  %v5629_v31 = vmul.f32 %v13114_v17, %v5494_v39  ;;  %v5880_v28 = vsel %vm3685_vm1, %v5628_v52, 0.0 }
 0x674   : > { %v8223_v36 = vpop.eup %8222  ;;  %v6625_v53 = vadd.f32 1.0, %v8221_v44  ;;  %v5627_v13 = vmul.f32 %v13114_v17, %v5492_v62  ;;  %v4569_v50 = vadd.f32 %v13185_v22, %v7851_v0  ;;  %v4560_v23 = vpop.f32.mrb[113].mxu0  ;;  %v5874_v15 = vsel %vm3685_vm1, %v5626_v56, 0.0 }
 0x675   : > { %v8225_v43 = vpop.eup %8224  ;;  %7009 = vst.msk [vmem:[%s13130_s30 + $0xd8] sm:$0xff] %vm6981_vm3, %v8223_v36  ;;  %v4561_v14 = vadd.f32 %v13185_v22, %v4560_v23  ;;  %v7852_v63 = vpop.f32.mrb[114].mxu0  ;;  %5875 = vadd.xlane.f32.xlu1 %v5874_v15  ;;  %v5883_v30 = vsel %vm3685_vm1, %v5629_v31, 0.0 }
 0x676   : > { %8230 = vrcp.f32 %v6625_v53  ;;  %v6626_v37 = vadd.f32 1.0, %v8225_v43  ;;  %v8227_v2 = vpop.eup %8226  ;;  %v4572_v16 = vadd.f32 %v13185_v22, %v7852_v63  ;;  %v4563_v57 = vpop.f32.mrb[115].mxu0  ;;  %v5877_v3 = vsel %vm3685_vm1, %v5627_v13, 0.0 }
 0x677   : > { %v6627_v12 = vadd.f32 1.0, %v8227_v2  ;;  %v5792_v33 = vpop.xlane.xlu1 %5791  ;;  %v8229_v5 = vpop.eup %8228  ;;  %v4564_v24 = vadd.f32 %v13185_v22, %v4563_v57  ;;  %v4737_v10 = vmax.f32 %v4569_v50, 0.0  ;;  %5878 = vadd.xlane.f32.xlu0 %v5877_v3  ;;  %v4735_v19 = vmax.f32 %v4561_v14, 0.0  ;;  %v13314_v2 = vld [vmem:[#allocation10] ss:$0 sm:$0xff] }
 0x678   : > { %8232 = vrcp.f32 %v6626_v37  ;;  %v6117_v47 = vadd.f32 %v13287_v26, %v5792_v33  ;;  %v6628_v8 = vadd.f32 1.0, %v8229_v5  ;;  %v4738_v34 = vmax.f32 %v4572_v16, 0.0  ;;  %v5795_v20 = vpop.xlane.xlu0 %5794 }
 0x679   : > { %8234 = vrcp.f32 %v6627_v12  ;;  %v4736_v9 = vmax.f32 %v4564_v24, 0.0  ;;  %v6118_v48 = vadd.f32 %v13287_v26, %v5795_v20  ;;  %5881 = vadd.xlane.f32.xlu1 %v5880_v28 }
 0x67a   : > { %v7478_v61 = vmul.f32 -1.442695, %v6117_v47  ;;  %8236 = vrcp.f32 %v6628_v8  ;;  %v4808_v58 = vpack.c.bf16 %v4738_v34, %v4737_v10 }
 0x67b   : > { %v5798_v51 = vpop.xlane.xlu1 %5797  ;;  %v4807_v27 = vpack.c.bf16 %v4736_v9, %v4735_v19  ;;  %v7479_v38 = vmul.f32 -1.442695, %v6118_v48  ;;  %5884 = vadd.xlane.f32.xlu0 %v5883_v30 }
 0x67c   : > { %8238 = vpow2.f32 %v7478_v61  ;;  %v6119_v46 = vadd.f32 %v13287_v26, %v5798_v51  ;;  %v5801_v29 = vpop.xlane.xlu0 %5800 }
 0x67d   : > { %8240 = vpow2.f32 %v7479_v38  ;;  %7993 = vmatprep.mubr.bf16.mxu1 %v4807_v27  ;;  %v6120_v60 = vadd.f32 %v13287_v26, %v5801_v29 }
 0x67e   : > { %v7480_v45 = vmul.f32 -1.442695, %v6119_v46  ;;  %7994 = vmatmul.mubr.bf16.gmra.mrb[112].mxu1 %v4808_v58 }
 0x67f   : > { %v7481_v42 = vmul.f32 -1.442695, %v6120_v60 }
 0x680   : > { %v8231_v40 = vpop.eup %8230  ;;  %8242 = vpow2.f32 %v7480_v45  ;;  %v7947_v55 = vpop.f32.mrb[64].mxu1 }
 0x681   : > { %7010 = vst.msk [vmem:[%s13130_s30 + $0xe0] sm:$0xff] %vm6981_vm3, %v8231_v40  ;;  %8244 = vpow2.f32 %v7481_v42  ;;  %v5185_v6 = vadd.f32 %v13104_v7, %v7947_v55  ;;  %v5176_v1 = vpop.f32.mrb[65].mxu1 }
 0x682   : > { %v8233_v25 = vpop.eup %8232  ;;  %v5177_v35 = vadd.f32 %v13104_v7, %v5176_v1  ;;  %v7948_v49 = vpop.f32.mrb[66].mxu1 }
 0x683   : > { %7011 = vst.msk [vmem:[%s13130_s30 + $0xe8] sm:$0xff] %vm6981_vm3, %v8233_v25  ;;  %v8235_v4 = vpop.eup %8234  ;;  %v5188_v54 = vadd.f32 %v13104_v7, %v7948_v49  ;;  %v5179_v32 = vpop.f32.mrb[67].mxu1  ;;  %v5497_v59 = vmax.f32 %v5185_v6, 0.0 }
 0x684   : > { %7012 = vst.msk [vmem:[%s13130_s30 + $0xf0] sm:$0xff] %vm6981_vm3, %v8235_v4  ;;  %v8237_v11 = vpop.eup %8236  ;;  %v5495_v18 = vmax.f32 %v5177_v35, 0.0  ;;  %v5180_v41 = vadd.f32 %v13305_v21, %v5179_v32  ;;  %v7855_v44 = vpop.f32.mrb[116].mxu0 }
 0x685   : > { %7013 = vst.msk [vmem:[%s13130_s30 + $0xf8] sm:$0xff] %vm6981_vm3, %v8237_v11  ;;  %v4585_v53 = vadd.f32 %v13185_v22, %v7855_v44  ;;  %v4576_v56 = vpop.f32.mrb[117].mxu0  ;;  %v5498_v43 = vmax.f32 %v5188_v54, 0.0  ;;  %v5632_v14 = vmul.f32 %v13314_v2, %v5497_v59 }
 0x686   : > { %v8239_v36 = vpop.eup %8238  ;;  %v5630_v62 = vmul.f32 %v13114_v17, %v5495_v18  ;;  %v5496_v7 = vmax.f32 %v5180_v41, 0.0  ;;  %v7856_v52 = vpop.f32.mrb[118].mxu0  ;;  %v4577_v37 = vadd.f32 %v13185_v22, %v4576_v56 }
 0x687   : > { %v6629_v39 = vadd.f32 1.0, %v8239_v36  ;;  %v8241_v0 = vpop.eup %8240  ;;  %v4588_v13 = vadd.f32 %v13185_v22, %v7856_v52  ;;  %v4579_v50 = vpop.f32.mrb[119].mxu0  ;;  %v4741_v12 = vmax.f32 %v4585_v53, 0.0  ;;  %v5633_v33 = vmul.f32 %v13314_v2, %v5498_v43 }
 0x688   : > { %v6630_v23 = vadd.f32 1.0, %v8241_v0  ;;  %v5631_v63 = vmul.f32 %v13314_v2, %v5496_v7  ;;  %v4580_v31 = vadd.f32 %v13185_v22, %v4579_v50  ;;  %v5886_v16 = vsel %vm3685_vm1, %v5630_v62, 0.0 }
 0x689   : > { %8246 = vrcp.f32 %v6629_v39  ;;  %v4742_v17 = vmax.f32 %v4588_v13, 0.0  ;;  %5887 = vadd.xlane.f32.xlu1 %v5886_v16  ;;  %v4739_v3 = vmax.f32 %v4577_v37, 0.0  ;;  %v5892_v48 = vsel %vm3685_vm1, %v5632_v14, 0.0 }
 0x68a   : > { %v8243_v15 = vpop.eup %8242  ;;  %8248 = vrcp.f32 %v6630_v23  ;;  %v5804_v5 = vpop.xlane.xlu1 %5803  ;;  %v5889_v24 = vsel %vm3685_vm1, %v5631_v63, 0.0  ;;  %v4740_v8 = vmax.f32 %v4580_v31, 0.0  ;;  %v5895_v51 = vsel %vm3685_vm1, %v5633_v33, 0.0 }
 0x68b   : > { %v6631_v57 = vadd.f32 1.0, %v8243_v15  ;;  %v8245_v47 = vpop.eup %8244  ;;  %v4810_v28 = vpack.c.bf16 %v4742_v17, %v4741_v12  ;;  %v6121_v10 = vadd.f32 %v13287_v26, %v5804_v5  ;;  %5890 = vadd.xlane.f32.xlu0 %v5889_v24 }
 0x68c   : > { %v6632_v34 = vadd.f32 1.0, %v8245_v47  ;;  %v5807_v20 = vpop.xlane.xlu0 %5806  ;;  %v4809_v19 = vpack.c.bf16 %v4740_v8, %v4739_v3 }
 0x68d   : > { %8250 = vrcp.f32 %v6631_v57  ;;  %v7482_v9 = vmul.f32 -1.442695, %v6121_v10  ;;  %v6122_v61 = vadd.f32 %v13287_v26, %v5807_v20  ;;  %5893 = vadd.xlane.f32.xlu1 %v5892_v48 }
 0x68e   : > { %8252 = vrcp.f32 %v6632_v34  ;;  %v5810_v58 = vpop.xlane.xlu1 %5809  ;;  %7997 = vmatprep.mubr.bf16.mxu1 %v4809_v19 }
 0x68f   : > { %8254 = vpow2.f32 %v7482_v9  ;;  %v7483_v30 = vmul.f32 -1.442695, %v6122_v61  ;;  %v6123_v27 = vadd.f32 %v13287_v26, %v5810_v58  ;;  %5896 = vadd.xlane.f32.xlu0 %v5895_v51  ;;  %7998 = vmatmul.mubr.bf16.gmra.mrb[116].mxu1 %v4810_v28 }
 0x690   : > { %v5813_v38 = vpop.xlane.xlu0 %5812 }
 0x691   : > { %8256 = vpow2.f32 %v7483_v30  ;;  %v7484_v46 = vmul.f32 -1.442695, %v6123_v27  ;;  %v6124_v29 = vadd.f32 %v13287_v26, %v5813_v38 }
 0x693   : > { %v8247_v45 = vpop.eup %8246  ;;  %8258 = vpow2.f32 %v7484_v46  ;;  %v7485_v60 = vmul.f32 -1.442695, %v6124_v29 }
 0x694   : > { %7014 = vst.msk [vmem:[%s13130_s30 + $0x100] sm:$0xff] %vm6981_vm3, %v8247_v45  ;;  %v8249_v40 = vpop.eup %8248  ;;  %v7951_v42 = vpop.f32.mrb[68].mxu1 }
 0x695   : > { %7015 = vst.msk [vmem:[%s13130_s30 + $0x108] sm:$0xff] %vm6981_vm3, %v8249_v40  ;;  %8260 = vpow2.f32 %v7485_v60  ;;  %v5201_v25 = vadd.f32 %v13305_v21, %v7951_v42  ;;  %v5192_v55 = vpop.f32.mrb[69].mxu1 }
 0x696   : > { %v5193_v1 = vadd.f32 %v13305_v21, %v5192_v55  ;;  %v7952_v4 = vpop.f32.mrb[70].mxu1 }
 0x697   : > { %v8251_v6 = vpop.eup %8250  ;;  %v5204_v35 = vadd.f32 %v13305_v21, %v7952_v4  ;;  %v5195_v49 = vpop.f32.mrb[71].mxu1  ;;  %v5501_v18 = vmax.f32 %v5201_v25, 0.0 }
 0x698   : > { %7016 = vst.msk [vmem:[%s13130_s30 + $0x110] sm:$0xff] %vm6981_vm3, %v8251_v6  ;;  %v8253_v54 = vpop.eup %8252  ;;  %v5499_v32 = vmax.f32 %v5193_v1, 0.0  ;;  %v5196_v11 = vadd.f32 %v13305_v21, %v5195_v49 }
 0x699   : > { %v8255_v59 = vpop.eup %8254  ;;  %7017 = vst.msk [vmem:[%s13130_s30 + $0x118] sm:$0xff] %vm6981_vm3, %v8253_v54  ;;  %v5502_v36 = vmax.f32 %v5204_v35, 0.0  ;;  %v5636_v50 = vmul.f32 %v13314_v2, %v5501_v18 }
 0x69a   : > { %v6633_v41 = vadd.f32 1.0, %v8255_v59  ;;  %v5634_v44 = vmul.f32 %v13314_v2, %v5499_v32  ;;  %v5500_v53 = vmax.f32 %v5196_v11, 0.0  ;;  %v7859_v56 = vpop.f32.mrb[120].mxu0 }
 0x69b   : > { %v8257_v39 = vpop.eup %8256  ;;  %v4601_v62 = vadd.f32 %v13185_v22, %v7859_v56  ;;  %v4592_v43 = vpop.f32.mrb[121].mxu0  ;;  %v5637_v12 = vmul.f32 %v13314_v2, %v5502_v36  ;;  %v5904_v19 = vsel %vm3685_vm1, %v5636_v50, 0.0 }
 0x69c   : > { %8262 = vrcp.f32 %v6633_v41  ;;  %v6634_v7 = vadd.f32 1.0, %v8257_v39  ;;  %v5635_v52 = vmul.f32 %v13314_v2, %v5500_v53  ;;  %v4593_v0 = vadd.f32 %v13185_v22, %v4592_v43  ;;  %v7860_v37 = vpop.f32.mrb[122].mxu0 }
 0x69d   : > { %v8259_v13 = vpop.eup %8258  ;;  %v4604_v23 = vadd.f32 %v13185_v22, %v7860_v37  ;;  %v4595_v14 = vpop.f32.mrb[123].mxu0  ;;  %v5898_v63 = vsel %vm3685_vm1, %v5634_v44, 0.0  ;;  %v4745_v57 = vmax.f32 %v4601_v62, 0.0  ;;  %v5907_v51 = vsel %vm3685_vm1, %v5637_v12, 0.0 }
 0x69e   : > { %8264 = vrcp.f32 %v6634_v7  ;;  %v6635_v15 = vadd.f32 1.0, %v8259_v13  ;;  %v4596_v17 = vadd.f32 %v13185_v22, %v4595_v14  ;;  %5899 = vadd.xlane.f32.xlu1 %v5898_v63  ;;  %v5816_v31 = vpop.xlane.xlu1 %5815  ;;  %v5901_v24 = vsel %vm3685_vm1, %v5635_v52, 0.0 }
 0x69f   : > { %v8261_v16 = vpop.eup %8260  ;;  %v4746_v33 = vmax.f32 %v4604_v23, 0.0  ;;  %v6125_v5 = vadd.f32 %v13287_v26, %v5816_v31  ;;  %v4743_v3 = vmax.f32 %v4593_v0, 0.0  ;;  %5902 = vadd.xlane.f32.xlu0 %v5901_v24 }
 0x6a0   : > { %8266 = vrcp.f32 %v6635_v15  ;;  %v6636_v47 = vadd.f32 1.0, %v8261_v16  ;;  %v4744_v28 = vmax.f32 %v4596_v17, 0.0  ;;  %v5819_v8 = vpop.xlane.xlu0 %5818 }
 0x6a1   : > { %v4812_v10 = vpack.c.bf16 %v4746_v33, %v4745_v57  ;;  %v7486_v34 = vmul.f32 -1.442695, %v6125_v5  ;;  %v6126_v20 = vadd.f32 %v13287_v26, %v5819_v8 }
 0x6a2   : > { %8268 = vrcp.f32 %v6636_v47  ;;  %v4811_v9 = vpack.c.bf16 %v4744_v28, %v4743_v3  ;;  %5905 = vadd.xlane.f32.xlu1 %v5904_v19  ;;  %v5822_v61 = vpop.xlane.xlu1 %5821 }
 0x6a3   : > { %8270 = vpow2.f32 %v7486_v34  ;;  %v7487_v48 = vmul.f32 -1.442695, %v6126_v20  ;;  %v6127_v58 = vadd.f32 %v13287_v26, %v5822_v61  ;;  %5908 = vadd.xlane.f32.xlu0 %v5907_v51 }
 0x6a4   : > { %8001 = vmatprep.mubr.bf16.mxu1 %v4811_v9  ;;  %v5825_v30 = vpop.xlane.xlu0 %5824 }
 0x6a5   : > { %8272 = vpow2.f32 %v7487_v48  ;;  %v7488_v27 = vmul.f32 -1.442695, %v6127_v58  ;;  %8002 = vmatmul.mubr.bf16.gmra.mrb[120].mxu1 %v4812_v10  ;;  %v6128_v38 = vadd.f32 %v13287_v26, %v5825_v30 }
 0x6a6   : > { %v8263_v46 = vpop.eup %8262 }
 0x6a7   : > { %7018 = vst.msk [vmem:[%s13130_s30 + $0x120] sm:$0xff] %vm6981_vm3, %v8263_v46  ;;  %8274 = vpow2.f32 %v7488_v27  ;;  %v7489_v29 = vmul.f32 -1.442695, %v6128_v38 }
 0x6a8   : > { %v8265_v45 = vpop.eup %8264  ;;  %v7955_v60 = vpop.f32.mrb[72].mxu1 }
 0x6a9   : > { %7019 = vst.msk [vmem:[%s13130_s30 + $0x128] sm:$0xff] %vm6981_vm3, %v8265_v45  ;;  %8276 = vpow2.f32 %v7489_v29  ;;  %v5217_v40 = vadd.f32 %v13305_v21, %v7955_v60  ;;  %v5208_v42 = vpop.f32.mrb[73].mxu1 }
 0x6aa   : > { %v8267_v25 = vpop.eup %8266  ;;  %v5209_v55 = vadd.f32 %v13305_v21, %v5208_v42  ;;  %v7956_v6 = vpop.f32.mrb[74].mxu1 }
 0x6ab   : > { %7020 = vst.msk [vmem:[%s13130_s30 + $0x130] sm:$0xff] %vm6981_vm3, %v8267_v25  ;;  %v5505_v1 = vmax.f32 %v5217_v40, 0.0  ;;  %v5220_v4 = vadd.f32 %v13305_v21, %v7956_v6  ;;  %v5211_v35 = vpop.f32.mrb[75].mxu1 }
 0x6ac   : > { %v8269_v49 = vpop.eup %8268  ;;  %v5503_v54 = vmax.f32 %v5209_v55, 0.0  ;;  %v5212_v32 = vadd.f32 %v13305_v21, %v5211_v35 }
 0x6ad   : > { %v8271_v11 = vpop.eup %8270  ;;  %7021 = vst.msk [vmem:[%s13130_s30 + $0x138] sm:$0xff] %vm6981_vm3, %v8269_v49  ;;  %v5506_v41 = vmax.f32 %v5220_v4, 0.0  ;;  %v5640_v53 = vmul.f32 %v13314_v2, %v5505_v1 }
 0x6ae   : > { %v6637_v59 = vadd.f32 1.0, %v8271_v11  ;;  %v5638_v18 = vmul.f32 %v13314_v2, %v5503_v54  ;;  %v5504_v44 = vmax.f32 %v5212_v32, 0.0 }
 0x6af   : > { %v8273_v36 = vpop.eup %8272  ;;  %v5641_v52 = vmul.f32 %v13314_v2, %v5506_v41  ;;  %v5916_v17 = vsel %vm3685_vm1, %v5640_v53, 0.0 }
 0x6b0   : > { %8278 = vrcp.f32 %v6637_v59  ;;  %v6638_v56 = vadd.f32 1.0, %v8273_v36  ;;  %v5639_v39 = vmul.f32 %v13314_v2, %v5504_v44  ;;  %v5910_v62 = vsel %vm3685_vm1, %v5638_v18, 0.0 }
 0x6b1   : > { %v8275_v43 = vpop.eup %8274  ;;  %5911 = vadd.xlane.f32.xlu1 %v5910_v62  ;;  %v5919_v5 = vsel %vm3685_vm1, %v5641_v52, 0.0 }
 0x6b2   : > { %8280 = vrcp.f32 %v6638_v56  ;;  %v6639_v7 = vadd.f32 1.0, %v8275_v43  ;;  %v7863_v0 = vpop.f32.mrb[124].mxu0  ;;  %v5913_v37 = vsel %vm3685_vm1, %v5639_v39, 0.0 }
 0x6b3   : > { %v8277_v13 = vpop.eup %8276  ;;  %v4617_v50 = vadd.f32 %v13185_v22, %v7863_v0  ;;  %v4608_v23 = vpop.f32.mrb[125].mxu0  ;;  %5914 = vadd.xlane.f32.xlu0 %v5913_v37 }
 0x6b4   : > { %8282 = vrcp.f32 %v6639_v7  ;;  %v6640_v14 = vadd.f32 1.0, %v8277_v13  ;;  %v5828_v63 = vpop.xlane.xlu1 %5827  ;;  %v4609_v15 = vadd.f32 %v13185_v22, %v4608_v23  ;;  %v7864_v12 = vpop.f32.mrb[126].mxu0 }
 0x6b5   : > { %v6129_v31 = vadd.f32 %v13287_v26, %v5828_v63  ;;  %v4620_v16 = vadd.f32 %v13185_v22, %v7864_v12  ;;  %v4611_v57 = vpop.f32.mrb[127].mxu0  ;;  %5917 = vadd.xlane.f32.xlu1 %v5916_v17  ;;  %v4749_v24 = vmax.f32 %v4617_v50, 0.0 }
 0x6b6   : > { %8284 = vrcp.f32 %v6640_v14  ;;  %v4612_v33 = vadd.f32 %v13185_v22, %v4611_v57  ;;  %v4747_v28 = vmax.f32 %v4609_v15, 0.0 }
 0x6b7   : > { %v7490_v47 = vmul.f32 -1.442695, %v6129_v31  ;;  %v4750_v3 = vmax.f32 %v4620_v16, 0.0  ;;  %5920 = vadd.xlane.f32.xlu0 %v5919_v5  ;;  %v5831_v10 = vpop.xlane.xlu0 %5830 }
 0x6b8   : > { %v4748_v8 = vmax.f32 %v4612_v33, 0.0  ;;  %v5834_v34 = vpop.xlane.xlu1 %5833  ;;  %v6130_v19 = vadd.f32 %v13287_v26, %v5831_v10 }
 0x6b9   : > { %8286 = vpow2.f32 %v7490_v47  ;;  %v4814_v20 = vpack.c.bf16 %v4750_v3, %v4749_v24  ;;  %v6131_v9 = vadd.f32 %v13287_v26, %v5834_v34 }
 0x6ba   : > { %v8279_v61 = vpop.eup %8278  ;;  %v4813_v22 = vpack.c.bf16 %v4748_v8, %v4747_v28  ;;  %v7491_v48 = vmul.f32 -1.442695, %v6130_v19 }
 0x6bb   : > { %7022 = vst.msk [vmem:[%s13130_s30 + $0x140] sm:$0xff] %vm6981_vm3, %v8279_v61  ;;  %v7492_v58 = vmul.f32 -1.442695, %v6131_v9  ;;  %v5837_v30 = vpop.xlane.xlu0 %5836 }
 0x6bc   : > { %v8281_v51 = vpop.eup %8280  ;;  %8005 = vmatprep.mubr.bf16.mxu1 %v4813_v22  ;;  %v7959_v27 = vpop.f32.mrb[76].mxu1  ;;  %8288 = vpow2.f32 %v7491_v48  ;;  %v6132_v38 = vadd.f32 %v13287_v26, %v5837_v30 }
 0x6bd   : > { %7023 = vst.msk [vmem:[%s13130_s30 + $0x148] sm:$0xff] %vm6981_vm3, %v8281_v51  ;;  %v5233_v46 = vadd.f32 %v13305_v21, %v7959_v27  ;;  %8006 = vmatmul.mubr.bf16.gmra.mrb[124].mxu1 %v4814_v20  ;;  %v5224_v29 = vpop.f32.mrb[77].mxu1  ;;  %8290 = vpow2.f32 %v7492_v58 }
 0x6be   : > { %v8283_v45 = vpop.eup %8282  ;;  %v5225_v60 = vadd.f32 %v13305_v21, %v5224_v29  ;;  %v7960_v40 = vpop.f32.mrb[78].mxu1  ;;  %v7493_v42 = vmul.f32 -1.442695, %v6132_v38 }
 0x6bf   : > { %7024 = vst.msk [vmem:[%s13130_s30 + $0x150] sm:$0xff] %vm6981_vm3, %v8283_v45  ;;  %v5236_v25 = vadd.f32 %v13305_v21, %v7960_v40  ;;  %v5227_v55 = vpop.f32.mrb[79].mxu1  ;;  %v5509_v1 = vmax.f32 %v5233_v46, 0.0 }
 0x6c0   : > { %v8285_v6 = vpop.eup %8284  ;;  %v5507_v4 = vmax.f32 %v5225_v60, 0.0  ;;  %v5228_v35 = vadd.f32 %v13305_v21, %v5227_v55  ;;  %8292 = vpow2.f32 %v7493_v42 }
 0x6c1   : > { %7025 = vst.msk [vmem:[%s13130_s30 + $0x158] sm:$0xff] %vm6981_vm3, %v8285_v6  ;;  %v5510_v54 = vmax.f32 %v5236_v25, 0.0  ;;  %v5644_v18 = vmul.f32 %v13314_v2, %v5509_v1 }
 0x6c2   : > { %v5642_v49 = vmul.f32 %v13314_v2, %v5507_v4  ;;  %v5508_v32 = vmax.f32 %v5228_v35, 0.0 }
 0x6c3   : > { %v8287_v11 = vpop.eup %8286  ;;  %v5645_v36 = vmul.f32 %v13314_v2, %v5510_v54  ;;  %v5928_v43 = vsel %vm3685_vm1, %v5644_v18, 0.0 }
 0x6c4   : > { %v6641_v59 = vadd.f32 1.0, %v8287_v11  ;;  %v5643_v41 = vmul.f32 %v13314_v2, %v5508_v32  ;;  %v5922_v44 = vsel %vm3685_vm1, %v5642_v49, 0.0 }
 0x6c5   : > { %5923 = vadd.xlane.f32.xlu1 %v5922_v44  ;;  %v5931_v52 = vsel %vm3685_vm1, %v5645_v36, 0.0 }
 0x6c6   : > { %8294 = vrcp.f32 %v6641_v59  ;;  %v5925_v53 = vsel %vm3685_vm1, %v5643_v41, 0.0  ;;  %v8289_v56 = vpop.eup %8288 }
 0x6c7   : > { %5926 = vadd.xlane.f32.xlu0 %v5925_v53  ;;  %v8291_v39 = vpop.eup %8290  ;;  %v6642_v62 = vadd.f32 1.0, %v8289_v56 }
 0x6c8   : > { %v6643_v7 = vadd.f32 1.0, %v8291_v39 }
 0x6c9   : > { %5929 = vadd.xlane.f32.xlu1 %v5928_v43  ;;  %8296 = vrcp.f32 %v6642_v62 }
 0x6ca   : > { %v8293_v0 = vpop.eup %8292  ;;  %8298 = vrcp.f32 %v6643_v7 }
 0x6cb   : > { %5932 = vadd.xlane.f32.xlu0 %v5931_v52  ;;  %v6644_v37 = vadd.f32 1.0, %v8293_v0 }
 0x6cd   : > { %v5840_v13 = vpop.xlane.xlu1 %5839  ;;  %8300 = vrcp.f32 %v6644_v37 }
 0x6ce   : > { %v6133_v50 = vadd.f32 %v13287_v26, %v5840_v13  ;;  %v5843_v23 = vpop.xlane.xlu0 %5842 }
 0x6cf   : > { %v6134_v14 = vadd.f32 %v13287_v26, %v5843_v23 }
 0x6d0   : > { %v8295_v63 = vpop.eup %8294  ;;  %v7494_v15 = vmul.f32 -1.442695, %v6133_v50  ;;  %v7963_v12 = vpop.f32.mrb[80].mxu1 }
 0x6d1   : > { %7026 = vst.msk [vmem:[%s13130_s30 + $0x160] sm:$0xff] %vm6981_vm3, %v8295_v63  ;;  %v7495_v17 = vmul.f32 -1.442695, %v6134_v14  ;;  %v5846_v31 = vpop.xlane.xlu1 %5845  ;;  %v5249_v16 = vadd.f32 %v13305_v21, %v7963_v12  ;;  %v5240_v57 = vpop.f32.mrb[81].mxu1 }
 0x6d2   : > { %8302 = vpow2.f32 %v7494_v15  ;;  %v6135_v33 = vadd.f32 %v13287_v26, %v5846_v31  ;;  %v5849_v5 = vpop.xlane.xlu0 %5848  ;;  %v5241_v24 = vadd.f32 %v13305_v21, %v5240_v57  ;;  %v7964_v47 = vpop.f32.mrb[82].mxu1 }
 0x6d3   : > { %8304 = vpow2.f32 %v7495_v17  ;;  %v6136_v3 = vadd.f32 %v13287_v26, %v5849_v5  ;;  %v5252_v28 = vadd.f32 %v13305_v21, %v7964_v47  ;;  %v5243_v8 = vpop.f32.mrb[83].mxu1  ;;  %v8297_v10 = vpop.eup %8296  ;;  %v5513_v20 = vmax.f32 %v5249_v16, 0.0 }
 0x6d4   : > { %v7496_v34 = vmul.f32 -1.442695, %v6135_v33  ;;  %v5511_v19 = vmax.f32 %v5241_v24, 0.0  ;;  %v5244_v9 = vadd.f32 %v13305_v21, %v5243_v8  ;;  %v8299_v61 = vpop.eup %8298  ;;  %7027 = vst.msk [vmem:[%s13130_s30 + $0x168] sm:$0xff] %vm6981_vm3, %v8297_v10 }
 0x6d5   : > { %v7497_v22 = vmul.f32 -1.442695, %v6136_v3  ;;  %7028 = vst.msk [vmem:[%s13130_s30 + $0x170] sm:$0xff] %vm6981_vm3, %v8299_v61  ;;  %v5514_v58 = vmax.f32 %v5252_v28, 0.0  ;;  %v5648_v27 = vmul.f32 %v13314_v2, %v5513_v20 }
 0x6d6   : > { %8306 = vpow2.f32 %v7496_v34  ;;  %v5646_v48 = vmul.f32 %v13314_v2, %v5511_v19  ;;  %v5512_v51 = vmax.f32 %v5244_v9, 0.0 }
 0x6d7   : > { %8308 = vpow2.f32 %v7497_v22  ;;  %v8301_v30 = vpop.eup %8300  ;;  %v5649_v29 = vmul.f32 %v13314_v2, %v5514_v58  ;;  %v5940_v40 = vsel %vm3685_vm1, %v5648_v27, 0.0 }
 0x6d8   : > { %v5647_v38 = vmul.f32 %v13314_v2, %v5512_v51  ;;  %v5934_v46 = vsel %vm3685_vm1, %v5646_v48, 0.0  ;;  %7029 = vst.msk [vmem:[%s13130_s30 + $0x178] sm:$0xff] %vm6981_vm3, %v8301_v30 }
 0x6d9   : > { %5935 = vadd.xlane.f32.xlu1 %v5934_v46  ;;  %v5943_v4 = vsel %vm3685_vm1, %v5649_v29, 0.0 }
 0x6da   : > { %v5937_v45 = vsel %vm3685_vm1, %v5647_v38, 0.0 }
 0x6db   : > { %5938 = vadd.xlane.f32.xlu0 %v5937_v45 }
 0x6dc   : > { %v8303_v60 = vpop.eup %8302 }
 0x6dd   : > { %v8305_v42 = vpop.eup %8304  ;;  %v6645_v25 = vadd.f32 1.0, %v8303_v60  ;;  %5941 = vadd.xlane.f32.xlu1 %v5940_v40 }
 0x6de   : > { %v5852_v55 = vpop.xlane.xlu1 %5851  ;;  %v6646_v6 = vadd.f32 1.0, %v8305_v42 }
 0x6df   : > { %v6137_v1 = vadd.f32 %v13287_v26, %v5852_v55  ;;  %8310 = vrcp.f32 %v6645_v25  ;;  %5944 = vadd.xlane.f32.xlu0 %v5943_v4 }
 0x6e0   : > { %v5855_v35 = vpop.xlane.xlu0 %5854  ;;  %v8307_v49 = vpop.eup %8306  ;;  %8312 = vrcp.f32 %v6646_v6 }
 0x6e1   : > { %v7498_v54 = vmul.f32 -1.442695, %v6137_v1  ;;  %v6138_v32 = vadd.f32 %v13287_v26, %v5855_v35  ;;  %v8309_v11 = vpop.eup %8308  ;;  %v6647_v59 = vadd.f32 1.0, %v8307_v49 }
 0x6e2   : > { %v5858_v18 = vpop.xlane.xlu1 %5857  ;;  %v6648_v41 = vadd.f32 1.0, %v8309_v11 }
 0x6e3   : > { %8314 = vpow2.f32 %v7498_v54  ;;  %v7499_v44 = vmul.f32 -1.442695, %v6138_v32  ;;  %v6139_v36 = vadd.f32 %v13287_v26, %v5858_v18  ;;  %v7967_v56 = vpop.f32.mrb[84].mxu1 }
 0x6e4   : > { %8316 = vrcp.f32 %v6647_v59  ;;  %v5861_v53 = vpop.xlane.xlu0 %5860  ;;  %v5265_v43 = vadd.f32 %v13305_v21, %v7967_v56  ;;  %v5256_v7 = vpop.f32.mrb[85].mxu1 }
 0x6e5   : > { %8318 = vrcp.f32 %v6648_v41  ;;  %v7500_v39 = vmul.f32 -1.442695, %v6139_v36  ;;  %v6140_v62 = vadd.f32 %v13287_v26, %v5861_v53  ;;  %v5257_v52 = vadd.f32 %v13305_v21, %v5256_v7  ;;  %v7968_v0 = vpop.f32.mrb[86].mxu1 }
 0x6e6   : > { %8320 = vpow2.f32 %v7499_v44  ;;  %v5268_v13 = vadd.f32 %v13305_v21, %v7968_v0  ;;  %v5259_v50 = vpop.f32.mrb[87].mxu1  ;;  %v5517_v23 = vmax.f32 %v5265_v43, 0.0 }
 0x6e7   : > { %8322 = vpow2.f32 %v7500_v39  ;;  %v7501_v37 = vmul.f32 -1.442695, %v6140_v62  ;;  %v5515_v14 = vmax.f32 %v5257_v52, 0.0  ;;  %v5260_v63 = vadd.f32 %v13305_v21, %v5259_v50 }
 0x6e8   : > { %v5518_v17 = vmax.f32 %v5268_v13, 0.0  ;;  %v5652_v57 = vmul.f32 %v13314_v2, %v5517_v23 }
 0x6e9   : > { %8324 = vpow2.f32 %v7501_v37  ;;  %v8311_v15 = vpop.eup %8310  ;;  %v5650_v12 = vmul.f32 %v13314_v2, %v5515_v14  ;;  %v5516_v31 = vmax.f32 %v5260_v63, 0.0 }
 0x6ea   : > { %v8313_v16 = vpop.eup %8312  ;;  %7030 = vst.msk [vmem:[%s13130_s30 + $0x180] sm:$0xff] %vm6981_vm3, %v8311_v15  ;;  %v5653_v28 = vmul.f32 %v13314_v2, %v5518_v17  ;;  %v5952_v9 = vsel %vm3685_vm1, %v5652_v57, 0.0 }
 0x6eb   : > { %7031 = vst.msk [vmem:[%s13130_s30 + $0x188] sm:$0xff] %vm6981_vm3, %v8313_v16  ;;  %v5651_v33 = vmul.f32 %v13314_v2, %v5516_v31  ;;  %v5946_v5 = vsel %vm3685_vm1, %v5650_v12, 0.0 }
 0x6ec   : > { %5947 = vadd.xlane.f32.xlu1 %v5946_v5  ;;  %v5955_v27 = vsel %vm3685_vm1, %v5653_v28, 0.0 }
 0x6ed   : > { %v8315_v24 = vpop.eup %8314  ;;  %v5949_v8 = vsel %vm3685_vm1, %v5651_v33, 0.0 }
 0x6ee   : > { %v8317_v47 = vpop.eup %8316  ;;  %v6649_v3 = vadd.f32 1.0, %v8315_v24  ;;  %v5864_v34 = vpop.xlane.xlu1 %5863  ;;  %5950 = vadd.xlane.f32.xlu0 %v5949_v8 }
 0x6ef   : > { %v8319_v10 = vpop.eup %8318  ;;  %7032 = vst.msk [vmem:[%s13130_s30 + $0x190] sm:$0xff] %vm6981_vm3, %v8317_v47  ;;  %v6141_v19 = vadd.f32 %v13287_v26, %v5864_v34 }
 0x6f0   : > { %v8321_v20 = vpop.eup %8320  ;;  %7033 = vst.msk [vmem:[%s13130_s30 + $0x198] sm:$0xff] %vm6981_vm3, %v8319_v10  ;;  %8326 = vrcp.f32 %v6649_v3  ;;  %5953 = vadd.xlane.f32.xlu1 %v5952_v9 }
 0x6f1   : > { %v8323_v61 = vpop.eup %8322  ;;  %v6650_v22 = vadd.f32 1.0, %v8321_v20  ;;  %v5867_v48 = vpop.xlane.xlu0 %5866  ;;  %v7502_v51 = vmul.f32 -1.442695, %v6141_v19 }
 0x6f2   : > { %v6651_v58 = vadd.f32 1.0, %v8323_v61  ;;  %v6142_v30 = vadd.f32 %v13287_v26, %v5867_v48  ;;  %v5870_v46 = vpop.xlane.xlu1 %5869  ;;  %5956 = vadd.xlane.f32.xlu0 %v5955_v27 }
 0x6f3   : > { %v8325_v38 = vpop.eup %8324  ;;  %8328 = vrcp.f32 %v6650_v22  ;;  %v6143_v60 = vadd.f32 %v13287_v26, %v5870_v46 }
 0x6f4   : > { %8330 = vrcp.f32 %v6651_v58  ;;  %v6652_v29 = vadd.f32 1.0, %v8325_v38  ;;  %v7503_v45 = vmul.f32 -1.442695, %v6142_v30 }
 0x6f5   : > { %8332 = vpow2.f32 %v7502_v51  ;;  %v5873_v40 = vpop.xlane.xlu0 %5872  ;;  %v7504_v42 = vmul.f32 -1.442695, %v6143_v60 }
 0x6f6   : > { %8334 = vrcp.f32 %v6652_v29  ;;  %v6144_v25 = vadd.f32 %v13287_v26, %v5873_v40 }
 0x6f7   : > { %8336 = vpow2.f32 %v7503_v45 }
 0x6f8   : > { %8338 = vpow2.f32 %v7504_v42  ;;  %v7505_v55 = vmul.f32 -1.442695, %v6144_v25 }
 0x6f9   : > { %v7971_v1 = vpop.f32.mrb[88].mxu1 }
 0x6fa   : > { %v8327_v6 = vpop.eup %8326  ;;  %8340 = vpow2.f32 %v7505_v55  ;;  %v5281_v4 = vadd.f32 %v13305_v21, %v7971_v1  ;;  %v5272_v35 = vpop.f32.mrb[89].mxu1  ;;  %v13490_v55 = vld [vmem:[#allocation2] ss:$0 sm:$0xff] }
 0x6fb   : > { %7034 = vst.msk [vmem:[%s13130_s30 + $0x1a0] sm:$0xff] %vm6981_vm3, %v8327_v6  ;;  %v5273_v49 = vadd.f32 %v13305_v21, %v5272_v35  ;;  %v7972_v54 = vpop.f32.mrb[90].mxu1 }
 0x6fc   : > { %v5521_v11 = vmax.f32 %v5281_v4, 0.0  ;;  %v5284_v59 = vadd.f32 %v13305_v21, %v7972_v54  ;;  %v5275_v18 = vpop.f32.mrb[91].mxu1 }
 0x6fd   : > { %v8329_v32 = vpop.eup %8328  ;;  %v5519_v44 = vmax.f32 %v5273_v49, 0.0  ;;  %v5276_v36 = vadd.f32 %v13305_v21, %v5275_v18 }
 0x6fe   : > { %v8331_v41 = vpop.eup %8330  ;;  %7035 = vst.msk [vmem:[%s13130_s30 + $0x1a8] sm:$0xff] %vm6981_vm3, %v8329_v32  ;;  %v5522_v43 = vmax.f32 %v5284_v59, 0.0  ;;  %v5656_v0 = vmul.f32 %v13314_v2, %v5521_v11 }
 0x6ff   : > { %v8333_v53 = vpop.eup %8332  ;;  %7036 = vst.msk [vmem:[%s13130_s30 + $0x1b0] sm:$0xff] %vm6981_vm3, %v8331_v41  ;;  %v5654_v62 = vmul.f32 %v13314_v2, %v5519_v44  ;;  %v5520_v7 = vmax.f32 %v5276_v36, 0.0 }
 0x700   : > { %v8335_v56 = vpop.eup %8334  ;;  %v6653_v39 = vadd.f32 1.0, %v8333_v53  ;;  %v5657_v15 = vmul.f32 %v13314_v2, %v5522_v43  ;;  %v5964_v33 = vsel %vm3685_vm1, %v5656_v0, 0.0 }
 0x701   : > { %v8337_v52 = vpop.eup %8336  ;;  %7037 = vst.msk [vmem:[%s13130_s30 + $0x1b8] sm:$0xff] %vm6981_vm3, %v8335_v56  ;;  %v5655_v50 = vmul.f32 %v13314_v2, %v5520_v7  ;;  %v5958_v23 = vsel %vm3685_vm1, %v5654_v62, 0.0 }
 0x702   : > { %v8339_v37 = vpop.eup %8338  ;;  %8342 = vrcp.f32 %v6653_v39  ;;  %v6654_v13 = vadd.f32 1.0, %v8337_v52  ;;  %5959 = vadd.xlane.f32.xlu1 %v5958_v23  ;;  %v5876_v12 = vpop.xlane.xlu1 %5875  ;;  %v5967_v3 = vsel %vm3685_vm1, %v5657_v15, 0.0 }
 0x703   : > { %v6655_v14 = vadd.f32 1.0, %v8339_v37  ;;  %v5961_v17 = vsel %vm3685_vm1, %v5655_v50, 0.0  ;;  %v6145_v16 = vadd.f32 %v13287_v26, %v5876_v12 }
 0x704   : > { %v8341_v63 = vpop.eup %8340  ;;  %8344 = vrcp.f32 %v6654_v13  ;;  %5962 = vadd.xlane.f32.xlu0 %v5961_v17  ;;  %v5879_v57 = vpop.xlane.xlu0 %5878  ;;  %v13509_v17 = vld [vmem:[#allocation8] ss:$0 sm:$0xff] }
 0x705   : > { %8346 = vrcp.f32 %v6655_v14  ;;  %v6656_v31 = vadd.f32 1.0, %v8341_v63  ;;  %v7506_v5 = vmul.f32 -1.442695, %v6145_v16  ;;  %v6146_v24 = vadd.f32 %v13287_v26, %v5879_v57 }
 0x706   : > { %5965 = vadd.xlane.f32.xlu1 %v5964_v33  ;;  %v5882_v47 = vpop.xlane.xlu1 %5881 }
 0x707   : > { %8348 = vrcp.f32 %v6656_v31  ;;  %v7507_v28 = vmul.f32 -1.442695, %v6146_v24  ;;  %v6147_v8 = vadd.f32 %v13287_v26, %v5882_v47 }
 0x708   : > { %8350 = vpow2.f32 %v7506_v5  ;;  %5968 = vadd.xlane.f32.xlu0 %v5967_v3  ;;  %v5885_v10 = vpop.xlane.xlu0 %5884 }
 0x709   : > { %8352 = vpow2.f32 %v7507_v28  ;;  %v7508_v34 = vmul.f32 -1.442695, %v6147_v8  ;;  %v6148_v20 = vadd.f32 %v13287_v26, %v5885_v10 }
 0x70b   : > { %8354 = vpow2.f32 %v7508_v34  ;;  %v7509_v9 = vmul.f32 -1.442695, %v6148_v20 }
 0x70c   : > { %v8343_v19 = vpop.eup %8342 }
 0x70d   : > { %7038 = vst.msk [vmem:[%s13130_s30 + $0x1c0] sm:$0xff] %vm6981_vm3, %v8343_v19  ;;  %8356 = vpow2.f32 %v7509_v9  ;;  %v13520_v9 = vld [vmem:[#allocation10] ss:$0 sm:$0xff] }
 0x70e   : > { %v8345_v61 = vpop.eup %8344 }
 0x70f   : > { %v8347_v22 = vpop.eup %8346  ;;  %7039 = vst.msk [vmem:[%s13130_s30 + $0x1c8] sm:$0xff] %vm6981_vm3, %v8345_v61 }
 0x710   : > { %7040 = vst.msk [vmem:[%s13130_s30 + $0x1d0] sm:$0xff] %vm6981_vm3, %v8347_v22 }
 0x711   : > { %v8349_v48 = vpop.eup %8348 }
 0x712   : > { %7041 = vst.msk [vmem:[%s13130_s30 + $0x1d8] sm:$0xff] %vm6981_vm3, %v8349_v48  ;;  %v8351_v58 = vpop.eup %8350 }
 0x713   : > { %v6657_v51 = vadd.f32 1.0, %v8351_v58  ;;  %v8353_v30 = vpop.eup %8352 }
 0x714   : > { %v6658_v26 = vadd.f32 1.0, %v8353_v30 }
 0x715   : > { %8358 = vrcp.f32 %v6657_v51  ;;  %v8355_v27 = vpop.eup %8354  ;;  %v7975_v38 = vpop.f32.mrb[92].mxu1 }
 0x716   : > { %8360 = vrcp.f32 %v6658_v26  ;;  %v6659_v46 = vadd.f32 1.0, %v8355_v27  ;;  %v5297_v29 = vadd.f32 %v13305_v21, %v7975_v38  ;;  %v5288_v45 = vpop.f32.mrb[93].mxu1  ;;  %v5888_v60 = vpop.xlane.xlu1 %5887 }
 0x717   : > { %v8357_v40 = vpop.eup %8356  ;;  %v5289_v42 = vadd.f32 %v13305_v21, %v5288_v45  ;;  %v7976_v25 = vpop.f32.mrb[94].mxu1  ;;  %v6149_v6 = vadd.f32 %v13490_v55, %v5888_v60 }
 0x718   : > { %v5891_v1 = vpop.xlane.xlu0 %5890  ;;  %8362 = vrcp.f32 %v6659_v46  ;;  %v6660_v4 = vadd.f32 1.0, %v8357_v40  ;;  %v5525_v35 = vmax.f32 %v5297_v29, 0.0  ;;  %v5300_v49 = vadd.f32 %v13305_v21, %v7976_v25  ;;  %v5291_v54 = vpop.f32.mrb[95].mxu1 }
 0x719   : > { %v5523_v32 = vmax.f32 %v5289_v42, 0.0  ;;  %v5292_v11 = vadd.f32 %v13305_v21, %v5291_v54  ;;  %v7510_v59 = vmul.f32 -1.442695, %v6149_v6  ;;  %v6150_v18 = vadd.f32 %v13490_v55, %v5891_v1 }
 0x71a   : > { %8364 = vrcp.f32 %v6660_v4  ;;  %v5526_v41 = vmax.f32 %v5300_v49, 0.0  ;;  %v5894_v44 = vpop.xlane.xlu1 %5893  ;;  %v5660_v21 = vmul.f32 %v13314_v2, %v5525_v35 }
 0x71b   : > { %v5658_v36 = vmul.f32 %v13314_v2, %v5523_v32  ;;  %v5524_v53 = vmax.f32 %v5292_v11, 0.0  ;;  %8366 = vpow2.f32 %v7510_v59  ;;  %v7511_v56 = vmul.f32 -1.442695, %v6150_v18 }
 0x71c   : > { %v5897_v39 = vpop.xlane.xlu0 %5896  ;;  %v6151_v62 = vadd.f32 %v13490_v55, %v5894_v44  ;;  %v5661_v50 = vmul.f32 %v13314_v2, %v5526_v41  ;;  %v5976_v63 = vsel %vm3685_vm1, %v5660_v21, 0.0 }
 0x71d   : > { %v6152_v43 = vadd.f32 %v13490_v55, %v5897_v39  ;;  %v5659_v7 = vmul.f32 %v13314_v2, %v5524_v53  ;;  %8368 = vpow2.f32 %v7511_v56  ;;  %v5970_v52 = vsel %vm3685_vm1, %v5658_v36, 0.0 }
 0x71e   : > { %5971 = vadd.xlane.f32.xlu1 %v5970_v52  ;;  %v7512_v37 = vmul.f32 -1.442695, %v6151_v62  ;;  %v5979_v2 = vsel %vm3685_vm1, %v5661_v50, 0.0 }
 0x71f   : > { %v8359_v0 = vpop.eup %8358  ;;  %v7513_v13 = vmul.f32 -1.442695, %v6152_v43  ;;  %v5973_v23 = vsel %vm3685_vm1, %v5659_v7, 0.0 }
 0x720   : > { %7042 = vst.msk [vmem:[%s13130_s30 + $0x1e0] sm:$0xff] %vm6981_vm3, %v8359_v0  ;;  %v8361_v14 = vpop.eup %8360  ;;  %8370 = vpow2.f32 %v7512_v37  ;;  %5974 = vadd.xlane.f32.xlu0 %v5973_v23 }
 0x721   : > { %7043 = vst.msk [vmem:[%s13130_s30 + $0x1e8] sm:$0xff] %vm6981_vm3, %v8361_v14  ;;  %8372 = vpow2.f32 %v7513_v13 }
 0x722   : > { %v8363_v12 = vpop.eup %8362  ;;  %5977 = vadd.xlane.f32.xlu1 %v5976_v63 }
 0x723   : > { %v7979_v15 = vpop.f32.mrb[96].mxu1  ;;  %7044 = vst.msk [vmem:[%s13130_s30 + $0x1f0] sm:$0xff] %vm6981_vm3, %v8363_v12 }
 0x724   : > { %v5313_v31 = vadd.f32 %v13509_v17, %v7979_v15  ;;  %v5304_v16 = vpop.f32.mrb[97].mxu1  ;;  %v8365_v5 = vpop.eup %8364  ;;  %5980 = vadd.xlane.f32.xlu0 %v5979_v2 }
 0x725   : > { %v5305_v57 = vadd.f32 %v13509_v17, %v5304_v16  ;;  %v7980_v33 = vpop.f32.mrb[98].mxu1  ;;  %v8367_v3 = vpop.eup %8366  ;;  %7045 = vst.msk [vmem:[%s13130_s30 + $0x1f8] sm:$0xff] %vm6981_vm3, %v8365_v5 }
 0x726   : > { %v5316_v24 = vadd.f32 %v13509_v17, %v7980_v33  ;;  %v5307_v47 = vpop.f32.mrb[99].mxu1  ;;  %v5529_v28 = vmax.f32 %v5313_v31, 0.0  ;;  %v6661_v34 = vadd.f32 1.0, %v8367_v3 }
 0x727   : > { %v5527_v8 = vmax.f32 %v5305_v57, 0.0  ;;  %v5308_v10 = vadd.f32 %v13509_v17, %v5307_v47  ;;  %v8369_v19 = vpop.eup %8368 }
 0x728   : > { %v5530_v20 = vmax.f32 %v5316_v24, 0.0  ;;  %8374 = vrcp.f32 %v6661_v34  ;;  %v6662_v48 = vadd.f32 1.0, %v8369_v19  ;;  %v5664_v58 = vmul.f32 %v13520_v9, %v5529_v28 }
 0x729   : > { %v5662_v61 = vmul.f32 %v13520_v9, %v5527_v8  ;;  %v5528_v22 = vmax.f32 %v5308_v10, 0.0 }
 0x72a   : > { %v8371_v26 = vpop.eup %8370  ;;  %8376 = vrcp.f32 %v6662_v48  ;;  %v5665_v27 = vmul.f32 %v13520_v9, %v5530_v20  ;;  %v5988_v4 = vsel %vm3685_vm1, %v5664_v58, 0.0 }
 0x72b   : > { %v5663_v51 = vmul.f32 %v13520_v9, %v5528_v22  ;;  %v5982_v30 = vsel %vm3685_vm1, %v5662_v61, 0.0  ;;  %v5900_v38 = vpop.xlane.xlu1 %5899  ;;  %v8373_v46 = vpop.eup %8372  ;;  %v6663_v29 = vadd.f32 1.0, %v8371_v26 }
 0x72c   : > { %5983 = vadd.xlane.f32.xlu1 %v5982_v30  ;;  %v6153_v45 = vadd.f32 %v13490_v55, %v5900_v38  ;;  %v6664_v40 = vadd.f32 1.0, %v8373_v46  ;;  %v5903_v42 = vpop.xlane.xlu0 %5902  ;;  %v5991_v32 = vsel %vm3685_vm1, %v5665_v27, 0.0 }
 0x72d   : > { %v5985_v60 = vsel %vm3685_vm1, %v5663_v51, 0.0  ;;  %8378 = vrcp.f32 %v6663_v29  ;;  %v6154_v1 = vadd.f32 %v13490_v55, %v5903_v42 }
 0x72e   : > { %5986 = vadd.xlane.f32.xlu0 %v5985_v60  ;;  %v7514_v25 = vmul.f32 -1.442695, %v6153_v45  ;;  %v7983_v6 = vpop.f32.mrb[100].mxu1  ;;  %8380 = vrcp.f32 %v6664_v40 }
 0x72f   : > { %v5329_v35 = vadd.f32 %v13509_v17, %v7983_v6  ;;  %v5320_v49 = vpop.f32.mrb[101].mxu1  ;;  %v5906_v54 = vpop.xlane.xlu1 %5905  ;;  %v7515_v11 = vmul.f32 -1.442695, %v6154_v1 }
 0x730   : > { %5989 = vadd.xlane.f32.xlu1 %v5988_v4  ;;  %8382 = vpow2.f32 %v7514_v25  ;;  %v5321_v59 = vadd.f32 %v13509_v17, %v5320_v49  ;;  %v6155_v18 = vadd.f32 %v13490_v55, %v5906_v54  ;;  %v7984_v41 = vpop.f32.mrb[102].mxu1  ;;  %v5909_v56 = vpop.xlane.xlu0 %5908 }
 0x731   : > { %v5533_v44 = vmax.f32 %v5329_v35, 0.0  ;;  %v5332_v36 = vadd.f32 %v13509_v17, %v7984_v41  ;;  %v5323_v53 = vpop.f32.mrb[103].mxu1  ;;  %8384 = vpow2.f32 %v7515_v11  ;;  %v6156_v7 = vadd.f32 %v13490_v55, %v5909_v56 }
 0x732   : > { %5992 = vadd.xlane.f32.xlu0 %v5991_v32  ;;  %v5531_v39 = vmax.f32 %v5321_v59, 0.0  ;;  %v7516_v62 = vmul.f32 -1.442695, %v6155_v18  ;;  %v5324_v43 = vadd.f32 %v13509_v17, %v5323_v53  ;;  %v8375_v21 = vpop.eup %8374 }
 0x733   : > { %7046 = vst.msk [vmem:[%s13130_s30 + $0x200] sm:$0xff] %vm6981_vm3, %v8375_v21  ;;  %v5534_v0 = vmax.f32 %v5332_v36, 0.0  ;;  %v7517_v50 = vmul.f32 -1.442695, %v6156_v7  ;;  %v5668_v23 = vmul.f32 %v13520_v9, %v5533_v44 }
 0x734   : > { %v5666_v52 = vmul.f32 %v13520_v9, %v5531_v39  ;;  %8386 = vpow2.f32 %v7516_v62  ;;  %v5532_v37 = vmax.f32 %v5324_v43, 0.0  ;;  %v8377_v13 = vpop.eup %8376 }
 0x735   : > { %7047 = vst.msk [vmem:[%s13130_s30 + $0x208] sm:$0xff] %vm6981_vm3, %v8377_v13  ;;  %8388 = vpow2.f32 %v7517_v50  ;;  %v5669_v12 = vmul.f32 %v13520_v9, %v5534_v0  ;;  %v6000_v5 = vsel %vm3685_vm1, %v5668_v23, 0.0 }
 0x736   : > { %v5667_v14 = vmul.f32 %v13520_v9, %v5532_v37  ;;  %v5994_v63 = vsel %vm3685_vm1, %v5666_v52, 0.0 }
 0x737   : > { %5995 = vadd.xlane.f32.xlu1 %v5994_v63  ;;  %v8379_v15 = vpop.eup %8378  ;;  %v6003_v19 = vsel %vm3685_vm1, %v5669_v12, 0.0 }
 0x738   : > { %v5997_v31 = vsel %vm3685_vm1, %v5667_v14, 0.0  ;;  %v8381_v16 = vpop.eup %8380  ;;  %7048 = vst.msk [vmem:[%s13130_s30 + $0x210] sm:$0xff] %vm6981_vm3, %v8379_v15 }
 0x739   : > { %5998 = vadd.xlane.f32.xlu0 %v5997_v31  ;;  %v7987_v2 = vpop.f32.mrb[104].mxu1  ;;  %7049 = vst.msk [vmem:[%s13130_s30 + $0x218] sm:$0xff] %vm6981_vm3, %v8381_v16 }
 0x73a   : > { %v8383_v57 = vpop.eup %8382  ;;  %v5345_v33 = vadd.f32 %v13509_v17, %v7987_v2  ;;  %v5336_v24 = vpop.f32.mrb[105].mxu1 }
 0x73b   : > { %v6665_v47 = vadd.f32 1.0, %v8383_v57  ;;  %6001 = vadd.xlane.f32.xlu1 %v6000_v5  ;;  %v5337_v3 = vadd.f32 %v13509_v17, %v5336_v24  ;;  %v7988_v28 = vpop.f32.mrb[106].mxu1  ;;  %v8385_v8 = vpop.eup %8384 }
 0x73c   : > { %v5537_v10 = vmax.f32 %v5345_v33, 0.0  ;;  %v5348_v34 = vadd.f32 %v13509_v17, %v7988_v28  ;;  %v5339_v20 = vpop.f32.mrb[107].mxu1  ;;  %v6666_v61 = vadd.f32 1.0, %v8385_v8 }
 0x73d   : > { %8390 = vrcp.f32 %v6665_v47  ;;  %v5535_v22 = vmax.f32 %v5337_v3, 0.0  ;;  %v5340_v48 = vadd.f32 %v13509_v17, %v5339_v20  ;;  %6004 = vadd.xlane.f32.xlu0 %v6003_v19 }
 0x73e   : > { %v8387_v58 = vpop.eup %8386  ;;  %v5538_v51 = vmax.f32 %v5348_v34, 0.0  ;;  %v5912_v30 = vpop.xlane.xlu1 %5911  ;;  %8392 = vrcp.f32 %v6666_v61  ;;  %v5672_v46 = vmul.f32 %v13520_v9, %v5537_v10 }
 0x73f   : > { %v6667_v26 = vadd.f32 1.0, %v8387_v58  ;;  %v5670_v27 = vmul.f32 %v13520_v9, %v5535_v22  ;;  %v5536_v38 = vmax.f32 %v5340_v48, 0.0  ;;  %v6157_v29 = vadd.f32 %v13490_v55, %v5912_v30  ;;  %v8389_v60 = vpop.eup %8388 }
 0x740   : > { %v5915_v45 = vpop.xlane.xlu0 %5914  ;;  %v6668_v6 = vadd.f32 1.0, %v8389_v60  ;;  %v5673_v35 = vmul.f32 %v13520_v9, %v5538_v51  ;;  %v6012_v44 = vsel %vm3685_vm1, %v5672_v46, 0.0 }
 0x741   : > { %8394 = vrcp.f32 %v6667_v26  ;;  %v5671_v40 = vmul.f32 %v13520_v9, %v5536_v38  ;;  %v6158_v42 = vadd.f32 %v13490_v55, %v5915_v45  ;;  %v6006_v25 = vsel %vm3685_vm1, %v5670_v27, 0.0 }
 0x742   : > { %v7518_v1 = vmul.f32 -1.442695, %v6157_v29  ;;  %6007 = vadd.xlane.f32.xlu1 %v6006_v25  ;;  %v5918_v4 = vpop.xlane.xlu1 %5917  ;;  %8396 = vrcp.f32 %v6668_v6  ;;  %v6015_v21 = vsel %vm3685_vm1, %v5673_v35, 0.0 }
 0x743   : > { %v7519_v49 = vmul.f32 -1.442695, %v6158_v42  ;;  %v6159_v54 = vadd.f32 %v13490_v55, %v5918_v4  ;;  %v6009_v32 = vsel %vm3685_vm1, %v5671_v40, 0.0 }
 0x744   : > { %6010 = vadd.xlane.f32.xlu0 %v6009_v32  ;;  %v5921_v11 = vpop.xlane.xlu0 %5920  ;;  %8398 = vpow2.f32 %v7518_v1 }
 0x745   : > { %v7520_v59 = vmul.f32 -1.442695, %v6159_v54  ;;  %v7991_v18 = vpop.f32.mrb[108].mxu1  ;;  %v6160_v41 = vadd.f32 %v13490_v55, %v5921_v11  ;;  %8400 = vpow2.f32 %v7519_v49 }
 0x746   : > { %v5361_v36 = vadd.f32 %v13509_v17, %v7991_v18  ;;  %6013 = vadd.xlane.f32.xlu1 %v6012_v44  ;;  %v5352_v53 = vpop.f32.mrb[109].mxu1 }
 0x747   : > { %v8391_v56 = vpop.eup %8390  ;;  %8402 = vpow2.f32 %v7520_v59  ;;  %v7521_v39 = vmul.f32 -1.442695, %v6160_v41  ;;  %v5353_v62 = vadd.f32 %v13509_v17, %v5352_v53  ;;  %v7992_v43 = vpop.f32.mrb[110].mxu1 }
 0x748   : > { %7050 = vst.msk [vmem:[%s13130_s30 + $0x220] sm:$0xff] %vm6981_vm3, %v8391_v56  ;;  %v5364_v7 = vadd.f32 %v13509_v17, %v7992_v43  ;;  %v5355_v52 = vpop.f32.mrb[111].mxu1  ;;  %6016 = vadd.xlane.f32.xlu0 %v6015_v21  ;;  %v8393_v0 = vpop.eup %8392  ;;  %v5541_v37 = vmax.f32 %v5361_v36, 0.0 }
 0x749   : > { %8404 = vpow2.f32 %v7521_v39  ;;  %v5539_v13 = vmax.f32 %v5353_v62, 0.0  ;;  %v5356_v50 = vadd.f32 %v13509_v17, %v5355_v52  ;;  %7051 = vst.msk [vmem:[%s13130_s30 + $0x228] sm:$0xff] %vm6981_vm3, %v8393_v0 }
 0x74a   : > { %v5542_v63 = vmax.f32 %v5364_v7, 0.0  ;;  %v5676_v12 = vmul.f32 %v13520_v9, %v5541_v37 }
 0x74b   : > { %v8395_v23 = vpop.eup %8394  ;;  %v5674_v14 = vmul.f32 %v13520_v9, %v5539_v13  ;;  %v5540_v15 = vmax.f32 %v5356_v50, 0.0 }
 0x74c   : > { %7052 = vst.msk [vmem:[%s13130_s30 + $0x230] sm:$0xff] %vm6981_vm3, %v8395_v23  ;;  %v8397_v2 = vpop.eup %8396  ;;  %v5677_v33 = vmul.f32 %v13520_v9, %v5542_v63  ;;  %v6024_v10 = vsel %vm3685_vm1, %v5676_v12, 0.0 }
 0x74d   : > { %v5675_v31 = vmul.f32 %v13520_v9, %v5540_v15  ;;  %v6018_v16 = vsel %vm3685_vm1, %v5674_v14, 0.0  ;;  %7053 = vst.msk [vmem:[%s13130_s30 + $0x238] sm:$0xff] %vm6981_vm3, %v8397_v2 }
 0x74e   : > { %6019 = vadd.xlane.f32.xlu1 %v6018_v16  ;;  %v8399_v57 = vpop.eup %8398  ;;  %v6027_v30 = vsel %vm3685_vm1, %v5677_v33, 0.0 }
 0x74f   : > { %v6021_v5 = vsel %vm3685_vm1, %v5675_v31, 0.0  ;;  %v8401_v24 = vpop.eup %8400  ;;  %v6669_v47 = vadd.f32 1.0, %v8399_v57 }
 0x750   : > { %6022 = vadd.xlane.f32.xlu0 %v6021_v5  ;;  %v6670_v28 = vadd.f32 1.0, %v8401_v24 }
 0x751   : > { %v8403_v3 = vpop.eup %8402  ;;  %v7995_v8 = vpop.f32.mrb[112].mxu1  ;;  %8406 = vrcp.f32 %v6669_v47 }
 0x752   : > { %v6671_v34 = vadd.f32 1.0, %v8403_v3  ;;  %v5377_v20 = vadd.f32 %v13509_v17, %v7995_v8  ;;  %6025 = vadd.xlane.f32.xlu1 %v6024_v10  ;;  %v5368_v19 = vpop.f32.mrb[113].mxu1  ;;  %v5924_v61 = vpop.xlane.xlu1 %5923  ;;  %8408 = vrcp.f32 %v6670_v28 }
 0x753   : > { %v8405_v22 = vpop.eup %8404  ;;  %v5369_v48 = vadd.f32 %v13509_v17, %v5368_v19  ;;  %v6161_v58 = vadd.f32 %v13490_v55, %v5924_v61  ;;  %v7996_v51 = vpop.f32.mrb[114].mxu1 }
 0x754   : > { %8410 = vrcp.f32 %v6671_v34  ;;  %v6672_v26 = vadd.f32 1.0, %v8405_v22  ;;  %v5545_v27 = vmax.f32 %v5377_v20, 0.0  ;;  %v5380_v38 = vadd.f32 %v13509_v17, %v7996_v51  ;;  %v5371_v46 = vpop.f32.mrb[115].mxu1  ;;  %6028 = vadd.xlane.f32.xlu0 %v6027_v30  ;;  %v5927_v29 = vpop.xlane.xlu0 %5926 }
 0x755   : > { %v5543_v45 = vmax.f32 %v5369_v48, 0.0  ;;  %v7522_v60 = vmul.f32 -1.442695, %v6161_v58  ;;  %v5372_v40 = vadd.f32 %v13509_v17, %v5371_v46  ;;  %v6162_v42 = vadd.f32 %v13490_v55, %v5927_v29 }
 0x756   : > { %8412 = vrcp.f32 %v6672_v26  ;;  %v5546_v25 = vmax.f32 %v5380_v38, 0.0  ;;  %v5930_v6 = vpop.xlane.xlu1 %5929  ;;  %v5680_v49 = vmul.f32 %v13520_v9, %v5545_v27 }
 0x757   : > { %v5678_v1 = vmul.f32 %v13520_v9, %v5543_v45  ;;  %8414 = vpow2.f32 %v7522_v60  ;;  %v5544_v4 = vmax.f32 %v5372_v40, 0.0  ;;  %v7523_v35 = vmul.f32 -1.442695, %v6162_v42 }
 0x758   : > { %v6163_v54 = vadd.f32 %v13490_v55, %v5930_v6  ;;  %v5933_v32 = vpop.xlane.xlu0 %5932  ;;  %v5681_v44 = vmul.f32 %v13520_v9, %v5546_v25  ;;  %v6036_v62 = vsel %vm3685_vm1, %v5680_v49, 0.0 }
 0x759   : > { %v5679_v11 = vmul.f32 %v13520_v9, %v5544_v4  ;;  %8416 = vpow2.f32 %v7523_v35  ;;  %v6164_v59 = vadd.f32 %v13490_v55, %v5933_v32  ;;  %v6030_v18 = vsel %vm3685_vm1, %v5678_v1, 0.0 }
 0x75a   : > { %v7524_v41 = vmul.f32 -1.442695, %v6163_v54  ;;  %6031 = vadd.xlane.f32.xlu1 %v6030_v18  ;;  %v6039_v21 = vsel %vm3685_vm1, %v5681_v44, 0.0 }
 0x75b   : > { %v7525_v36 = vmul.f32 -1.442695, %v6164_v59  ;;  %v6033_v53 = vsel %vm3685_vm1, %v5679_v11, 0.0  ;;  %v8407_v56 = vpop.eup %8406 }
 0x75c   : > { %8418 = vpow2.f32 %v7524_v41  ;;  %6034 = vadd.xlane.f32.xlu0 %v6033_v53  ;;  %v8409_v39 = vpop.eup %8408  ;;  %7054 = vst.msk [vmem:[%s13130_s30 + $0x240] sm:$0xff] %vm6981_vm3, %v8407_v56 }
 0x75d   : > { %8420 = vpow2.f32 %v7525_v36  ;;  %7055 = vst.msk [vmem:[%s13130_s30 + $0x248] sm:$0xff] %vm6981_vm3, %v8409_v39 }
 0x75e   : > { %v8411_v43 = vpop.eup %8410  ;;  %6037 = vadd.xlane.f32.xlu1 %v6036_v62 }
 0x75f   : > { %7056 = vst.msk [vmem:[%s13130_s30 + $0x250] sm:$0xff] %vm6981_vm3, %v8411_v43 }
 0x760   : > { %v8413_v7 = vpop.eup %8412  ;;  %6040 = vadd.xlane.f32.xlu0 %v6039_v21 }
 0x761   : > { %v8415_v52 = vpop.eup %8414  ;;  %7057 = vst.msk [vmem:[%s13130_s30 + $0x258] sm:$0xff] %vm6981_vm3, %v8413_v7 }
 0x762   : > { %v6673_v0 = vadd.f32 1.0, %v8415_v52  ;;  %v7999_v13 = vpop.f32.mrb[116].mxu1 }
 0x763   : > { %v8417_v37 = vpop.eup %8416  ;;  %v5393_v23 = vadd.f32 %v13509_v17, %v7999_v13  ;;  %v5384_v14 = vpop.f32.mrb[117].mxu1 }
 0x764   : > { %8422 = vrcp.f32 %v6673_v0  ;;  %v6674_v50 = vadd.f32 1.0, %v8417_v37  ;;  %v5385_v63 = vadd.f32 %v13509_v17, %v5384_v14  ;;  %v8000_v15 = vpop.f32.mrb[118].mxu1 }
 0x765   : > { %v5549_v31 = vmax.f32 %v5393_v23, 0.0  ;;  %v5396_v16 = vadd.f32 %v13509_v17, %v8000_v15  ;;  %v5387_v57 = vpop.f32.mrb[119].mxu1 }
 0x766   : > { %v8419_v12 = vpop.eup %8418  ;;  %8424 = vrcp.f32 %v6674_v50  ;;  %v5936_v2 = vpop.xlane.xlu1 %5935  ;;  %v5547_v24 = vmax.f32 %v5385_v63, 0.0  ;;  %v5388_v3 = vadd.f32 %v13509_v17, %v5387_v57 }
 0x767   : > { %v8421_v33 = vpop.eup %8420  ;;  %v6675_v5 = vadd.f32 1.0, %v8419_v12  ;;  %v6165_v47 = vadd.f32 %v13490_v55, %v5936_v2  ;;  %v5550_v8 = vmax.f32 %v5396_v16, 0.0  ;;  %v5684_v61 = vmul.f32 %v13520_v9, %v5549_v31 }
 0x768   : > { %v6676_v28 = vadd.f32 1.0, %v8421_v33  ;;  %v5939_v10 = vpop.xlane.xlu0 %5938  ;;  %v5682_v34 = vmul.f32 %v13520_v9, %v5547_v24  ;;  %v5548_v19 = vmax.f32 %v5388_v3, 0.0 }
 0x769   : > { %8426 = vrcp.f32 %v6675_v5  ;;  %v7526_v20 = vmul.f32 -1.442695, %v6165_v47  ;;  %v6166_v22 = vadd.f32 %v13490_v55, %v5939_v10  ;;  %v5685_v38 = vmul.f32 %v13520_v9, %v5550_v8 }
 0x76a   : > { %8428 = vrcp.f32 %v6676_v28  ;;  %v5942_v48 = vpop.xlane.xlu1 %5941  ;;  %v5683_v58 = vmul.f32 %v13520_v9, %v5548_v19  ;;  %v6042_v30 = vsel %vm3685_vm1, %v5682_v34, 0.0  ;;  %v6048_v42 = vsel %vm3685_vm1, %v5684_v61, 0.0 }
 0x76b   : > { %8430 = vpow2.f32 %v7526_v20  ;;  %v6167_v51 = vadd.f32 %v13490_v55, %v5942_v48  ;;  %v7527_v26 = vmul.f32 -1.442695, %v6166_v22  ;;  %6043 = vadd.xlane.f32.xlu1 %v6042_v30  ;;  %v6051_v6 = vsel %vm3685_vm1, %v5685_v38, 0.0 }
 0x76c   : > { %v5945_v27 = vpop.xlane.xlu0 %5944  ;;  %v6045_v45 = vsel %vm3685_vm1, %v5683_v58, 0.0 }
 0x76d   : > { %v7528_v46 = vmul.f32 -1.442695, %v6167_v51  ;;  %v6168_v29 = vadd.f32 %v13490_v55, %v5945_v27  ;;  %8432 = vpow2.f32 %v7527_v26  ;;  %6046 = vadd.xlane.f32.xlu0 %v6045_v45 }
 0x76e   : > { %v8423_v60 = vpop.eup %8422 }
 0x76f   : > { %7058 = vst.msk [vmem:[%s13130_s30 + $0x260] sm:$0xff] %vm6981_vm3, %v8423_v60  ;;  %8434 = vpow2.f32 %v7528_v46  ;;  %v7529_v40 = vmul.f32 -1.442695, %v6168_v29  ;;  %6049 = vadd.xlane.f32.xlu1 %v6048_v42 }
 0x770   : > { %v8425_v25 = vpop.eup %8424 }
 0x771   : > { %7059 = vst.msk [vmem:[%s13130_s30 + $0x268] sm:$0xff] %vm6981_vm3, %v8425_v25  ;;  %8436 = vpow2.f32 %v7529_v40  ;;  %6052 = vadd.xlane.f32.xlu0 %v6051_v6 }
 0x773   : > { %v8427_v1 = vpop.eup %8426 }
 0x774   : > { %v8429_v4 = vpop.eup %8428  ;;  %7060 = vst.msk [vmem:[%s13130_s30 + $0x270] sm:$0xff] %vm6981_vm3, %v8427_v1 }
 0x775   : > { %v8431_v35 = vpop.eup %8430  ;;  %7061 = vst.msk [vmem:[%s13130_s30 + $0x278] sm:$0xff] %vm6981_vm3, %v8429_v4 }
 0x776   : > { %v6677_v49 = vadd.f32 1.0, %v8431_v35 }
 0x777   : > { %v8433_v54 = vpop.eup %8432 }
 0x778   : > { %8438 = vrcp.f32 %v6677_v49  ;;  %v8003_v32 = vpop.f32.mrb[120].mxu1  ;;  %v6678_v59 = vadd.f32 1.0, %v8433_v54 }
 0x779   : > { %v8435_v11 = vpop.eup %8434  ;;  %v5409_v18 = vadd.f32 %v13509_v17, %v8003_v32  ;;  %v5400_v41 = vpop.f32.mrb[121].mxu1 }
 0x77a   : > { %v5948_v44 = vpop.xlane.xlu1 %5947  ;;  %v6679_v36 = vadd.f32 1.0, %v8435_v11  ;;  %v5401_v53 = vadd.f32 %v13509_v17, %v5400_v41  ;;  %v8004_v56 = vpop.f32.mrb[122].mxu1  ;;  %8440 = vrcp.f32 %v6678_v59 }
 0x77b   : > { %v6169_v39 = vadd.f32 %v13490_v55, %v5948_v44  ;;  %v8437_v62 = vpop.eup %8436  ;;  %v5553_v43 = vmax.f32 %v5409_v18, 0.0  ;;  %v5412_v21 = vadd.f32 %v13509_v17, %v8004_v56  ;;  %v5403_v7 = vpop.f32.mrb[123].mxu1 }
 0x77c   : > { %v5951_v52 = vpop.xlane.xlu0 %5950  ;;  %8442 = vrcp.f32 %v6679_v36  ;;  %v6680_v0 = vadd.f32 1.0, %v8437_v62  ;;  %v5551_v37 = vmax.f32 %v5401_v53, 0.0  ;;  %v5404_v50 = vadd.f32 %v13509_v17, %v5403_v7 }
 0x77d   : > { %v7530_v13 = vmul.f32 -1.442695, %v6169_v39  ;;  %v6170_v23 = vadd.f32 %v13490_v55, %v5951_v52  ;;  %v5554_v12 = vmax.f32 %v5412_v21, 0.0  ;;  %v5688_v57 = vmul.f32 %v13520_v9, %v5553_v43 }
 0x77e   : > { %v5954_v14 = vpop.xlane.xlu1 %5953  ;;  %8444 = vrcp.f32 %v6680_v0  ;;  %v5686_v63 = vmul.f32 %v13520_v9, %v5551_v37  ;;  %v5552_v31 = vmax.f32 %v5404_v50, 0.0 }
 0x77f   : > { %v6171_v15 = vadd.f32 %v13490_v55, %v5954_v14  ;;  %8446 = vpow2.f32 %v7530_v13  ;;  %v7531_v16 = vmul.f32 -1.442695, %v6170_v23  ;;  %v5689_v8 = vmul.f32 %v13520_v9, %v5554_v12 }
 0x780   : > { %v5957_v2 = vpop.xlane.xlu0 %5956  ;;  %v6054_v5 = vsel %vm3685_vm1, %v5686_v63, 0.0  ;;  %v5687_v47 = vmul.f32 %v13520_v9, %v5552_v31  ;;  %v6060_v34 = vsel %vm3685_vm1, %v5688_v57, 0.0 }
 0x781   : > { %v7532_v33 = vmul.f32 -1.442695, %v6171_v15  ;;  %v6172_v24 = vadd.f32 %v13490_v55, %v5957_v2  ;;  %8448 = vpow2.f32 %v7531_v16  ;;  %6055 = vadd.xlane.f32.xlu1 %v6054_v5  ;;  %v6063_v61 = vsel %vm3685_vm1, %v5689_v8, 0.0 }
 0x782   : > { %v8439_v3 = vpop.eup %8438  ;;  %v6057_v10 = vsel %vm3685_vm1, %v5687_v47, 0.0 }
 0x783   : > { %8450 = vpow2.f32 %v7532_v33  ;;  %v7533_v28 = vmul.f32 -1.442695, %v6172_v24  ;;  %7062 = vst.msk [vmem:[%s13130_s30 + $0x280] sm:$0xff] %vm6981_vm3, %v8439_v3  ;;  %6058 = vadd.xlane.f32.xlu0 %v6057_v10 }
 0x784   : > { %v8441_v20 = vpop.eup %8440 }
 0x785   : > { %8452 = vpow2.f32 %v7533_v28  ;;  %6061 = vadd.xlane.f32.xlu1 %v6060_v34  ;;  %7063 = vst.msk [vmem:[%s13130_s30 + $0x288] sm:$0xff] %vm6981_vm3, %v8441_v20 }
 0x786   : > { %v8443_v19 = vpop.eup %8442 }
 0x787   : > { %7064 = vst.msk [vmem:[%s13130_s30 + $0x290] sm:$0xff] %vm6981_vm3, %v8443_v19  ;;  %6064 = vadd.xlane.f32.xlu0 %v6063_v61 }
 0x788   : > { %v8445_v22 = vpop.eup %8444 }
 0x789   : > { %v8447_v48 = vpop.eup %8446  ;;  %7065 = vst.msk [vmem:[%s13130_s30 + $0x298] sm:$0xff] %vm6981_vm3, %v8445_v22 }
 0x78a   : > { %v6681_v58 = vadd.f32 1.0, %v8447_v48 }
 0x78b   : > { %v8449_v51 = vpop.eup %8448 }
 0x78c   : > { %8454 = vrcp.f32 %v6681_v58  ;;  %v6682_v26 = vadd.f32 1.0, %v8449_v51 }
 0x78d   : > { %v8451_v30 = vpop.eup %8450 }
 0x78e   : > { %v6683_v27 = vadd.f32 1.0, %v8451_v30  ;;  %8456 = vrcp.f32 %v6682_v26 }
 0x78f   : > { %v8453_v38 = vpop.eup %8452  ;;  %v5960_v29 = vpop.xlane.xlu1 %5959 }
 0x790   : > { %8458 = vrcp.f32 %v6683_v27  ;;  %v6684_v46 = vadd.f32 1.0, %v8453_v38  ;;  %v6173_v45 = vadd.f32 %v13490_v55, %v5960_v29  ;;  %v8007_v60 = vpop.f32.mrb[124].mxu1 }
 0x791   : > { %v5425_v40 = vadd.f32 %v13509_v17, %v8007_v60  ;;  %v5416_v42 = vpop.f32.mrb[125].mxu1  ;;  %v5963_v25 = vpop.xlane.xlu0 %5962 }
 0x792   : > { %8460 = vrcp.f32 %v6684_v46  ;;  %v7534_v6 = vmul.f32 -1.442695, %v6173_v45  ;;  %v5417_v1 = vadd.f32 %v13509_v17, %v5416_v42  ;;  %v6174_v4 = vadd.f32 %v13490_v55, %v5963_v25  ;;  %v8008_v35 = vpop.f32.mrb[126].mxu1 }
 0x793   : > { %v5557_v49 = vmax.f32 %v5425_v40, 0.0  ;;  %v5428_v54 = vadd.f32 %v13509_v17, %v8008_v35  ;;  %v5966_v32 = vpop.xlane.xlu1 %5965  ;;  %v5419_v11 = vpop.f32.mrb[127].mxu1 }
 0x794   : > { %8462 = vpow2.f32 %v7534_v6  ;;  %v5555_v59 = vmax.f32 %v5417_v1, 0.0  ;;  %v7535_v18 = vmul.f32 -1.442695, %v6174_v4  ;;  %v6175_v41 = vadd.f32 %v13490_v55, %v5966_v32 }
 0x795   : > { %v5420_v44 = vadd.f32 %v13509_v17, %v5419_v11  ;;  %v5969_v36 = vpop.xlane.xlu0 %5968  ;;  %v5558_v43 = vmax.f32 %v5428_v54, 0.0  ;;  %v5692_v52 = vmul.f32 %v13520_v9, %v5557_v49 }
 0x796   : > { %v8455_v53 = vpop.eup %8454  ;;  %v5690_v56 = vmul.f32 %v13520_v9, %v5555_v59  ;;  %8464 = vpow2.f32 %v7535_v18  ;;  %v7536_v39 = vmul.f32 -1.442695, %v6175_v41  ;;  %v6176_v62 = vadd.f32 %v13490_v55, %v5969_v36  ;;  %v13702_v36 = vld [vmem:[#allocation2] ss:$0 sm:$0xff] }
 0x797   : > { %7066 = vst.msk [vmem:[%s13130_s30 + $0x2a0] sm:$0xff] %vm6981_vm3, %v8455_v53  ;;  %v5556_v21 = vmax.f32 %v5420_v44, 0.0  ;;  %v5693_v23 = vmul.f32 %v13520_v9, %v5558_v43  ;;  %v6072_v63 = vsel %vm3685_vm1, %v5692_v52, 0.0 }
 0x798   : > { %v8457_v7 = vpop.eup %8456  ;;  %8466 = vpow2.f32 %v7536_v39  ;;  %v7537_v17 = vmul.f32 -1.442695, %v6176_v62  ;;  %v6066_v0 = vsel %vm3685_vm1, %v5690_v56, 0.0 }
 0x799   : > { %7067 = vst.msk [vmem:[%s13130_s30 + $0x2a8] sm:$0xff] %vm6981_vm3, %v8457_v7  ;;  %v5691_v13 = vmul.f32 %v13520_v9, %v5556_v21  ;;  %6067 = vadd.xlane.f32.xlu1 %v6066_v0  ;;  %v6075_v31 = vsel %vm3685_vm1, %v5693_v23, 0.0 }
 0x79a   : > { %v8459_v37 = vpop.eup %8458  ;;  %8468 = vpow2.f32 %v7537_v17 }
 0x79b   : > { %7068 = vst.msk [vmem:[%s13130_s30 + $0x2b0] sm:$0xff] %vm6981_vm3, %v8459_v37  ;;  %v6069_v14 = vsel %vm3685_vm1, %v5691_v13, 0.0 }
 0x79c   : > { %v8461_v50 = vpop.eup %8460  ;;  %6070 = vadd.xlane.f32.xlu0 %v6069_v14 }
 0x79d   : > { %7069 = vst.msk [vmem:[%s13130_s30 + $0x2b8] sm:$0xff] %vm6981_vm3, %v8461_v50  ;;  %6073 = vadd.xlane.f32.xlu1 %v6072_v63 }
 0x79e   : > { %v8463_v15 = vpop.eup %8462 }
 0x79f   : > { %v6685_v12 = vadd.f32 1.0, %v8463_v15 }
 0x7a0   : > { %v8465_v16 = vpop.eup %8464  ;;  %6076 = vadd.xlane.f32.xlu0 %v6075_v31 }
 0x7a1   : > { %8470 = vrcp.f32 %v6685_v12  ;;  %v6686_v2 = vadd.f32 1.0, %v8465_v16 }
 0x7a2   : > { %v8467_v57 = vpop.eup %8466 }
 0x7a3   : > { %8472 = vrcp.f32 %v6686_v2  ;;  %v6687_v9 = vadd.f32 1.0, %v8467_v57 }
 0x7a4   : > { %v8469_v33 = vpop.eup %8468 }
 0x7a5   : > { %8474 = vrcp.f32 %v6687_v9  ;;  %v6688_v5 = vadd.f32 1.0, %v8469_v33 }
 0x7a7   : > { %8476 = vrcp.f32 %v6688_v5 }
 0x7ab   : > { %v8471_v24 = vpop.eup %8470  ;;  %v5972_v47 = vpop.xlane.xlu1 %5971 }
 0x7ac   : > { %7070 = vst.msk [vmem:[%s13130_s30 + $0x2c0] sm:$0xff] %vm6981_vm3, %v8471_v24  ;;  %v6177_v28 = vadd.f32 %v13490_v55, %v5972_v47 }
 0x7ad   : > { %v8473_v3 = vpop.eup %8472  ;;  %v5975_v8 = vpop.xlane.xlu0 %5974 }
 0x7ae   : > { %7071 = vst.msk [vmem:[%s13130_s30 + $0x2c8] sm:$0xff] %vm6981_vm3, %v8473_v3  ;;  %v7538_v34 = vmul.f32 -1.442695, %v6177_v28  ;;  %v6178_v20 = vadd.f32 %v13490_v55, %v5975_v8 }
 0x7af   : > { %v8475_v10 = vpop.eup %8474  ;;  %v5978_v19 = vpop.xlane.xlu1 %5977 }
 0x7b0   : > { %7072 = vst.msk [vmem:[%s13130_s30 + $0x2d0] sm:$0xff] %vm6981_vm3, %v8475_v10  ;;  %8478 = vpow2.f32 %v7538_v34  ;;  %v7539_v22 = vmul.f32 -1.442695, %v6178_v20  ;;  %v6179_v48 = vadd.f32 %v13490_v55, %v5978_v19 }
 0x7b1   : > { %v8477_v61 = vpop.eup %8476  ;;  %v5981_v58 = vpop.xlane.xlu0 %5980 }
 0x7b2   : > { %7073 = vst.msk [vmem:[%s13130_s30 + $0x2d8] sm:$0xff] %vm6981_vm3, %v8477_v61  ;;  %8480 = vpow2.f32 %v7539_v22  ;;  %v7540_v51 = vmul.f32 -1.442695, %v6179_v48  ;;  %v6180_v30 = vadd.f32 %v13490_v55, %v5981_v58 }
 0x7b4   : > { %8482 = vpow2.f32 %v7540_v51  ;;  %v7541_v26 = vmul.f32 -1.442695, %v6180_v30 }
 0x7b6   : > { %8484 = vpow2.f32 %v7541_v26 }
 0x7b9   : > { %v5984_v27 = vpop.xlane.xlu1 %5983 }
 0x7ba   : > { %v6181_v38 = vadd.f32 %v13490_v55, %v5984_v27  ;;  %v8479_v29 = vpop.eup %8478 }
 0x7bb   : > { %v5987_v46 = vpop.xlane.xlu0 %5986  ;;  %v6689_v40 = vadd.f32 1.0, %v8479_v29 }
 0x7bc   : > { %v7542_v45 = vmul.f32 -1.442695, %v6181_v38  ;;  %v6182_v60 = vadd.f32 %v13490_v55, %v5987_v46  ;;  %v8481_v25 = vpop.eup %8480 }
 0x7bd   : > { %v5990_v42 = vpop.xlane.xlu1 %5989  ;;  %v6690_v4 = vadd.f32 1.0, %v8481_v25 }
 0x7be   : > { %8486 = vpow2.f32 %v7542_v45  ;;  %v7543_v6 = vmul.f32 -1.442695, %v6182_v60  ;;  %v6183_v1 = vadd.f32 %v13490_v55, %v5990_v42  ;;  %v8483_v49 = vpop.eup %8482 }
 0x7bf   : > { %8488 = vrcp.f32 %v6689_v40  ;;  %v5993_v35 = vpop.xlane.xlu0 %5992  ;;  %v6691_v11 = vadd.f32 1.0, %v8483_v49 }
 0x7c0   : > { %8490 = vpow2.f32 %v7543_v6  ;;  %v7544_v54 = vmul.f32 -1.442695, %v6183_v1  ;;  %v6184_v32 = vadd.f32 %v13490_v55, %v5993_v35  ;;  %v8485_v59 = vpop.eup %8484 }
 0x7c1   : > { %8492 = vrcp.f32 %v6690_v4  ;;  %v6692_v41 = vadd.f32 1.0, %v8485_v59 }
 0x7c2   : > { %8494 = vpow2.f32 %v7544_v54  ;;  %v7545_v18 = vmul.f32 -1.442695, %v6184_v32 }
 0x7c3   : > { %8496 = vrcp.f32 %v6691_v11 }
 0x7c4   : > { %8498 = vpow2.f32 %v7545_v18  ;;  %v5996_v44 = vpop.xlane.xlu1 %5995 }
 0x7c5   : > { %8500 = vrcp.f32 %v6692_v41  ;;  %v6185_v53 = vadd.f32 %v13702_v36, %v5996_v44 }
 0x7c6   : > { %v5999_v56 = vpop.xlane.xlu0 %5998 }
 0x7c7   : > { %v7546_v62 = vmul.f32 -1.442695, %v6185_v53  ;;  %v6186_v55 = vadd.f32 %v13702_v36, %v5999_v56 }
 0x7c8   : > { %v8487_v39 = vpop.eup %8486  ;;  %v6002_v7 = vpop.xlane.xlu1 %6001 }
 0x7c9   : > { %v8489_v43 = vpop.eup %8488  ;;  %v6693_v21 = vadd.f32 1.0, %v8487_v39  ;;  %8502 = vpow2.f32 %v7546_v62  ;;  %v7547_v17 = vmul.f32 -1.442695, %v6186_v55  ;;  %v6187_v0 = vadd.f32 %v13702_v36, %v6002_v7 }
 0x7ca   : > { %v8491_v52 = vpop.eup %8490  ;;  %7074 = vst.msk [vmem:[%s13130_s30 + $0x2e0] sm:$0xff] %vm6981_vm3, %v8489_v43  ;;  %v6005_v50 = vpop.xlane.xlu0 %6004 }
 0x7cb   : > { %v8493_v37 = vpop.eup %8492  ;;  %8504 = vrcp.f32 %v6693_v21  ;;  %v6694_v13 = vadd.f32 1.0, %v8491_v52  ;;  %v7548_v14 = vmul.f32 -1.442695, %v6187_v0  ;;  %v6188_v63 = vadd.f32 %v13702_v36, %v6005_v50 }
 0x7cc   : > { %v8495_v23 = vpop.eup %8494  ;;  %7075 = vst.msk [vmem:[%s13130_s30 + $0x2e8] sm:$0xff] %vm6981_vm3, %v8493_v37  ;;  %8506 = vpow2.f32 %v7547_v17 }
 0x7cd   : > { %v8497_v15 = vpop.eup %8496  ;;  %8508 = vrcp.f32 %v6694_v13  ;;  %v6695_v12 = vadd.f32 1.0, %v8495_v23  ;;  %v7549_v16 = vmul.f32 -1.442695, %v6188_v63 }
 0x7ce   : > { %v8499_v31 = vpop.eup %8498  ;;  %7076 = vst.msk [vmem:[%s13130_s30 + $0x2f0] sm:$0xff] %vm6981_vm3, %v8497_v15  ;;  %8510 = vpow2.f32 %v7548_v14 }
 0x7cf   : > { %v8501_v2 = vpop.eup %8500  ;;  %8512 = vrcp.f32 %v6695_v12  ;;  %v6696_v57 = vadd.f32 1.0, %v8499_v31  ;;  %v6008_v9 = vpop.xlane.xlu1 %6007 }
 0x7d0   : > { %7077 = vst.msk [vmem:[%s13130_s30 + $0x2f8] sm:$0xff] %vm6981_vm3, %v8501_v2  ;;  %8514 = vpow2.f32 %v7549_v16  ;;  %v6189_v33 = vadd.f32 %v13702_v36, %v6008_v9 }
 0x7d1   : > { %8516 = vrcp.f32 %v6696_v57  ;;  %v6011_v5 = vpop.xlane.xlu0 %6010 }
 0x7d2   : > { %v7550_v24 = vmul.f32 -1.442695, %v6189_v33  ;;  %v6190_v47 = vadd.f32 %v13702_v36, %v6011_v5 }
 0x7d3   : > { %v8503_v3 = vpop.eup %8502  ;;  %v6014_v28 = vpop.xlane.xlu1 %6013 }
 0x7d4   : > { %v6697_v10 = vadd.f32 1.0, %v8503_v3  ;;  %8518 = vpow2.f32 %v7550_v24  ;;  %v7551_v34 = vmul.f32 -1.442695, %v6190_v47  ;;  %v6191_v20 = vadd.f32 %v13702_v36, %v6014_v28 }
 0x7d5   : > { %v8505_v8 = vpop.eup %8504  ;;  %v6017_v61 = vpop.xlane.xlu0 %6016 }
 0x7d6   : > { %v8507_v19 = vpop.eup %8506  ;;  %7078 = vst.msk [vmem:[%s13130_s30 + $0x300] sm:$0xff] %vm6981_vm3, %v8505_v8  ;;  %8520 = vrcp.f32 %v6697_v10  ;;  %v7552_v58 = vmul.f32 -1.442695, %v6191_v20  ;;  %v6192_v51 = vadd.f32 %v13702_v36, %v6017_v61 }
 0x7d7   : > { %v8509_v22 = vpop.eup %8508  ;;  %v6698_v48 = vadd.f32 1.0, %v8507_v19  ;;  %8522 = vpow2.f32 %v7551_v34 }
 0x7d8   : > { %v8511_v30 = vpop.eup %8510  ;;  %7079 = vst.msk [vmem:[%s13130_s30 + $0x308] sm:$0xff] %vm6981_vm3, %v8509_v22  ;;  %v7553_v38 = vmul.f32 -1.442695, %v6192_v51 }
 0x7d9   : > { %v8513_v26 = vpop.eup %8512  ;;  %8524 = vrcp.f32 %v6698_v48  ;;  %v6699_v27 = vadd.f32 1.0, %v8511_v30 }
 0x7da   : > { %v8515_v46 = vpop.eup %8514  ;;  %7080 = vst.msk [vmem:[%s13130_s30 + $0x310] sm:$0xff] %vm6981_vm3, %v8513_v26  ;;  %8526 = vpow2.f32 %v7552_v58 }
 0x7db   : > { %v8517_v29 = vpop.eup %8516  ;;  %8528 = vrcp.f32 %v6699_v27  ;;  %v6700_v45 = vadd.f32 1.0, %v8515_v46  ;;  %v6020_v60 = vpop.xlane.xlu1 %6019 }
 0x7dc   : > { %7081 = vst.msk [vmem:[%s13130_s30 + $0x318] sm:$0xff] %vm6981_vm3, %v8517_v29  ;;  %8530 = vpow2.f32 %v7553_v38  ;;  %v6193_v40 = vadd.f32 %v13702_v36, %v6020_v60 }
 0x7dd   : > { %8532 = vrcp.f32 %v6700_v45  ;;  %v6023_v42 = vpop.xlane.xlu0 %6022 }
 0x7de   : > { %v8519_v25 = vpop.eup %8518  ;;  %v7554_v6 = vmul.f32 -1.442695, %v6193_v40  ;;  %v6194_v1 = vadd.f32 %v13702_v36, %v6023_v42 }
 0x7df   : > { %v6701_v4 = vadd.f32 1.0, %v8519_v25  ;;  %v6026_v35 = vpop.xlane.xlu1 %6025 }
 0x7e0   : > { %v8521_v49 = vpop.eup %8520  ;;  %8534 = vpow2.f32 %v7554_v6  ;;  %v7555_v54 = vmul.f32 -1.442695, %v6194_v1  ;;  %v6195_v32 = vadd.f32 %v13702_v36, %v6026_v35 }
 0x7e1   : > { %v8523_v11 = vpop.eup %8522  ;;  %7082 = vst.msk [vmem:[%s13130_s30 + $0x320] sm:$0xff] %vm6981_vm3, %v8521_v49  ;;  %8536 = vrcp.f32 %v6701_v4  ;;  %v6029_v59 = vpop.xlane.xlu0 %6028 }
 0x7e2   : > { %v6702_v41 = vadd.f32 1.0, %v8523_v11  ;;  %8538 = vpow2.f32 %v7555_v54  ;;  %v7556_v44 = vmul.f32 -1.442695, %v6195_v32  ;;  %v6196_v53 = vadd.f32 %v13702_v36, %v6029_v59 }
 0x7e3   : > { %v8525_v18 = vpop.eup %8524 }
 0x7e4   : > { %v8527_v56 = vpop.eup %8526  ;;  %7083 = vst.msk [vmem:[%s13130_s30 + $0x328] sm:$0xff] %vm6981_vm3, %v8525_v18  ;;  %8540 = vrcp.f32 %v6702_v41  ;;  %v7557_v55 = vmul.f32 -1.442695, %v6196_v53 }
 0x7e5   : > { %v8529_v39 = vpop.eup %8528  ;;  %v6703_v62 = vadd.f32 1.0, %v8527_v56  ;;  %8542 = vpow2.f32 %v7556_v44 }
 0x7e6   : > { %v8531_v43 = vpop.eup %8530  ;;  %7084 = vst.msk [vmem:[%s13130_s30 + $0x330] sm:$0xff] %vm6981_vm3, %v8529_v39 }
 0x7e7   : > { %v8533_v21 = vpop.eup %8532  ;;  %8544 = vrcp.f32 %v6703_v62  ;;  %v6704_v7 = vadd.f32 1.0, %v8531_v43  ;;  %v6032_v52 = vpop.xlane.xlu1 %6031 }
 0x7e8   : > { %7085 = vst.msk [vmem:[%s13130_s30 + $0x338] sm:$0xff] %vm6981_vm3, %v8533_v21  ;;  %8546 = vpow2.f32 %v7557_v55  ;;  %v6197_v17 = vadd.f32 %v13702_v36, %v6032_v52 }
 0x7e9   : > { %8548 = vrcp.f32 %v6704_v7  ;;  %v6035_v0 = vpop.xlane.xlu0 %6034 }
 0x7ea   : > { %v8535_v37 = vpop.eup %8534  ;;  %v7558_v13 = vmul.f32 -1.442695, %v6197_v17  ;;  %v6198_v50 = vadd.f32 %v13702_v36, %v6035_v0 }
 0x7eb   : > { %v8537_v23 = vpop.eup %8536  ;;  %v6705_v14 = vadd.f32 1.0, %v8535_v37  ;;  %v6038_v63 = vpop.xlane.xlu1 %6037 }
 0x7ec   : > { %v8539_v15 = vpop.eup %8538  ;;  %7086 = vst.msk [vmem:[%s13130_s30 + $0x340] sm:$0xff] %vm6981_vm3, %v8537_v23  ;;  %8550 = vpow2.f32 %v7558_v13  ;;  %v7559_v12 = vmul.f32 -1.442695, %v6198_v50  ;;  %v6199_v31 = vadd.f32 %v13702_v36, %v6038_v63 }
 0x7ed   : > { %8552 = vrcp.f32 %v6705_v14  ;;  %v6706_v16 = vadd.f32 1.0, %v8539_v15  ;;  %v6041_v2 = vpop.xlane.xlu0 %6040 }
 0x7ee   : > { %v8541_v57 = vpop.eup %8540  ;;  %8554 = vpow2.f32 %v7559_v12  ;;  %v7560_v9 = vmul.f32 -1.442695, %v6199_v31  ;;  %v6200_v33 = vadd.f32 %v13702_v36, %v6041_v2 }
 0x7ef   : > { %v8543_v5 = vpop.eup %8542  ;;  %7087 = vst.msk [vmem:[%s13130_s30 + $0x348] sm:$0xff] %vm6981_vm3, %v8541_v57  ;;  %8556 = vrcp.f32 %v6706_v16 }
 0x7f0   : > { %v6707_v47 = vadd.f32 1.0, %v8543_v5  ;;  %8558 = vpow2.f32 %v7560_v9  ;;  %v7561_v3 = vmul.f32 -1.442695, %v6200_v33 }
 0x7f1   : > { %v8545_v24 = vpop.eup %8544 }
 0x7f2   : > { %v8547_v28 = vpop.eup %8546  ;;  %7088 = vst.msk [vmem:[%s13130_s30 + $0x350] sm:$0xff] %vm6981_vm3, %v8545_v24  ;;  %8560 = vrcp.f32 %v6707_v47 }
 0x7f3   : > { %v8549_v8 = vpop.eup %8548  ;;  %v6708_v10 = vadd.f32 1.0, %v8547_v28  ;;  %8562 = vpow2.f32 %v7561_v3 }
 0x7f4   : > { %7089 = vst.msk [vmem:[%s13130_s30 + $0x358] sm:$0xff] %vm6981_vm3, %v8549_v8 }
 0x7f5   : > { %8564 = vrcp.f32 %v6708_v10 }
 0x7f6   : > { %v8551_v34 = vpop.eup %8550 }
 0x7f7   : > { %v8553_v20 = vpop.eup %8552  ;;  %v6709_v19 = vadd.f32 1.0, %v8551_v34 }
 0x7f8   : > { %v8555_v61 = vpop.eup %8554  ;;  %7090 = vst.msk [vmem:[%s13130_s30 + $0x360] sm:$0xff] %vm6981_vm3, %v8553_v20  ;;  %v6044_v58 = vpop.xlane.xlu1 %6043 }
 0x7f9   : > { %v8557_v22 = vpop.eup %8556  ;;  %8566 = vrcp.f32 %v6709_v19  ;;  %v6710_v48 = vadd.f32 1.0, %v8555_v61  ;;  %v6201_v30 = vadd.f32 %v13702_v36, %v6044_v58 }
 0x7fa   : > { %v8559_v51 = vpop.eup %8558  ;;  %7091 = vst.msk [vmem:[%s13130_s30 + $0x368] sm:$0xff] %vm6981_vm3, %v8557_v22  ;;  %v6047_v27 = vpop.xlane.xlu0 %6046 }
 0x7fb   : > { %8568 = vrcp.f32 %v6710_v48  ;;  %v6711_v26 = vadd.f32 1.0, %v8559_v51  ;;  %v7562_v46 = vmul.f32 -1.442695, %v6201_v30  ;;  %v6202_v29 = vadd.f32 %v13702_v36, %v6047_v27 }
 0x7fc   : > { %v8561_v38 = vpop.eup %8560  ;;  %v6050_v60 = vpop.xlane.xlu1 %6049 }
 0x7fd   : > { %v8563_v45 = vpop.eup %8562  ;;  %7092 = vst.msk [vmem:[%s13130_s30 + $0x370] sm:$0xff] %vm6981_vm3, %v8561_v38  ;;  %8570 = vrcp.f32 %v6711_v26  ;;  %v7563_v25 = vmul.f32 -1.442695, %v6202_v29  ;;  %v6203_v6 = vadd.f32 %v13702_v36, %v6050_v60 }
 0x7fe   : > { %v6712_v42 = vadd.f32 1.0, %v8563_v45  ;;  %8572 = vpow2.f32 %v7562_v46  ;;  %v6053_v1 = vpop.xlane.xlu0 %6052 }
 0x7ff   : > { %v8565_v40 = vpop.eup %8564  ;;  %v7564_v4 = vmul.f32 -1.442695, %v6203_v6  ;;  %v6204_v35 = vadd.f32 %v13702_v36, %v6053_v1 }
 0x800   : > { %7093 = vst.msk [vmem:[%s13130_s30 + $0x378] sm:$0xff] %vm6981_vm3, %v8565_v40  ;;  %8574 = vrcp.f32 %v6712_v42 }
 0x801   : > { %8576 = vpow2.f32 %v7563_v25  ;;  %v7565_v49 = vmul.f32 -1.442695, %v6204_v35 }
 0x802   : > { %8578 = vpow2.f32 %v7564_v4 }
 0x803   : > { %v8567_v54 = vpop.eup %8566  ;;  %8580 = vpow2.f32 %v7565_v49 }
 0x804   : > { %7094 = vst.msk [vmem:[%s13130_s30 + $0x380] sm:$0xff] %vm6981_vm3, %v8567_v54 }
 0x805   : > { %v8569_v32 = vpop.eup %8568 }
 0x806   : > { %7095 = vst.msk [vmem:[%s13130_s30 + $0x388] sm:$0xff] %vm6981_vm3, %v8569_v32 }
 0x807   : > { %v8571_v11 = vpop.eup %8570 }
 0x808   : > { %v8573_v59 = vpop.eup %8572  ;;  %7096 = vst.msk [vmem:[%s13130_s30 + $0x390] sm:$0xff] %vm6981_vm3, %v8571_v11 }
 0x809   : > { %v6713_v18 = vadd.f32 1.0, %v8573_v59 }
 0x80a   : > { %v8575_v41 = vpop.eup %8574 }
 0x80b   : > { %v8577_v44 = vpop.eup %8576  ;;  %7097 = vst.msk [vmem:[%s13130_s30 + $0x398] sm:$0xff] %vm6981_vm3, %v8575_v41  ;;  %8582 = vrcp.f32 %v6713_v18 }
 0x80c   : > { %v8579_v53 = vpop.eup %8578  ;;  %v6714_v56 = vadd.f32 1.0, %v8577_v44 }
 0x80d   : > { %v6715_v39 = vadd.f32 1.0, %v8579_v53  ;;  %v8581_v62 = vpop.eup %8580 }
 0x80e   : > { %8584 = vrcp.f32 %v6714_v56  ;;  %v6056_v55 = vpop.xlane.xlu1 %6055  ;;  %v6716_v43 = vadd.f32 1.0, %v8581_v62 }
 0x80f   : > { %8586 = vrcp.f32 %v6715_v39  ;;  %v6205_v21 = vadd.f32 %v13702_v36, %v6056_v55 }
 0x810   : > { %8588 = vrcp.f32 %v6716_v43  ;;  %v6059_v52 = vpop.xlane.xlu0 %6058 }
 0x811   : > { %v7566_v7 = vmul.f32 -1.442695, %v6205_v21  ;;  %v6206_v17 = vadd.f32 %v13702_v36, %v6059_v52 }
 0x812   : > { %v6062_v0 = vpop.xlane.xlu1 %6061 }
 0x813   : > { %8590 = vpow2.f32 %v7566_v7  ;;  %v6207_v37 = vadd.f32 %v13702_v36, %v6062_v0  ;;  %v7567_v13 = vmul.f32 -1.442695, %v6206_v17 }
 0x814   : > { %v6065_v14 = vpop.xlane.xlu0 %6064 }
 0x815   : > { %v8583_v50 = vpop.eup %8582  ;;  %v7568_v23 = vmul.f32 -1.442695, %v6207_v37  ;;  %8592 = vpow2.f32 %v7567_v13  ;;  %v6208_v63 = vadd.f32 %v13702_v36, %v6065_v14 }
 0x816   : > { %7098 = vst.msk [vmem:[%s13130_s30 + $0x3a0] sm:$0xff] %vm6981_vm3, %v8583_v50 }
 0x817   : > { %8594 = vpow2.f32 %v7568_v23  ;;  %v7569_v12 = vmul.f32 -1.442695, %v6208_v63 }
 0x818   : > { %v8585_v15 = vpop.eup %8584 }
 0x819   : > { %v8587_v31 = vpop.eup %8586  ;;  %7099 = vst.msk [vmem:[%s13130_s30 + $0x3a8] sm:$0xff] %vm6981_vm3, %v8585_v15  ;;  %8596 = vpow2.f32 %v7569_v12 }
 0x81a   : > { %7100 = vst.msk [vmem:[%s13130_s30 + $0x3b0] sm:$0xff] %vm6981_vm3, %v8587_v31  ;;  %v8589_v16 = vpop.eup %8588 }
 0x81b   : > { %7101 = vst.msk [vmem:[%s13130_s30 + $0x3b8] sm:$0xff] %vm6981_vm3, %v8589_v16 }
 0x81d   : > { %v8591_v2 = vpop.eup %8590 }
 0x81e   : > { %v6717_v57 = vadd.f32 1.0, %v8591_v2 }
 0x81f   : > { %v8593_v9 = vpop.eup %8592 }
 0x820   : > { %8598 = vrcp.f32 %v6717_v57  ;;  %v6718_v5 = vadd.f32 1.0, %v8593_v9 }
 0x821   : > { %v8595_v33 = vpop.eup %8594 }
 0x822   : > { %v6719_v24 = vadd.f32 1.0, %v8595_v33  ;;  %8600 = vrcp.f32 %v6718_v5 }
 0x823   : > { %v8597_v47 = vpop.eup %8596 }
 0x824   : > { %8602 = vrcp.f32 %v6719_v24  ;;  %v6720_v3 = vadd.f32 1.0, %v8597_v47 }
 0x826   : > { %v6068_v28 = vpop.xlane.xlu1 %6067  ;;  %8604 = vrcp.f32 %v6720_v3 }
 0x827   : > { %v6209_v8 = vadd.f32 %v13702_v36, %v6068_v28 }
 0x829   : > { %v7570_v10 = vmul.f32 -1.442695, %v6209_v8  ;;  %v6071_v34 = vpop.xlane.xlu0 %6070 }
 0x82a   : > { %v8599_v20 = vpop.eup %8598  ;;  %v6210_v19 = vadd.f32 %v13702_v36, %v6071_v34  ;;  %v6074_v61 = vpop.xlane.xlu1 %6073 }
 0x82b   : > { %7102 = vst.msk [vmem:[%s13130_s30 + $0x3c0] sm:$0xff] %vm6981_vm3, %v8599_v20  ;;  %8606 = vpow2.f32 %v7570_v10  ;;  %v6211_v22 = vadd.f32 %v13702_v36, %v6074_v61 }
 0x82c   : > { %v7571_v48 = vmul.f32 -1.442695, %v6210_v19  ;;  %v8601_v58 = vpop.eup %8600 }
 0x82d   : > { %v7572_v51 = vmul.f32 -1.442695, %v6211_v22  ;;  %v6077_v30 = vpop.xlane.xlu0 %6076  ;;  %7103 = vst.msk [vmem:[%s13130_s30 + $0x3c8] sm:$0xff] %vm6981_vm3, %v8601_v58 }
 0x82e   : > { %v8603_v26 = vpop.eup %8602  ;;  %8608 = vpow2.f32 %v7571_v48  ;;  %v6212_v27 = vadd.f32 %v13702_v36, %v6077_v30 }
 0x82f   : > { %7104 = vst.msk [vmem:[%s13130_s30 + $0x3d0] sm:$0xff] %vm6981_vm3, %v8603_v26  ;;  %8610 = vpow2.f32 %v7572_v51 }
 0x830   : > { %v7573_v38 = vmul.f32 -1.442695, %v6212_v27  ;;  %v8605_v46 = vpop.eup %8604 }
 0x831   : > { %7105 = vst.msk [vmem:[%s13130_s30 + $0x3d8] sm:$0xff] %vm6981_vm3, %v8605_v46 }
 0x832   : > { %8612 = vpow2.f32 %v7573_v38 }
 0x835   : > { %v8607_v29 = vpop.eup %8606 }
 0x836   : > { %v6721_v45 = vadd.f32 1.0, %v8607_v29 }
 0x838   : > { %v8609_v60 = vpop.eup %8608  ;;  %8614 = vrcp.f32 %v6721_v45 }
 0x839   : > { %v8611_v40 = vpop.eup %8610  ;;  %v6722_v42 = vadd.f32 1.0, %v8609_v60 }
 0x83a   : > { %v6723_v25 = vadd.f32 1.0, %v8611_v40 }
 0x83b   : > { %8616 = vrcp.f32 %v6722_v42 }
 0x83c   : > { %v8613_v36 = vpop.eup %8612  ;;  %8618 = vrcp.f32 %v6723_v25 }
 0x83d   : > { %v6724_v6 = vadd.f32 1.0, %v8613_v36 }
 0x83f   : > { %8620 = vrcp.f32 %v6724_v6 }
 0x842   : > { %v8615_v1 = vpop.eup %8614 }
 0x843   : > { %7106 = vst.msk [vmem:[%s13130_s30 + $0x3e0] sm:$0xff] %vm6981_vm3, %v8615_v1 }
 0x845   : > { %v8617_v4 = vpop.eup %8616 }
 0x846   : > { %v8619_v35 = vpop.eup %8618  ;;  %7107 = vst.msk [vmem:[%s13130_s30 + $0x3e8] sm:$0xff] %vm6981_vm3, %v8617_v4 }
 0x847   : > { %7108 = vst.msk [vmem:[%s13130_s30 + $0x3f0] sm:$0xff] %vm6981_vm3, %v8619_v35 }
 0x849   : > { %v8621_v49 = vpop.eup %8620 }
 0x84a   : > { %7109 = vst.msk [vmem:[%s13130_s30 + $0x3f8] sm:$0xff] %vm6981_vm3, %v8621_v49 }
 0x84b PF: > { %p21_p11 = scmp.ge.s32.totalorder %s9147_s22, 5   ;;  %s14593_s26 = smov %s8938_s27 }
 0x84c   : > { %s14594_s27 = smov %s8942_s28  ;;  %s14595_s28 = smov %s9158_s19 }
 0x84d   : > { %s14596_s29 = smov %s9147_s22  ;;  %23 = sbr.rel (!%p21_p11) target bundleno = 8 (0x8), region = 104 }
 0x854   :  { %7132 = vsyncpa [#allocation4], 1 }
 0x855   :  { %7134 = vsyncpa [#allocation4 + $0x1], 1 }
 0x856   :  { %7135 = vsyncpa [#allocation6], 1 }
 0x857   :  { %7136 = vsyncpa [#allocation9], 1 }

</bundles_post_ra>
